<compile_context>
chip_gen: v7x
topology: tpu7x:2x2x1
jax: 0.10.0
libtpu: 0.0.40
codegen_flags: <defaults>
</compile_context>

<pallas_src>
import functools

import jax
import jax.numpy as jnp
from jax.experimental import pallas as pl
from jax.experimental.pallas import tpu as pltpu

_VMEM_LIMIT = 32 * 1024 * 1024
_BN_EPS = 1e-5


def _round_up(x, m):
    return ((x + m - 1) // m) * m


def _choose_tm(m):
    # Rows per M tile: multiple of 8 sublanes; 512 keeps (2 bufs x patch tile +
    # resident weight + output tile) a few MiB — safe for v7x's smaller VMEM.
    return min(512, _round_up(m, 8))


def _choose_tn(m):
    # Lane tile for the transposed final layer: multiple of 128 lanes.
    return min(1024, _round_up(m, 128))


# ----------------------------- Pallas kernels ------------------------------ #

def _mm_bn_relu_kernel(p_ref, w_ref, g_ref, b_ref, o_ref, sum_ref, sq_ref, *,
                       m_real, eps):
    """grid = (phase, m-tile).  Phase 0: accumulate per-channel sum / sumsq of
    Y = P @ W.  Phase 1: recompute the tile matmul, normalize with the global
    batch statistics, apply gamma/beta + ReLU."""
    ph = pl.program_id(0)
    mi = pl.program_id(1)

    # bf16 x bf16 operands, f32 accumulation on the MXU.
    y = jnp.dot(p_ref[...], w_ref[...], preferred_element_type=jnp.float32)

    @pl.when(jnp.logical_and(ph == 0, mi == 0))
    def _init():
        sum_ref[...] = jnp.zeros_like(sum_ref)
        sq_ref[...] = jnp.zeros_like(sq_ref)

    @pl.when(ph == 0)
    def _stats():
        sum_ref[...] += jnp.sum(y, axis=0, keepdims=True)
        sq_ref[...] += jnp.sum(y * y, axis=0, keepdims=True)
        # Placeholder write (fully overwritten in phase 1); keeps output defined.
        o_ref[...] = y.astype(o_ref.dtype)

    @pl.when(ph == 1)
    def _normalize():
        inv_m = 1.0 / m_real                      # true rows only (zero-padded
        mean = sum_ref[...] * inv_m               #  rows contribute 0 to sums)
        var = jnp.maximum(sq_ref[...] * inv_m - mean * mean, 0.0)
        y_n = (y - mean) * jax.lax.rsqrt(var + eps)
        o_ref[...] = jnp.maximum(y_n * g_ref[...] + b_ref[...],
                                 0.0).astype(o_ref.dtype)


def _mm_tanh_t_kernel(w_ref, pt_ref, o_ref):
    """Transposed final layer: (1, K) @ (K, tn) -> lane-dense (1, tn) output."""
    y = jnp.dot(w_ref[...], pt_ref[...], preferred_element_type=jnp.float32)
    o_ref[...] = jnp.tanh(y)


# ------------------------------ pallas_call wrappers ------------------------ #

def _fused_matmul_bn_relu(patches, w_mat, gamma, beta, *, m_real, tm):
    M_pad, K_pad = patches.shape
    _, N_pad = w_mat.shape
    n_m = M_pad // tm
    kernel = functools.partial(_mm_bn_relu_kernel, m_real=m_real, eps=_BN_EPS)
    return pl.pallas_call(
        kernel,
        out_shape=jax.ShapeDtypeStruct((M_pad, N_pad), jnp.bfloat16),
        grid=(2, n_m),
        in_specs=[
            pl.BlockSpec((tm, K_pad), lambda ph, m: (m, 0)),
            pl.BlockSpec((K_pad, N_pad), lambda ph, m: (0, 0)),
            pl.BlockSpec((1, N_pad), lambda ph, m: (0, 0)),
            pl.BlockSpec((1, N_pad), lambda ph, m: (0, 0)),
        ],
        out_specs=pl.BlockSpec((tm, N_pad), lambda ph, m: (m, 0)),
        scratch_shapes=[
            pltpu.VMEM((1, N_pad), jnp.float32),   # per-channel sum
            pltpu.VMEM((1, N_pad), jnp.float32),   # per-channel sum of squares
        ],
        compiler_params=pltpu.CompilerParams(
            dimension_semantics=("arbitrary", "arbitrary"),
            vmem_limit_bytes=_VMEM_LIMIT),
    )(patches, w_mat, gamma, beta)


def _fused_matvec_tanh_t(w_row, pt, *, tn):
    K_pad, M_pad = pt.shape
    n_m = M_pad // tn
    return pl.pallas_call(
        _mm_tanh_t_kernel,
        out_shape=jax.ShapeDtypeStruct((1, M_pad), jnp.float32),
        grid=(n_m,),
        in_specs=[
            pl.BlockSpec((1, K_pad), lambda m: (0, 0)),
            pl.BlockSpec((K_pad, tn), lambda m: (0, m)),
        ],
        out_specs=pl.BlockSpec((1, tn), lambda m: (0, m)),
        compiler_params=pltpu.CompilerParams(
            dimension_semantics=("parallel",),      # megacore on v7x
            vmem_limit_bytes=_VMEM_LIMIT),
    )(w_row, pt)


# ------------------------------- JAX glue (NHWC) ---------------------------- #

def _dilate_and_pad(x, stride, k, p):
    """ConvTranspose2d input -> equivalent regular-conv input. x: (B,H,W,C)."""
    B, H, W, C = x.shape
    if stride > 1:
        Hd, Wd = (H - 1) * stride + 1, (W - 1) * stride + 1
        xd = jnp.zeros((B, Hd, Wd, C), dtype=x.dtype)
        xd = xd.at[:, ::stride, ::stride, :].set(x)
    else:
        xd = x
    pad = k - 1 - p
    return jnp.pad(xd, ((0, 0), (pad, pad), (pad, pad), (0, 0)))


def _im2col_rows(x, k):
    """x: (B,H,W,C) -> patches (B*Ho*Wo, k*k*C); K ordering = (ki, kj, c)."""
    B, H, W, C = x.shape
    Ho, Wo = H - k + 1, W - k + 1
    cols = [x[:, i:i + Ho, j:j + Wo, :] for i in range(k) for j in range(k)]
    p = jnp.concatenate(cols, axis=-1)              # (B, Ho, Wo, k*k*C)
    return p.reshape(B * Ho * Wo, k * k * C), Ho, Wo


def _im2col_cols(x, k):
    """Transposed patches (k*k*C, B*Ho*Wo) for the lane-dense final layer."""
    B, H, W, C = x.shape
    Ho, Wo = H - k + 1, W - k + 1
    cols = [x[:, i:i + Ho, j:j + Wo, :] for i in range(k) for j in range(k)]
    p = jnp.stack(cols, axis=0)                     # (k*k, B, Ho, Wo, C)
    p = p.transpose(0, 4, 1, 2, 3)                  # (k*k, C, B, Ho, Wo)
    return p.reshape(k * k * C, B * Ho * Wo), Ho, Wo


def _convT_weight_to_matmul(w_t):
    """PyTorch ConvTranspose2d weight (C_in, C_out, k, k) -> (k*k*C_in, C_out)
    for the equivalent regular convolution; K ordering (ki, kj, c_in) matches
    the NHWC im2col."""
    C_in, C_out, k, _ = w_t.shape
    w_flip = jnp.flip(w_t, axis=(2, 3))
    return w_flip.transpose(2, 3, 0, 1).reshape(k * k * C_in, C_out)


# ------------------------------ parameters ---------------------------------- #

def init_generator_params(key, latent_dim, feature_dim):
    f8, f4, f2 = feature_dim * 8, feature_dim * 4, feature_dim * 2
    ks = jax.random.split(key, 10)
    std = 0.02
    return {
        "w1": jax.random.normal(ks[0], (latent_dim, f8, 3, 3), jnp.float32) * std,
        "g1": 1.0 + 0.1 * jax.random.normal(ks[1], (f8,), jnp.float32),
        "b1": 0.1 * jax.random.normal(ks[2], (f8,), jnp.float32),
        "w2": jax.random.normal(ks[3], (f8, f4, 4, 4), jnp.float32) * std,
        "g2": 1.0 + 0.1 * jax.random.normal(ks[4], (f4,), jnp.float32),
        "b2": 0.1 * jax.random.normal(ks[5], (f4,), jnp.float32),
        "w3": jax.random.normal(ks[6], (f4, f2, 5, 5), jnp.float32) * std,
        "g3": 1.0 + 0.1 * jax.random.normal(ks[7], (f2,), jnp.float32),
        "b3": 0.1 * jax.random.normal(ks[8], (f2,), jnp.float32),
        "w4": jax.random.normal(ks[9], (f2, 1, 6, 6), jnp.float32) * std,
    }


def prepare_generator_params(params):
    """One-time (hoisted) conversion to kernel layout: flipped matmul weights,
    zero-padded to multiples of 128 on K and C_out, cast to bf16; gamma/beta
    zero-padded, kept in f32.  Returns (prep_arrays, static_cfg)."""
    prep = {}
    cfg = []
    layer_hp = [("w1", "g1", "b1", 1, 0),
                ("w2", "g2", "b2", 2, 1),
                ("w3", "g3", "b3", 2, 1)]
    for li, (wk, gk, bk, stride, pad) in enumerate(layer_hp, start=1):
        w_t = params[wk]
        c_out, k = int(w_t.shape[1]), int(w_t.shape[2])
        w_mat = _convT_weight_to_matmul(w_t)               # (k*k*C_in, C_out)
        K = w_mat.shape[0]
        K_pad, N_pad = _round_up(K, 128), _round_up(c_out, 128)
        prep[f"w{li}"] = jnp.pad(
            w_mat, ((0, K_pad - K), (0, N_pad - c_out))).astype(jnp.bfloat16)
        prep[f"g{li}"] = jnp.pad(params[gk].astype(jnp.float32),
                                 (0, N_pad - c_out)).reshape(1, N_pad)
        prep[f"b{li}"] = jnp.pad(params[bk].astype(jnp.float32),
                                 (0, N_pad - c_out)).reshape(1, N_pad)
        cfg.append((k, stride, pad, c_out, K))
    # Final layer (C_out = 1): stored as a (1, K_pad) row for the transposed
    # lane-dense tanh kernel.
    w_t = params["w4"]
    k = int(w_t.shape[2])
    w_mat = _convT_weight_to_matmul(w_t)                   # (K, 1)
    K = w_mat.shape[0]
    K_pad = _round_up(K, 128)
    prep["w4"] = jnp.pad(w_mat, ((0, K_pad - K), (0, 0))).T.astype(jnp.bfloat16)
    cfg.append((k, 2, 1, 1, K))
    return prep, tuple(cfg)


# ------------------------------ Generator ----------------------------------- #

@functools.partial(jax.jit, static_argnames=("cfg",))
def generator_forward(prep, z, *, cfg):
    # z: (B, latent_dim, 1, 1) NCHW  ->  (B, 1, 28, 28) NCHW
    B = z.shape[0]
    x = z.transpose(0, 2, 3, 1).astype(jnp.bfloat16)        # NHWC once, bf16

    # Layers 1-3: ConvTranspose2d + BatchNorm2d(batch stats) + ReLU.
    for li in range(3):
        k, stride, pad, cout, _ = cfg[li]
        w_mat = prep[f"w{li + 1}"]
        K_pad = w_mat.shape[0]
        xp = _dilate_and_pad(x, stride, k, pad)
        patches, Ho, Wo = _im2col_rows(xp, k)               # (M, K) bf16
        M, K = patches.shape
        tm = _choose_tm(M)
        M_pad = _round_up(M, tm)
        patches = jnp.pad(patches, ((0, M_pad - M), (0, K_pad - K)))
        y = _fused_matmul_bn_relu(patches, w_mat,
                                  prep[f"g{li + 1}"], prep[f"b{li + 1}"],
                                  m_real=M, tm=tm)          # (M_pad, N_pad) bf16
        x = y[:M, :cout].reshape(B, Ho, Wo, cout)           # stays NHWC

    # Layer 4: ConvTranspose2d -> Tanh, transposed so output lanes = pixels.
    k, stride, pad, _, _ = cfg[3]
    w_row = prep["w4"]                                      # (1, K_pad) bf16
    K_pad = w_row.shape[1]
    xp = _dilate_and_pad(x, stride, k, pad)
    pt, Ho, Wo = _im2col_cols(xp, k)                        # (K, M) bf16
    K, M = pt.shape
    tn = _choose_tn(M)
    M_pad = _round_up(M, tn)
    pt = jnp.pad(pt, ((0, K_pad - K), (0, M_pad - M)))
    y = _fused_matvec_tanh_t(w_row, pt, tn=tn)              # (1, M_pad) f32
    img = y[0, :M].reshape(B, Ho, Wo)
    return img[:, None, :, :]                               # NCHW (B, 1, 28, 28)


# --------------------------------- main -------------------------------------- #

if __name__ == "__main__":
    # Small, shape-consistent instantiation of Generator(latent_dim, feature_dim)
    latent_dim = 16
    feature_dim = 8
    batch = 2

    key = jax.random.PRNGKey(0)
    kp, kz = jax.random.split(key)
    params = init_generator_params(kp, latent_dim, feature_dim)
    prep, cfg = prepare_generator_params(params)            # hoisted weight prep
    z = jax.random.normal(kz, (batch, latent_dim, 1, 1), jnp.float32)

    out = generator_forward(prep, z, cfg=cfg)
    out = jax.block_until_ready(out)

    assert out.shape == (batch, 1, 28, 28), out.shape
    assert bool(jnp.all(jnp.isfinite(out)))
    assert bool(jnp.all(jnp.abs(out) <= 1.0 + 1e-6))         # tanh range
    print("KERNEL_OK")
</pallas_src>

<mosaic_0001>
module attributes {stable_mosaic.version = 11 : i64} {
  func.func @_mm_bn_relu_kernel(%arg0: i32, %arg1: i32, %arg2: memref<24x256xbf16, #tpu.memory_space<vmem>>, %arg3: memref<256x128xbf16, #tpu.memory_space<vmem>>, %arg4: memref<1x128xf32, #tpu.memory_space<vmem>>, %arg5: memref<1x128xf32, #tpu.memory_space<vmem>>, %arg6: memref<24x128xbf16, #tpu.memory_space<vmem>>, %arg7: memref<1x128xf32, #tpu.memory_space<vmem>>, %arg8: memref<1x128xf32, #tpu.memory_space<vmem>>) attributes {dimension_semantics = [#tpu.dimension_semantics<arbitrary>, #tpu.dimension_semantics<arbitrary>], iteration_bounds = array<i64: 2, 1>, scalar_prefetch = 0 : i64, scratch_operands = 2 : i64, tpu.core_type = #tpu.core_type<tc>, window_params = [{transform_indices = @transform_0, window_bounds = array<i64: 24, 256>}, {pipeline_mode = #tpu.pipeline_mode<synchronous>, transform_indices = @transform_1, window_bounds = array<i64: 256, 128>}, {pipeline_mode = #tpu.pipeline_mode<synchronous>, transform_indices = @transform_2, window_bounds = array<i64: 1, 128>}, {pipeline_mode = #tpu.pipeline_mode<synchronous>, transform_indices = @transform_3, window_bounds = array<i64: 1, 128>}, {transform_indices = @transform_4, window_bounds = array<i64: 24, 128>}]} {
    %c0 = arith.constant 0 : index
    %c0_0 = arith.constant 0 : index
    %0 = vector.load %arg2[%c0, %c0_0] : memref<24x256xbf16, #tpu.memory_space<vmem>>, vector<24x256xbf16>
    %c0_1 = arith.constant 0 : index
    %c0_2 = arith.constant 0 : index
    %1 = vector.load %arg3[%c0_1, %c0_2] : memref<256x128xbf16, #tpu.memory_space<vmem>>, vector<256x128xbf16>
    %cst = arith.constant dense<0.000000e+00> : vector<24x128xf32>
    %2 = tpu.matmul %0, %1, %cst {dimension_numbers = #tpu.dot_dimension_numbers<[1], [0], [0], [1], [0, 0, 1, 1], [], []>} : vector<24x256xbf16>, vector<256x128xbf16>, vector<24x128xf32> -> vector<24x128xf32>
    %c0_i32 = arith.constant 0 : i32
    %3 = arith.cmpi eq, %arg0, %c0_i32 : i32
    %c0_i32_3 = arith.constant 0 : i32
    %4 = arith.cmpi eq, %arg1, %c0_i32_3 : i32
    %5 = arith.andi %3, %4 : i1
    %6 = arith.extui %5 : i1 to i32
    %c0_i32_4 = arith.constant 0 : i32
    %7 = arith.cmpi ne, %6, %c0_i32_4 : i32
    scf.if %7 {
      %cst_8 = arith.constant 0.000000e+00 : f32
      %14 = vector.broadcast %cst_8 : f32 to vector<1x128xf32>
      %c0_9 = arith.constant 0 : index
      %c0_10 = arith.constant 0 : index
      %15 = vector.load %arg7[%c0_9, %c0_10] : memref<1x128xf32, #tpu.memory_space<vmem>>, vector<1x128xf32>
      tpu.vector_store %arg7[%c0_9, %c0_10], %14 {strides = array<i32>} : memref<1x128xf32, #tpu.memory_space<vmem>>, vector<1x128xf32>,
      %cst_11 = arith.constant 0.000000e+00 : f32
      %16 = vector.broadcast %cst_11 : f32 to vector<1x128xf32>
      %c0_12 = arith.constant 0 : index
      %c0_13 = arith.constant 0 : index
      %17 = vector.load %arg8[%c0_12, %c0_13] : memref<1x128xf32, #tpu.memory_space<vmem>>, vector<1x128xf32>
      tpu.vector_store %arg8[%c0_12, %c0_13], %16 {strides = array<i32>} : memref<1x128xf32, #tpu.memory_space<vmem>>, vector<1x128xf32>,
    } else {
    }
    %c0_i32_5 = arith.constant 0 : i32
    %8 = arith.cmpi eq, %arg0, %c0_i32_5 : i32
    %9 = arith.extui %8 : i1 to i32
    %c0_i32_6 = arith.constant 0 : i32
    %10 = arith.cmpi ne, %9, %c0_i32_6 : i32
    scf.if %10 {
      %c0_8 = arith.constant 0 : index
      %c0_9 = arith.constant 0 : index
      %14 = vector.load %arg7[%c0_8, %c0_9] : memref<1x128xf32, #tpu.memory_space<vmem>>, vector<1x128xf32>
      %cst_10 = arith.constant dense<0.000000e+00> : vector<128xf32>
      %15 = vector.multi_reduction <add>, %2, %cst_10 [0] : vector<24x128xf32> to vector<128xf32>
      %16 = vector.shape_cast %15 : vector<128xf32> to vector<1x128xf32>
      %17 = arith.addf %14, %16 : vector<1x128xf32>
      %c0_11 = arith.constant 0 : index
      %c0_12 = arith.constant 0 : index
      %18 = vector.load %arg7[%c0_11, %c0_12] : memref<1x128xf32, #tpu.memory_space<vmem>>, vector<1x128xf32>
      tpu.vector_store %arg7[%c0_11, %c0_12], %17 {strides = array<i32>} : memref<1x128xf32, #tpu.memory_space<vmem>>, vector<1x128xf32>,
      %c0_13 = arith.constant 0 : index
      %c0_14 = arith.constant 0 : index
      %19 = vector.load %arg8[%c0_13, %c0_14] : memref<1x128xf32, #tpu.memory_space<vmem>>, vector<1x128xf32>
      %20 = arith.mulf %2, %2 : vector<24x128xf32>
      %cst_15 = arith.constant dense<0.000000e+00> : vector<128xf32>
      %21 = vector.multi_reduction <add>, %20, %cst_15 [0] : vector<24x128xf32> to vector<128xf32>
      %22 = vector.shape_cast %21 : vector<128xf32> to vector<1x128xf32>
      %23 = arith.addf %19, %22 : vector<1x128xf32>
      %c0_16 = arith.constant 0 : index
      %c0_17 = arith.constant 0 : index
      %24 = vector.load %arg8[%c0_16, %c0_17] : memref<1x128xf32, #tpu.memory_space<vmem>>, vector<1x128xf32>
      tpu.vector_store %arg8[%c0_16, %c0_17], %23 {strides = array<i32>} : memref<1x128xf32, #tpu.memory_space<vmem>>, vector<1x128xf32>,
      %25 = arith.truncf %2 : vector<24x128xf32> to vector<24x128xbf16>
      %c0_18 = arith.constant 0 : index
      %c0_19 = arith.constant 0 : index
      %26 = vector.load %arg6[%c0_18, %c0_19] : memref<24x128xbf16, #tpu.memory_space<vmem>>, vector<24x128xbf16>
      tpu.vector_store %arg6[%c0_18, %c0_19], %25 {strides = array<i32>} : memref<24x128xbf16, #tpu.memory_space<vmem>>, vector<24x128xbf16>,
    } else {
    }
    %c1_i32 = arith.constant 1 : i32
    %11 = arith.cmpi eq, %arg0, %c1_i32 : i32
    %12 = arith.extui %11 : i1 to i32
    %c0_i32_7 = arith.constant 0 : i32
    %13 = arith.cmpi ne, %12, %c0_i32_7 : i32
    scf.if %13 {
      %c0_8 = arith.constant 0 : index
      %c0_9 = arith.constant 0 : index
      %14 = vector.load %arg7[%c0_8, %c0_9] : memref<1x128xf32, #tpu.memory_space<vmem>>, vector<1x128xf32>
      %cst_10 = arith.constant 0.055555556 : f32
      %15 = vector.broadcast %cst_10 : f32 to vector<1x128xf32>
      %16 = arith.mulf %14, %15 : vector<1x128xf32>
      %c0_11 = arith.constant 0 : index
      %c0_12 = arith.constant 0 : index
      %17 = vector.load %arg8[%c0_11, %c0_12] : memref<1x128xf32, #tpu.memory_space<vmem>>, vector<1x128xf32>
      %cst_13 = arith.constant 0.055555556 : f32
      %18 = vector.broadcast %cst_13 : f32 to vector<1x128xf32>
      %19 = arith.mulf %17, %18 : vector<1x128xf32>
      %20 = arith.mulf %16, %16 : vector<1x128xf32>
      %21 = arith.subf %19, %20 : vector<1x128xf32>
      %cst_14 = arith.constant 0.000000e+00 : f32
      %22 = vector.broadcast %cst_14 : f32 to vector<1x128xf32>
      %23 = arith.maximumf %21, %22 : vector<1x128xf32>
      %24 = vector.broadcast %16 : vector<1x128xf32> to vector<24x128xf32>
      %25 = arith.subf %2, %24 : vector<24x128xf32>
      %cst_15 = arith.constant 9.99999974E-6 : f32
      %26 = vector.broadcast %cst_15 : f32 to vector<1x128xf32>
      %27 = arith.addf %23, %26 : vector<1x128xf32>
      %28 = math.rsqrt %27 : vector<1x128xf32>
      %29 = vector.broadcast %28 : vector<1x128xf32> to vector<24x128xf32>
      %30 = arith.mulf %25, %29 : vector<24x128xf32>
      %c0_16 = arith.constant 0 : index
      %c0_17 = arith.constant 0 : index
      %31 = vector.load %arg4[%c0_16, %c0_17] : memref<1x128xf32, #tpu.memory_space<vmem>>, vector<1x128xf32>
      %32 = vector.broadcast %31 : vector<1x128xf32> to vector<24x128xf32>
      %33 = arith.mulf %30, %32 : vector<24x128xf32>
      %c0_18 = arith.constant 0 : index
      %c0_19 = arith.constant 0 : index
      %34 = vector.load %arg5[%c0_18, %c0_19] : memref<1x128xf32, #tpu.memory_space<vmem>>, vector<1x128xf32>
      %35 = vector.broadcast %34 : vector<1x128xf32> to vector<24x128xf32>
      %36 = arith.addf %33, %35 : vector<24x128xf32>
      %cst_20 = arith.constant 0.000000e+00 : f32
      %37 = vector.broadcast %cst_20 : f32 to vector<24x128xf32>
      %38 = arith.maximumf %36, %37 : vector<24x128xf32>
      %39 = arith.truncf %38 : vector<24x128xf32> to vector<24x128xbf16>
      %c0_21 = arith.constant 0 : index
      %c0_22 = arith.constant 0 : index
      %40 = vector.load %arg6[%c0_21, %c0_22] : memref<24x128xbf16, #tpu.memory_space<vmem>>, vector<24x128xbf16>
      tpu.vector_store %arg6[%c0_21, %c0_22], %39 {strides = array<i32>} : memref<24x128xbf16, #tpu.memory_space<vmem>>, vector<24x128xbf16>,
    } else {
    }
    return
  }
  func.func @transform_0(%arg0: i32, %arg1: i32) -> (i32, i32) {
    %c0_i32 = arith.constant 0 : i32
    %c0_i32_0 = arith.constant 0 : i32
    return %arg1, %c0_i32 : i32, i32
  }
  func.func @transform_1(%arg0: i32, %arg1: i32) -> (i32, i32) {
    %c0_i32 = arith.constant 0 : i32
    %c0_i32_0 = arith.constant 0 : i32
    %c0_i32_1 = arith.constant 0 : i32
    return %c0_i32, %c0_i32_0 : i32, i32
  }
  func.func @transform_2(%arg0: i32, %arg1: i32) -> (i32, i32) {
    %c0_i32 = arith.constant 0 : i32
    %c0_i32_0 = arith.constant 0 : i32
    %c0_i32_1 = arith.constant 0 : i32
    return %c0_i32, %c0_i32_0 : i32, i32
  }
  func.func @transform_3(%arg0: i32, %arg1: i32) -> (i32, i32) {
    %c0_i32 = arith.constant 0 : i32
    %c0_i32_0 = arith.constant 0 : i32
    %c0_i32_1 = arith.constant 0 : i32
    return %c0_i32, %c0_i32_0 : i32, i32
  }
  func.func @transform_4(%arg0: i32, %arg1: i32) -> (i32, i32) {
    %c0_i32 = arith.constant 0 : i32
    %c0_i32_0 = arith.constant 0 : i32
    return %arg1, %c0_i32 : i32, i32
  }
}

module attributes {stable_mosaic.version = 11 : i64} {
  func.func @_mm_bn_relu_kernel(%arg0: i32, %arg1: i32, %arg2: memref<72x1024xbf16, #tpu.memory_space<vmem>>, %arg3: memref<1024x128xbf16, #tpu.memory_space<vmem>>, %arg4: memref<1x128xf32, #tpu.memory_space<vmem>>, %arg5: memref<1x128xf32, #tpu.memory_space<vmem>>, %arg6: memref<72x128xbf16, #tpu.memory_space<vmem>>, %arg7: memref<1x128xf32, #tpu.memory_space<vmem>>, %arg8: memref<1x128xf32, #tpu.memory_space<vmem>>) attributes {dimension_semantics = [#tpu.dimension_semantics<arbitrary>, #tpu.dimension_semantics<arbitrary>], iteration_bounds = array<i64: 2, 1>, scalar_prefetch = 0 : i64, scratch_operands = 2 : i64, tpu.core_type = #tpu.core_type<tc>, window_params = [{transform_indices = @transform_0, window_bounds = array<i64: 72, 1024>}, {pipeline_mode = #tpu.pipeline_mode<synchronous>, transform_indices = @transform_1, window_bounds = array<i64: 1024, 128>}, {pipeline_mode = #tpu.pipeline_mode<synchronous>, transform_indices = @transform_2, window_bounds = array<i64: 1, 128>}, {pipeline_mode = #tpu.pipeline_mode<synchronous>, transform_indices = @transform_3, window_bounds = array<i64: 1, 128>}, {transform_indices = @transform_4, window_bounds = array<i64: 72, 128>}]} {
    %c0 = arith.constant 0 : index
    %c0_0 = arith.constant 0 : index
    %0 = vector.load %arg2[%c0, %c0_0] : memref<72x1024xbf16, #tpu.memory_space<vmem>>, vector<72x1024xbf16>
    %c0_1 = arith.constant 0 : index
    %c0_2 = arith.constant 0 : index
    %1 = vector.load %arg3[%c0_1, %c0_2] : memref<1024x128xbf16, #tpu.memory_space<vmem>>, vector<1024x128xbf16>
    %cst = arith.constant dense<0.000000e+00> : vector<72x128xf32>
    %2 = tpu.matmul %0, %1, %cst {dimension_numbers = #tpu.dot_dimension_numbers<[1], [0], [0], [1], [0, 0, 1, 1], [], []>} : vector<72x1024xbf16>, vector<1024x128xbf16>, vector<72x128xf32> -> vector<72x128xf32>
    %c0_i32 = arith.constant 0 : i32
    %3 = arith.cmpi eq, %arg0, %c0_i32 : i32
    %c0_i32_3 = arith.constant 0 : i32
    %4 = arith.cmpi eq, %arg1, %c0_i32_3 : i32
    %5 = arith.andi %3, %4 : i1
    %6 = arith.extui %5 : i1 to i32
    %c0_i32_4 = arith.constant 0 : i32
    %7 = arith.cmpi ne, %6, %c0_i32_4 : i32
    scf.if %7 {
      %cst_8 = arith.constant 0.000000e+00 : f32
      %14 = vector.broadcast %cst_8 : f32 to vector<1x128xf32>
      %c0_9 = arith.constant 0 : index
      %c0_10 = arith.constant 0 : index
      %15 = vector.load %arg7[%c0_9, %c0_10] : memref<1x128xf32, #tpu.memory_space<vmem>>, vector<1x128xf32>
      tpu.vector_store %arg7[%c0_9, %c0_10], %14 {strides = array<i32>} : memref<1x128xf32, #tpu.memory_space<vmem>>, vector<1x128xf32>,
      %cst_11 = arith.constant 0.000000e+00 : f32
      %16 = vector.broadcast %cst_11 : f32 to vector<1x128xf32>
      %c0_12 = arith.constant 0 : index
      %c0_13 = arith.constant 0 : index
      %17 = vector.load %arg8[%c0_12, %c0_13] : memref<1x128xf32, #tpu.memory_space<vmem>>, vector<1x128xf32>
      tpu.vector_store %arg8[%c0_12, %c0_13], %16 {strides = array<i32>} : memref<1x128xf32, #tpu.memory_space<vmem>>, vector<1x128xf32>,
    } else {
    }
    %c0_i32_5 = arith.constant 0 : i32
    %8 = arith.cmpi eq, %arg0, %c0_i32_5 : i32
    %9 = arith.extui %8 : i1 to i32
    %c0_i32_6 = arith.constant 0 : i32
    %10 = arith.cmpi ne, %9, %c0_i32_6 : i32
    scf.if %10 {
      %c0_8 = arith.constant 0 : index
      %c0_9 = arith.constant 0 : index
      %14 = vector.load %arg7[%c0_8, %c0_9] : memref<1x128xf32, #tpu.memory_space<vmem>>, vector<1x128xf32>
      %cst_10 = arith.constant dense<0.000000e+00> : vector<128xf32>
      %15 = vector.multi_reduction <add>, %2, %cst_10 [0] : vector<72x128xf32> to vector<128xf32>
      %16 = vector.shape_cast %15 : vector<128xf32> to vector<1x128xf32>
      %17 = arith.addf %14, %16 : vector<1x128xf32>
      %c0_11 = arith.constant 0 : index
      %c0_12 = arith.constant 0 : index
      %18 = vector.load %arg7[%c0_11, %c0_12] : memref<1x128xf32, #tpu.memory_space<vmem>>, vector<1x128xf32>
      tpu.vector_store %arg7[%c0_11, %c0_12], %17 {strides = array<i32>} : memref<1x128xf32, #tpu.memory_space<vmem>>, vector<1x128xf32>,
      %c0_13 = arith.constant 0 : index
      %c0_14 = arith.constant 0 : index
      %19 = vector.load %arg8[%c0_13, %c0_14] : memref<1x128xf32, #tpu.memory_space<vmem>>, vector<1x128xf32>
      %20 = arith.mulf %2, %2 : vector<72x128xf32>
      %cst_15 = arith.constant dense<0.000000e+00> : vector<128xf32>
      %21 = vector.multi_reduction <add>, %20, %cst_15 [0] : vector<72x128xf32> to vector<128xf32>
      %22 = vector.shape_cast %21 : vector<128xf32> to vector<1x128xf32>
      %23 = arith.addf %19, %22 : vector<1x128xf32>
      %c0_16 = arith.constant 0 : index
      %c0_17 = arith.constant 0 : index
      %24 = vector.load %arg8[%c0_16, %c0_17] : memref<1x128xf32, #tpu.memory_space<vmem>>, vector<1x128xf32>
      tpu.vector_store %arg8[%c0_16, %c0_17], %23 {strides = array<i32>} : memref<1x128xf32, #tpu.memory_space<vmem>>, vector<1x128xf32>,
      %25 = arith.truncf %2 : vector<72x128xf32> to vector<72x128xbf16>
      %c0_18 = arith.constant 0 : index
      %c0_19 = arith.constant 0 : index
      %26 = vector.load %arg6[%c0_18, %c0_19] : memref<72x128xbf16, #tpu.memory_space<vmem>>, vector<72x128xbf16>
      tpu.vector_store %arg6[%c0_18, %c0_19], %25 {strides = array<i32>} : memref<72x128xbf16, #tpu.memory_space<vmem>>, vector<72x128xbf16>,
    } else {
    }
    %c1_i32 = arith.constant 1 : i32
    %11 = arith.cmpi eq, %arg0, %c1_i32 : i32
    %12 = arith.extui %11 : i1 to i32
    %c0_i32_7 = arith.constant 0 : i32
    %13 = arith.cmpi ne, %12, %c0_i32_7 : i32
    scf.if %13 {
      %c0_8 = arith.constant 0 : index
      %c0_9 = arith.constant 0 : index
      %14 = vector.load %arg7[%c0_8, %c0_9] : memref<1x128xf32, #tpu.memory_space<vmem>>, vector<1x128xf32>
      %cst_10 = arith.constant 0.013888889 : f32
      %15 = vector.broadcast %cst_10 : f32 to vector<1x128xf32>
      %16 = arith.mulf %14, %15 : vector<1x128xf32>
      %c0_11 = arith.constant 0 : index
      %c0_12 = arith.constant 0 : index
      %17 = vector.load %arg8[%c0_11, %c0_12] : memref<1x128xf32, #tpu.memory_space<vmem>>, vector<1x128xf32>
      %cst_13 = arith.constant 0.013888889 : f32
      %18 = vector.broadcast %cst_13 : f32 to vector<1x128xf32>
      %19 = arith.mulf %17, %18 : vector<1x128xf32>
      %20 = arith.mulf %16, %16 : vector<1x128xf32>
      %21 = arith.subf %19, %20 : vector<1x128xf32>
      %cst_14 = arith.constant 0.000000e+00 : f32
      %22 = vector.broadcast %cst_14 : f32 to vector<1x128xf32>
      %23 = arith.maximumf %21, %22 : vector<1x128xf32>
      %24 = vector.broadcast %16 : vector<1x128xf32> to vector<72x128xf32>
      %25 = arith.subf %2, %24 : vector<72x128xf32>
      %cst_15 = arith.constant 9.99999974E-6 : f32
      %26 = vector.broadcast %cst_15 : f32 to vector<1x128xf32>
      %27 = arith.addf %23, %26 : vector<1x128xf32>
      %28 = math.rsqrt %27 : vector<1x128xf32>
      %29 = vector.broadcast %28 : vector<1x128xf32> to vector<72x128xf32>
      %30 = arith.mulf %25, %29 : vector<72x128xf32>
      %c0_16 = arith.constant 0 : index
      %c0_17 = arith.constant 0 : index
      %31 = vector.load %arg4[%c0_16, %c0_17] : memref<1x128xf32, #tpu.memory_space<vmem>>, vector<1x128xf32>
      %32 = vector.broadcast %31 : vector<1x128xf32> to vector<72x128xf32>
      %33 = arith.mulf %30, %32 : vector<72x128xf32>
      %c0_18 = arith.constant 0 : index
      %c0_19 = arith.constant 0 : index
      %34 = vector.load %arg5[%c0_18, %c0_19] : memref<1x128xf32, #tpu.memory_space<vmem>>, vector<1x128xf32>
      %35 = vector.broadcast %34 : vector<1x128xf32> to vector<72x128xf32>
      %36 = arith.addf %33, %35 : vector<72x128xf32>
      %cst_20 = arith.constant 0.000000e+00 : f32
      %37 = vector.broadcast %cst_20 : f32 to vector<72x128xf32>
      %38 = arith.maximumf %36, %37 : vector<72x128xf32>
      %39 = arith.truncf %38 : vector<72x128xf32> to vector<72x128xbf16>
      %c0_21 = arith.constant 0 : index
      %c0_22 = arith.constant 0 : index
      %40 = vector.load %arg6[%c0_21, %c0_22] : memref<72x128xbf16, #tpu.memory_space<vmem>>, vector<72x128xbf16>
      tpu.vector_store %arg6[%c0_21, %c0_22], %39 {strides = array<i32>} : memref<72x128xbf16, #tpu.memory_space<vmem>>, vector<72x128xbf16>,
    } else {
    }
    return
  }
  func.func @transform_0(%arg0: i32, %arg1: i32) -> (i32, i32) {
    %c0_i32 = arith.constant 0 : i32
    %c0_i32_0 = arith.constant 0 : i32
    return %arg1, %c0_i32 : i32, i32
  }
  func.func @transform_1(%arg0: i32, %arg1: i32) -> (i32, i32) {
    %c0_i32 = arith.constant 0 : i32
    %c0_i32_0 = arith.constant 0 : i32
    %c0_i32_1 = arith.constant 0 : i32
    return %c0_i32, %c0_i32_0 : i32, i32
  }
  func.func @transform_2(%arg0: i32, %arg1: i32) -> (i32, i32) {
    %c0_i32 = arith.constant 0 : i32
    %c0_i32_0 = arith.constant 0 : i32
    %c0_i32_1 = arith.constant 0 : i32
    return %c0_i32, %c0_i32_0 : i32, i32
  }
  func.func @transform_3(%arg0: i32, %arg1: i32) -> (i32, i32) {
    %c0_i32 = arith.constant 0 : i32
    %c0_i32_0 = arith.constant 0 : i32
    %c0_i32_1 = arith.constant 0 : i32
    return %c0_i32, %c0_i32_0 : i32, i32
  }
  func.func @transform_4(%arg0: i32, %arg1: i32) -> (i32, i32) {
    %c0_i32 = arith.constant 0 : i32
    %c0_i32_0 = arith.constant 0 : i32
    return %arg1, %c0_i32 : i32, i32
  }
}

module attributes {stable_mosaic.version = 11 : i64} {
  func.func @_mm_bn_relu_kernel(%arg0: i32, %arg1: i32, %arg2: memref<344x896xbf16, #tpu.memory_space<vmem>>, %arg3: memref<896x128xbf16, #tpu.memory_space<vmem>>, %arg4: memref<1x128xf32, #tpu.memory_space<vmem>>, %arg5: memref<1x128xf32, #tpu.memory_space<vmem>>, %arg6: memref<344x128xbf16, #tpu.memory_space<vmem>>, %arg7: memref<1x128xf32, #tpu.memory_space<vmem>>, %arg8: memref<1x128xf32, #tpu.memory_space<vmem>>) attributes {dimension_semantics = [#tpu.dimension_semantics<arbitrary>, #tpu.dimension_semantics<arbitrary>], iteration_bounds = array<i64: 2, 1>, scalar_prefetch = 0 : i64, scratch_operands = 2 : i64, tpu.core_type = #tpu.core_type<tc>, window_params = [{transform_indices = @transform_0, window_bounds = array<i64: 344, 896>}, {pipeline_mode = #tpu.pipeline_mode<synchronous>, transform_indices = @transform_1, window_bounds = array<i64: 896, 128>}, {pipeline_mode = #tpu.pipeline_mode<synchronous>, transform_indices = @transform_2, window_bounds = array<i64: 1, 128>}, {pipeline_mode = #tpu.pipeline_mode<synchronous>, transform_indices = @transform_3, window_bounds = array<i64: 1, 128>}, {transform_indices = @transform_4, window_bounds = array<i64: 344, 128>}]} {
    %c0 = arith.constant 0 : index
    %c0_0 = arith.constant 0 : index
    %0 = vector.load %arg2[%c0, %c0_0] : memref<344x896xbf16, #tpu.memory_space<vmem>>, vector<344x896xbf16>
    %c0_1 = arith.constant 0 : index
    %c0_2 = arith.constant 0 : index
    %1 = vector.load %arg3[%c0_1, %c0_2] : memref<896x128xbf16, #tpu.memory_space<vmem>>, vector<896x128xbf16>
    %cst = arith.constant dense<0.000000e+00> : vector<344x128xf32>
    %2 = tpu.matmul %0, %1, %cst {dimension_numbers = #tpu.dot_dimension_numbers<[1], [0], [0], [1], [0, 0, 1, 1], [], []>} : vector<344x896xbf16>, vector<896x128xbf16>, vector<344x128xf32> -> vector<344x128xf32>
    %c0_i32 = arith.constant 0 : i32
    %3 = arith.cmpi eq, %arg0, %c0_i32 : i32
    %c0_i32_3 = arith.constant 0 : i32
    %4 = arith.cmpi eq, %arg1, %c0_i32_3 : i32
    %5 = arith.andi %3, %4 : i1
    %6 = arith.extui %5 : i1 to i32
    %c0_i32_4 = arith.constant 0 : i32
    %7 = arith.cmpi ne, %6, %c0_i32_4 : i32
    scf.if %7 {
      %cst_8 = arith.constant 0.000000e+00 : f32
      %14 = vector.broadcast %cst_8 : f32 to vector<1x128xf32>
      %c0_9 = arith.constant 0 : index
      %c0_10 = arith.constant 0 : index
      %15 = vector.load %arg7[%c0_9, %c0_10] : memref<1x128xf32, #tpu.memory_space<vmem>>, vector<1x128xf32>
      tpu.vector_store %arg7[%c0_9, %c0_10], %14 {strides = array<i32>} : memref<1x128xf32, #tpu.memory_space<vmem>>, vector<1x128xf32>,
      %cst_11 = arith.constant 0.000000e+00 : f32
      %16 = vector.broadcast %cst_11 : f32 to vector<1x128xf32>
      %c0_12 = arith.constant 0 : index
      %c0_13 = arith.constant 0 : index
      %17 = vector.load %arg8[%c0_12, %c0_13] : memref<1x128xf32, #tpu.memory_space<vmem>>, vector<1x128xf32>
      tpu.vector_store %arg8[%c0_12, %c0_13], %16 {strides = array<i32>} : memref<1x128xf32, #tpu.memory_space<vmem>>, vector<1x128xf32>,
    } else {
    }
    %c0_i32_5 = arith.constant 0 : i32
    %8 = arith.cmpi eq, %arg0, %c0_i32_5 : i32
    %9 = arith.extui %8 : i1 to i32
    %c0_i32_6 = arith.constant 0 : i32
    %10 = arith.cmpi ne, %9, %c0_i32_6 : i32
    scf.if %10 {
      %c0_8 = arith.constant 0 : index
      %c0_9 = arith.constant 0 : index
      %14 = vector.load %arg7[%c0_8, %c0_9] : memref<1x128xf32, #tpu.memory_space<vmem>>, vector<1x128xf32>
      %cst_10 = arith.constant dense<0.000000e+00> : vector<128xf32>
      %15 = vector.multi_reduction <add>, %2, %cst_10 [0] : vector<344x128xf32> to vector<128xf32>
      %16 = vector.shape_cast %15 : vector<128xf32> to vector<1x128xf32>
      %17 = arith.addf %14, %16 : vector<1x128xf32>
      %c0_11 = arith.constant 0 : index
      %c0_12 = arith.constant 0 : index
      %18 = vector.load %arg7[%c0_11, %c0_12] : memref<1x128xf32, #tpu.memory_space<vmem>>, vector<1x128xf32>
      tpu.vector_store %arg7[%c0_11, %c0_12], %17 {strides = array<i32>} : memref<1x128xf32, #tpu.memory_space<vmem>>, vector<1x128xf32>,
      %c0_13 = arith.constant 0 : index
      %c0_14 = arith.constant 0 : index
      %19 = vector.load %arg8[%c0_13, %c0_14] : memref<1x128xf32, #tpu.memory_space<vmem>>, vector<1x128xf32>
      %20 = arith.mulf %2, %2 : vector<344x128xf32>
      %cst_15 = arith.constant dense<0.000000e+00> : vector<128xf32>
      %21 = vector.multi_reduction <add>, %20, %cst_15 [0] : vector<344x128xf32> to vector<128xf32>
      %22 = vector.shape_cast %21 : vector<128xf32> to vector<1x128xf32>
      %23 = arith.addf %19, %22 : vector<1x128xf32>
      %c0_16 = arith.constant 0 : index
      %c0_17 = arith.constant 0 : index
      %24 = vector.load %arg8[%c0_16, %c0_17] : memref<1x128xf32, #tpu.memory_space<vmem>>, vector<1x128xf32>
      tpu.vector_store %arg8[%c0_16, %c0_17], %23 {strides = array<i32>} : memref<1x128xf32, #tpu.memory_space<vmem>>, vector<1x128xf32>,
      %25 = arith.truncf %2 : vector<344x128xf32> to vector<344x128xbf16>
      %c0_18 = arith.constant 0 : index
      %c0_19 = arith.constant 0 : index
      %26 = vector.load %arg6[%c0_18, %c0_19] : memref<344x128xbf16, #tpu.memory_space<vmem>>, vector<344x128xbf16>
      tpu.vector_store %arg6[%c0_18, %c0_19], %25 {strides = array<i32>} : memref<344x128xbf16, #tpu.memory_space<vmem>>, vector<344x128xbf16>,
    } else {
    }
    %c1_i32 = arith.constant 1 : i32
    %11 = arith.cmpi eq, %arg0, %c1_i32 : i32
    %12 = arith.extui %11 : i1 to i32
    %c0_i32_7 = arith.constant 0 : i32
    %13 = arith.cmpi ne, %12, %c0_i32_7 : i32
    scf.if %13 {
      %c0_8 = arith.constant 0 : index
      %c0_9 = arith.constant 0 : index
      %14 = vector.load %arg7[%c0_8, %c0_9] : memref<1x128xf32, #tpu.memory_space<vmem>>, vector<1x128xf32>
      %cst_10 = arith.constant 2.958580e-03 : f32
      %15 = vector.broadcast %cst_10 : f32 to vector<1x128xf32>
      %16 = arith.mulf %14, %15 : vector<1x128xf32>
      %c0_11 = arith.constant 0 : index
      %c0_12 = arith.constant 0 : index
      %17 = vector.load %arg8[%c0_11, %c0_12] : memref<1x128xf32, #tpu.memory_space<vmem>>, vector<1x128xf32>
      %cst_13 = arith.constant 2.958580e-03 : f32
      %18 = vector.broadcast %cst_13 : f32 to vector<1x128xf32>
      %19 = arith.mulf %17, %18 : vector<1x128xf32>
      %20 = arith.mulf %16, %16 : vector<1x128xf32>
      %21 = arith.subf %19, %20 : vector<1x128xf32>
      %cst_14 = arith.constant 0.000000e+00 : f32
      %22 = vector.broadcast %cst_14 : f32 to vector<1x128xf32>
      %23 = arith.maximumf %21, %22 : vector<1x128xf32>
      %24 = vector.broadcast %16 : vector<1x128xf32> to vector<344x128xf32>
      %25 = arith.subf %2, %24 : vector<344x128xf32>
      %cst_15 = arith.constant 9.99999974E-6 : f32
      %26 = vector.broadcast %cst_15 : f32 to vector<1x128xf32>
      %27 = arith.addf %23, %26 : vector<1x128xf32>
      %28 = math.rsqrt %27 : vector<1x128xf32>
      %29 = vector.broadcast %28 : vector<1x128xf32> to vector<344x128xf32>
      %30 = arith.mulf %25, %29 : vector<344x128xf32>
      %c0_16 = arith.constant 0 : index
      %c0_17 = arith.constant 0 : index
      %31 = vector.load %arg4[%c0_16, %c0_17] : memref<1x128xf32, #tpu.memory_space<vmem>>, vector<1x128xf32>
      %32 = vector.broadcast %31 : vector<1x128xf32> to vector<344x128xf32>
      %33 = arith.mulf %30, %32 : vector<344x128xf32>
      %c0_18 = arith.constant 0 : index
      %c0_19 = arith.constant 0 : index
      %34 = vector.load %arg5[%c0_18, %c0_19] : memref<1x128xf32, #tpu.memory_space<vmem>>, vector<1x128xf32>
      %35 = vector.broadcast %34 : vector<1x128xf32> to vector<344x128xf32>
      %36 = arith.addf %33, %35 : vector<344x128xf32>
      %cst_20 = arith.constant 0.000000e+00 : f32
      %37 = vector.broadcast %cst_20 : f32 to vector<344x128xf32>
      %38 = arith.maximumf %36, %37 : vector<344x128xf32>
      %39 = arith.truncf %38 : vector<344x128xf32> to vector<344x128xbf16>
      %c0_21 = arith.constant 0 : index
      %c0_22 = arith.constant 0 : index
      %40 = vector.load %arg6[%c0_21, %c0_22] : memref<344x128xbf16, #tpu.memory_space<vmem>>, vector<344x128xbf16>
      tpu.vector_store %arg6[%c0_21, %c0_22], %39 {strides = array<i32>} : memref<344x128xbf16, #tpu.memory_space<vmem>>, vector<344x128xbf16>,
    } else {
    }
    return
  }
  func.func @transform_0(%arg0: i32, %arg1: i32) -> (i32, i32) {
    %c0_i32 = arith.constant 0 : i32
    %c0_i32_0 = arith.constant 0 : i32
    return %arg1, %c0_i32 : i32, i32
  }
  func.func @transform_1(%arg0: i32, %arg1: i32) -> (i32, i32) {
    %c0_i32 = arith.constant 0 : i32
    %c0_i32_0 = arith.constant 0 : i32
    %c0_i32_1 = arith.constant 0 : i32
    return %c0_i32, %c0_i32_0 : i32, i32
  }
  func.func @transform_2(%arg0: i32, %arg1: i32) -> (i32, i32) {
    %c0_i32 = arith.constant 0 : i32
    %c0_i32_0 = arith.constant 0 : i32
    %c0_i32_1 = arith.constant 0 : i32
    return %c0_i32, %c0_i32_0 : i32, i32
  }
  func.func @transform_3(%arg0: i32, %arg1: i32) -> (i32, i32) {
    %c0_i32 = arith.constant 0 : i32
    %c0_i32_0 = arith.constant 0 : i32
    %c0_i32_1 = arith.constant 0 : i32
    return %c0_i32, %c0_i32_0 : i32, i32
  }
  func.func @transform_4(%arg0: i32, %arg1: i32) -> (i32, i32) {
    %c0_i32 = arith.constant 0 : i32
    %c0_i32_0 = arith.constant 0 : i32
    return %arg1, %c0_i32 : i32, i32
  }
}

module attributes {stable_mosaic.version = 11 : i64} {
  func.func @_mm_tanh_t_kernel(%arg0: i32, %arg1: memref<1x640xbf16, #tpu.memory_space<vmem>>, %arg2: memref<640x1024xbf16, #tpu.memory_space<vmem>>, %arg3: memref<1x1024xf32, #tpu.memory_space<vmem>>) attributes {dimension_semantics = [#tpu.dimension_semantics<parallel>], iteration_bounds = array<i64: 2>, scalar_prefetch = 0 : i64, scratch_operands = 0 : i64, tpu.core_type = #tpu.core_type<tc>, window_params = [{pipeline_mode = #tpu.pipeline_mode<synchronous>, transform_indices = @transform_0, window_bounds = array<i64: 1, 640>}, {transform_indices = @transform_1, window_bounds = array<i64: 640, 1024>}, {transform_indices = @transform_2, window_bounds = array<i64: 1, 1024>}]} {
    %c0 = arith.constant 0 : index
    %c0_0 = arith.constant 0 : index
    %0 = vector.load %arg1[%c0, %c0_0] : memref<1x640xbf16, #tpu.memory_space<vmem>>, vector<1x640xbf16>
    %c0_1 = arith.constant 0 : index
    %c0_2 = arith.constant 0 : index
    %1 = vector.load %arg2[%c0_1, %c0_2] : memref<640x1024xbf16, #tpu.memory_space<vmem>>, vector<640x1024xbf16>
    %cst = arith.constant dense<0.000000e+00> : vector<1x1024xf32>
    %2 = tpu.matmul %0, %1, %cst {dimension_numbers = #tpu.dot_dimension_numbers<[1], [0], [0], [1], [0, 0, 1, 1], [], []>} : vector<1x640xbf16>, vector<640x1024xbf16>, vector<1x1024xf32> -> vector<1x1024xf32>
    %3 = math.tanh %2 : vector<1x1024xf32>
    %c0_3 = arith.constant 0 : index
    %c0_4 = arith.constant 0 : index
    %4 = vector.load %arg3[%c0_3, %c0_4] : memref<1x1024xf32, #tpu.memory_space<vmem>>, vector<1x1024xf32>
    tpu.vector_store %arg3[%c0_3, %c0_4], %3 {strides = array<i32>} : memref<1x1024xf32, #tpu.memory_space<vmem>>, vector<1x1024xf32>,
    return
  }
  func.func @transform_0(%arg0: i32) -> (i32, i32) {
    %c0_i32 = arith.constant 0 : i32
    %c0_i32_0 = arith.constant 0 : i32
    %c0_i32_1 = arith.constant 0 : i32
    return %c0_i32, %c0_i32_0 : i32, i32
  }
  func.func @transform_1(%arg0: i32) -> (i32, i32) {
    %c0_i32 = arith.constant 0 : i32
    %c0_i32_0 = arith.constant 0 : i32
    return %c0_i32, %arg0 : i32, i32
  }
  func.func @transform_2(%arg0: i32) -> (i32, i32) {
    %c0_i32 = arith.constant 0 : i32
    %c0_i32_0 = arith.constant 0 : i32
    return %c0_i32, %arg0 : i32, i32
  }
}

</mosaic_0001>

<bundles_post_ra>
// kernel: generator_forward.4
= control target key start
LH: loop header
LB: loop body
LE: loop exit
PB: predicated region body
PF: predicated region fallthrough
CT: control target
= control target key end

     0   :  { %9 = vsyncpa [#allocation5], 0  ;;  %s1173_s0 = inlined_call_operand.vmem [shape: bf16[24,256], index: 0, kind: input, shape index: {}]   ;;  %s1174_s1 = inlined_call_operand.hbm [shape: bf16[256,128], index: 1, kind: input, shape index: {}]   ;;  %s1175_s2 = inlined_call_operand.hbm [shape: f32[1,128], index: 2, kind: input, shape index: {}]   ;;  %s1176_s3 = inlined_call_operand.hbm [shape: f32[1,128], index: 3, kind: input, shape index: {}]   ;;  %s1177_s4 = inlined_call_operand.vmem [shape: bf16[24,128], index: 4, kind: output, shape index: {}]  }
   0x1   :  { %10 = vsyncpa [#allocation7], 0  ;;  %s1005_s15 = smov 0   ;;  %s1007_s16 = smov 0  }
   0x2   :  { %s1009_s17 = smov 0  }
   0x3 LB: > { %s974_s18 = smov [#allocation6]   ;;  %s671_s20 = sadd.s32 4294967295, %s972_s17   ;;  %s972_s17 = sphi %s1009_s17, %s16_s17   ;;  %s968_s16 = sphi %s1007_s16, %s1190_s16   ;;  %s964_s15 = sphi %s1005_s15, %s1189_s15  }
   0x4   : > { %s184_s19 = sshll.u32 %s974_s18, 4  ;;  %p672_p0 = scmp.ge.s32.totalorder %s972_s17, 1  ;;  %s185_s19 = int_to_ptr.vmem [resolvable:$true] %s184_s19 }
   0x5   : > { %p148_p1 = scmp.lt.s32.totalorder %s972_s17, 3  ;;  %p1023_p2 = scmp.eq.s32.totalorder %s671_s20, 0 }
   0x6   : > { %s28_s23 = sadd.s32 1, %s968_s16  ;;  %s975_s26 = smov [#allocation4]  }
   0x7   : > { %s1181_s21 = scalar_select %p1023_p2, 1, 0 }
   0x8   : > { %p1027_p3 = pnand %p672_p0, %p148_p1  ;;  %p1040_p6 = scmp.ge.s32.totalorder %s28_s23, 2 }
   0x9   : > { %s170_s27 = sshll.u32 %s975_s26, 4  ;;  %s858_s30 = scalar_lea.hbm %s1175_s2, 16  ;;  %s1044_s27 = int_to_ptr.vmem [resolvable:$true] %s170_s27 }
   0xa   : > { %s1182_s22 = scalar_select %p1027_p3, 1, 0 }
   0xb   : > { %p789_p4 = pneg %p1027_p3  ;;  %p859_p7 = scmp.ne.s32.totalorder %s1175_s2, %s858_s30 }
   0xc   : > { %s1184_s25 = scalar_select %p1040_p6, 1, 0 }
   0xd   : > { %p1036_p5 = pnand %p1023_p2, %p789_p4  ;;  %p865_p11 = scmp.lt.u32.totalorder %s858_s30, %s1175_s2 }
   0xf   : > { %p1054_p8 = pneg %p1036_p5 }
  0x11   : > { %p861_p9 = pnand %p1054_p8, %p859_p7 }
  0x13   : > { %p862_p10 = pneg %p861_p9 }
  0x15   : > { %p867_p12 = pnand %p865_p11, %p862_p10 }
  0x17   : > { %870 = shalt.err (!%p867_p12)
}
  0x18   : > { %s871_s10 = scalar_lea.vmem %s185_s19, 16  ;;  %s878_s11 = scalar_lea.vmem %s185_s19, 32 }
  0x19   : > { %p872_p13 = scmp.ne.s32.totalorder %s185_s19, %s871_s10  ;;  %p879_p4 = scmp.lt.s32.totalorder %s185_s19, %s185_s19 }
  0x1a   : > { %p880_p2 = scmp.lt.s32.totalorder %s878_s11, %s871_s10 }
  0x1b   : > { %p874_p0 = pnand %p872_p13, %p1054_p8 }
  0x1c   : > { %p881_p3 = por %p880_p2, %p879_p4 }
  0x1d   : > { %p875_p1 = pneg %p874_p0 }
  0x1f   : > { %p882_p6 = pnand %p881_p3, %p875_p1 }
  0x21   : > { %885 = shalt.err (!%p882_p6)
}
  0x22   : > { %795 = dma.hbm_to_vmem [thread:$0]  (!%p1036_p5), %s1175_s2, 16, %s185_s19, [#allocation7]  }
  0x23   : > { %p1186_p7 = scmp.ne.s32.totalorder %s1184_s25, 0  ;;  %s886_s20 = scalar_lea.hbm %s1174_s1, 2048 }
  0x24   : > { %p887_p2 = scmp.ne.s32.totalorder %s1174_s1, %s886_s20  ;;  %p893_p9 = scmp.lt.u32.totalorder %s886_s20, %s1174_s1 }
  0x25   : > { %s1192_s23 = smov (%p1186_p7, %s28_s23), 0 }
  0x26   : > { %p889_p3 = pnand %p887_p2, %p1054_p8 }
  0x28   : > { %p890_p6 = pneg %p889_p3 }
  0x2a   : > { %p895_p10 = pnand %p893_p9, %p890_p6 }
  0x2c   : > { %898 = shalt.err (!%p895_p10)
}
  0x2d   : > { %s899_s19 = scalar_lea.vmem %s1044_s27, 2048  ;;  %p907_p0 = scmp.lt.s32.totalorder %s1044_s27, %s1044_s27 }
  0x2e   : > { %p900_p11 = scmp.ne.s32.totalorder %s1044_s27, %s899_s19  ;;  %p908_p1 = scmp.lt.s32.totalorder %s899_s19, %s899_s19 }
  0x30   : > { %p902_p12 = pnand %p900_p11, %p1054_p8  ;;  %p909_p4 = por %p908_p1, %p907_p0 }
  0x32   : > { %p903_p13 = pneg %p902_p12 }
  0x34   : > { %p910_p7 = pnand %p909_p4, %p903_p13 }
  0x36   : > { %913 = shalt.err (!%p910_p7)
}
  0x37   : > { %s976_s25 = smov 64   ;;  %s977_s5 = smov 4  }
  0x38   : > { %792 = dma.hbm_to_vmem [thread:$0]  (!%p1036_p5), %s1174_s1, 2048, %s1044_s27, [#allocation5], %s976_s25, %s976_s25, %s977_s5  }
  0x39   : > { %s978_s9 = smov [#allocation8]   ;;  %s914_s13 = scalar_lea.hbm %s1176_s3, 16 }
  0x3a   : > { %s195_s10 = sshll.u32 %s978_s9, 4  ;;  %p915_p2 = scmp.ne.s32.totalorder %s1176_s3, %s914_s13  ;;  %s196_s10 = int_to_ptr.vmem [resolvable:$true] %s195_s10 }
  0x3b   : > { %p921_p9 = scmp.lt.u32.totalorder %s914_s13, %s1176_s3 }
  0x3c   : > { %p917_p3 = pnand %p915_p2, %p1054_p8 }
  0x3e   : > { %p918_p6 = pneg %p917_p3 }
  0x40   : > { %p923_p10 = pnand %p921_p9, %p918_p6 }
  0x42   : > { %926 = shalt.err (!%p923_p10)
}
  0x43   : > { %s927_s27 = scalar_lea.vmem %s196_s10, 16  ;;  %s934_s28 = scalar_lea.vmem %s196_s10, 32 }
  0x44   : > { %p928_p11 = scmp.ne.s32.totalorder %s196_s10, %s927_s27  ;;  %p935_p0 = scmp.lt.s32.totalorder %s196_s10, %s196_s10 }
  0x45   : > { %p936_p1 = scmp.lt.s32.totalorder %s934_s28, %s927_s27 }
  0x46   : > { %p930_p12 = pnand %p928_p11, %p1054_p8 }
  0x47   : > { %p937_p4 = por %p936_p1, %p935_p0 }
  0x48   : > { %p931_p13 = pneg %p930_p12 }
  0x4a   : > { %p938_p7 = pnand %p937_p4, %p931_p13 }
  0x4c   : > { %941 = shalt.err (!%p938_p7)
}
  0x4d   : > { %798 = dma.hbm_to_vmem [thread:$0]  (!%p1036_p5), %s1176_s3, 16, %s196_s10, [#allocation7]  }
  0x4e   : > { %p1187_p2 = scmp.ne.s32.totalorder %s1182_s22, 0 }
  0x4f   : > { %p1188_p3 = scmp.ne.s32.totalorder (!%p1187_p2), %s1181_s21, 0 }
  0x50   : > { %208 = sbr.rel (%p1187_p2) target bundleno = 400 (0x190), region = 36 }
  0x57   : > { %955 = dma.done.wait (%p1188_p3), [#allocation5], 2048  }
  0x58   : > { %957 = vsyncadd (%p1188_p3), [#allocation5], 4294965248 }
  0x59   : > { %959 = dma.done.wait (%p1188_p3), [#allocation7], 32  }
  0x5a   : > { %961 = vsyncadd (%p1188_p3), [#allocation7], 4294967264  ;;  %v835_v0 = vld [vmem:[#allocation4 + $0x40] sm:$0xff]   ;;  %v837_v2 = vld [vmem:[#allocation4 + $0x48] sm:$0xff]   ;;  %p453_p5 = scmp.eq.s32.totalorder %s964_s15, 0 }
  0x5b   : > { %v836_v1 = vld [vmem:[#allocation4] sm:$0xff]   ;;  %733 = vmatprep.subr.bf16.mxu0 %v835_v0  ;;  %761 = vmatprep.subr.bf16.mxu1 %v835_v0  ;;  %v838_v3 = vld [vmem:[#allocation4 + $0x8] sm:$0xff]   ;;  %v839_v4 = vld [vmem:[#allocation4 + $0x50] sm:$0xff]   ;;  %v979_v32 = vmov (%p453_p5), 0.0  }
  0x5c   : > { %734 = vmatpush3.bf16.msra.mxu0 %v836_v1  ;;  %769 = vmatpush3.bf16.msra.mxu1 %v836_v1  ;;  %v840_v5 = vld [vmem:[#allocation4 + $0x10] sm:$0xff]   ;;  %v841_v6 = vld [vmem:[#allocation4 + $0x58] sm:$0xff]   ;;  %v843_v8 = vld [vmem:[#allocation4 + $0x60] sm:$0xff]   ;;  %459 = vst [vmem:[#allocation2] sm:$0x1] (%p453_p5), %v979_v32 }
  0x5d   : > { %735 = vmatprep.subr.bf16.mxu0 %v837_v2  ;;  %762 = vmatprep.subr.bf16.mxu1 %v837_v2  ;;  %v842_v7 = vld [vmem:[#allocation4 + $0x18] sm:$0xff]   ;;  %v844_v9 = vld [vmem:[#allocation4 + $0x20] sm:$0xff]   ;;  %v845_v10 = vld [vmem:[#allocation4 + $0x68] sm:$0xff]   ;;  %460 = vst [vmem:[#allocation3] sm:$0x1] (%p453_p5), %v979_v32 }
  0x5e   : > { %v853_v11 = vld [vmem:[%s1173_s0 + $0x4] ss:$8 sps:$4 sm:$0xff]   ;;  %v259_v12 = vld [vmem:[%s1173_s0 + $0x10] sm:$0xff]  ;;  %v849_v17 = vld [vmem:[#allocation4 + $0x78] sm:$0xff]  }
  0x5f   : > { %v684_v13 = vcombine.high %v259_v12, %v259_v12  ;;  %v846_v14 = vld [vmem:[#allocation4 + $0x28] sm:$0xff]   ;;  %v847_v15 = vld [vmem:[#allocation4 + $0x70] sm:$0xff]   ;;  %437 = vmatprep.mubr.bf16.mxu0 %v853_v11  ;;  %v850_v18 = vld [vmem:[#allocation4 + $0x38] sm:$0xff]   ;;  %v683_v20 = vcombine.low %v259_v12, %v259_v12 }
  0x60   : > { %736 = vmatpush3.bf16.msra.mxu0 %v838_v3  ;;  %770 = vmatpush3.bf16.msra.mxu1 %v838_v3  ;;  %v848_v16 = vld [vmem:[#allocation4 + $0x30] sm:$0xff]   ;;  %v851_v19 = vld [vmem:[%s1173_s0] ss:$8 sps:$4 sm:$0xff]  }
  0x61   : > { %737 = vmatprep.subr.bf16.mxu0 %v839_v4  ;;  %763 = vmatprep.subr.bf16.mxu1 %v839_v4 }
  0x62   : > { %445 = vmatprep.mubr.bf16.mxu1 %v684_v13 }
  0x64   : > { %738 = vmatpush3.bf16.msra.mxu0 %v840_v5  ;;  %771 = vmatpush3.bf16.msra.mxu1 %v840_v5 }
  0x65   : > { %739 = vmatprep.subr.bf16.mxu0 %v841_v6  ;;  %764 = vmatprep.subr.bf16.mxu1 %v841_v6 }
  0x68   : > { %740 = vmatpush3.bf16.msra.mxu0 %v842_v7  ;;  %772 = vmatpush3.bf16.msra.mxu1 %v842_v7 }
  0x69   : > { %741 = vmatprep.subr.bf16.mxu0 %v843_v8  ;;  %765 = vmatprep.subr.bf16.mxu1 %v843_v8 }
  0x6c   : > { %742 = vmatpush3.bf16.msra.mxu0 %v844_v9  ;;  %773 = vmatpush3.bf16.msra.mxu1 %v844_v9 }
  0x6d   : > { %743 = vmatprep.subr.bf16.mxu0 %v845_v10  ;;  %766 = vmatprep.subr.bf16.mxu1 %v845_v10 }
  0x70   : > { %744 = vmatpush3.bf16.msra.mxu0 %v846_v14  ;;  %774 = vmatpush3.bf16.msra.mxu1 %v846_v14 }
  0x71   : > { %745 = vmatprep.subr.bf16.mxu0 %v847_v15  ;;  %767 = vmatprep.subr.bf16.mxu1 %v847_v15 }
  0x74   : > { %746 = vmatpush3.bf16.msra.mxu0 %v848_v16  ;;  %775 = vmatpush3.bf16.msra.mxu1 %v848_v16 }
  0x75   : > { %747 = vmatprep.subr.bf16.mxu0 %v849_v17  ;;  %768 = vmatprep.subr.bf16.mxu1 %v849_v17 }
  0x78   : > { %748 = vmatpush3.bf16.msra.mxu0 %v850_v18  ;;  %776 = vmatpush3.bf16.msra.mxu1 %v850_v18 }
  0x7b   : > { %438 = vmatmul.mubr.bf16.vlgmr.msra.gmra.mrb[0].mxu0 %v851_v19  ;;  %446 = vmatmul.mubr.bf16.vlgmr.msra.gmra.mrb[0].mxu1 %v683_v20 }
 0x14c   : > { %458 = sbr.rel (!%p453_p5) target bundleno = 339 (0x153), region = 52 }
 0x14e   : > { %v749_v21 = vpop.f32.mrb[0].mxu0  ;;  %v755_v22 = vpop.f32.mrb[0].mxu1 }
 0x14f   : > { %v750_v23 = vpop.f32.mrb[1].mxu0  ;;  %v756_v24 = vpop.f32.mrb[1].mxu1 }
 0x150   : > { %v1135_v25 = vadd.f32 %v750_v23, %v749_v21  ;;  %v1137_v26 = vadd.f32 %v756_v24, %v755_v22  ;;  %v752_v27 = vpop.f32.mrb[2].mxu0  ;;  %v758_v28 = vpop.f32.mrb[2].mxu1 }
 0x151   : > { %v753_v29 = vpop.f32.mrb[3].mxu0  ;;  %v759_v30 = vpop.f32.mrb[3].mxu1 }
 0x152   : > { %v754_v31 = vadd.f32 %v753_v29, %v752_v27 }
 0x153 PF: > { %p702_p8 = scmp.ne.s32.totalorder %s964_s15, 0 }
 0x154   : > { %v465_v33 = vadd.f32 (!%p702_p8), %v754_v31, %v1135_v25  ;;  %v476_v34 = vmul.f32 (!%p702_p8), %v1135_v25, %v1135_v25  ;;  %v477_v35 = vmul.f32 (!%p702_p8), %v754_v31, %v754_v31  ;;  %v478_v36 = vmul.f32 (!%p702_p8), %v1137_v26, %v1137_v26  ;;  %v464_v51 = vld [vmem:[#allocation2] sm:$0x1] (!%p702_p8)  ;;  %v475_v54 = vld [vmem:[#allocation3] sm:$0x1] (!%p702_p8) }
 0x155   : > { %463 = sbr.rel (%p702_p8) target bundleno = 361 (0x169), region = 56  ;;  %v726_v37 = vpack.c.bf16 (!%p702_p8), %v754_v31, %v1135_v25  ;;  %v719_v38 = vpack.c.bf16 (!%p702_p8), %v1137_v26, %v1137_v26 }
 0x156   : > { %v466_v39 = vadd.f32 (!%p702_p8), %v1137_v26, %v465_v33  ;;  %v479_v40 = vadd.f32 (!%p702_p8), %v477_v35, %v476_v34 }
 0x157   : > { %727 = vst [vmem:[%s1177_s4] sm:$0xff] (!%p702_p8), %v726_v37   ;;  %504 = vst [vmem:[%s1177_s4 + $0x8] sm:$0xf] (!%p702_p8), %v719_v38 }
 0x158   : > { %v467_v41 = vrot.slane (!%p702_p8), %v466_v39, 4  ;;  %v480_v42 = vadd.f32 (!%p702_p8), %v479_v40, %v478_v36 }
 0x15a   : > { %v468_v43 = vadd.f32 (!%p702_p8), %v467_v41, %v466_v39  ;;  %v481_v44 = vrot.slane (!%p702_p8), %v480_v42, 4 }
 0x15c   : > { %v469_v45 = vrot.slane %v468_v43, 2  ;;  %v482_v46 = vadd.f32 %v481_v44, %v480_v42 }
 0x15e   : > { %v470_v47 = vadd.f32 %v469_v45, %v468_v43  ;;  %v483_v48 = vrot.slane %v482_v46, 2 }
 0x160   : > { %v471_v49 = vrot.slane %v470_v47, 1  ;;  %v484_v50 = vadd.f32 %v483_v48, %v482_v46 }
 0x162   : > { %v472_v52 = vadd.f32 %v471_v49, %v470_v47  ;;  %v485_v53 = vrot.slane %v484_v50, 1 }
 0x164   : > { %v473_v55 = vadd.f32 %v472_v52, %v464_v51  ;;  %v486_v56 = vadd.f32 %v485_v53, %v484_v50 }
 0x166   : > { %474 = vst [vmem:[#allocation2] sm:$0x1] %v473_v55  ;;  %v487_v57 = vadd.f32 %v486_v56, %v475_v54 }
 0x168   : > { %488 = vst [vmem:[#allocation3] sm:$0x1] %v487_v57 }
 0x169 PF: > { %p706_p6 = scmp.ne.s32.totalorder %s964_s15, 1 }
 0x16a   : > { %v517_v63 = vlaneseq (!%p706_p6)  ;;  %v707_v11 = vld [vmem:[#allocation6] ss:$0 sm:$0xff] (!%p706_p6)  ;;  %v708_v15 = vld [vmem:[#allocation8] ss:$0 sm:$0xff] (!%p706_p6) }
 0x16b   : > { %508 = sbr.rel (%p706_p6) target bundleno = 400 (0x190), region = 60 }
 0x16c   : > { %v518_v2 = vshrl.u32 (!%p706_p6), %v517_v63, 7 }
 0x16d   : > { %v509_v58 = vld [vmem:[#allocation2] sm:$0x1] (!%p706_p6) }
 0x16e   : > { %v510_v60 = vmul.f32 (!%p706_p6), 0.055555556, %v509_v58  ;;  %v519_v4 = vsub.s32 (!%p706_p6), 0, %v518_v2 }
 0x16f   : > { %v511_v59 = vld [vmem:[#allocation3] sm:$0x1] (!%p706_p6) }
 0x170   : > { %v512_v61 = vmul.f32 (!%p706_p6), 0.055555556, %v511_v59  ;;  %v513_v62 = vmul.f32 (!%p706_p6), %v510_v60, %v510_v60  ;;  %v520_v5 = vrot.slane (!%p706_p6), %v510_v60, %v519_v4 }
 0x172   : > { %v514_v0 = vsub.f32 %v512_v61, %v513_v62  ;;  %v522_v6 = vsub.f32 %v1135_v25, %v520_v5  ;;  %v523_v7 = vsub.f32 %v754_v31, %v520_v5  ;;  %v524_v8 = vsub.f32 %v1137_v26, %v520_v5 }
 0x174   : > { %v515_v1 = vmax.f32 %v514_v0, 0.0 }
 0x176   : > { %v525_v3 = vadd.f32 1e-05, %v515_v1 }
 0x178   : > { %856 = vrsqrt.f32 %v525_v3 }
 0x182   : > { %v857_v9 = vpop.eup %856 }
 0x183   : > { %v531_v10 = vrot.slane %v857_v9, %v519_v4 }
 0x185   : > { %v533_v12 = vmul.f32 %v531_v10, %v522_v6  ;;  %v534_v13 = vmul.f32 %v531_v10, %v523_v7  ;;  %v535_v14 = vmul.f32 %v531_v10, %v524_v8 }
 0x187   : > { %v543_v16 = vmul.f32 %v707_v11, %v533_v12  ;;  %v544_v17 = vmul.f32 %v707_v11, %v534_v13  ;;  %v545_v18 = vmul.f32 %v707_v11, %v535_v14 }
 0x189   : > { %v553_v19 = vadd.f32 %v708_v15, %v543_v16  ;;  %v554_v20 = vadd.f32 %v708_v15, %v544_v17  ;;  %v555_v21 = vadd.f32 %v708_v15, %v545_v18 }
 0x18b   : > { %v556_v22 = vmax.f32 %v553_v19, 0.0  ;;  %v557_v23 = vmax.f32 %v554_v20, 0.0  ;;  %v558_v24 = vmax.f32 %v555_v21, 0.0 }
 0x18d   : > { %v731_v25 = vpack.c.bf16 %v557_v23, %v556_v22  ;;  %v722_v27 = vpack.c.bf16 %v558_v24, %v558_v24 }
 0x18f   : > { %732 = vst [vmem:[%s1177_s4] sm:$0xff] %v731_v25   ;;  %574 = vst [vmem:[%s1177_s4 + $0x8] sm:$0xf] %v722_v27 }
 0x190 PF: > { %s16_s17 = sadd.s32 1, %s972_s17   ;;  %s1189_s15 = smov %s968_s16 }
 0x191   : > { %p13_p9 = scmp.ge.s32.totalorder %s16_s17, 4   ;;  %s1190_s16 = smov %s1192_s23 }
 0x193   :  { %15 = sbr.rel (!%p13_p9) target bundleno = 3 (0x3), region = 91 }
 0x19a   :  { %597 = vsyncpa [#allocation5], 1 }
 0x19b   :  { %599 = vsyncpa [#allocation5 + $0x1], 1 }
 0x19c   :  { %600 = vsyncpa [#allocation7], 1 }

// kernel: generator_forward.5
= control target key start
LH: loop header
LB: loop body
LE: loop exit
PB: predicated region body
PF: predicated region fallthrough
CT: control target
= control target key end

     0   :  { %9 = vsyncpa [#allocation5], 0  ;;  %s2639_s0 = inlined_call_operand.vmem [shape: bf16[72,1024], index: 0, kind: input, shape index: {}]   ;;  %s2640_s1 = inlined_call_operand.hbm [shape: bf16[1024,128], index: 1, kind: input, shape index: {}]   ;;  %s2641_s2 = inlined_call_operand.hbm [shape: f32[1,128], index: 2, kind: input, shape index: {}]   ;;  %s2642_s3 = inlined_call_operand.hbm [shape: f32[1,128], index: 3, kind: input, shape index: {}]   ;;  %s2643_s4 = inlined_call_operand.vmem [shape: bf16[72,128], index: 4, kind: output, shape index: {}]  }
   0x1   :  { %10 = vsyncpa [#allocation7], 0  ;;  %s2276_s15 = smov 0   ;;  %s2278_s16 = smov 0  }
   0x2   :  { %s2280_s17 = smov 0  }
   0x3 LB: > { %s2245_s18 = smov [#allocation6]   ;;  %s1607_s20 = sadd.s32 4294967295, %s2243_s17   ;;  %s2243_s17 = sphi %s2280_s17, %s16_s17   ;;  %s2239_s16 = sphi %s2278_s16, %s2656_s16   ;;  %s2235_s15 = sphi %s2276_s15, %s2655_s15  }
   0x4   : > { %s184_s19 = sshll.u32 %s2245_s18, 4  ;;  %p1608_p0 = scmp.ge.s32.totalorder %s2243_s17, 1  ;;  %s185_s19 = int_to_ptr.vmem [resolvable:$true] %s184_s19 }
   0x5   : > { %p148_p1 = scmp.lt.s32.totalorder %s2243_s17, 3  ;;  %p2294_p2 = scmp.eq.s32.totalorder %s1607_s20, 0 }
   0x6   : > { %s28_s23 = sadd.s32 1, %s2239_s16  ;;  %s2246_s26 = smov [#allocation4]  }
   0x7   : > { %s2647_s21 = scalar_select %p2294_p2, 1, 0 }
   0x8   : > { %p2298_p3 = pnand %p1608_p0, %p148_p1  ;;  %p2311_p6 = scmp.ge.s32.totalorder %s28_s23, 2 }
   0x9   : > { %s170_s27 = sshll.u32 %s2246_s26, 4  ;;  %s2129_s30 = scalar_lea.hbm %s2641_s2, 16  ;;  %s2315_s27 = int_to_ptr.vmem [resolvable:$true] %s170_s27 }
   0xa   : > { %s2648_s22 = scalar_select %p2298_p3, 1, 0 }
   0xb   : > { %p2009_p4 = pneg %p2298_p3  ;;  %p2130_p7 = scmp.ne.s32.totalorder %s2641_s2, %s2129_s30 }
   0xc   : > { %s2650_s25 = scalar_select %p2311_p6, 1, 0 }
   0xd   : > { %p2307_p5 = pnand %p2294_p2, %p2009_p4  ;;  %p2136_p11 = scmp.lt.u32.totalorder %s2129_s30, %s2641_s2 }
   0xf   : > { %p2325_p8 = pneg %p2307_p5 }
  0x11   : > { %p2132_p9 = pnand %p2325_p8, %p2130_p7 }
  0x13   : > { %p2133_p10 = pneg %p2132_p9 }
  0x15   : > { %p2138_p12 = pnand %p2136_p11, %p2133_p10 }
  0x17   : > { %2141 = shalt.err (!%p2138_p12)
}
  0x18   : > { %s2142_s10 = scalar_lea.vmem %s185_s19, 16  ;;  %s2149_s11 = scalar_lea.vmem %s185_s19, 32 }
  0x19   : > { %p2143_p13 = scmp.ne.s32.totalorder %s185_s19, %s2142_s10  ;;  %p2150_p4 = scmp.lt.s32.totalorder %s185_s19, %s185_s19 }
  0x1a   : > { %p2151_p2 = scmp.lt.s32.totalorder %s2149_s11, %s2142_s10 }
  0x1b   : > { %p2145_p0 = pnand %p2143_p13, %p2325_p8 }
  0x1c   : > { %p2152_p3 = por %p2151_p2, %p2150_p4 }
  0x1d   : > { %p2146_p1 = pneg %p2145_p0 }
  0x1f   : > { %p2153_p6 = pnand %p2152_p3, %p2146_p1 }
  0x21   : > { %2156 = shalt.err (!%p2153_p6)
}
  0x22   : > { %2015 = dma.hbm_to_vmem [thread:$0]  (!%p2307_p5), %s2641_s2, 16, %s185_s19, [#allocation7]  }
  0x23   : > { %p2652_p7 = scmp.ne.s32.totalorder %s2650_s25, 0  ;;  %s2157_s20 = scalar_lea.hbm %s2640_s1, 8192 }
  0x24   : > { %p2158_p2 = scmp.ne.s32.totalorder %s2640_s1, %s2157_s20  ;;  %p2164_p9 = scmp.lt.u32.totalorder %s2157_s20, %s2640_s1 }
  0x25   : > { %s2658_s23 = smov (%p2652_p7, %s28_s23), 0 }
  0x26   : > { %p2160_p3 = pnand %p2158_p2, %p2325_p8 }
  0x28   : > { %p2161_p6 = pneg %p2160_p3 }
  0x2a   : > { %p2166_p10 = pnand %p2164_p9, %p2161_p6 }
  0x2c   : > { %2169 = shalt.err (!%p2166_p10)
}
  0x2d   : > { %s2170_s19 = scalar_lea.vmem %s2315_s27, 8192  ;;  %p2178_p0 = scmp.lt.s32.totalorder %s2315_s27, %s2315_s27 }
  0x2e   : > { %p2171_p11 = scmp.ne.s32.totalorder %s2315_s27, %s2170_s19  ;;  %p2179_p1 = scmp.lt.s32.totalorder %s2170_s19, %s2170_s19 }
  0x30   : > { %p2173_p12 = pnand %p2171_p11, %p2325_p8  ;;  %p2180_p4 = por %p2179_p1, %p2178_p0 }
  0x32   : > { %p2174_p13 = pneg %p2173_p12 }
  0x34   : > { %p2181_p7 = pnand %p2180_p4, %p2174_p13 }
  0x36   : > { %2184 = shalt.err (!%p2181_p7)
}
  0x37   : > { %s2247_s25 = smov 64   ;;  %s2248_s5 = smov 4  }
  0x38   : > { %2012 = dma.hbm_to_vmem [thread:$0]  (!%p2307_p5), %s2640_s1, 8192, %s2315_s27, [#allocation5], %s2247_s25, %s2247_s25, %s2248_s5  }
  0x39   : > { %s2249_s9 = smov [#allocation8]   ;;  %s2185_s13 = scalar_lea.hbm %s2642_s3, 16 }
  0x3a   : > { %s195_s10 = sshll.u32 %s2249_s9, 4  ;;  %p2186_p2 = scmp.ne.s32.totalorder %s2642_s3, %s2185_s13  ;;  %s196_s10 = int_to_ptr.vmem [resolvable:$true] %s195_s10 }
  0x3b   : > { %p2192_p9 = scmp.lt.u32.totalorder %s2185_s13, %s2642_s3 }
  0x3c   : > { %p2188_p3 = pnand %p2186_p2, %p2325_p8 }
  0x3e   : > { %p2189_p6 = pneg %p2188_p3 }
  0x40   : > { %p2194_p10 = pnand %p2192_p9, %p2189_p6 }
  0x42   : > { %2197 = shalt.err (!%p2194_p10)
}
  0x43   : > { %s2198_s27 = scalar_lea.vmem %s196_s10, 16  ;;  %s2205_s28 = scalar_lea.vmem %s196_s10, 32 }
  0x44   : > { %p2199_p11 = scmp.ne.s32.totalorder %s196_s10, %s2198_s27  ;;  %p2206_p0 = scmp.lt.s32.totalorder %s196_s10, %s196_s10 }
  0x45   : > { %p2207_p1 = scmp.lt.s32.totalorder %s2205_s28, %s2198_s27 }
  0x46   : > { %p2201_p12 = pnand %p2199_p11, %p2325_p8 }
  0x47   : > { %p2208_p4 = por %p2207_p1, %p2206_p0 }
  0x48   : > { %p2202_p13 = pneg %p2201_p12 }
  0x4a   : > { %p2209_p7 = pnand %p2208_p4, %p2202_p13 }
  0x4c   : > { %2212 = shalt.err (!%p2209_p7)
}
  0x4d   : > { %2018 = dma.hbm_to_vmem [thread:$0]  (!%p2307_p5), %s2642_s3, 16, %s196_s10, [#allocation7]  }
  0x4e   : > { %p2653_p2 = scmp.ne.s32.totalorder %s2648_s22, 0 }
  0x4f   : > { %p2654_p3 = scmp.ne.s32.totalorder (!%p2653_p2), %s2647_s21, 0 }
  0x50   : > { %208 = sbr.rel (%p2653_p2) target bundleno = 495 (0x1ef), region = 36 }
  0x57   : > { %2226 = dma.done.wait (%p2654_p3), [#allocation5], 8192  }
  0x58   : > { %2228 = vsyncadd (%p2654_p3), [#allocation5], 4294959104 }
  0x59   : > { %2230 = dma.done.wait (%p2654_p3), [#allocation7], 32  }
  0x5a   : > { %2232 = vsyncadd (%p2654_p3), [#allocation7], 4294967264  ;;  %v2055_v0 = vld [vmem:[#allocation4 + $0x40] sm:$0xff]   ;;  %v2059_v4 = vld [vmem:[#allocation4 + $0x48] sm:$0xff]   ;;  %p1281_p5 = scmp.eq.s32.totalorder %s2235_s15, 0 }
  0x5b   : > { %v2056_v1 = vld [vmem:[#allocation4 + $0xc0] sm:$0xff]   ;;  %1813 = vmatprep.subr.bf16.mxu0 %v2055_v0  ;;  %v2060_v5 = vld [vmem:[#allocation4 + $0xc8] sm:$0xff]   ;;  %v2063_v8 = vld [vmem:[#allocation4 + $0x50] sm:$0xff]  }
  0x5c   : > { %v2057_v2 = vld [vmem:[#allocation4] sm:$0xff]   ;;  %1859 = vmatprep.subr.bf16.mxu1 %v2056_v1  ;;  %v2061_v6 = vld [vmem:[#allocation4 + $0x8] sm:$0xff]   ;;  %v2064_v9 = vld [vmem:[#allocation4 + $0xd0] sm:$0xff]  }
  0x5d   : > { %v2058_v3 = vld [vmem:[#allocation4 + $0x80] sm:$0xff]   ;;  %1814 = vmatpush3.bf16.msra.mxu0 %v2057_v2  ;;  %v2062_v7 = vld [vmem:[#allocation4 + $0x88] sm:$0xff]   ;;  %v2065_v10 = vld [vmem:[#allocation4 + $0x10] sm:$0xff]  }
  0x5e   : > { %1860 = vmatpush3.bf16.msra.mxu1 %v2058_v3  ;;  %1815 = vmatprep.subr.bf16.mxu0 %v2059_v4  ;;  %v2066_v11 = vld [vmem:[#allocation4 + $0x90] sm:$0xff]   ;;  %v2067_v12 = vld [vmem:[#allocation4 + $0x58] sm:$0xff]   ;;  %v2071_v16 = vld [vmem:[#allocation4 + $0x60] sm:$0xff]  }
  0x5f   : > { %1861 = vmatprep.subr.bf16.mxu1 %v2060_v5  ;;  %v2068_v13 = vld [vmem:[#allocation4 + $0xd8] sm:$0xff]   ;;  %v2072_v17 = vld [vmem:[#allocation4 + $0xe0] sm:$0xff]   ;;  %v2075_v20 = vld [vmem:[#allocation4 + $0x68] sm:$0xff]  }
  0x60   : > { %v2069_v14 = vld [vmem:[#allocation4 + $0x18] sm:$0xff]   ;;  %v2073_v18 = vld [vmem:[#allocation4 + $0x20] sm:$0xff]   ;;  %v2076_v21 = vld [vmem:[#allocation4 + $0xe8] sm:$0xff]  }
  0x61   : > { %1816 = vmatpush3.bf16.msra.mxu0 %v2061_v6  ;;  %v2070_v15 = vld [vmem:[#allocation4 + $0x98] sm:$0xff]   ;;  %v2074_v19 = vld [vmem:[#allocation4 + $0xa0] sm:$0xff]   ;;  %v2077_v22 = vld [vmem:[#allocation4 + $0x28] sm:$0xff]  }
  0x62   : > { %1862 = vmatpush3.bf16.msra.mxu1 %v2062_v7  ;;  %1817 = vmatprep.subr.bf16.mxu0 %v2063_v8  ;;  %v2078_v23 = vld [vmem:[#allocation4 + $0xa8] sm:$0xff]   ;;  %v2079_v24 = vld [vmem:[#allocation4 + $0x70] sm:$0xff]   ;;  %v2083_v28 = vld [vmem:[#allocation4 + $0x78] sm:$0xff]  }
  0x63   : > { %1863 = vmatprep.subr.bf16.mxu1 %v2064_v9  ;;  %v2080_v25 = vld [vmem:[#allocation4 + $0xf0] sm:$0xff]   ;;  %v2084_v29 = vld [vmem:[#allocation4 + $0xf8] sm:$0xff]   ;;  %v258_v34 = vld [vmem:[%s2639_s0 + $0x8] sm:$0xff] }
  0x64   : > { %v2081_v26 = vld [vmem:[#allocation4 + $0x30] sm:$0xff]   ;;  %v2085_v30 = vld [vmem:[#allocation4 + $0x38] sm:$0xff]   ;;  %v262_v37 = vld [vmem:[%s2639_s0 + $0x28] sm:$0xff] }
  0x65   : > { %1818 = vmatpush3.bf16.msra.mxu0 %v2065_v10  ;;  %v2082_v27 = vld [vmem:[#allocation4 + $0xb0] sm:$0xff]   ;;  %v2086_v31 = vld [vmem:[#allocation4 + $0xb8] sm:$0xff]   ;;  %v1619_v38 = vcombine.low %v258_v34, %v262_v37  ;;  %v1620_v39 = vcombine.high %v258_v34, %v262_v37  ;;  %v2087_v40 = vld [vmem:[#allocation4 + $0x140] sm:$0xff]  }
  0x66   : > { %1864 = vmatpush3.bf16.msra.mxu1 %v2066_v11  ;;  %1819 = vmatprep.subr.bf16.mxu0 %v2067_v12  ;;  %v257_v32 = vld [vmem:[%s2639_s0] sm:$0xff]  ;;  %v2091_v44 = vld [vmem:[#allocation4 + $0x148] sm:$0xff]   ;;  %v2095_v56 = vld [vmem:[#allocation4 + $0x150] sm:$0xff]  }
  0x67   : > { %1865 = vmatprep.subr.bf16.mxu1 %v2068_v13  ;;  %v261_v33 = vld [vmem:[%s2639_s0 + $0x20] sm:$0xff]  ;;  %1097 = vmatprep.mubr.bf16.mxu1 %v1620_v39  ;;  %v2092_v45 = vld [vmem:[#allocation4 + $0x108] sm:$0xff]   ;;  %v2096_v57 = vld [vmem:[#allocation4 + $0x110] sm:$0xff]  }
  0x68   : > { %v1617_v35 = vcombine.low %v257_v32, %v261_v33  ;;  %v1618_v36 = vcombine.high %v257_v32, %v261_v33  ;;  %v2088_v41 = vld [vmem:[#allocation4 + $0x100] sm:$0xff]   ;;  %v2093_v53 = vld [vmem:[#allocation4 + $0x1c8] sm:$0xff]   ;;  %v2097_v58 = vld [vmem:[#allocation4 + $0x1d0] sm:$0xff]  }
  0x69   : > { %1820 = vmatpush3.bf16.msra.mxu0 %v2069_v14  ;;  %v2089_v42 = vld [vmem:[#allocation4 + $0x1c0] sm:$0xff]   ;;  %v2094_v55 = vld [vmem:[#allocation4 + $0x188] sm:$0xff]   ;;  %v2098_v59 = vld [vmem:[#allocation4 + $0x190] sm:$0xff]  }
  0x6a   : > { %1866 = vmatpush3.bf16.msra.mxu1 %v2070_v15  ;;  %1821 = vmatprep.subr.bf16.mxu0 %v2071_v16  ;;  %v2090_v43 = vld [vmem:[#allocation4 + $0x180] sm:$0xff]   ;;  %v2099_v2 = vld [vmem:[#allocation4 + $0x158] sm:$0xff]   ;;  %v2118_v33 = vld [vmem:[#allocation4 + $0x1b0] sm:$0xff]  }
  0x6b   : > { %1867 = vmatprep.subr.bf16.mxu1 %v2072_v17  ;;  %1025 = vmatprep.mubr.bf16.mxu0 %v1618_v36  ;;  %v265_v46 = vld [vmem:[%s2639_s0 + $0x40] sm:$0xff]  ;;  %v266_v49 = vld [vmem:[%s2639_s0 + $0x48] sm:$0xff]  ;;  %v263_v39 = vld [vmem:[%s2639_s0 + $0x30] sm:$0xff] }
  0x6c   : > { %v269_v47 = vld [vmem:[%s2639_s0 + $0x60] sm:$0xff]  ;;  %v270_v50 = vld [vmem:[%s2639_s0 + $0x68] sm:$0xff] }
  0x6d   : > { %1822 = vmatpush3.bf16.msra.mxu0 %v2073_v18  ;;  %v1626_v48 = vcombine.high %v265_v46, %v269_v47  ;;  %v1625_v51 = vcombine.low %v265_v46, %v269_v47  ;;  %v1628_v52 = vcombine.high %v266_v49, %v270_v50  ;;  %v1627_v54 = vcombine.low %v266_v49, %v270_v50  ;;  %v273_v60 = vld [vmem:[%s2639_s0 + $0x80] sm:$0xff]  ;;  %v274_v62 = vld [vmem:[%s2639_s0 + $0x88] sm:$0xff]  ;;  %v268_v47 = vld [vmem:[%s2639_s0 + $0x58] sm:$0xff] }
  0x6e   : > { %1868 = vmatpush3.bf16.msra.mxu1 %v2074_v19  ;;  %1823 = vmatprep.subr.bf16.mxu0 %v2075_v20  ;;  %v277_v61 = vld [vmem:[%s2639_s0 + $0xa0] sm:$0xff]  ;;  %v278_v63 = vld [vmem:[%s2639_s0 + $0xa8] sm:$0xff] }
  0x6f   : > { %1869 = vmatprep.subr.bf16.mxu1 %v2076_v21  ;;  %v1634_v0 = vcombine.high %v273_v60, %v277_v61  ;;  %v1636_v1 = vcombine.high %v274_v62, %v278_v63  ;;  %v1633_v3 = vcombine.low %v273_v60, %v277_v61  ;;  %v1635_v4 = vcombine.low %v274_v62, %v278_v63  ;;  %v2100_v5 = vld [vmem:[#allocation4 + $0x118] sm:$0xff]   ;;  %v2103_v8 = vld [vmem:[#allocation4 + $0x160] sm:$0xff]   ;;  %v2107_v20 = vld [vmem:[#allocation4 + $0x168] sm:$0xff]  }
  0x70   : > { %v2101_v6 = vld [vmem:[#allocation4 + $0x1d8] sm:$0xff]   ;;  %v2104_v9 = vld [vmem:[#allocation4 + $0x120] sm:$0xff]   ;;  %v2108_v21 = vld [vmem:[#allocation4 + $0x128] sm:$0xff]  }
  0x71   : > { %1824 = vmatpush3.bf16.msra.mxu0 %v2077_v22  ;;  %v2102_v7 = vld [vmem:[#allocation4 + $0x198] sm:$0xff]   ;;  %v2105_v10 = vld [vmem:[#allocation4 + $0x1e0] sm:$0xff]   ;;  %v2109_v22 = vld [vmem:[#allocation4 + $0x1e8] sm:$0xff]  }
  0x72   : > { %1870 = vmatpush3.bf16.msra.mxu1 %v2078_v23  ;;  %1825 = vmatprep.subr.bf16.mxu0 %v2079_v24  ;;  %v281_v11 = vld [vmem:[%s2639_s0 + $0xc0] sm:$0xff]  ;;  %v282_v13 = vld [vmem:[%s2639_s0 + $0xc8] sm:$0xff]  ;;  %v2111_v24 = vld [vmem:[#allocation4 + $0x170] sm:$0xff]  }
  0x73   : > { %1871 = vmatprep.subr.bf16.mxu1 %v2080_v25  ;;  %v285_v12 = vld [vmem:[%s2639_s0 + $0xe0] sm:$0xff]  ;;  %v286_v15 = vld [vmem:[%s2639_s0 + $0xe8] sm:$0xff]  ;;  %v283_v60 = vld [vmem:[%s2639_s0 + $0xd0] sm:$0xff] }
  0x74   : > { %v1642_v14 = vcombine.high %v281_v11, %v285_v12  ;;  %v1641_v16 = vcombine.low %v281_v11, %v285_v12  ;;  %v1644_v17 = vcombine.high %v282_v13, %v286_v15  ;;  %v2106_v18 = vld [vmem:[#allocation4 + $0x1a0] sm:$0xff]   ;;  %v1643_v19 = vcombine.low %v282_v13, %v286_v15  ;;  %v2110_v23 = vld [vmem:[#allocation4 + $0x1a8] sm:$0xff]   ;;  %v2119_v34 = vld [vmem:[#allocation4 + $0x178] sm:$0xff]  }
  0x75   : > { %1826 = vmatpush3.bf16.msra.mxu0 %v2081_v26  ;;  %v289_v25 = vld [vmem:[%s2639_s0 + $0x100] sm:$0xff]  ;;  %v290_v26 = vld [vmem:[%s2639_s0 + $0x108] sm:$0xff]  ;;  %v287_v61 = vld [vmem:[%s2639_s0 + $0xf0] sm:$0xff] }
  0x76   : > { %1872 = vmatpush3.bf16.msra.mxu1 %v2082_v27  ;;  %1827 = vmatprep.subr.bf16.mxu0 %v2083_v28  ;;  %v1650_v27 = vcombine.high %v289_v25, %v289_v25  ;;  %v1652_v28 = vcombine.high %v290_v26, %v290_v26  ;;  %v1651_v32 = vcombine.low %v290_v26, %v290_v26  ;;  %v2121_v36 = vld [vmem:[#allocation4 + $0x1f8] sm:$0xff]  }
  0x77   : > { %1873 = vmatprep.subr.bf16.mxu1 %v2084_v29  ;;  %v2114_v29 = vld [vmem:[#allocation4 + $0x130] sm:$0xff]   ;;  %v2122_v37 = vld [vmem:[#allocation4 + $0x1b8] sm:$0xff]  }
  0x78   : > { %v284_v62 = vld [vmem:[%s2639_s0 + $0xd8] sm:$0xff] }
  0x79   : > { %1828 = vmatpush3.bf16.msra.mxu0 %v2085_v30  ;;  %v1649_v30 = vcombine.low %v289_v25, %v289_v25  ;;  %v288_v63 = vld [vmem:[%s2639_s0 + $0xf8] sm:$0xff] }
  0x7a   : > { %1874 = vmatpush3.bf16.msra.mxu1 %v2086_v31  ;;  %1905 = vmatprep.subr.bf16.mxu0 %v2087_v40  ;;  %v2117_v31 = vld [vmem:[#allocation4 + $0x1f0] sm:$0xff]  }
  0x7b   : > { %1951 = vmatprep.subr.bf16.mxu1 %v2089_v42  ;;  %v260_v40 = vld [vmem:[%s2639_s0 + $0x18] sm:$0xff] }
  0x7c   : > { %1026 = vmatmul.mubr.bf16.vlgmr.msra.gmra.mrb[0].mxu0 %v1617_v35  ;;  %v2120_v35 = vld [vmem:[#allocation4 + $0x138] sm:$0xff]  }
  0x7d   : > { %1098 = vmatmul.mubr.bf16.vlgmr.msra.gmra.mrb[0].mxu1 %v1619_v38  ;;  %1906 = vmatpush3.bf16.msra.mxu0 %v2088_v41  ;;  %v259_v38 = vld [vmem:[%s2639_s0 + $0x10] sm:$0xff]  ;;  %v264_v42 = vld [vmem:[%s2639_s0 + $0x38] sm:$0xff] }
  0x7e   : > { %1952 = vmatpush3.bf16.msra.mxu1 %v2090_v43  ;;  %1907 = vmatprep.subr.bf16.mxu0 %v2091_v44  ;;  %v1622_v41 = vcombine.high %v259_v38, %v263_v39  ;;  %v267_v43 = vld [vmem:[%s2639_s0 + $0x50] sm:$0xff]  ;;  %v1624_v46 = vcombine.high %v260_v40, %v264_v42  ;;  %v1623_v49 = vcombine.low %v260_v40, %v264_v42 }
  0x7f   : > { %1033 = vmatprep.mubr.bf16.mxu0 %v1626_v48  ;;  %1105 = vmatprep.mubr.bf16.mxu1 %v1628_v52  ;;  %v271_v44 = vld [vmem:[%s2639_s0 + $0x70] sm:$0xff]  ;;  %v272_v48 = vld [vmem:[%s2639_s0 + $0x78] sm:$0xff] }
  0x80   : > { %1953 = vmatprep.subr.bf16.mxu1 %v2093_v53  ;;  %v1630_v50 = vcombine.high %v267_v43, %v271_v44  ;;  %v275_v52 = vld [vmem:[%s2639_s0 + $0x90] sm:$0xff] }
  0x81   : > { %1908 = vmatpush3.bf16.msra.mxu0 %v2092_v45  ;;  %v1621_v45 = vcombine.low %v259_v38, %v263_v39  ;;  %v279_v53 = vld [vmem:[%s2639_s0 + $0xb0] sm:$0xff] }
  0x82   : > { %1954 = vmatpush3.bf16.msra.mxu1 %v2094_v55  ;;  %1909 = vmatprep.subr.bf16.mxu0 %v2095_v56  ;;  %v280_v55 = vld [vmem:[%s2639_s0 + $0xb8] sm:$0xff]  ;;  %v1629_v56 = vcombine.low %v267_v43, %v271_v44 }
  0x83   : > { %1955 = vmatprep.subr.bf16.mxu1 %v2097_v58  ;;  %v1638_v58 = vcombine.high %v275_v52, %v279_v53 }
  0x84   : > { %1034 = vmatmul.mubr.bf16.gmra.mrb[4].mxu0 %v1625_v51  ;;  %v1632_v51 = vcombine.high %v268_v47, %v272_v48 }
  0x85   : > { %1106 = vmatmul.mubr.bf16.gmra.mrb[4].mxu1 %v1627_v54  ;;  %1910 = vmatpush3.bf16.msra.mxu0 %v2096_v57  ;;  %v276_v54 = vld [vmem:[%s2639_s0 + $0x98] sm:$0xff]  ;;  %v1631_v57 = vcombine.low %v268_v47, %v272_v48 }
  0x86   : > { %1956 = vmatpush3.bf16.msra.mxu1 %v2098_v59  ;;  %1041 = vmatprep.mubr.bf16.mxu0 %v1634_v0  ;;  %v1640_v59 = vcombine.high %v276_v54, %v280_v55  ;;  %v1637_v0 = vcombine.low %v275_v52, %v279_v53 }
  0x87   : > { %1113 = vmatprep.mubr.bf16.mxu1 %v1636_v1  ;;  %1911 = vmatprep.subr.bf16.mxu0 %v2099_v2  ;;  %v1639_v1 = vcombine.low %v276_v54, %v280_v55  ;;  %v1646_v2 = vcombine.high %v283_v60, %v287_v61 }
  0x88   : > { %1957 = vmatprep.subr.bf16.mxu1 %v2101_v6  ;;  %v1645_v6 = vcombine.low %v283_v60, %v287_v61 }
  0x89   : > { %1912 = vmatpush3.bf16.msra.mxu0 %v2100_v5  ;;  %v292_v5 = vld [vmem:[%s2639_s0 + $0x118] sm:$0xff] }
  0x8a   : > { %1958 = vmatpush3.bf16.msra.mxu1 %v2102_v7  ;;  %1913 = vmatprep.subr.bf16.mxu0 %v2103_v8  ;;  %v1647_v7 = vcombine.low %v284_v62, %v288_v63  ;;  %v1655_v11 = vcombine.low %v292_v5, %v292_v5 }
  0x8b   : > { %1959 = vmatprep.subr.bf16.mxu1 %v2105_v10 }
  0x8c   : > { %1042 = vmatmul.mubr.bf16.gmra.mrb[8].mxu0 %v1633_v3  ;;  %v1648_v3 = vcombine.high %v284_v62, %v288_v63 }
  0x8d   : > { %1114 = vmatmul.mubr.bf16.gmra.mrb[8].mxu1 %v1635_v4  ;;  %1914 = vmatpush3.bf16.msra.mxu0 %v2104_v9  ;;  %v291_v4 = vld [vmem:[%s2639_s0 + $0x110] sm:$0xff]  ;;  %v1656_v9 = vcombine.high %v292_v5, %v292_v5 }
  0x8e   : > { %1049 = vmatprep.mubr.bf16.mxu0 %v1642_v14  ;;  %1121 = vmatprep.mubr.bf16.mxu1 %v1644_v17  ;;  %v1654_v8 = vcombine.high %v291_v4, %v291_v4  ;;  %v1653_v10 = vcombine.low %v291_v4, %v291_v4 }
  0x8f   : > { %1960 = vmatpush3.bf16.msra.mxu1 %v2106_v18  ;;  %1915 = vmatprep.subr.bf16.mxu0 %v2107_v20 }
  0x90   : > { %1961 = vmatprep.subr.bf16.mxu1 %v2109_v22 }
  0x91   : > { %1916 = vmatpush3.bf16.msra.mxu0 %v2108_v21 }
  0x92   : > { %1917 = vmatprep.subr.bf16.mxu0 %v2111_v24 }
  0x93   : > { %1962 = vmatpush3.bf16.msra.mxu1 %v2110_v23 }
  0x94   : > { %1050 = vmatmul.mubr.bf16.gmra.mrb[12].mxu0 %v1641_v16  ;;  %1963 = vmatprep.subr.bf16.mxu1 %v2117_v31 }
  0x95   : > { %1122 = vmatmul.mubr.bf16.gmra.mrb[12].mxu1 %v1643_v19  ;;  %1057 = vmatprep.mubr.bf16.mxu0 %v1650_v27 }
  0x96   : > { %1129 = vmatprep.mubr.bf16.mxu1 %v1652_v28  ;;  %1918 = vmatpush3.bf16.msra.mxu0 %v2114_v29 }
  0x97   : > { %1964 = vmatpush3.bf16.msra.mxu1 %v2118_v33  ;;  %1919 = vmatprep.subr.bf16.mxu0 %v2119_v34 }
  0x98   : > { %1965 = vmatprep.subr.bf16.mxu1 %v2121_v36 }
  0x9a   : > { %1920 = vmatpush3.bf16.msra.mxu0 %v2120_v35 }
  0x9b   : > { %1966 = vmatpush3.bf16.msra.mxu1 %v2122_v37 }
  0x9c   : > { %1058 = vmatmul.mubr.bf16.gmra.mrb[16].mxu0 %v1649_v30 }
  0x9d   : > { %1130 = vmatmul.mubr.bf16.gmra.mrb[16].mxu1 %v1651_v32  ;;  %1169 = vmatprep.mubr.bf16.mxu0 %v1622_v41 }
  0x9e   : > { %1241 = vmatprep.mubr.bf16.mxu1 %v1624_v46 }
  0xa4   : > { %1170 = vmatmul.mubr.bf16.vlgmr.msra.gmra.mrb[20].mxu0 %v1621_v45 }
  0xa5   : > { %1242 = vmatmul.mubr.bf16.vlgmr.msra.gmra.mrb[20].mxu1 %v1623_v49  ;;  %1177 = vmatprep.mubr.bf16.mxu0 %v1630_v50 }
  0xa6   : > { %1249 = vmatprep.mubr.bf16.mxu1 %v1632_v51 }
  0xac   : > { %1178 = vmatmul.mubr.bf16.gmra.mrb[24].mxu0 %v1629_v56 }
  0xad   : > { %1250 = vmatmul.mubr.bf16.gmra.mrb[24].mxu1 %v1631_v57  ;;  %1185 = vmatprep.mubr.bf16.mxu0 %v1638_v58 }
  0xae   : > { %1257 = vmatprep.mubr.bf16.mxu1 %v1640_v59 }
  0xb4   : > { %1186 = vmatmul.mubr.bf16.gmra.mrb[28].mxu0 %v1637_v0 }
  0xb5   : > { %1258 = vmatmul.mubr.bf16.gmra.mrb[28].mxu1 %v1639_v1  ;;  %1193 = vmatprep.mubr.bf16.mxu0 %v1646_v2 }
  0xb6   : > { %1265 = vmatprep.mubr.bf16.mxu1 %v1648_v3 }
  0xbc   : > { %1194 = vmatmul.mubr.bf16.gmra.mrb[32].mxu0 %v1645_v6 }
  0xbd   : > { %1266 = vmatmul.mubr.bf16.gmra.mrb[32].mxu1 %v1647_v7  ;;  %1201 = vmatprep.mubr.bf16.mxu0 %v1654_v8 }
  0xbe   : > { %1273 = vmatprep.mubr.bf16.mxu1 %v1656_v9 }
  0xc4   : > { %1202 = vmatmul.mubr.bf16.gmra.mrb[36].mxu0 %v1653_v10 }
  0xc5   : > { %1274 = vmatmul.mubr.bf16.gmra.mrb[36].mxu1 %v1655_v11 }
 0x14f   : > { %v1829_v12 = vpop.f32.mrb[0].mxu0 }
 0x150   : > { %v1875_v13 = vpop.f32.mrb[0].mxu1  ;;  %v1830_v14 = vpop.f32.mrb[1].mxu0 }
 0x151   : > { %v1831_v15 = vadd.f32 %v1830_v14, %v1829_v12  ;;  %v1876_v16 = vpop.f32.mrb[1].mxu1  ;;  %v1832_v17 = vpop.f32.mrb[2].mxu0 }
 0x152   : > { %v1877_v18 = vadd.f32 %v1876_v16, %v1875_v13  ;;  %v1878_v19 = vpop.f32.mrb[2].mxu1  ;;  %v1833_v20 = vpop.f32.mrb[3].mxu0 }
 0x153   : > { %v1834_v21 = vadd.f32 %v1833_v20, %v1832_v17  ;;  %v1879_v22 = vpop.f32.mrb[3].mxu1 }
 0x154   : > { %v2505_v23 = vadd.f32 %v1877_v18, %v1831_v15  ;;  %v1880_v24 = vadd.f32 %v1879_v22, %v1878_v19 }
 0x156   : > { %v2507_v25 = vadd.f32 %v1880_v24, %v1834_v21 }
 0x157   : > { %v1835_v26 = vpop.f32.mrb[4].mxu0 }
 0x158   : > { %v1881_v27 = vpop.f32.mrb[4].mxu1  ;;  %v1836_v28 = vpop.f32.mrb[5].mxu0 }
 0x159   : > { %v1837_v29 = vadd.f32 %v1836_v28, %v1835_v26  ;;  %v1882_v30 = vpop.f32.mrb[5].mxu1  ;;  %v1838_v31 = vpop.f32.mrb[6].mxu0 }
 0x15a   : > { %v1883_v32 = vadd.f32 %v1882_v30, %v1881_v27  ;;  %v1884_v33 = vpop.f32.mrb[6].mxu1  ;;  %v1839_v34 = vpop.f32.mrb[7].mxu0 }
 0x15b   : > { %v1840_v35 = vadd.f32 %v1839_v34, %v1838_v31  ;;  %v1885_v36 = vpop.f32.mrb[7].mxu1 }
 0x15c   : > { %v2509_v37 = vadd.f32 %v1883_v32, %v1837_v29  ;;  %v1886_v38 = vadd.f32 %v1885_v36, %v1884_v33 }
 0x15e   : > { %v2511_v39 = vadd.f32 %v1886_v38, %v1840_v35 }
 0x15f   : > { %v1841_v40 = vpop.f32.mrb[8].mxu0 }
 0x160   : > { %v1887_v41 = vpop.f32.mrb[8].mxu1  ;;  %v1842_v42 = vpop.f32.mrb[9].mxu0 }
 0x161   : > { %v1843_v43 = vadd.f32 %v1842_v42, %v1841_v40  ;;  %v1888_v44 = vpop.f32.mrb[9].mxu1  ;;  %v1844_v45 = vpop.f32.mrb[10].mxu0 }
 0x162   : > { %v1889_v46 = vadd.f32 %v1888_v44, %v1887_v41  ;;  %v1890_v47 = vpop.f32.mrb[10].mxu1  ;;  %v1845_v48 = vpop.f32.mrb[11].mxu0 }
 0x163   : > { %v1846_v49 = vadd.f32 %v1845_v48, %v1844_v45  ;;  %v1891_v50 = vpop.f32.mrb[11].mxu1 }
 0x164   : > { %v2513_v51 = vadd.f32 %v1889_v46, %v1843_v43  ;;  %v1892_v52 = vadd.f32 %v1891_v50, %v1890_v47 }
 0x166   : > { %v2515_v53 = vadd.f32 %v1892_v52, %v1846_v49 }
 0x167   : > { %v1847_v54 = vpop.f32.mrb[12].mxu0 }
 0x168   : > { %v1893_v55 = vpop.f32.mrb[12].mxu1  ;;  %v1848_v56 = vpop.f32.mrb[13].mxu0 }
 0x169   : > { %v1849_v57 = vadd.f32 %v1848_v56, %v1847_v54  ;;  %v1894_v58 = vpop.f32.mrb[13].mxu1  ;;  %v1850_v59 = vpop.f32.mrb[14].mxu0 }
 0x16a   : > { %v1895_v60 = vadd.f32 %v1894_v58, %v1893_v55  ;;  %v1896_v61 = vpop.f32.mrb[14].mxu1  ;;  %v1851_v62 = vpop.f32.mrb[15].mxu0 }
 0x16b   : > { %v1852_v63 = vadd.f32 %v1851_v62, %v1850_v59  ;;  %v1897_v0 = vpop.f32.mrb[15].mxu1 }
 0x16c   : > { %v2517_v1 = vadd.f32 %v1895_v60, %v1849_v57  ;;  %v1898_v2 = vadd.f32 %v1897_v0, %v1896_v61 }
 0x16e   : > { %v2519_v3 = vadd.f32 %v1898_v2, %v1852_v63 }
 0x16f   : > { %v1853_v4 = vpop.f32.mrb[16].mxu0 }
 0x170   : > { %v1899_v5 = vpop.f32.mrb[16].mxu1  ;;  %v1854_v6 = vpop.f32.mrb[17].mxu0 }
 0x171   : > { %v1855_v7 = vadd.f32 %v1854_v6, %v1853_v4  ;;  %v1900_v8 = vpop.f32.mrb[17].mxu1  ;;  %v1856_v9 = vpop.f32.mrb[18].mxu0 }
 0x172   : > { %v1901_v10 = vadd.f32 %v1900_v8, %v1899_v5  ;;  %v1902_v11 = vpop.f32.mrb[18].mxu1  ;;  %v1857_v12 = vpop.f32.mrb[19].mxu0 }
 0x173   : > { %v1903_v13 = vpop.f32.mrb[19].mxu1 }
 0x174   : > { %v2521_v14 = vadd.f32 %v1901_v10, %v1855_v7 }
 0x177   : > { %v1921_v15 = vpop.f32.mrb[20].mxu0 }
 0x178   : > { %v1967_v16 = vpop.f32.mrb[20].mxu1  ;;  %v1922_v17 = vpop.f32.mrb[21].mxu0 }
 0x179   : > { %v1923_v18 = vadd.f32 %v1922_v17, %v1921_v15  ;;  %v1968_v19 = vpop.f32.mrb[21].mxu1  ;;  %v1924_v20 = vpop.f32.mrb[22].mxu0 }
 0x17a   : > { %v1969_v21 = vadd.f32 %v1968_v19, %v1967_v16  ;;  %v1970_v22 = vpop.f32.mrb[22].mxu1  ;;  %v1925_v24 = vpop.f32.mrb[23].mxu0 }
 0x17b   : > { %v1172_v26 = vadd.f32 %v1923_v18, %v2505_v23  ;;  %v1926_v27 = vadd.f32 %v1925_v24, %v1924_v20  ;;  %v1971_v28 = vpop.f32.mrb[23].mxu1 }
 0x17c   : > { %v1972_v29 = vadd.f32 %v1971_v28, %v1970_v22 }
 0x17d   : > { %v2524_v30 = vadd.f32 %v1969_v21, %v1172_v26  ;;  %v1175_v31 = vadd.f32 %v1926_v27, %v2507_v25 }
 0x17f   : > { %v2527_v32 = vadd.f32 %v1972_v29, %v1175_v31  ;;  %v1927_v33 = vpop.f32.mrb[24].mxu0 }
 0x180   : > { %v1973_v34 = vpop.f32.mrb[24].mxu1  ;;  %v1928_v35 = vpop.f32.mrb[25].mxu0 }
 0x181   : > { %v1929_v36 = vadd.f32 %v1928_v35, %v1927_v33  ;;  %v1974_v38 = vpop.f32.mrb[25].mxu1  ;;  %v1930_v40 = vpop.f32.mrb[26].mxu0 }
 0x182   : > { %v1975_v41 = vadd.f32 %v1974_v38, %v1973_v34  ;;  %v1976_v42 = vpop.f32.mrb[26].mxu1  ;;  %v1931_v43 = vpop.f32.mrb[27].mxu0 }
 0x183   : > { %v1180_v23 = vadd.f32 %v1929_v36, %v2509_v37  ;;  %v1932_v44 = vadd.f32 %v1931_v43, %v1930_v40  ;;  %v1977_v45 = vpop.f32.mrb[27].mxu1 }
 0x184   : > { %v1978_v46 = vadd.f32 %v1977_v45, %v1976_v42 }
 0x185   : > { %v2530_v47 = vadd.f32 %v1975_v41, %v1180_v23  ;;  %v1183_v25 = vadd.f32 %v1932_v44, %v2511_v39 }
 0x187   : > { %v2533_v48 = vadd.f32 %v1978_v46, %v1183_v25  ;;  %v1933_v49 = vpop.f32.mrb[28].mxu0 }
 0x188   : > { %v1979_v50 = vpop.f32.mrb[28].mxu1  ;;  %v1934_v52 = vpop.f32.mrb[29].mxu0 }
 0x189   : > { %v1935_v54 = vadd.f32 %v1934_v52, %v1933_v49  ;;  %v1980_v55 = vpop.f32.mrb[29].mxu1  ;;  %v1936_v56 = vpop.f32.mrb[30].mxu0 }
 0x18a   : > { %v1981_v57 = vadd.f32 %v1980_v55, %v1979_v50  ;;  %v1982_v58 = vpop.f32.mrb[30].mxu1  ;;  %v1937_v59 = vpop.f32.mrb[31].mxu0 }
 0x18b   : > { %v1188_v37 = vadd.f32 %v1935_v54, %v2513_v51  ;;  %v1938_v60 = vadd.f32 %v1937_v59, %v1936_v56  ;;  %v1983_v61 = vpop.f32.mrb[31].mxu1 }
 0x18c   : > { %v1984_v62 = vadd.f32 %v1983_v61, %v1982_v58 }
 0x18d   : > { %v2536_v63 = vadd.f32 %v1981_v57, %v1188_v37  ;;  %v1191_v39 = vadd.f32 %v1938_v60, %v2515_v53 }
 0x18f   : > { %v2539_v0 = vadd.f32 %v1984_v62, %v1191_v39  ;;  %v1939_v2 = vpop.f32.mrb[32].mxu0 }
 0x190   : > { %v1985_v4 = vpop.f32.mrb[32].mxu1  ;;  %v1940_v5 = vpop.f32.mrb[33].mxu0 }
 0x191   : > { %v1941_v6 = vadd.f32 %v1940_v5, %v1939_v2  ;;  %v1986_v7 = vpop.f32.mrb[33].mxu1  ;;  %v1942_v8 = vpop.f32.mrb[34].mxu0 }
 0x192   : > { %v1987_v9 = vadd.f32 %v1986_v7, %v1985_v4  ;;  %v1988_v10 = vpop.f32.mrb[34].mxu1  ;;  %v1943_v11 = vpop.f32.mrb[35].mxu0 }
 0x193   : > { %v1196_v51 = vadd.f32 %v1941_v6, %v2517_v1  ;;  %v1944_v12 = vadd.f32 %v1943_v11, %v1942_v8  ;;  %v1989_v13 = vpop.f32.mrb[35].mxu1 }
 0x194   : > { %v1990_v15 = vadd.f32 %v1989_v13, %v1988_v10 }
 0x195   : > { %v2542_v16 = vadd.f32 %v1987_v9, %v1196_v51  ;;  %v1199_v53 = vadd.f32 %v1944_v12, %v2519_v3  ;;  %v2250_v3 = vmov (%p1281_p5), 0.0  }
 0x196   : > { %1287 = vst [vmem:[#allocation2] sm:$0x1] (%p1281_p5), %v2250_v3  ;;  %1288 = vst [vmem:[#allocation3] sm:$0x1] (%p1281_p5), %v2250_v3 }
 0x197   : > { %v2545_v17 = vadd.f32 %v1990_v15, %v1199_v53  ;;  %v1945_v18 = vpop.f32.mrb[36].mxu0  ;;  %1286 = sbr.rel (!%p1281_p5) target bundleno = 414 (0x19e), region = 52 }
 0x198   : > { %v1991_v19 = vpop.f32.mrb[36].mxu1  ;;  %v1946_v20 = vpop.f32.mrb[37].mxu0 }
 0x199   : > { %v1947_v21 = vadd.f32 %v1946_v20, %v1945_v18  ;;  %v1992_v22 = vpop.f32.mrb[37].mxu1  ;;  %v1948_v24 = vpop.f32.mrb[38].mxu0 }
 0x19a   : > { %v1993_v26 = vadd.f32 %v1992_v22, %v1991_v19  ;;  %v1994_v27 = vpop.f32.mrb[38].mxu1  ;;  %v1949_v28 = vpop.f32.mrb[39].mxu0 }
 0x19b   : > { %v1204_v1 = vadd.f32 %v1947_v21, %v2521_v14  ;;  %v1995_v29 = vpop.f32.mrb[39].mxu1 }
 0x19d   : > { %v2548_v31 = vadd.f32 %v1993_v26, %v1204_v1 }
 0x19e PF: > { %p1722_p8 = scmp.ne.s32.totalorder %s2235_s15, 0 }
 0x19f   : > { %v1293_v33 = vadd.f32 (!%p1722_p8), %v2527_v32, %v2524_v30  ;;  %v1310_v34 = vmul.f32 (!%p1722_p8), %v2524_v30, %v2524_v30  ;;  %v1311_v14 = vmul.f32 (!%p1722_p8), %v2527_v32, %v2527_v32  ;;  %v1312_v35 = vmul.f32 (!%p1722_p8), %v2530_v47, %v2530_v47  ;;  %v1292_v12 = vld [vmem:[#allocation2] sm:$0x1] (!%p1722_p8)  ;;  %v1309_v53 = vld [vmem:[#allocation3] sm:$0x1] (!%p1722_p8) }
 0x1a0   : > { %1291 = sbr.rel (%p1722_p8) target bundleno = 448 (0x1c0), region = 56  ;;  %v1313_v38 = vmul.f32 (!%p1722_p8), %v2533_v48, %v2533_v48  ;;  %v1770_v41 = vpack.c.bf16 (!%p1722_p8), %v2527_v32, %v2524_v30  ;;  %v1775_v42 = vpack.c.bf16 (!%p1722_p8), %v2533_v48, %v2530_v47  ;;  %v1780_v43 = vpack.c.bf16 (!%p1722_p8), %v2539_v0, %v2536_v63 }
 0x1a1   : > { %v1294_v36 = vadd.f32 (!%p1722_p8), %v1293_v33, %v2530_v47  ;;  %v1319_v40 = vadd.f32 (!%p1722_p8), %v1311_v14, %v1310_v34  ;;  %v1785_v23 = vpack.c.bf16 (!%p1722_p8), %v2545_v17, %v2542_v16  ;;  %v1314_v45 = vmul.f32 (!%p1722_p8), %v2536_v63, %v2536_v63 }
 0x1a2   : > { %v1757_v25 = vpack.c.bf16 (!%p1722_p8), %v2548_v31, %v2548_v31  ;;  %1771 = vst [vmem:[%s2643_s4] sm:$0xff] (!%p1722_p8), %v1770_v41   ;;  %1807 = vst [vmem:[%s2643_s4 + $0x8] sm:$0xff] (!%p1722_p8), %v1775_v42   ;;  %v1315_v50 = vmul.f32 (!%p1722_p8), %v2539_v0, %v2539_v0  ;;  %v1316_v55 = vmul.f32 (!%p1722_p8), %v2542_v16, %v2542_v16 }
 0x1a3   : > { %v1295_v44 = vadd.f32 (!%p1722_p8), %v1294_v36, %v2533_v48  ;;  %v1320_v46 = vadd.f32 (!%p1722_p8), %v1319_v40, %v1312_v35  ;;  %1808 = vst [vmem:[%s2643_s4 + $0x10] sm:$0xff] (!%p1722_p8), %v1780_v43   ;;  %1809 = vst [vmem:[%s2643_s4 + $0x18] sm:$0xff] (!%p1722_p8), %v1785_v23   ;;  %v1317_v58 = vmul.f32 (!%p1722_p8), %v2545_v17, %v2545_v17 }
 0x1a4   : > { %1380 = vst [vmem:[%s2643_s4 + $0x20] sm:$0xf] (!%p1722_p8), %v1757_v25  ;;  %v1318_v60 = vmul.f32 (!%p1722_p8), %v2548_v31, %v2548_v31 }
 0x1a5   : > { %v1296_v49 = vadd.f32 (!%p1722_p8), %v1295_v44, %v2536_v63  ;;  %v1321_v52 = vadd.f32 (!%p1722_p8), %v1320_v46, %v1313_v38 }
 0x1a7   : > { %v1297_v54 = vadd.f32 %v1296_v49, %v2539_v0  ;;  %v1322_v56 = vadd.f32 %v1321_v52, %v1314_v45 }
 0x1a9   : > { %v1298_v57 = vadd.f32 %v1297_v54, %v2542_v16  ;;  %v1323_v59 = vadd.f32 %v1322_v56, %v1315_v50 }
 0x1ab   : > { %v1299_v37 = vadd.f32 %v1298_v57, %v2545_v17  ;;  %v1324_v61 = vadd.f32 %v1323_v59, %v1316_v55 }
 0x1ad   : > { %v1300_v62 = vadd.f32 %v1299_v37, %v2548_v31  ;;  %v1325_v39 = vadd.f32 %v1324_v61, %v1317_v58 }
 0x1af   : > { %v1301_v2 = vrot.slane %v1300_v62, 4  ;;  %v1326_v4 = vadd.f32 %v1325_v39, %v1318_v60 }
 0x1b1   : > { %v1302_v5 = vadd.f32 %v1301_v2, %v1300_v62  ;;  %v1327_v6 = vrot.slane %v1326_v4, 4 }
 0x1b3   : > { %v1303_v7 = vrot.slane %v1302_v5, 2  ;;  %v1328_v8 = vadd.f32 %v1327_v6, %v1326_v4 }
 0x1b5   : > { %v1304_v9 = vadd.f32 %v1303_v7, %v1302_v5  ;;  %v1329_v10 = vrot.slane %v1328_v8, 2 }
 0x1b7   : > { %v1305_v11 = vrot.slane %v1304_v9, 1  ;;  %v1330_v51 = vadd.f32 %v1329_v10, %v1328_v8 }
 0x1b9   : > { %v1306_v13 = vadd.f32 %v1305_v11, %v1304_v9  ;;  %v1331_v15 = vrot.slane %v1330_v51, 1 }
 0x1bb   : > { %v1307_v18 = vadd.f32 %v1306_v13, %v1292_v12  ;;  %v1332_v19 = vadd.f32 %v1331_v15, %v1330_v51 }
 0x1bd   : > { %1308 = vst [vmem:[#allocation2] sm:$0x1] %v1307_v18  ;;  %v1333_v20 = vadd.f32 %v1332_v19, %v1309_v53 }
 0x1bf   : > { %1334 = vst [vmem:[#allocation3] sm:$0x1] %v1333_v20 }
 0x1c0 PF: > { %p1732_p6 = scmp.ne.s32.totalorder %s2235_s15, 1 }
 0x1c1   : > { %v1393_v28 = vlaneseq (!%p1732_p6)  ;;  %v1733_v46 = vld [vmem:[#allocation6] ss:$0 sm:$0xff] (!%p1732_p6) }
 0x1c2   : > { %1384 = sbr.rel (%p1732_p6) target bundleno = 495 (0x1ef), region = 60 }
 0x1c3   : > { %v1394_v3 = vshrl.u32 (!%p1732_p6), %v1393_v28, 7 }
 0x1c4   : > { %v1385_v21 = vld [vmem:[#allocation2] sm:$0x1] (!%p1732_p6) }
 0x1c5   : > { %v1386_v24 = vmul.f32 (!%p1732_p6), 0.013888889, %v1385_v21  ;;  %v1395_v34 = vsub.s32 (!%p1732_p6), 0, %v1394_v3 }
 0x1c6   : > { %v1387_v22 = vld [vmem:[#allocation3] sm:$0x1] (!%p1732_p6) }
 0x1c7   : > { %v1388_v26 = vmul.f32 (!%p1732_p6), 0.013888889, %v1387_v22  ;;  %v1389_v27 = vmul.f32 (!%p1732_p6), %v1386_v24, %v1386_v24  ;;  %v1396_v14 = vrot.slane (!%p1732_p6), %v1386_v24, %v1395_v34 }
 0x1c9   : > { %v1390_v1 = vsub.f32 %v1388_v26, %v1389_v27  ;;  %v1398_v35 = vsub.f32 %v2524_v30, %v1396_v14  ;;  %v1399_v36 = vsub.f32 %v2527_v32, %v1396_v14  ;;  %v1400_v38 = vsub.f32 %v2530_v47, %v1396_v14  ;;  %v1734_v47 = vld [vmem:[#allocation8] ss:$0 sm:$0xff] }
 0x1ca   : > { %v1401_v40 = vsub.f32 %v2533_v48, %v1396_v14  ;;  %v1402_v42 = vsub.f32 %v2536_v63, %v1396_v14  ;;  %v1403_v43 = vsub.f32 %v2539_v0, %v1396_v14  ;;  %v1404_v23 = vsub.f32 %v2542_v16, %v1396_v14 }
 0x1cb   : > { %v1391_v29 = vmax.f32 %v1390_v1, 0.0  ;;  %v1405_v44 = vsub.f32 %v2545_v17, %v1396_v14  ;;  %v1406_v25 = vsub.f32 %v2548_v31, %v1396_v14 }
 0x1cd   : > { %v1407_v33 = vadd.f32 1e-05, %v1391_v29 }
 0x1cf   : > { %2127 = vrsqrt.f32 %v1407_v33 }
 0x1d9   : > { %v2128_v41 = vpop.eup %2127 }
 0x1da   : > { %v1413_v45 = vrot.slane %v2128_v41, %v1395_v34 }
 0x1dc   : > { %v1415_v30 = vmul.f32 %v1413_v45, %v1398_v35  ;;  %v1416_v49 = vmul.f32 %v1413_v45, %v1399_v36  ;;  %v1417_v32 = vmul.f32 %v1413_v45, %v1400_v38  ;;  %v1418_v50 = vmul.f32 %v1413_v45, %v1401_v40 }
 0x1dd   : > { %v1419_v52 = vmul.f32 %v1413_v45, %v1402_v42  ;;  %v1420_v48 = vmul.f32 %v1413_v45, %v1403_v43  ;;  %v1421_v54 = vmul.f32 %v1413_v45, %v1404_v23  ;;  %v1422_v55 = vmul.f32 %v1413_v45, %v1405_v44 }
 0x1de   : > { %v1431_v63 = vmul.f32 %v1733_v46, %v1415_v30  ;;  %v1432_v56 = vmul.f32 %v1733_v46, %v1416_v49  ;;  %v1433_v0 = vmul.f32 %v1733_v46, %v1417_v32  ;;  %v1434_v57 = vmul.f32 %v1733_v46, %v1418_v50 }
 0x1df   : > { %v1435_v16 = vmul.f32 %v1733_v46, %v1419_v52  ;;  %v1436_v58 = vmul.f32 %v1733_v46, %v1420_v48  ;;  %v1437_v17 = vmul.f32 %v1733_v46, %v1421_v54  ;;  %v1438_v59 = vmul.f32 %v1733_v46, %v1422_v55 }
 0x1e0   : > { %v1447_v37 = vadd.f32 %v1734_v47, %v1431_v63  ;;  %v1448_v60 = vadd.f32 %v1734_v47, %v1432_v56  ;;  %v1449_v31 = vadd.f32 %v1734_v47, %v1433_v0  ;;  %v1450_v61 = vadd.f32 %v1734_v47, %v1434_v57 }
 0x1e1   : > { %v1451_v62 = vadd.f32 %v1734_v47, %v1435_v16  ;;  %v1452_v39 = vadd.f32 %v1734_v47, %v1436_v58  ;;  %v1453_v2 = vadd.f32 %v1734_v47, %v1437_v17  ;;  %v1454_v4 = vadd.f32 %v1734_v47, %v1438_v59 }
 0x1e2   : > { %v1456_v5 = vmax.f32 %v1447_v37, 0.0  ;;  %v1457_v6 = vmax.f32 %v1448_v60, 0.0  ;;  %v1458_v7 = vmax.f32 %v1449_v31, 0.0  ;;  %v1459_v8 = vmax.f32 %v1450_v61, 0.0 }
 0x1e3   : > { %v1460_v9 = vmax.f32 %v1451_v62, 0.0  ;;  %v1461_v10 = vmax.f32 %v1452_v39, 0.0  ;;  %v1462_v11 = vmax.f32 %v1453_v2, 0.0  ;;  %v1463_v51 = vmax.f32 %v1454_v4, 0.0 }
 0x1e4   : > { %v1790_v12 = vpack.c.bf16 %v1457_v6, %v1456_v5  ;;  %v1795_v13 = vpack.c.bf16 %v1459_v8, %v1458_v7  ;;  %v1423_v15 = vmul.f32 %v1413_v45, %v1406_v25 }
 0x1e5   : > { %v1800_v53 = vpack.c.bf16 %v1461_v10, %v1460_v9  ;;  %v1805_v18 = vpack.c.bf16 %v1463_v51, %v1462_v11 }
 0x1e6   : > { %1791 = vst [vmem:[%s2643_s4] sm:$0xff] %v1790_v12   ;;  %1810 = vst [vmem:[%s2643_s4 + $0x8] sm:$0xff] %v1795_v13   ;;  %v1439_v19 = vmul.f32 %v1733_v46, %v1423_v15 }
 0x1e7   : > { %1811 = vst [vmem:[%s2643_s4 + $0x10] sm:$0xff] %v1800_v53   ;;  %1812 = vst [vmem:[%s2643_s4 + $0x18] sm:$0xff] %v1805_v18  }
 0x1e8   : > { %v1455_v20 = vadd.f32 %v1734_v47, %v1439_v19 }
 0x1ea   : > { %v1464_v21 = vmax.f32 %v1455_v20, 0.0 }
 0x1ec   : > { %v1766_v22 = vpack.c.bf16 %v1464_v21, %v1464_v21 }
 0x1ee   : > { %1510 = vst [vmem:[%s2643_s4 + $0x20] sm:$0xf] %v1766_v22 }
 0x1ef PF: > { %s16_s17 = sadd.s32 1, %s2243_s17   ;;  %s2655_s15 = smov %s2239_s16 }
 0x1f0   : > { %p13_p9 = scmp.ge.s32.totalorder %s16_s17, 4   ;;  %s2656_s16 = smov %s2658_s23 }
 0x1f2   :  { %15 = sbr.rel (!%p13_p9) target bundleno = 3 (0x3), region = 91 }
 0x1f9   :  { %1533 = vsyncpa [#allocation5], 1 }
 0x1fa   :  { %1535 = vsyncpa [#allocation5 + $0x1], 1 }
 0x1fb   :  { %1536 = vsyncpa [#allocation7], 1 }

// kernel: generator_forward.6
= control target key start
LH: loop header
LB: loop body
LE: loop exit
PB: predicated region body
PF: predicated region fallthrough
CT: control target
= control target key end

     0   :  { %s4603_s15 = smov 0   ;;  %s4605_s16 = smov 0   ;;  %s6310_s0 = inlined_call_operand.vmem [shape: bf16[344,896], index: 0, kind: input, shape index: {}]   ;;  %s6311_s1 = inlined_call_operand.vmem [shape: bf16[896,128], index: 1, kind: input, shape index: {}]   ;;  %s6312_s2 = inlined_call_operand.vmem [shape: f32[1,128], index: 2, kind: input, shape index: {}]   ;;  %s6313_s3 = inlined_call_operand.vmem [shape: f32[1,128], index: 3, kind: input, shape index: {}]   ;;  %s6314_s4 = inlined_call_operand.vmem [shape: bf16[344,128], index: 4, kind: output, shape index: {}]  }
   0x1   :  { %s4607_s17 = smov 0  }
   0x2 LB: > { %s26_s18 = sadd.s32 1, %s4570_s16  ;;  %p3360_p0 = scmp.ge.s32.totalorder %s4574_s17, 1  ;;  %s4574_s17 = sphi %s4607_s17, %s14_s17   ;;  %s4570_s16 = sphi %s4605_s16, %s6357_s16   ;;  %s4566_s15 = sphi %s4603_s15, %s6356_s15  }
   0x3   : > { %p28_p1 = scmp.ge.s32.totalorder %s26_s18, 2  ;;  %p176_p2 = scmp.lt.s32.totalorder %s4574_s17, 3 }
   0x5   : > { %s6359_s18 = smov (%p28_p1, %s26_s18), 0  ;;  %p177_p3 = pnand %p3360_p0, %p176_p2 }
   0x7   : > { %180 = sbr.rel (%p177_p3) target bundleno = 799 (0x31f), region = 36 }
   0xe   : > { %v4277_v0 = vld [vmem:[%s6311_s1] sm:$0xff]   ;;  %v4576_v1 = vmov 0   ;;  %v4279_v3 = vld [vmem:[%s6311_s1 + $0x8] sm:$0xff]   ;;  %v4281_v5 = vld [vmem:[%s6311_s1 + $0x10] sm:$0xff]   ;;  %p2450_p4 = scmp.eq.s32.totalorder %s4566_s15, 0 }
   0xf   : > { %1618 = vmatprep.subr.bf16.mxu1 %v4576_v1  ;;  %1826 = vmatprep.subr.bf16.mxu0 %v4576_v1  ;;  %v4631_v2 = vld [vmem:[%s6311_s1 + $0x80] sm:$0xff]   ;;  %v4641_v4 = vld [vmem:[%s6311_s1 + $0x88] sm:$0xff]   ;;  %v4652_v6 = vld [vmem:[%s6311_s1 + $0x90] sm:$0xff]  }
  0x10   : > { %1619 = vmatpush1.bf16.msra.mxu1 %v4277_v0  ;;  %1827 = vmatpush1.bf16.msra.mxu0 %v4631_v2  ;;  %v4283_v7 = vld [vmem:[%s6311_s1 + $0x18] sm:$0xff]   ;;  %v4285_v9 = vld [vmem:[%s6311_s1 + $0x20] sm:$0xff]   ;;  %v4287_v11 = vld [vmem:[%s6311_s1 + $0x28] sm:$0xff]  }
  0x11   : > { %1620 = vmatprep.subr.bf16.mxu1 %v4576_v1  ;;  %1828 = vmatprep.subr.bf16.mxu0 %v4576_v1  ;;  %v4663_v8 = vld [vmem:[%s6311_s1 + $0x98] sm:$0xff]   ;;  %v4674_v10 = vld [vmem:[%s6311_s1 + $0xa0] sm:$0xff]   ;;  %v4685_v12 = vld [vmem:[%s6311_s1 + $0xa8] sm:$0xff]  }
  0x12   : > { %v4289_v13 = vld [vmem:[%s6311_s1 + $0x30] sm:$0xff]   ;;  %v4291_v15 = vld [vmem:[%s6311_s1 + $0x38] sm:$0xff]   ;;  %v4293_v17 = vld [vmem:[%s6311_s1 + $0x40] sm:$0xff]  }
  0x13   : > { %v4696_v14 = vld [vmem:[%s6311_s1 + $0xb0] sm:$0xff]   ;;  %v4707_v16 = vld [vmem:[%s6311_s1 + $0xb8] sm:$0xff]   ;;  %v4718_v18 = vld [vmem:[%s6311_s1 + $0xc0] sm:$0xff]  }
  0x14   : > { %1621 = vmatpush1.bf16.msra.mxu1 %v4279_v3  ;;  %1829 = vmatpush1.bf16.msra.mxu0 %v4641_v4  ;;  %v4311_v19 = vld [vmem:[%s6310_s0 + $0x4] ss:$28 sps:$4 sm:$0xff]   ;;  %v4295_v20 = vld [vmem:[%s6311_s1 + $0x48] sm:$0xff]   ;;  %v4297_v23 = vld [vmem:[%s6311_s1 + $0x50] sm:$0xff]  }
  0x15   : > { %1622 = vmatprep.subr.bf16.mxu1 %v4576_v1  ;;  %1830 = vmatprep.subr.bf16.mxu0 %v4576_v1  ;;  %v4314_v21 = vld [vmem:[%s6310_s0 + $0xc] ss:$28 sps:$4 sm:$0xff]   ;;  %v4746_v24 = vld [vmem:[%s6311_s1 + $0xd0] sm:$0xff]   ;;  %v4299_v25 = vld [vmem:[%s6311_s1 + $0x58] sm:$0xff]  }
  0x16   : > { %v4735_v22 = vld [vmem:[%s6311_s1 + $0xc8] sm:$0xff]   ;;  %1650 = vmatprep.mubr.bf16.mxu1 %v4311_v19  ;;  %1858 = vmatprep.mubr.bf16.mxu0 %v4314_v21  ;;  %v4757_v26 = vld [vmem:[%s6311_s1 + $0xd8] sm:$0xff]   ;;  %v4301_v27 = vld [vmem:[%s6311_s1 + $0x60] sm:$0xff]  }
  0x17   : > { %v4768_v28 = vld [vmem:[%s6311_s1 + $0xe0] sm:$0xff]   ;;  %v4303_v29 = vld [vmem:[%s6311_s1 + $0x68] sm:$0xff]   ;;  %v4305_v31 = vld [vmem:[%s6311_s1 + $0x70] sm:$0xff]  }
  0x18   : > { %1623 = vmatpush1.bf16.msra.mxu1 %v4281_v5  ;;  %1831 = vmatpush1.bf16.msra.mxu0 %v4652_v6  ;;  %v4779_v30 = vld [vmem:[%s6311_s1 + $0xe8] sm:$0xff]   ;;  %v4790_v32 = vld [vmem:[%s6311_s1 + $0xf0] sm:$0xff]   ;;  %v4307_v33 = vld [vmem:[%s6311_s1 + $0x78] sm:$0xff]  }
  0x19   : > { %1624 = vmatprep.subr.bf16.mxu1 %v4576_v1  ;;  %1832 = vmatprep.subr.bf16.mxu0 %v4576_v1  ;;  %v4801_v34 = vld [vmem:[%s6311_s1 + $0xf8] sm:$0xff]   ;;  %v4312_v36 = vld [vmem:[%s6310_s0 + $0x8] ss:$28 sps:$4 sm:$0xff]   ;;  %v4323_v43 = vld [vmem:[%s6310_s0 + $0x74] ss:$28 sps:$4 sm:$0xff]  }
  0x1a   : > { %v4309_v35 = vld [vmem:[%s6310_s0] ss:$28 sps:$4 sm:$0xff]   ;;  %v4322_v40 = vld [vmem:[%s6311_s1 + $0x108] sm:$0xff]   ;;  %v4320_v41 = vld [vmem:[%s6310_s0 + $0x38] ss:$28 sps:$4 sm:$0xff]  }
  0x1b   : > { %v4316_v37 = vld [vmem:[%s6310_s0 + $0x3c] ss:$28 sps:$4 sm:$0xff]   ;;  %v4315_v38 = vld [vmem:[%s6311_s1 + $0x100] sm:$0xff]   ;;  %v4329_v45 = vld [vmem:[%s6311_s1 + $0x110] sm:$0xff]  }
  0x1c   : > { %1625 = vmatpush1.bf16.msra.mxu1 %v4283_v7  ;;  %1833 = vmatpush1.bf16.msra.mxu0 %v4663_v8  ;;  %v4318_v39 = vld [vmem:[%s6310_s0 + $0x44] ss:$28 sps:$4 sm:$0xff]   ;;  %v4325_v44 = vld [vmem:[%s6310_s0 + $0x7c] ss:$28 sps:$4 sm:$0xff]   ;;  %v4327_v47 = vld [vmem:[%s6310_s0 + $0x70] ss:$28 sps:$4 sm:$0xff]  }
  0x1d   : > { %1626 = vmatprep.subr.bf16.mxu1 %v4576_v1  ;;  %1834 = vmatprep.subr.bf16.mxu0 %v4576_v1  ;;  %v4321_v42 = vld [vmem:[%s6310_s0 + $0x40] ss:$28 sps:$4 sm:$0xff]   ;;  %v4328_v48 = vld [vmem:[%s6310_s0 + $0x78] ss:$28 sps:$4 sm:$0xff]   ;;  %v4330_v49 = vld [vmem:[%s6310_s0 + $0xac] ss:$28 sps:$4 sm:$0xff]  }
  0x1e   : > { %v4336_v46 = vld [vmem:[%s6311_s1 + $0x118] sm:$0xff]   ;;  %v4332_v50 = vld [vmem:[%s6310_s0 + $0xb4] ss:$28 sps:$4 sm:$0xff]   ;;  %v4343_v51 = vld [vmem:[%s6311_s1 + $0x120] sm:$0xff]  }
  0x1f   : > { %v4350_v52 = vld [vmem:[%s6311_s1 + $0x128] sm:$0xff]   ;;  %v4337_v55 = vld [vmem:[%s6310_s0 + $0xe4] ss:$28 sps:$4 sm:$0xff]   ;;  %v4357_v57 = vld [vmem:[%s6311_s1 + $0x130] sm:$0xff]  }
  0x20   : > { %1627 = vmatpush1.bf16.msra.mxu1 %v4285_v9  ;;  %1835 = vmatpush1.bf16.msra.mxu0 %v4674_v10  ;;  %v4334_v53 = vld [vmem:[%s6310_s0 + $0xa8] ss:$28 sps:$4 sm:$0xff]   ;;  %v4335_v54 = vld [vmem:[%s6310_s0 + $0xb0] ss:$28 sps:$4 sm:$0xff]   ;;  %v4364_v58 = vld [vmem:[%s6311_s1 + $0x138] sm:$0xff]  }
  0x21   : > { %1628 = vmatprep.subr.bf16.mxu1 %v4576_v1  ;;  %1836 = vmatprep.subr.bf16.mxu0 %v4576_v1  ;;  %v4339_v56 = vld [vmem:[%s6310_s0 + $0xec] ss:$28 sps:$4 sm:$0xff]   ;;  %v4341_v59 = vld [vmem:[%s6310_s0 + $0xe0] ss:$28 sps:$4 sm:$0xff]   ;;  %v4356_v9 = vld [vmem:[%s6310_s0 + $0x158] ss:$28 sps:$4 sm:$0xff]  }
  0x22   : > { %v4342_v60 = vld [vmem:[%s6310_s0 + $0xe8] ss:$28 sps:$4 sm:$0xff]   ;;  %v4344_v61 = vld [vmem:[%s6310_s0 + $0x11c] ss:$28 sps:$4 sm:$0xff]   ;;  %v4355_v7 = vld [vmem:[%s6310_s0 + $0x150] ss:$28 sps:$4 sm:$0xff]  }
  0x23   : > { %v4346_v62 = vld [vmem:[%s6310_s0 + $0x124] ss:$28 sps:$4 sm:$0xff]   ;;  %v4378_v0 = vld [vmem:[%s6311_s1 + $0x148] sm:$0xff]   ;;  %v4353_v5 = vld [vmem:[%s6310_s0 + $0x15c] ss:$28 sps:$4 sm:$0xff]  }
  0x24   : > { %1629 = vmatpush1.bf16.msra.mxu1 %v4287_v11  ;;  %1837 = vmatpush1.bf16.msra.mxu0 %v4685_v12  ;;  %v4371_v63 = vld [vmem:[%s6311_s1 + $0x140] sm:$0xff]   ;;  %v4360_v11 = vld [vmem:[%s6310_s0 + $0x194] ss:$28 sps:$4 sm:$0xff]   ;;  %v4426_v19 = vld [vmem:[%s6311_s1 + $0x178] sm:$0xff]  }
  0x25   : > { %1630 = vmatprep.subr.bf16.mxu1 %v4576_v1  ;;  %1838 = vmatprep.subr.bf16.mxu0 %v4576_v1  ;;  %v4349_v3 = vld [vmem:[%s6310_s0 + $0x120] ss:$28 sps:$4 sm:$0xff]  }
  0x26   : > { %v4999_v21 = vld [vmem:[%s6311_s1 + $0x180] sm:$0xff]  }
  0x28   : > { %1631 = vmatpush1.bf16.msra.mxu1 %v4289_v13  ;;  %1839 = vmatpush1.bf16.msra.mxu0 %v4696_v14  ;;  %v4362_v13 = vld [vmem:[%s6310_s0 + $0x188] ss:$28 sps:$4 sm:$0xff]  }
  0x29   : > { %1632 = vmatprep.subr.bf16.mxu1 %v4576_v1  ;;  %1840 = vmatprep.subr.bf16.mxu0 %v4576_v1 }
  0x2c   : > { %1633 = vmatpush1.bf16.msra.mxu1 %v4291_v15  ;;  %1841 = vmatpush1.bf16.msra.mxu0 %v4707_v16  ;;  %v4363_v15 = vld [vmem:[%s6310_s0 + $0x190] ss:$28 sps:$4 sm:$0xff]  }
  0x2d   : > { %1634 = vmatprep.subr.bf16.mxu1 %v4576_v1  ;;  %1842 = vmatprep.subr.bf16.mxu0 %v4576_v1 }
  0x30   : > { %1635 = vmatpush1.bf16.msra.mxu1 %v4293_v17  ;;  %1843 = vmatpush1.bf16.msra.mxu0 %v4718_v18  ;;  %v4367_v17 = vld [vmem:[%s6310_s0 + $0x1cc] ss:$28 sps:$4 sm:$0xff]  }
  0x31   : > { %1636 = vmatprep.subr.bf16.mxu1 %v4576_v1  ;;  %1844 = vmatprep.subr.bf16.mxu0 %v4576_v1 }
  0x34   : > { %1637 = vmatpush1.bf16.msra.mxu1 %v4295_v20  ;;  %1845 = vmatpush1.bf16.msra.mxu0 %v4735_v22  ;;  %v4369_v20 = vld [vmem:[%s6310_s0 + $0x1c0] ss:$28 sps:$4 sm:$0xff]  }
  0x35   : > { %1638 = vmatprep.subr.bf16.mxu1 %v4576_v1  ;;  %1846 = vmatprep.subr.bf16.mxu0 %v4576_v1 }
  0x38   : > { %1639 = vmatpush1.bf16.msra.mxu1 %v4297_v23  ;;  %1847 = vmatpush1.bf16.msra.mxu0 %v4746_v24  ;;  %v4372_v23 = vld [vmem:[%s6310_s0 + $0x1fc] ss:$28 sps:$4 sm:$0xff]  }
  0x39   : > { %1640 = vmatprep.subr.bf16.mxu1 %v4576_v1  ;;  %1848 = vmatprep.subr.bf16.mxu0 %v4576_v1 }
  0x3c   : > { %1641 = vmatpush1.bf16.msra.mxu1 %v4299_v25  ;;  %1849 = vmatpush1.bf16.msra.mxu0 %v4757_v26  ;;  %v4376_v25 = vld [vmem:[%s6310_s0 + $0x1f8] ss:$28 sps:$4 sm:$0xff]  }
  0x3d   : > { %1642 = vmatprep.subr.bf16.mxu1 %v4576_v1  ;;  %1850 = vmatprep.subr.bf16.mxu0 %v4576_v1 }
  0x40   : > { %1643 = vmatpush1.bf16.msra.mxu1 %v4301_v27  ;;  %1851 = vmatpush1.bf16.msra.mxu0 %v4768_v28  ;;  %v4381_v27 = vld [vmem:[%s6310_s0 + $0x23c] ss:$28 sps:$4 sm:$0xff]  }
  0x41   : > { %1644 = vmatprep.subr.bf16.mxu1 %v4576_v1  ;;  %1852 = vmatprep.subr.bf16.mxu0 %v4576_v1 }
  0x44   : > { %1645 = vmatpush1.bf16.msra.mxu1 %v4303_v29  ;;  %1853 = vmatpush1.bf16.msra.mxu0 %v4779_v30  ;;  %v4384_v29 = vld [vmem:[%s6310_s0 + $0x238] ss:$28 sps:$4 sm:$0xff]  }
  0x45   : > { %1646 = vmatprep.subr.bf16.mxu1 %v4576_v1  ;;  %1854 = vmatprep.subr.bf16.mxu0 %v4576_v1 }
  0x48   : > { %1647 = vmatpush1.bf16.msra.mxu1 %v4305_v31  ;;  %1855 = vmatpush1.bf16.msra.mxu0 %v4790_v32  ;;  %v4388_v31 = vld [vmem:[%s6310_s0 + $0x274] ss:$28 sps:$4 sm:$0xff]  }
  0x49   : > { %1648 = vmatprep.subr.bf16.mxu1 %v4576_v1  ;;  %1856 = vmatprep.subr.bf16.mxu0 %v4576_v1 }
  0x4c   : > { %1649 = vmatpush1.bf16.msra.mxu1 %v4307_v33  ;;  %1857 = vmatpush1.bf16.msra.mxu0 %v4801_v34  ;;  %v4391_v33 = vld [vmem:[%s6310_s0 + $0x270] ss:$28 sps:$4 sm:$0xff]  }
  0x4d   : > { %4093 = vmatprep.subr.bf16.mxu1 %v4576_v1  ;;  %2034 = vmatprep.subr.bf16.mxu0 %v4576_v1 }
  0x4f   : > { %1651 = vmatmul.mubr.bf16.vlgmr.msra.gmra.mrb[0].mxu1 %v4309_v35  ;;  %1859 = vmatmul.mubr.bf16.vlgmr.msra.gmra.mrb[0].mxu0 %v4312_v36  ;;  %v4394_v35 = vld [vmem:[%s6310_s0 + $0x2ac] ss:$28 sps:$4 sm:$0xff]   ;;  %v4397_v36 = vld [vmem:[%s6310_s0 + $0x2a0] ss:$28 sps:$4 sm:$0xff]  }
  0x50   : > { %1658 = vmatprep.mubr.bf16.mxu1 %v4316_v37  ;;  %2035 = vmatpush1.bf16.msra.mxu0 %v4315_v38  ;;  %v4398_v37 = vld [vmem:[%s6310_s0 + $0x2a8] ss:$28 sps:$4 sm:$0xff]   ;;  %v4399_v38 = vld [vmem:[%s6310_s0 + $0x2dc] ss:$28 sps:$4 sm:$0xff]  }
  0x51   : > { %1866 = vmatprep.mubr.bf16.mxu0 %v4318_v39  ;;  %4109 = vmatpush1.bf16.msra.mxu1 %v4631_v2  ;;  %v4348_v2 = vld [vmem:[%s6310_s0 + $0x118] ss:$28 sps:$4 sm:$0xff]   ;;  %v4401_v39 = vld [vmem:[%s6310_s0 + $0x2e4] ss:$28 sps:$4 sm:$0xff]  }
  0x52   : > { %2036 = vmatprep.subr.bf16.mxu0 %v4576_v1  ;;  %4094 = vmatprep.subr.bf16.mxu1 %v4576_v1 }
  0x54   : > { %2037 = vmatpush1.bf16.msra.mxu0 %v4322_v40  ;;  %v4404_v40 = vld [vmem:[%s6310_s0 + $0x2d8] ss:$28 sps:$4 sm:$0xff]  }
  0x55   : > { %2038 = vmatprep.subr.bf16.mxu0 %v4576_v1  ;;  %4110 = vmatpush1.bf16.msra.mxu1 %v4641_v4  ;;  %v4351_v4 = vld [vmem:[%s6310_s0 + $0x154] ss:$28 sps:$4 sm:$0xff]  }
  0x56   : > { %4095 = vmatprep.subr.bf16.mxu1 %v4576_v1 }
  0x57   : > { %1659 = vmatmul.mubr.bf16.gmra.mrb[4].mxu1 %v4320_v41  ;;  %1867 = vmatmul.mubr.bf16.gmra.mrb[4].mxu0 %v4321_v42  ;;  %v4405_v41 = vld [vmem:[%s6310_s0 + $0x2e0] ss:$28 sps:$4 sm:$0xff]   ;;  %v4406_v42 = vld [vmem:[%s6310_s0 + $0x314] ss:$28 sps:$4 sm:$0xff]  }
  0x58   : > { %1666 = vmatprep.mubr.bf16.mxu1 %v4323_v43  ;;  %1874 = vmatprep.mubr.bf16.mxu0 %v4325_v44  ;;  %v4408_v43 = vld [vmem:[%s6310_s0 + $0x31c] ss:$28 sps:$4 sm:$0xff]   ;;  %v4410_v44 = vld [vmem:[%s6310_s0 + $0x310] ss:$28 sps:$4 sm:$0xff]  }
  0x59   : > { %2039 = vmatpush1.bf16.msra.mxu0 %v4329_v45  ;;  %4111 = vmatpush1.bf16.msra.mxu1 %v4652_v6  ;;  %v4385_v6 = vld [vmem:[%s6311_s1 + $0x150] sm:$0xff]  }
  0x5a   : > { %2040 = vmatprep.subr.bf16.mxu0 %v4576_v1  ;;  %4096 = vmatprep.subr.bf16.mxu1 %v4576_v1  ;;  %v4411_v45 = vld [vmem:[%s6310_s0 + $0x318] ss:$28 sps:$4 sm:$0xff]  }
  0x5d   : > { %2041 = vmatpush1.bf16.msra.mxu0 %v4336_v46  ;;  %4112 = vmatpush1.bf16.msra.mxu1 %v4663_v8  ;;  %v4396_v8 = vld [vmem:[%s6311_s1 + $0x158] sm:$0xff]   ;;  %v4413_v46 = vld [vmem:[%s6310_s0 + $0x34c] ss:$28 sps:$4 sm:$0xff]  }
  0x5e   : > { %2042 = vmatprep.subr.bf16.mxu0 %v4576_v1  ;;  %4097 = vmatprep.subr.bf16.mxu1 %v4576_v1 }
  0x5f   : > { %1667 = vmatmul.mubr.bf16.gmra.mrb[8].mxu1 %v4327_v47  ;;  %1875 = vmatmul.mubr.bf16.gmra.mrb[8].mxu0 %v4328_v48  ;;  %v4415_v47 = vld [vmem:[%s6310_s0 + $0x354] ss:$28 sps:$4 sm:$0xff]   ;;  %v4417_v48 = vld [vmem:[%s6310_s0 + $0x348] ss:$28 sps:$4 sm:$0xff]  }
  0x60   : > { %1674 = vmatprep.mubr.bf16.mxu1 %v4330_v49  ;;  %1882 = vmatprep.mubr.bf16.mxu0 %v4332_v50  ;;  %v4418_v49 = vld [vmem:[%s6310_s0 + $0x350] ss:$28 sps:$4 sm:$0xff]   ;;  %v4420_v50 = vld [vmem:[%s6310_s0 + $0x384] ss:$28 sps:$4 sm:$0xff]  }
  0x61   : > { %2043 = vmatpush1.bf16.msra.mxu0 %v4343_v51  ;;  %4113 = vmatpush1.bf16.msra.mxu1 %v4674_v10  ;;  %v4358_v10 = vld [vmem:[%s6310_s0 + $0x18c] ss:$28 sps:$4 sm:$0xff]  }
  0x62   : > { %2044 = vmatprep.subr.bf16.mxu0 %v4576_v1  ;;  %4098 = vmatprep.subr.bf16.mxu1 %v4576_v1  ;;  %v4422_v51 = vld [vmem:[%s6310_s0 + $0x38c] ss:$28 sps:$4 sm:$0xff]  }
  0x65   : > { %2045 = vmatpush1.bf16.msra.mxu0 %v4350_v52  ;;  %4114 = vmatpush1.bf16.msra.mxu1 %v4685_v12  ;;  %v4403_v12 = vld [vmem:[%s6311_s1 + $0x160] sm:$0xff]  }
  0x66   : > { %2046 = vmatprep.subr.bf16.mxu0 %v4576_v1  ;;  %4099 = vmatprep.subr.bf16.mxu1 %v4576_v1  ;;  %v4424_v52 = vld [vmem:[%s6310_s0 + $0x380] ss:$28 sps:$4 sm:$0xff]  }
  0x67   : > { %1675 = vmatmul.mubr.bf16.gmra.mrb[12].mxu1 %v4334_v53  ;;  %1883 = vmatmul.mubr.bf16.gmra.mrb[12].mxu0 %v4335_v54  ;;  %v4425_v53 = vld [vmem:[%s6310_s0 + $0x388] ss:$28 sps:$4 sm:$0xff]   ;;  %v4427_v54 = vld [vmem:[%s6310_s0 + $0x3bc] ss:$28 sps:$4 sm:$0xff]  }
  0x68   : > { %1682 = vmatprep.mubr.bf16.mxu1 %v4337_v55  ;;  %1890 = vmatprep.mubr.bf16.mxu0 %v4339_v56  ;;  %v4431_v55 = vld [vmem:[%s6310_s0 + $0x14] ss:$28 sps:$4 sm:$0xff]  }
  0x69   : > { %2047 = vmatpush1.bf16.msra.mxu0 %v4357_v57  ;;  %4115 = vmatpush1.bf16.msra.mxu1 %v4696_v14  ;;  %v4412_v14 = vld [vmem:[%s6311_s1 + $0x168] sm:$0xff]   ;;  %v4432_v56 = vld [vmem:[%s6310_s0 + $0x3b8] ss:$28 sps:$4 sm:$0xff]  }
  0x6a   : > { %2048 = vmatprep.subr.bf16.mxu0 %v4576_v1  ;;  %4100 = vmatprep.subr.bf16.mxu1 %v4576_v1  ;;  %v4429_v57 = vld [vmem:[%s6310_s0 + $0x10] ss:$28 sps:$4 sm:$0xff]  }
  0x6d   : > { %2049 = vmatpush1.bf16.msra.mxu0 %v4364_v58  ;;  %4116 = vmatpush1.bf16.msra.mxu1 %v4707_v16  ;;  %v4365_v16 = vld [vmem:[%s6310_s0 + $0x1c4] ss:$28 sps:$4 sm:$0xff]   ;;  %v4433_v58 = vld [vmem:[%s6310_s0 + $0x3f4] ss:$28 sps:$4 sm:$0xff]  }
  0x6e   : > { %2050 = vmatprep.subr.bf16.mxu0 %v4576_v1  ;;  %4101 = vmatprep.subr.bf16.mxu1 %v4576_v1 }
  0x6f   : > { %1683 = vmatmul.mubr.bf16.gmra.mrb[16].mxu1 %v4341_v59  ;;  %1891 = vmatmul.mubr.bf16.gmra.mrb[16].mxu0 %v4342_v60  ;;  %v4435_v59 = vld [vmem:[%s6310_s0 + $0x4c] ss:$28 sps:$4 sm:$0xff]  }
  0x70   : > { %1690 = vmatprep.mubr.bf16.mxu1 %v4344_v61  ;;  %1898 = vmatprep.mubr.bf16.mxu0 %v4346_v62  ;;  %v4437_v60 = vld [vmem:[%s6310_s0 + $0x3f0] ss:$28 sps:$4 sm:$0xff]   ;;  %v4438_v61 = vld [vmem:[%s6310_s0 + $0x48] ss:$28 sps:$4 sm:$0xff]  }
  0x71   : > { %2051 = vmatpush1.bf16.msra.mxu0 %v4371_v63  ;;  %4117 = vmatpush1.bf16.msra.mxu1 %v4718_v18  ;;  %v4419_v18 = vld [vmem:[%s6311_s1 + $0x170] sm:$0xff]   ;;  %v4439_v62 = vld [vmem:[%s6310_s0 + $0x42c] ss:$28 sps:$4 sm:$0xff]   ;;  %v4441_v63 = vld [vmem:[%s6310_s0 + $0x84] ss:$28 sps:$4 sm:$0xff]  }
  0x72   : > { %2052 = vmatprep.subr.bf16.mxu0 %v4576_v1  ;;  %4102 = vmatprep.subr.bf16.mxu1 %v4576_v1 }
  0x75   : > { %2053 = vmatpush1.bf16.msra.mxu0 %v4378_v0  ;;  %4118 = vmatpush1.bf16.msra.mxu1 %v4735_v22  ;;  %v4370_v22 = vld [vmem:[%s6310_s0 + $0x1c8] ss:$28 sps:$4 sm:$0xff]  }
  0x76   : > { %2054 = vmatprep.subr.bf16.mxu0 %v4576_v1  ;;  %4103 = vmatprep.subr.bf16.mxu1 %v4576_v1  ;;  %v4443_v0 = vld [vmem:[%s6310_s0 + $0x428] ss:$28 sps:$4 sm:$0xff]  }
  0x77   : > { %1691 = vmatmul.mubr.bf16.gmra.mrb[20].mxu1 %v4348_v2  ;;  %1899 = vmatmul.mubr.bf16.gmra.mrb[20].mxu0 %v4349_v3  ;;  %v4444_v2 = vld [vmem:[%s6310_s0 + $0x80] ss:$28 sps:$4 sm:$0xff]  }
  0x78   : > { %1698 = vmatprep.mubr.bf16.mxu1 %v4351_v4  ;;  %1906 = vmatprep.mubr.bf16.mxu0 %v4353_v5  ;;  %v4445_v3 = vld [vmem:[%s6310_s0 + $0x464] ss:$28 sps:$4 sm:$0xff]   ;;  %v4447_v4 = vld [vmem:[%s6310_s0 + $0xbc] ss:$28 sps:$4 sm:$0xff]  }
  0x79   : > { %2055 = vmatpush1.bf16.msra.mxu0 %v4385_v6  ;;  %4119 = vmatpush1.bf16.msra.mxu1 %v4746_v24  ;;  %v4374_v24 = vld [vmem:[%s6310_s0 + $0x204] ss:$28 sps:$4 sm:$0xff]   ;;  %v385_v5 = vld [vmem:[%s6310_s0 + $0x498] sm:$0xff] }
  0x7a   : > { %2056 = vmatprep.subr.bf16.mxu0 %v4576_v1  ;;  %4104 = vmatprep.subr.bf16.mxu1 %v4576_v1  ;;  %v4449_v6 = vld [vmem:[%s6310_s0 + $0x460] ss:$28 sps:$4 sm:$0xff]  }
  0x7d   : > { %2057 = vmatpush1.bf16.msra.mxu0 %v4396_v8  ;;  %4120 = vmatpush1.bf16.msra.mxu1 %v4757_v26  ;;  %v4377_v26 = vld [vmem:[%s6310_s0 + $0x200] ss:$28 sps:$4 sm:$0xff]   ;;  %v3509_v8 = vcombine.high %v385_v5, %v385_v5 }
  0x7e   : > { %2058 = vmatprep.subr.bf16.mxu0 %v4576_v1  ;;  %4105 = vmatprep.subr.bf16.mxu1 %v4576_v1 }
  0x7f   : > { %1699 = vmatmul.mubr.bf16.gmra.mrb[24].mxu1 %v4355_v7  ;;  %1907 = vmatmul.mubr.bf16.gmra.mrb[24].mxu0 %v4356_v9  ;;  %v4450_v7 = vld [vmem:[%s6310_s0 + $0xb8] ss:$28 sps:$4 sm:$0xff]  }
  0x80   : > { %1706 = vmatprep.mubr.bf16.mxu1 %v4358_v10  ;;  %1914 = vmatprep.mubr.bf16.mxu0 %v4360_v11  ;;  %v4452_v9 = vld [vmem:[%s6310_s0 + $0xf4] ss:$28 sps:$4 sm:$0xff]   ;;  %v3508_v10 = vcombine.low %v385_v5, %v385_v5  ;;  %v4511_v5 = vld [vmem:[%s6310_s0 + $0x2e8] ss:$28 sps:$4 sm:$0xff]  }
  0x81   : > { %2059 = vmatpush1.bf16.msra.mxu0 %v4403_v12  ;;  %4121 = vmatpush1.bf16.msra.mxu1 %v4768_v28  ;;  %v4383_v28 = vld [vmem:[%s6310_s0 + $0x230] ss:$28 sps:$4 sm:$0xff]   ;;  %v4458_v12 = vld [vmem:[%s6310_s0 + $0x3c4] ss:$28 sps:$4 sm:$0xff]  }
  0x82   : > { %2060 = vmatprep.subr.bf16.mxu0 %v4576_v1  ;;  %4106 = vmatprep.subr.bf16.mxu1 %v4576_v1  ;;  %v4455_v11 = vld [vmem:[%s6310_s0 + $0xf0] ss:$28 sps:$4 sm:$0xff]  }
  0x85   : > { %2061 = vmatpush1.bf16.msra.mxu0 %v4412_v14  ;;  %4122 = vmatpush1.bf16.msra.mxu1 %v4779_v30  ;;  %v4386_v30 = vld [vmem:[%s6310_s0 + $0x26c] ss:$28 sps:$4 sm:$0xff]   ;;  %v4456_v14 = vld [vmem:[%s6310_s0 + $0x3c0] ss:$28 sps:$4 sm:$0xff]  }
  0x86   : > { %2062 = vmatprep.subr.bf16.mxu0 %v4576_v1  ;;  %4107 = vmatprep.subr.bf16.mxu1 %v4576_v1 }
  0x87   : > { %1707 = vmatmul.mubr.bf16.gmra.mrb[28].mxu1 %v4362_v13  ;;  %1915 = vmatmul.mubr.bf16.gmra.mrb[28].mxu0 %v4363_v15  ;;  %v4459_v13 = vld [vmem:[%s6310_s0 + $0x12c] ss:$28 sps:$4 sm:$0xff]  }
  0x88   : > { %1714 = vmatprep.mubr.bf16.mxu1 %v4365_v16  ;;  %1922 = vmatprep.mubr.bf16.mxu0 %v4367_v17  ;;  %v4461_v15 = vld [vmem:[%s6310_s0 + $0x128] ss:$28 sps:$4 sm:$0xff]   ;;  %v4462_v16 = vld [vmem:[%s6310_s0 + $0x3fc] ss:$28 sps:$4 sm:$0xff]  }
  0x89   : > { %2063 = vmatpush1.bf16.msra.mxu0 %v4419_v18  ;;  %4123 = vmatpush1.bf16.msra.mxu1 %v4790_v32  ;;  %v4390_v32 = vld [vmem:[%s6310_s0 + $0x268] ss:$28 sps:$4 sm:$0xff]  }
  0x8a   : > { %2064 = vmatprep.subr.bf16.mxu0 %v4576_v1  ;;  %4108 = vmatprep.subr.bf16.mxu1 %v4576_v1  ;;  %v4379_v1 = vld [vmem:[%s6310_s0 + $0x234] ss:$28 sps:$4 sm:$0xff]   ;;  %v4464_v17 = vld [vmem:[%s6310_s0 + $0x164] ss:$28 sps:$4 sm:$0xff]   ;;  %v4469_v18 = vld [vmem:[%s6311_s1 + $0x188] sm:$0xff]  }
  0x8d   : > { %2065 = vmatpush1.bf16.msra.mxu0 %v4426_v19  ;;  %4124 = vmatpush1.bf16.msra.mxu1 %v4801_v34  ;;  %v4392_v34 = vld [vmem:[%s6310_s0 + $0x2a4] ss:$28 sps:$4 sm:$0xff]   ;;  %v4476_v19 = vld [vmem:[%s6311_s1 + $0x190] sm:$0xff]  }
  0x8e   : > { %4033 = vmatprep.subr.bf16.mxu1 %v4999_v21 }
  0x8f   : > { %1715 = vmatmul.mubr.bf16.gmra.mrb[32].mxu1 %v4369_v20  ;;  %1923 = vmatmul.mubr.bf16.gmra.mrb[32].mxu0 %v4370_v22  ;;  %v4467_v20 = vld [vmem:[%s6310_s0 + $0x3f8] ss:$28 sps:$4 sm:$0xff]   ;;  %v4468_v22 = vld [vmem:[%s6310_s0 + $0x160] ss:$28 sps:$4 sm:$0xff]  }
  0x90   : > { %1722 = vmatprep.mubr.bf16.mxu1 %v4372_v23  ;;  %1930 = vmatprep.mubr.bf16.mxu0 %v4374_v24  ;;  %v4470_v23 = vld [vmem:[%s6310_s0 + $0x434] ss:$28 sps:$4 sm:$0xff]   ;;  %v4477_v24 = vld [vmem:[%s6311_s1 + $0x198] sm:$0xff]  }
  0x97   : > { %1723 = vmatmul.mubr.bf16.gmra.mrb[36].mxu1 %v4376_v25  ;;  %1931 = vmatmul.mubr.bf16.gmra.mrb[36].mxu0 %v4377_v26  ;;  %v4484_v25 = vld [vmem:[%s6311_s1 + $0x1a0] sm:$0xff]   ;;  %v4474_v26 = vld [vmem:[%s6310_s0 + $0x430] ss:$28 sps:$4 sm:$0xff]  }
  0x98   : > { %1730 = vmatprep.mubr.bf16.mxu1 %v4379_v1  ;;  %1938 = vmatprep.mubr.bf16.mxu0 %v4381_v27  ;;  %v4475_v1 = vld [vmem:[%s6310_s0 + $0x198] ss:$28 sps:$4 sm:$0xff]   ;;  %v4478_v27 = vld [vmem:[%s6310_s0 + $0x46c] ss:$28 sps:$4 sm:$0xff]  }
  0x9f   : > { %1731 = vmatmul.mubr.bf16.gmra.mrb[40].mxu1 %v4383_v28  ;;  %1939 = vmatmul.mubr.bf16.gmra.mrb[40].mxu0 %v4384_v29  ;;  %v4480_v28 = vld [vmem:[%s6310_s0 + $0x1d4] ss:$28 sps:$4 sm:$0xff]   ;;  %v4485_v29 = vld [vmem:[%s6311_s1 + $0x1a8] sm:$0xff]  }
  0xa0   : > { %1738 = vmatprep.mubr.bf16.mxu1 %v4386_v30  ;;  %1946 = vmatprep.mubr.bf16.mxu0 %v4388_v31  ;;  %v386_v30 = vld [vmem:[%s6310_s0 + $0x4a0] sm:$0xff]  ;;  %v4491_v31 = vld [vmem:[%s6311_s1 + $0x1b0] sm:$0xff]  }
  0xa7   : > { %1739 = vmatmul.mubr.bf16.gmra.mrb[44].mxu1 %v4390_v32  ;;  %1947 = vmatmul.mubr.bf16.gmra.mrb[44].mxu0 %v4391_v33  ;;  %v4482_v32 = vld [vmem:[%s6310_s0 + $0x468] ss:$28 sps:$4 sm:$0xff]   ;;  %v4483_v33 = vld [vmem:[%s6310_s0 + $0x1d0] ss:$28 sps:$4 sm:$0xff]  }
  0xa8   : > { %1746 = vmatprep.mubr.bf16.mxu1 %v4392_v34  ;;  %1954 = vmatprep.mubr.bf16.mxu0 %v4394_v35  ;;  %v3511_v34 = vcombine.high %v386_v30, %v386_v30  ;;  %v4487_v35 = vld [vmem:[%s6310_s0 + $0x20c] ss:$28 sps:$4 sm:$0xff]  }
  0xaf   : > { %1747 = vmatmul.mubr.bf16.gmra.mrb[48].mxu1 %v4397_v36  ;;  %1955 = vmatmul.mubr.bf16.gmra.mrb[48].mxu0 %v4398_v37  ;;  %v4492_v36 = vld [vmem:[%s6311_s1 + $0x1b8] sm:$0xff]   ;;  %v3510_v37 = vcombine.low %v386_v30, %v386_v30  ;;  %v4530_v30 = vld [vmem:[%s6310_s0 + $0x328] ss:$28 sps:$4 sm:$0xff]  }
  0xb0   : > { %1754 = vmatprep.mubr.bf16.mxu1 %v4399_v38  ;;  %1962 = vmatprep.mubr.bf16.mxu0 %v4401_v39  ;;  %v4490_v38 = vld [vmem:[%s6310_s0 + $0x208] ss:$28 sps:$4 sm:$0xff]   ;;  %v4495_v39 = vld [vmem:[%s6310_s0 + $0x18] ss:$28 sps:$4 sm:$0xff]  }
  0xb7   : > { %1755 = vmatmul.mubr.bf16.gmra.mrb[52].mxu1 %v4404_v40  ;;  %1963 = vmatmul.mubr.bf16.gmra.mrb[52].mxu0 %v4405_v41  ;;  %v4493_v40 = vld [vmem:[%s6310_s0 + $0x244] ss:$28 sps:$4 sm:$0xff]  }
  0xb8   : > { %1762 = vmatprep.mubr.bf16.mxu1 %v4406_v42  ;;  %1970 = vmatprep.mubr.bf16.mxu0 %v4408_v43  ;;  %v4497_v42 = vld [vmem:[%s6310_s0 + $0x50] ss:$28 sps:$4 sm:$0xff]  }
  0xbf   : > { %1763 = vmatmul.mubr.bf16.gmra.mrb[56].mxu1 %v4410_v44  ;;  %1971 = vmatmul.mubr.bf16.gmra.mrb[56].mxu0 %v4411_v45  ;;  %v4496_v44 = vld [vmem:[%s6310_s0 + $0x240] ss:$28 sps:$4 sm:$0xff]  }
  0xc0   : > { %1770 = vmatprep.mubr.bf16.mxu1 %v4413_v46  ;;  %1978 = vmatprep.mubr.bf16.mxu0 %v4415_v47  ;;  %v4500_v46 = vld [vmem:[%s6310_s0 + $0x88] ss:$28 sps:$4 sm:$0xff]  }
  0xc7   : > { %1771 = vmatmul.mubr.bf16.gmra.mrb[60].mxu1 %v4417_v48  ;;  %1979 = vmatmul.mubr.bf16.gmra.mrb[60].mxu0 %v4418_v49  ;;  %v4498_v48 = vld [vmem:[%s6310_s0 + $0x27c] ss:$28 sps:$4 sm:$0xff]  }
  0xc8   : > { %1778 = vmatprep.mubr.bf16.mxu1 %v4420_v50  ;;  %1986 = vmatprep.mubr.bf16.mxu0 %v4422_v51  ;;  %v4502_v50 = vld [vmem:[%s6310_s0 + $0xc0] ss:$28 sps:$4 sm:$0xff]  }
  0xcf   : > { %1779 = vmatmul.mubr.bf16.gmra.mrb[64].mxu1 %v4424_v52  ;;  %1987 = vmatmul.mubr.bf16.gmra.mrb[64].mxu0 %v4425_v53  ;;  %v4501_v52 = vld [vmem:[%s6310_s0 + $0x278] ss:$28 sps:$4 sm:$0xff]  }
  0xd0   : > { %1786 = vmatprep.mubr.bf16.mxu1 %v4427_v54  ;;  %2066 = vmatprep.mubr.bf16.mxu0 %v4431_v55  ;;  %v4505_v54 = vld [vmem:[%s6310_s0 + $0xf8] ss:$28 sps:$4 sm:$0xff]  }
  0xd7   : > { %1787 = vmatmul.mubr.bf16.gmra.mrb[68].mxu1 %v4432_v56  ;;  %2067 = vmatmul.mubr.bf16.vlgmr.msra.gmra.mrb[0].mxu0 %v4429_v57  ;;  %v4503_v56 = vld [vmem:[%s6310_s0 + $0x2b4] ss:$28 sps:$4 sm:$0xff]  }
  0xd8   : > { %1794 = vmatprep.mubr.bf16.mxu1 %v4433_v58  ;;  %2074 = vmatprep.mubr.bf16.mxu0 %v4435_v59  ;;  %v4507_v58 = vld [vmem:[%s6310_s0 + $0x130] ss:$28 sps:$4 sm:$0xff]  }
  0xdf   : > { %1795 = vmatmul.mubr.bf16.gmra.mrb[72].mxu1 %v4437_v60  ;;  %2075 = vmatmul.mubr.bf16.gmra.mrb[4].mxu0 %v4438_v61  ;;  %v4506_v60 = vld [vmem:[%s6310_s0 + $0x2b0] ss:$28 sps:$4 sm:$0xff]  }
  0xe0   : > { %1802 = vmatprep.mubr.bf16.mxu1 %v4439_v62  ;;  %2082 = vmatprep.mubr.bf16.mxu0 %v4441_v63  ;;  %v4510_v62 = vld [vmem:[%s6310_s0 + $0x168] ss:$28 sps:$4 sm:$0xff]  }
  0xe7   : > { %1803 = vmatmul.mubr.bf16.gmra.mrb[76].mxu1 %v4443_v0  ;;  %2083 = vmatmul.mubr.bf16.gmra.mrb[8].mxu0 %v4444_v2  ;;  %v4508_v0 = vld [vmem:[%s6310_s0 + $0x2ec] ss:$28 sps:$4 sm:$0xff]  }
  0xe8   : > { %1810 = vmatprep.mubr.bf16.mxu1 %v4445_v3  ;;  %2090 = vmatprep.mubr.bf16.mxu0 %v4447_v4  ;;  %v4512_v3 = vld [vmem:[%s6310_s0 + $0x1a0] ss:$28 sps:$4 sm:$0xff]  }
  0xef   : > { %1811 = vmatmul.mubr.bf16.gmra.mrb[80].mxu1 %v4449_v6  ;;  %2091 = vmatmul.mubr.bf16.gmra.mrb[12].mxu0 %v4450_v7  ;;  %v4515_v7 = vld [vmem:[%s6310_s0 + $0x1d8] ss:$28 sps:$4 sm:$0xff]  }
  0xf0   : > { %1818 = vmatprep.mubr.bf16.mxu1 %v3509_v8  ;;  %2098 = vmatprep.mubr.bf16.mxu0 %v4452_v9  ;;  %v4513_v9 = vld [vmem:[%s6310_s0 + $0x324] ss:$28 sps:$4 sm:$0xff]  }
  0xf7   : > { %1819 = vmatmul.mubr.bf16.gmra.mrb[84].mxu1 %v3508_v10  ;;  %2099 = vmatmul.mubr.bf16.gmra.mrb[16].mxu0 %v4455_v11  ;;  %v4517_v11 = vld [vmem:[%s6310_s0 + $0x210] ss:$28 sps:$4 sm:$0xff]  }
  0xf8   : > { %1994 = vmatprep.mubr.bf16.mxu1 %v4458_v12  ;;  %2106 = vmatprep.mubr.bf16.mxu0 %v4459_v13  ;;  %v4516_v13 = vld [vmem:[%s6310_s0 + $0x320] ss:$28 sps:$4 sm:$0xff]  }
  0xff   : > { %1995 = vmatmul.mubr.bf16.vlgmr.msra.gmra.mrb[68].mxu1 %v4456_v14  ;;  %2107 = vmatmul.mubr.bf16.gmra.mrb[20].mxu0 %v4461_v15  ;;  %v4520_v15 = vld [vmem:[%s6310_s0 + $0x248] ss:$28 sps:$4 sm:$0xff]  }
 0x100   : > { %2002 = vmatprep.mubr.bf16.mxu1 %v4462_v16  ;;  %2114 = vmatprep.mubr.bf16.mxu0 %v4464_v17  ;;  %v4518_v17 = vld [vmem:[%s6310_s0 + $0x35c] ss:$28 sps:$4 sm:$0xff]  }
 0x101   : > { %4034 = vmatpush3.bf16.msra.mxu1 %v4999_v21  ;;  %v4472_v21 = vld [vmem:[%s6310_s0 + $0x19c] ss:$28 sps:$4 sm:$0xff]  }
 0x102   : > { %4035 = vmatprep.subr.bf16.mxu1 %v4469_v18 }
 0x105   : > { %4036 = vmatpush3.bf16.msra.mxu1 %v4469_v18 }
 0x106   : > { %4037 = vmatprep.subr.bf16.mxu1 %v4476_v19 }
 0x107   : > { %2003 = vmatmul.mubr.bf16.gmra.mrb[72].mxu1 %v4467_v20  ;;  %2115 = vmatmul.mubr.bf16.gmra.mrb[24].mxu0 %v4468_v22  ;;  %v4521_v22 = vld [vmem:[%s6310_s0 + $0x358] ss:$28 sps:$4 sm:$0xff]  }
 0x108   : > { %2010 = vmatprep.mubr.bf16.mxu1 %v4470_v23  ;;  %2122 = vmatprep.mubr.bf16.mxu0 %v4472_v21  ;;  %v4525_v21 = vld [vmem:[%s6310_s0 + $0x2b8] ss:$28 sps:$4 sm:$0xff]  }
 0x109   : > { %4038 = vmatpush3.bf16.msra.mxu1 %v4476_v19  ;;  %v4522_v19 = vld [vmem:[%s6310_s0 + $0x280] ss:$28 sps:$4 sm:$0xff]  }
 0x10a   : > { %4039 = vmatprep.subr.bf16.mxu1 %v4477_v24 }
 0x10d   : > { %4040 = vmatpush3.bf16.msra.mxu1 %v4477_v24 }
 0x10e   : > { %4041 = vmatprep.subr.bf16.mxu1 %v4484_v25 }
 0x10f   : > { %2011 = vmatmul.mubr.bf16.gmra.mrb[76].mxu1 %v4474_v26  ;;  %2123 = vmatmul.mubr.bf16.gmra.mrb[28].mxu0 %v4475_v1  ;;  %v4527_v1 = vld [vmem:[%s6310_s0 + $0x2f0] ss:$28 sps:$4 sm:$0xff]  }
 0x110   : > { %2018 = vmatprep.mubr.bf16.mxu1 %v4478_v27  ;;  %2130 = vmatprep.mubr.bf16.mxu0 %v4480_v28  ;;  %v4526_v28 = vld [vmem:[%s6310_s0 + $0x390] ss:$28 sps:$4 sm:$0xff]  }
 0x111   : > { %4042 = vmatpush3.bf16.msra.mxu1 %v4484_v25  ;;  %v4523_v25 = vld [vmem:[%s6310_s0 + $0x394] ss:$28 sps:$4 sm:$0xff]  }
 0x112   : > { %4043 = vmatprep.subr.bf16.mxu1 %v4485_v29 }
 0x115   : > { %4044 = vmatpush3.bf16.msra.mxu1 %v4485_v29 }
 0x116   : > { %4045 = vmatprep.subr.bf16.mxu1 %v4491_v31 }
 0x117   : > { %2019 = vmatmul.mubr.bf16.gmra.mrb[80].mxu1 %v4482_v32  ;;  %2131 = vmatmul.mubr.bf16.gmra.mrb[32].mxu0 %v4483_v33  ;;  %v4528_v32 = vld [vmem:[%s6310_s0 + $0x3cc] ss:$28 sps:$4 sm:$0xff]  }
 0x118   : > { %2026 = vmatprep.mubr.bf16.mxu1 %v3511_v34  ;;  %2138 = vmatprep.mubr.bf16.mxu0 %v4487_v35  ;;  %v4532_v34 = vld [vmem:[%s6310_s0 + $0x360] ss:$28 sps:$4 sm:$0xff]  }
 0x119   : > { %4046 = vmatpush3.bf16.msra.mxu1 %v4491_v31 }
 0x11a   : > { %4047 = vmatprep.subr.bf16.mxu1 %v4492_v36 }
 0x11d   : > { %4048 = vmatpush3.bf16.msra.mxu1 %v4492_v36  ;;  %v4531_v36 = vld [vmem:[%s6310_s0 + $0x3c8] ss:$28 sps:$4 sm:$0xff]  }
 0x11f   : > { %2027 = vmatmul.mubr.bf16.gmra.mrb[88].mxu1 %v3510_v37  ;;  %2139 = vmatmul.mubr.bf16.gmra.mrb[36].mxu0 %v4490_v38  ;;  %v4535_v38 = vld [vmem:[%s6310_s0 + $0x398] ss:$28 sps:$4 sm:$0xff]  }
 0x120   : > { %4049 = vmatprep.mubr.bf16.mxu1 %v4495_v39  ;;  %2146 = vmatprep.mubr.bf16.mxu0 %v4493_v40  ;;  %v4533_v40 = vld [vmem:[%s6310_s0 + $0x404] ss:$28 sps:$4 sm:$0xff]  }
 0x122   : > { %v5247_v41 = vpop.f32.mrb[0].mxu1 }
 0x123   : > { %v1654_v43 = vpop.f32.mrb[1].mxu1 }
 0x124   : > { %v5255_v45 = vpop.f32.mrb[2].mxu1  ;;  %v4537_v43 = vld [vmem:[%s6310_s0 + $0x3d0] ss:$28 sps:$4 sm:$0xff]  }
 0x125   : > { %v1657_v47 = vpop.f32.mrb[3].mxu1 }
 0x127   : > { %4050 = vmatmul.mubr.bf16.vlgmr.msra.gmra.mrb[92].mxu1 %v4497_v42  ;;  %2147 = vmatmul.mubr.bf16.gmra.mrb[40].mxu0 %v4496_v44 }
 0x128   : > { %4053 = vmatprep.mubr.bf16.mxu1 %v4500_v46  ;;  %2154 = vmatprep.mubr.bf16.mxu0 %v4498_v48  ;;  %v4536_v46 = vld [vmem:[%s6310_s0 + $0x400] ss:$28 sps:$4 sm:$0xff]   ;;  %v4540_v48 = vld [vmem:[%s6310_s0 + $0x408] ss:$28 sps:$4 sm:$0xff]  }
 0x12a   : > { %v5263_v49 = vpop.f32.mrb[4].mxu1 }
 0x12b   : > { %v1662_v51 = vpop.f32.mrb[5].mxu1 }
 0x12c   : > { %v5271_v53 = vpop.f32.mrb[6].mxu1  ;;  %v4538_v51 = vld [vmem:[%s6310_s0 + $0x43c] ss:$28 sps:$4 sm:$0xff]  }
 0x12d   : > { %v1665_v55 = vpop.f32.mrb[7].mxu1 }
 0x12f   : > { %4054 = vmatmul.mubr.bf16.gmra.mrb[96].mxu1 %v4502_v50  ;;  %2155 = vmatmul.mubr.bf16.gmra.mrb[44].mxu0 %v4501_v52 }
 0x130   : > { %4057 = vmatprep.mubr.bf16.mxu1 %v4505_v54  ;;  %2162 = vmatprep.mubr.bf16.mxu0 %v4503_v56  ;;  %v4542_v54 = vld [vmem:[%s6310_s0 + $0x440] ss:$28 sps:$4 sm:$0xff]   ;;  %v4541_v56 = vld [vmem:[%s6310_s0 + $0x438] ss:$28 sps:$4 sm:$0xff]  }
 0x132   : > { %v5279_v57 = vpop.f32.mrb[8].mxu1 }
 0x133   : > { %v1670_v59 = vpop.f32.mrb[9].mxu1 }
 0x134   : > { %v5287_v61 = vpop.f32.mrb[10].mxu1  ;;  %v4546_v59 = vld [vmem:[%s6310_s0 + $0x478] ss:$28 sps:$4 sm:$0xff]  }
 0x135   : > { %v1673_v63 = vpop.f32.mrb[11].mxu1 }
 0x137   : > { %4058 = vmatmul.mubr.bf16.gmra.mrb[100].mxu1 %v4507_v58  ;;  %2163 = vmatmul.mubr.bf16.gmra.mrb[48].mxu0 %v4506_v60 }
 0x138   : > { %4061 = vmatprep.mubr.bf16.mxu1 %v4510_v62  ;;  %2170 = vmatprep.mubr.bf16.mxu0 %v4508_v0  ;;  %v4543_v62 = vld [vmem:[%s6310_s0 + $0x474] ss:$28 sps:$4 sm:$0xff]   ;;  %v387_v0 = vld [vmem:[%s6310_s0 + $0x4a8] sm:$0xff] }
 0x13a   : > { %v5295_v2 = vpop.f32.mrb[12].mxu1 }
 0x13b   : > { %v1678_v4 = vpop.f32.mrb[13].mxu1 }
 0x13c   : > { %v5303_v6 = vpop.f32.mrb[14].mxu1  ;;  %v4547_v4 = vld [vmem:[%s6310_s0 + $0x4b0] ss:$0 sps:$4 sm:$0xff]  }
 0x13d   : > { %v1681_v8 = vpop.f32.mrb[15].mxu1 }
 0x13f   : > { %4062 = vmatmul.mubr.bf16.gmra.mrb[104].mxu1 %v4512_v3  ;;  %2171 = vmatmul.mubr.bf16.gmra.mrb[52].mxu0 %v4511_v5  ;;  %v4545_v5 = vld [vmem:[%s6310_s0 + $0x470] ss:$28 sps:$4 sm:$0xff]  }
 0x140   : > { %4065 = vmatprep.mubr.bf16.mxu1 %v4515_v7  ;;  %2178 = vmatprep.mubr.bf16.mxu0 %v4513_v9  ;;  %v3513_v9 = vcombine.high %v387_v0, %v387_v0 }
 0x142   : > { %v5311_v10 = vpop.f32.mrb[16].mxu1 }
 0x143   : > { %v1686_v12 = vpop.f32.mrb[17].mxu1 }
 0x144   : > { %v5319_v14 = vpop.f32.mrb[18].mxu1 }
 0x145   : > { %v1689_v16 = vpop.f32.mrb[19].mxu1 }
 0x147   : > { %4066 = vmatmul.mubr.bf16.gmra.mrb[108].mxu1 %v4517_v11  ;;  %2179 = vmatmul.mubr.bf16.gmra.mrb[56].mxu0 %v4516_v13  ;;  %v3512_v13 = vcombine.low %v387_v0, %v387_v0 }
 0x148   : > { %4069 = vmatprep.mubr.bf16.mxu1 %v4520_v15  ;;  %2186 = vmatprep.mubr.bf16.mxu0 %v4518_v17 }
 0x14a   : > { %v5327_v18 = vpop.f32.mrb[20].mxu1 }
 0x14b   : > { %v1694_v20 = vpop.f32.mrb[21].mxu1 }
 0x14c   : > { %v5335_v23 = vpop.f32.mrb[22].mxu1 }
 0x14d   : > { %v1697_v24 = vpop.f32.mrb[23].mxu1 }
 0x14f   : > { %4070 = vmatmul.mubr.bf16.gmra.mrb[112].mxu1 %v4522_v19  ;;  %2187 = vmatmul.mubr.bf16.gmra.mrb[60].mxu0 %v4521_v22 }
 0x150   : > { %4073 = vmatprep.mubr.bf16.mxu1 %v4525_v21  ;;  %2194 = vmatprep.mubr.bf16.mxu0 %v4523_v25 }
 0x152   : > { %v5343_v26 = vpop.f32.mrb[24].mxu1 }
 0x153   : > { %v1702_v27 = vpop.f32.mrb[25].mxu1 }
 0x154   : > { %v5351_v29 = vpop.f32.mrb[26].mxu1 }
 0x155   : > { %v1705_v31 = vpop.f32.mrb[27].mxu1 }
 0x157   : > { %4074 = vmatmul.mubr.bf16.gmra.mrb[116].mxu1 %v4527_v1  ;;  %2195 = vmatmul.mubr.bf16.gmra.mrb[64].mxu0 %v4526_v28 }
 0x158   : > { %4077 = vmatprep.mubr.bf16.mxu1 %v4530_v30  ;;  %2202 = vmatprep.mubr.bf16.mxu0 %v4528_v32 }
 0x15a   : > { %v5359_v33 = vpop.f32.mrb[28].mxu1 }
 0x15b   : > { %v1710_v35 = vpop.f32.mrb[29].mxu1 }
 0x15c   : > { %v5367_v37 = vpop.f32.mrb[30].mxu1 }
 0x15d   : > { %v1713_v39 = vpop.f32.mrb[31].mxu1 }
 0x15f   : > { %4078 = vmatmul.mubr.bf16.gmra.mrb[120].mxu1 %v4532_v34  ;;  %2203 = vmatmul.mubr.bf16.gmra.mrb[68].mxu0 %v4531_v36 }
 0x160   : > { %4081 = vmatprep.mubr.bf16.mxu1 %v4535_v38  ;;  %2210 = vmatprep.mubr.bf16.mxu0 %v4533_v40 }
 0x162   : > { %v5375_v42 = vpop.f32.mrb[32].mxu1 }
 0x163   : > { %v1718_v44 = vpop.f32.mrb[33].mxu1 }
 0x164   : > { %v5383_v47 = vpop.f32.mrb[34].mxu1 }
 0x165   : > { %v1721_v50 = vpop.f32.mrb[35].mxu1 }
 0x167   : > { %4082 = vmatmul.mubr.bf16.gmra.mrb[124].mxu1 %v4537_v43  ;;  %2211 = vmatmul.mubr.bf16.gmra.mrb[72].mxu0 %v4536_v46 }
 0x168   : > { %4085 = vmatprep.mubr.bf16.mxu1 %v4540_v48  ;;  %2218 = vmatprep.mubr.bf16.mxu0 %v4538_v51 }
 0x16a   : > { %v5391_v52 = vpop.f32.mrb[36].mxu1 }
 0x16b   : > { %v1726_v55 = vpop.f32.mrb[37].mxu1 }
 0x16c   : > { %v5399_v58 = vpop.f32.mrb[38].mxu1 }
 0x16d   : > { %v1729_v60 = vpop.f32.mrb[39].mxu1 }
 0x16f   : > { %4086 = vmatmul.mubr.bf16.gmra.mrb[128].mxu1 %v4542_v54  ;;  %2219 = vmatmul.mubr.bf16.gmra.mrb[76].mxu0 %v4541_v56 }
 0x170   : > { %4089 = vmatprep.mubr.bf16.mxu1 %v4546_v59  ;;  %2226 = vmatprep.mubr.bf16.mxu0 %v4543_v62 }
 0x172   : > { %v5407_v63 = vpop.f32.mrb[40].mxu1 }
 0x173   : > { %v1734_v3 = vpop.f32.mrb[41].mxu1 }
 0x174   : > { %v5418_v7 = vpop.f32.mrb[42].mxu1 }
 0x175   : > { %v1737_v8 = vpop.f32.mrb[43].mxu1 }
 0x177   : > { %4090 = vmatmul.mubr.bf16.gmra.mrb[132].mxu1 %v4547_v4  ;;  %2227 = vmatmul.mubr.bf16.gmra.mrb[80].mxu0 %v4545_v5 }
 0x178   : > { %2234 = vmatprep.mubr.bf16.mxu0 %v3513_v9 }
 0x17a   : > { %v5420_v11 = vpop.f32.mrb[44].mxu1 }
 0x17b   : > { %v1742_v12 = vpop.f32.mrb[45].mxu1 }
 0x17c   : > { %v5422_v15 = vpop.f32.mrb[46].mxu1 }
 0x17d   : > { %v1745_v16 = vpop.f32.mrb[47].mxu1 }
 0x17f   : > { %2235 = vmatmul.mubr.bf16.gmra.mrb[84].mxu0 %v3512_v13 }
 0x182   : > { %v5424_v17 = vpop.f32.mrb[48].mxu1 }
 0x183   : > { %v1750_v19 = vpop.f32.mrb[49].mxu1 }
 0x184   : > { %v5426_v20 = vpop.f32.mrb[50].mxu1 }
 0x185   : > { %v1753_v22 = vpop.f32.mrb[51].mxu1 }
 0x18a   : > { %v5428_v21 = vpop.f32.mrb[52].mxu1 }
 0x18b   : > { %v1758_v24 = vpop.f32.mrb[53].mxu1 }
 0x18c   : > { %v5430_v25 = vpop.f32.mrb[54].mxu1 }
 0x18d   : > { %v1761_v1 = vpop.f32.mrb[55].mxu1 }
 0x192   : > { %v5432_v27 = vpop.f32.mrb[56].mxu1 }
 0x193   : > { %v1766_v28 = vpop.f32.mrb[57].mxu1 }
 0x194   : > { %v5434_v30 = vpop.f32.mrb[58].mxu1 }
 0x195   : > { %v1769_v31 = vpop.f32.mrb[59].mxu1 }
 0x19a   : > { %v5436_v32 = vpop.f32.mrb[60].mxu1 }
 0x19b   : > { %v1774_v34 = vpop.f32.mrb[61].mxu1 }
 0x19c   : > { %v5438_v35 = vpop.f32.mrb[62].mxu1 }
 0x19d   : > { %v1777_v36 = vpop.f32.mrb[63].mxu1 }
 0x1a2   : > { %v5440_v38 = vpop.f32.mrb[64].mxu1 }
 0x1a3   : > { %v1782_v39 = vpop.f32.mrb[65].mxu1 }
 0x1a4   : > { %v5442_v40 = vpop.f32.mrb[66].mxu1 }
 0x1a5   : > { %v1785_v43 = vpop.f32.mrb[67].mxu1 }
 0x1aa   : > { %v2068_v44 = vpop.f32.mrb[0].mxu0 }
 0x1ab   : > { %v5445_v46 = vadd.f32 %v2068_v44, %v5247_v41  ;;  %v2070_v48 = vpop.f32.mrb[1].mxu0 }
 0x1ac   : > { %v2071_v50 = vpop.f32.mrb[2].mxu0 }
 0x1ad   : > { %v5448_v51 = vadd.f32 %v2071_v50, %v5255_v45  ;;  %v2073_v54 = vpop.f32.mrb[3].mxu0 }
 0x1b2   : > { %v2076_v55 = vpop.f32.mrb[4].mxu0 }
 0x1b3   : > { %v5451_v56 = vadd.f32 %v2076_v55, %v5263_v49  ;;  %v2078_v59 = vpop.f32.mrb[5].mxu0 }
 0x1b4   : > { %v2079_v60 = vpop.f32.mrb[6].mxu0 }
 0x1b5   : > { %v5454_v62 = vadd.f32 %v2079_v60, %v5271_v53  ;;  %v2081_v0 = vpop.f32.mrb[7].mxu0 }
 0x1ba   : > { %v2084_v3 = vpop.f32.mrb[8].mxu0 }
 0x1bb   : > { %v5457_v41 = vadd.f32 %v2084_v3, %v5279_v57  ;;  %v2086_v4 = vpop.f32.mrb[9].mxu0 }
 0x1bc   : > { %v2087_v5 = vpop.f32.mrb[10].mxu0 }
 0x1bd   : > { %v5460_v45 = vadd.f32 %v2087_v5, %v5287_v61  ;;  %v2089_v8 = vpop.f32.mrb[11].mxu0 }
 0x1c2   : > { %v2092_v9 = vpop.f32.mrb[12].mxu0 }
 0x1c3   : > { %v5463_v49 = vadd.f32 %v2092_v9, %v5295_v2  ;;  %v2094_v12 = vpop.f32.mrb[13].mxu0 }
 0x1c4   : > { %v2095_v13 = vpop.f32.mrb[14].mxu0 }
 0x1c5   : > { %v5466_v53 = vadd.f32 %v2095_v13, %v5303_v6  ;;  %v2097_v16 = vpop.f32.mrb[15].mxu0 }
 0x1ca   : > { %v1820_v19 = vpop.f32.mrb[84].mxu1  ;;  %v2100_v22 = vpop.f32.mrb[16].mxu0 }
 0x1cb   : > { %v1822_v57 = vpop.f32.mrb[85].mxu1  ;;  %v5469_v24 = vadd.f32 %v2100_v22, %v5311_v10  ;;  %v2102_v1 = vpop.f32.mrb[17].mxu0 }
 0x1cc   : > { %v1823_v61 = vpop.f32.mrb[86].mxu1  ;;  %v2103_v28 = vpop.f32.mrb[18].mxu0 }
 0x1cd   : > { %v1824_v31 = vpop.f32.mrb[87].mxu1  ;;  %v5472_v2 = vadd.f32 %v2103_v28, %v5319_v14  ;;  %v2105_v34 = vpop.f32.mrb[19].mxu0 }
 0x1d2   : > { %v5474_v36 = vpop.f32.mrb[68].mxu1  ;;  %v2108_v6 = vpop.f32.mrb[20].mxu0 }
 0x1d3   : > { %v1998_v39 = vpop.f32.mrb[69].mxu1  ;;  %v5477_v43 = vadd.f32 %v2108_v6, %v5327_v18  ;;  %v2110_v44 = vpop.f32.mrb[21].mxu0 }
 0x1d4   : > { %v5479_v48 = vpop.f32.mrb[70].mxu1  ;;  %v2111_v10 = vpop.f32.mrb[22].mxu0 }
 0x1d5   : > { %v2001_v50 = vpop.f32.mrb[71].mxu1  ;;  %v5482_v54 = vadd.f32 %v2111_v10, %v5335_v23  ;;  %v2113_v55 = vpop.f32.mrb[23].mxu0 }
 0x1da   : > { %v5485_v14 = vpop.f32.mrb[72].mxu1  ;;  %v2116_v59 = vpop.f32.mrb[24].mxu0 }
 0x1db   : > { %v2006_v60 = vpop.f32.mrb[73].mxu1  ;;  %v5488_v0 = vadd.f32 %v2116_v59, %v5343_v26  ;;  %v2118_v3 = vpop.f32.mrb[25].mxu0 }
 0x1dc   : > { %v5490_v18 = vpop.f32.mrb[74].mxu1  ;;  %v2119_v4 = vpop.f32.mrb[26].mxu0 }
 0x1dd   : > { %v2009_v5 = vpop.f32.mrb[75].mxu1  ;;  %v5493_v8 = vadd.f32 %v2119_v4, %v5351_v29  ;;  %v2121_v9 = vpop.f32.mrb[27].mxu0 }
 0x1e2   : > { %v5495_v23 = vpop.f32.mrb[76].mxu1  ;;  %v2124_v12 = vpop.f32.mrb[28].mxu0 }
 0x1e3   : > { %v2014_v13 = vpop.f32.mrb[77].mxu1  ;;  %v5498_v16 = vadd.f32 %v2124_v12, %v5359_v33  ;;  %v2126_v22 = vpop.f32.mrb[29].mxu0 }
 0x1e4   : > { %v5500_v57 = vpop.f32.mrb[78].mxu1  ;;  %v2127_v26 = vpop.f32.mrb[30].mxu0 }
 0x1e5   : > { %v2017_v1 = vpop.f32.mrb[79].mxu1  ;;  %v5503_v61 = vadd.f32 %v2127_v26, %v5367_v37  ;;  %v2129_v28 = vpop.f32.mrb[31].mxu0 }
 0x1ea   : > { %v5505_v31 = vpop.f32.mrb[80].mxu1  ;;  %v2132_v29 = vpop.f32.mrb[32].mxu0 }
 0x1eb   : > { %v2022_v34 = vpop.f32.mrb[81].mxu1  ;;  %v5508_v6 = vadd.f32 %v2132_v29, %v5375_v42  ;;  %v2134_v39 = vpop.f32.mrb[33].mxu0 }
 0x1ec   : > { %v5510_v44 = vpop.f32.mrb[82].mxu1  ;;  %v2135_v33 = vpop.f32.mrb[34].mxu0 }
 0x1ed   : > { %v2025_v10 = vpop.f32.mrb[83].mxu1  ;;  %v5513_v50 = vadd.f32 %v2135_v33, %v5383_v47  ;;  %v2137_v55 = vpop.f32.mrb[35].mxu0 }
 0x1f2   : > { %v2028_v59 = vpop.f32.mrb[88].mxu1  ;;  %v2140_v60 = vpop.f32.mrb[36].mxu0 }
 0x1f3   : > { %v5515_v37 = vadd.f32 %v2028_v59, %v1820_v19  ;;  %v2030_v3 = vpop.f32.mrb[89].mxu1  ;;  %v5518_v4 = vadd.f32 %v2140_v60, %v5391_v52  ;;  %v2142_v5 = vpop.f32.mrb[37].mxu0 }
 0x1f4   : > { %v2031_v42 = vpop.f32.mrb[90].mxu1  ;;  %v2143_v9 = vpop.f32.mrb[38].mxu0 }
 0x1f5   : > { %v2032_v12 = vpop.f32.mrb[91].mxu1  ;;  %v5521_v13 = vadd.f32 %v2143_v9, %v5399_v58  ;;  %v2145_v22 = vpop.f32.mrb[39].mxu0 }
 0x1fa   : > { %v4051_v26 = vpop.f32.mrb[92].mxu1  ;;  %v2148_v47 = vpop.f32.mrb[40].mxu0 }
 0x1fb   : > { %v5524_v1 = vadd.f32 %v5451_v56, %v4051_v26  ;;  %v2276_v19 = vpop.f32.mrb[93].mxu1  ;;  %v5527_v28 = vadd.f32 %v2148_v47, %v5407_v63  ;;  %v2150_v29 = vpop.f32.mrb[41].mxu0 }
 0x1fc   : > { %v5530_v52 = vadd.f32 %v5445_v46, %v2276_v19  ;;  %v4052_v34 = vpop.f32.mrb[94].mxu1  ;;  %v2151_v39 = vpop.f32.mrb[42].mxu0 }
 0x1fd   : > { %v5533_v33 = vadd.f32 %v5454_v62, %v4052_v34  ;;  %v2279_v58 = vpop.f32.mrb[95].mxu1  ;;  %v5536_v10 = vadd.f32 %v2151_v39, %v5418_v7  ;;  %v2153_v55 = vpop.f32.mrb[43].mxu0 }
 0x1fe   : > { %v5539_v56 = vadd.f32 %v5448_v51, %v2279_v58 }
 0x202   : > { %v4055_v59 = vpop.f32.mrb[96].mxu1  ;;  %v2156_v63 = vpop.f32.mrb[44].mxu0 }
 0x203   : > { %v5542_v60 = vadd.f32 %v5463_v49, %v4055_v59  ;;  %v2292_v46 = vpop.f32.mrb[97].mxu1  ;;  %v4147_v3 = vadd.f32 %v2156_v63, %v5420_v11  ;;  %v2158_v5 = vpop.f32.mrb[45].mxu0 }
 0x204   : > { %v5546_v62 = vadd.f32 %v5457_v41, %v2292_v46  ;;  %v4056_v42 = vpop.f32.mrb[98].mxu1  ;;  %v2159_v9 = vpop.f32.mrb[46].mxu0 }
 0x205   : > { %v5549_v7 = vadd.f32 %v5466_v53, %v4056_v42  ;;  %v2295_v12 = vpop.f32.mrb[99].mxu1  ;;  %v4148_v51 = vadd.f32 %v2159_v9, %v5422_v15  ;;  %v2161_v22 = vpop.f32.mrb[47].mxu0 }
 0x206   : > { %v5553_v26 = vadd.f32 %v5460_v45, %v2295_v12 }
 0x20a   : > { %v4059_v49 = vpop.f32.mrb[100].mxu1  ;;  %v2164_v47 = vpop.f32.mrb[48].mxu0 }
 0x20b   : > { %v5556_v11 = vadd.f32 %v5477_v43, %v4059_v49  ;;  %v2308_v19 = vpop.f32.mrb[101].mxu1  ;;  %v4149_v41 = vadd.f32 %v2164_v47, %v5424_v17  ;;  %v2166_v29 = vpop.f32.mrb[49].mxu0 }
 0x20c   : > { %v5560_v34 = vadd.f32 %v5469_v24, %v2308_v19  ;;  %v4060_v53 = vpop.f32.mrb[102].mxu1  ;;  %v2167_v39 = vpop.f32.mrb[50].mxu0 }
 0x20d   : > { %v5563_v15 = vadd.f32 %v5482_v54, %v4060_v53  ;;  %v2311_v58 = vpop.f32.mrb[103].mxu1  ;;  %v4150_v45 = vadd.f32 %v2167_v39, %v5426_v20  ;;  %v2169_v55 = vpop.f32.mrb[51].mxu0 }
 0x20e   : > { %v5567_v59 = vadd.f32 %v5472_v2, %v2311_v58 }
 0x212   : > { %v4063_v43 = vpop.f32.mrb[104].mxu1  ;;  %v2172_v63 = vpop.f32.mrb[52].mxu0 }
 0x213   : > { %v5570_v17 = vadd.f32 %v5498_v16, %v4063_v43  ;;  %v2324_v46 = vpop.f32.mrb[105].mxu1  ;;  %v4151_v24 = vadd.f32 %v2172_v63, %v5428_v21  ;;  %v2174_v5 = vpop.f32.mrb[53].mxu0 }
 0x214   : > { %v5574_v42 = vadd.f32 %v5488_v0, %v2324_v46  ;;  %v4064_v54 = vpop.f32.mrb[106].mxu1  ;;  %v2175_v9 = vpop.f32.mrb[54].mxu0 }
 0x215   : > { %v5577_v20 = vadd.f32 %v5503_v61, %v4064_v54  ;;  %v2327_v12 = vpop.f32.mrb[107].mxu1  ;;  %v4152_v2 = vadd.f32 %v2175_v9, %v5430_v25  ;;  %v2177_v22 = vpop.f32.mrb[55].mxu0 }
 0x216   : > { %v5581_v49 = vadd.f32 %v5493_v8, %v2327_v12 }
 0x21a   : > { %v4067_v16 = vpop.f32.mrb[108].mxu1  ;;  %v2180_v47 = vpop.f32.mrb[56].mxu0 }
 0x21b   : > { %v5584_v21 = vadd.f32 %v5518_v4, %v4067_v16  ;;  %v2340_v19 = vpop.f32.mrb[109].mxu1  ;;  %v4153_v0 = vadd.f32 %v2180_v47, %v5432_v27  ;;  %v2182_v29 = vpop.f32.mrb[57].mxu0 }
 0x21c   : > { %v5588_v53 = vadd.f32 %v5508_v6, %v2340_v19  ;;  %v4068_v61 = vpop.f32.mrb[110].mxu1  ;;  %v2183_v39 = vpop.f32.mrb[58].mxu0 }
 0x21d   : > { %v5591_v25 = vadd.f32 %v5521_v13, %v4068_v61  ;;  %v2343_v58 = vpop.f32.mrb[111].mxu1  ;;  %v4154_v8 = vadd.f32 %v2183_v39, %v5434_v30  ;;  %v2185_v55 = vpop.f32.mrb[59].mxu0 }
 0x21e   : > { %v5595_v43 = vadd.f32 %v5513_v50, %v2343_v58 }
 0x222   : > { %v4071_v4 = vpop.f32.mrb[112].mxu1  ;;  %v2188_v63 = vpop.f32.mrb[60].mxu0 }
 0x223   : > { %v5597_v46 = vadd.f32 %v4147_v3, %v4071_v4  ;;  %v2356_v27 = vpop.f32.mrb[113].mxu1  ;;  %v4155_v6 = vadd.f32 %v2188_v63, %v5436_v32  ;;  %v2190_v5 = vpop.f32.mrb[61].mxu0 }
 0x224   : > { %v5601_v54 = vadd.f32 %v5527_v28, %v2356_v27  ;;  %v4072_v13 = vpop.f32.mrb[114].mxu1  ;;  %v2191_v9 = vpop.f32.mrb[62].mxu0 }
 0x225   : > { %v5603_v12 = vadd.f32 %v4148_v51, %v4072_v13  ;;  %v2359_v30 = vpop.f32.mrb[115].mxu1  ;;  %v4156_v22 = vadd.f32 %v2191_v9, %v5438_v35  ;;  %v2193_v50 = vpop.f32.mrb[63].mxu0 }
 0x226   : > { %v5607_v16 = vadd.f32 %v5536_v10, %v2359_v30 }
 0x22a   : > { %v4075_v3 = vpop.f32.mrb[116].mxu1  ;;  %v2196_v47 = vpop.f32.mrb[64].mxu0 }
 0x22b   : > { %v5609_v19 = vadd.f32 %v4151_v24, %v4075_v3  ;;  %v2372_v32 = vpop.f32.mrb[117].mxu1  ;;  %v4157_v29 = vadd.f32 %v2196_v47, %v5440_v38  ;;  %v2198_v28 = vpop.f32.mrb[65].mxu0 }
 0x22c   : > { %v5612_v61 = vadd.f32 %v4149_v41, %v2372_v32  ;;  %v4076_v39 = vpop.f32.mrb[118].mxu1  ;;  %v2199_v51 = vpop.f32.mrb[66].mxu0 }
 0x22d   : > { %v5614_v58 = vadd.f32 %v4152_v2, %v4076_v39  ;;  %v2375_v55 = vpop.f32.mrb[119].mxu1  ;;  %v4158_v35 = vadd.f32 %v2199_v51, %v5442_v40  ;;  %v2201_v4 = vpop.f32.mrb[67].mxu0 }
 0x22e   : > { %v5617_v10 = vadd.f32 %v4150_v45, %v2375_v55 }
 0x232   : > { %v4079_v63 = vpop.f32.mrb[120].mxu1  ;;  %v2204_v27 = vpop.f32.mrb[68].mxu0 }
 0x233   : > { %v5619_v24 = vadd.f32 %v4155_v6, %v4079_v63  ;;  %v2388_v5 = vpop.f32.mrb[121].mxu1  ;;  %v4159_v38 = vadd.f32 %v2204_v27, %v5474_v36  ;;  %v2206_v13 = vpop.f32.mrb[69].mxu0 }
 0x234   : > { %v5622_v41 = vadd.f32 %v4153_v0, %v2388_v5  ;;  %v4080_v9 = vpop.f32.mrb[122].mxu1  ;;  %v2207_v30 = vpop.f32.mrb[70].mxu0 }
 0x235   : > { %v5624_v2 = vadd.f32 %v4156_v22, %v4080_v9  ;;  %v2391_v50 = vpop.f32.mrb[123].mxu1  ;;  %v4160_v40 = vadd.f32 %v2207_v30, %v5479_v48  ;;  %v2209_v3 = vpop.f32.mrb[71].mxu0 }
 0x236   : > { %v5627_v45 = vadd.f32 %v4154_v8, %v2391_v50 }
 0x23a   : > { %v4083_v47 = vpop.f32.mrb[124].mxu1  ;;  %v2212_v32 = vpop.f32.mrb[72].mxu0 }
 0x23b   : > { %v5629_v6 = vadd.f32 %v4159_v38, %v4083_v47  ;;  %v2404_v28 = vpop.f32.mrb[125].mxu1  ;;  %v4161_v36 = vadd.f32 %v2212_v32, %v5485_v14  ;;  %v2214_v39 = vpop.f32.mrb[73].mxu0 }
 0x23c   : > { %v5632_v0 = vadd.f32 %v4157_v29, %v2404_v28  ;;  %v4084_v51 = vpop.f32.mrb[126].mxu1  ;;  %v2215_v55 = vpop.f32.mrb[74].mxu0 }
 0x23d   : > { %v5634_v22 = vadd.f32 %v4160_v40, %v4084_v51  ;;  %v2407_v4 = vpop.f32.mrb[127].mxu1  ;;  %v4162_v48 = vadd.f32 %v2215_v55, %v5490_v18  ;;  %v2217_v63 = vpop.f32.mrb[75].mxu0 }
 0x23e   : > { %v5637_v8 = vadd.f32 %v4158_v35, %v2407_v4 }
 0x242   : > { %v4087_v27 = vpop.f32.mrb[128].mxu1  ;;  %v2220_v5 = vpop.f32.mrb[76].mxu0 }
 0x243   : > { %v2420_v38 = vpop.f32.mrb[129].mxu1  ;;  %v4163_v13 = vadd.f32 %v2220_v5, %v5495_v23  ;;  %v2222_v9 = vpop.f32.mrb[77].mxu0 }
 0x244   : > { %v5640_v14 = vadd.f32 %v4161_v36, %v2420_v38  ;;  %v4088_v29 = vpop.f32.mrb[130].mxu1  ;;  %v2223_v30 = vpop.f32.mrb[78].mxu0 }
 0x245   : > { %v2423_v50 = vpop.f32.mrb[131].mxu1  ;;  %v5642_v3 = vadd.f32 %v4163_v13, %v4087_v27  ;;  %v4164_v40 = vadd.f32 %v2223_v30, %v5500_v57  ;;  %v2225_v47 = vpop.f32.mrb[79].mxu0 }
 0x246   : > { %v5645_v18 = vadd.f32 %v4162_v48, %v2423_v50 }
 0x247   : > { %v5647_v35 = vadd.f32 %v4164_v40, %v4088_v29 }
 0x24a   : > { %v4091_v32 = vpop.f32.mrb[132].mxu1  ;;  %v2228_v28 = vpop.f32.mrb[80].mxu0 }
 0x24b   : > { %v2436_v39 = vpop.f32.mrb[133].mxu1  ;;  %v4165_v23 = vadd.f32 %v2228_v28, %v5505_v31  ;;  %v2230_v51 = vpop.f32.mrb[81].mxu0  ;;  %v4577_v31 = vmov (%p2450_p4), 0.0  }
 0x24c   : > { %v4092_v36 = vpop.f32.mrb[134].mxu1  ;;  %v2231_v55 = vpop.f32.mrb[82].mxu0  ;;  %2456 = vst [vmem:[#allocation2] sm:$0x1] (%p2450_p4), %v4577_v31  ;;  %2457 = vst [vmem:[#allocation3] sm:$0x1] (%p2450_p4), %v4577_v31 }
 0x24d   : > { %v2439_v4 = vpop.f32.mrb[135].mxu1  ;;  %v4166_v63 = vadd.f32 %v2231_v55, %v5510_v44  ;;  %v5651_v27 = vadd.f32 %v4165_v23, %v2436_v39  ;;  %v2233_v5 = vpop.f32.mrb[83].mxu0 }
 0x24f   : > { %6319 = vst [vmem:[#allocation4_spill] sm:$0xff] %v5651_v27  ;;  %v5653_v57 = vadd.f32 %v4166_v63, %v2439_v4  ;;  %2455 = sbr.rel (!%p2450_p4) target bundleno = 598 (0x256), region = 40 }
 0x251   : > { %6320 = vst [vmem:[#allocation5_spill] sm:$0xff] %v5653_v57 }
 0x252   : > { %v2236_v48 = vpop.f32.mrb[84].mxu0 }
 0x253   : > { %v2237_v38 = vadd.f32 %v2236_v48, %v5515_v37  ;;  %v2238_v13 = vpop.f32.mrb[85].mxu0 }
 0x254   : > { %v2239_v9 = vpop.f32.mrb[86].mxu0 }
 0x255   : > { %v5656_v29 = vadd.f32 %v4091_v32, %v2237_v38  ;;  %v2240_v30 = vpop.f32.mrb[87].mxu0 }
 0x256 PF: > { %p3572_p5 = scmp.ne.s32.totalorder %s4566_s15, 0 }
 0x257   : > { %v2462_v44 = vadd.f32 (!%p3572_p5), %v5539_v56, %v5530_v52  ;;  %v2513_v32 = vmul.f32 (!%p3572_p5), %v5530_v52, %v5530_v52  ;;  %v2514_v28 = vmul.f32 (!%p3572_p5), %v5539_v56, %v5539_v56  ;;  %v2515_v23 = vmul.f32 (!%p3572_p5), %v5524_v1, %v5524_v1 }
 0x258   : > { %2460 = sbr.rel (%p3572_p5) target bundleno = 706 (0x2c2), region = 44  ;;  %v2516_v51 = vmul.f32 (!%p3572_p5), %v5533_v33, %v5533_v33  ;;  %v2517_v36 = vmul.f32 (!%p3572_p5), %v5546_v62, %v5546_v62  ;;  %v2518_v55 = vmul.f32 (!%p3572_p5), %v5553_v26, %v5553_v26  ;;  %v2519_v63 = vmul.f32 (!%p3572_p5), %v5542_v60, %v5542_v60 }
 0x259   : > { %v2463_v37 = vadd.f32 (!%p3572_p5), %v2462_v44, %v5524_v1  ;;  %v2556_v5 = vadd.f32 (!%p3572_p5), %v2514_v28, %v2513_v32  ;;  %v3756_v48 = vpack.c.bf16 (!%p3572_p5), %v5539_v56, %v5530_v52  ;;  %v3761_v38 = vpack.c.bf16 (!%p3572_p5), %v5533_v33, %v5524_v1 }
 0x25a   : > { %v3766_v13 = vpack.c.bf16 (!%p3572_p5), %v5553_v26, %v5546_v62  ;;  %v3771_v9 = vpack.c.bf16 (!%p3572_p5), %v5549_v7, %v5542_v60  ;;  %v3776_v30 = vpack.c.bf16 (!%p3572_p5), %v5567_v59, %v5560_v34  ;;  %v3801_v32 = vpack.c.bf16 (!%p3572_p5), %v5591_v25, %v5584_v21 }
 0x25b   : > { %v2464_v50 = vadd.f32 (!%p3572_p5), %v2463_v37, %v5533_v33  ;;  %v2557_v44 = vadd.f32 (!%p3572_p5), %v2556_v5, %v2515_v23  ;;  %3757 = vst [vmem:[%s6314_s4] sm:$0xff] (!%p3572_p5), %v3756_v48   ;;  %v3781_v37 = vpack.c.bf16 (!%p3572_p5), %v5563_v15, %v5556_v11  ;;  %3963 = vst [vmem:[%s6314_s4 + $0x8] sm:$0xff] (!%p3572_p5), %v3761_v38  }
 0x25c   : > { %3964 = vst [vmem:[%s6314_s4 + $0x10] sm:$0xff] (!%p3572_p5), %v3766_v13   ;;  %3965 = vst [vmem:[%s6314_s4 + $0x18] sm:$0xff] (!%p3572_p5), %v3771_v9   ;;  %v3806_v28 = vpack.c.bf16 (!%p3572_p5), %v5607_v16, %v5601_v54  ;;  %v3816_v5 = vpack.c.bf16 (!%p3572_p5), %v5617_v10, %v5612_v61  ;;  %v3826_v48 = vpack.c.bf16 (!%p3572_p5), %v5627_v45, %v5622_v41 }
 0x25d   : > { %v2465_v40 = vadd.f32 (!%p3572_p5), %v2464_v50, %v5546_v62  ;;  %v3786_v50 = vpack.c.bf16 (!%p3572_p5), %v5581_v49, %v5574_v42  ;;  %3966 = vst [vmem:[%s6314_s4 + $0x20] sm:$0xff] (!%p3572_p5), %v3776_v30   ;;  %v2558_v23 = vadd.f32 (!%p3572_p5), %v2557_v44, %v2516_v51  ;;  %3967 = vst [vmem:[%s6314_s4 + $0x28] sm:$0xff] (!%p3572_p5), %v3781_v37  }
 0x25e   : > { %3971 = vst [vmem:[%s6314_s4 + $0x48] sm:$0xff] (!%p3572_p5), %v3801_v32   ;;  %3972 = vst [vmem:[%s6314_s4 + $0x50] sm:$0xff] (!%p3572_p5), %v3806_v28   ;;  %v3821_v51 = vpack.c.bf16 (!%p3572_p5), %v5614_v58, %v5609_v19  ;;  %v3831_v38 = vpack.c.bf16 (!%p3572_p5), %v5624_v2, %v5619_v24  ;;  %v3836_v13 = vpack.c.bf16 (!%p3572_p5), %v5637_v8, %v5632_v0 }
 0x25f   : > { %v2466_v47 = vadd.f32 %v2465_v40, %v5553_v26  ;;  %v3791_v40 = vpack.c.bf16 %v5577_v20, %v5570_v17  ;;  %3968 = vst [vmem:[%s6314_s4 + $0x30] sm:$0xff] %v3786_v50   ;;  %v2559_v30 = vadd.f32 %v2558_v23, %v2517_v36  ;;  %3974 = vst [vmem:[%s6314_s4 + $0x60] sm:$0xff] %v3816_v5  }
 0x260   : > { %v3846_v44 = vpack.c.bf16 %v5645_v18, %v5640_v14  ;;  %3975 = vst [vmem:[%s6314_s4 + $0x68] sm:$0xff] %v3821_v51   ;;  %3976 = vst [vmem:[%s6314_s4 + $0x70] sm:$0xff] %v3826_v48   ;;  %v3851_v36 = vpack.c.bf16 %v5647_v35, %v5642_v3  ;;  %v3856_v37 = vpack.c.bf16 %v5653_v57, %v5651_v27 }
 0x261   : > { %v2467_v39 = vadd.f32 %v2466_v47, %v5542_v60  ;;  %v3796_v47 = vpack.c.bf16 %v5595_v43, %v5588_v53  ;;  %3969 = vst [vmem:[%s6314_s4 + $0x38] sm:$0xff] %v3791_v40   ;;  %3977 = vst [vmem:[%s6314_s4 + $0x78] sm:$0xff] %v3831_v38   ;;  %v3709_v50 = vpack.c.bf16 %v5656_v29, %v5656_v29 }
 0x262   : > { %3978 = vst [vmem:[%s6314_s4 + $0x80] sm:$0xff] %v3836_v13   ;;  %v2560_v32 = vadd.f32 %v2559_v30, %v2518_v55  ;;  %3980 = vst [vmem:[%s6314_s4 + $0x90] sm:$0xff] %v3846_v44   ;;  %v2521_v28 = vmul.f32 %v5560_v34, %v5560_v34  ;;  %v2523_v48 = vmul.f32 %v5556_v11, %v5556_v11 }
 0x263   : > { %v2468_v4 = vadd.f32 %v2467_v39, %v5549_v7  ;;  %3970 = vst [vmem:[%s6314_s4 + $0x40] sm:$0xff] %v3796_v47   ;;  %v2520_v47 = vmul.f32 %v5549_v7, %v5549_v7  ;;  %3981 = vst [vmem:[%s6314_s4 + $0x98] sm:$0xff] %v3851_v36  }
 0x264   : > { %3982 = vst [vmem:[%s6314_s4 + $0xa0] sm:$0xff] %v3856_v37   ;;  %2821 = vst [vmem:[%s6314_s4 + $0xa8] sm:$0xf] %v3709_v50  ;;  %v2526_v37 = vmul.f32 %v5581_v49, %v5581_v49 }
 0x265   : > { %v2469_v31 = vadd.f32 %v2468_v4, %v5560_v34  ;;  %v3811_v4 = vpack.c.bf16 %v5603_v12, %v5597_v46 }
 0x267   : > { %v2470_v39 = vadd.f32 %v2469_v31, %v5567_v59  ;;  %3973 = vst [vmem:[%s6314_s4 + $0x58] sm:$0xff] %v3811_v4   ;;  %v3841_v31 = vpack.c.bf16 %v5634_v22, %v5629_v6  ;;  %v2522_v4 = vmul.f32 %v5567_v59, %v5567_v59 }
 0x269   : > { %v2471_v9 = vadd.f32 %v2470_v39, %v5556_v11  ;;  %3979 = vst [vmem:[%s6314_s4 + $0x88] sm:$0xff] %v3841_v31   ;;  %v2561_v39 = vadd.f32 %v2560_v32, %v2519_v63  ;;  %v2525_v31 = vmul.f32 %v5574_v42, %v5574_v42 }
 0x26b   : > { %v2472_v40 = vadd.f32 %v2471_v9, %v5563_v15  ;;  %v2562_v5 = vadd.f32 %v2561_v39, %v2520_v47  ;;  %v2524_v9 = vmul.f32 %v5563_v15, %v5563_v15  ;;  %v2527_v47 = vmul.f32 %v5570_v17, %v5570_v17 }
 0x26d   : > { %v2473_v55 = vadd.f32 %v2472_v40, %v5574_v42  ;;  %v2563_v38 = vadd.f32 %v2562_v5, %v2521_v28  ;;  %v2528_v28 = vmul.f32 %v5577_v20, %v5577_v20 }
 0x26f   : > { %v2474_v23 = vadd.f32 %v2473_v55, %v5581_v49  ;;  %v2564_v30 = vadd.f32 %v2563_v38, %v2522_v4  ;;  %v2529_v4 = vmul.f32 %v5588_v53, %v5588_v53 }
 0x271   : > { %v2475_v51 = vadd.f32 %v2474_v23, %v5570_v17  ;;  %v2565_v44 = vadd.f32 %v2564_v30, %v2523_v48  ;;  %v2530_v48 = vmul.f32 %v5595_v43, %v5595_v43 }
 0x273   : > { %v2476_v13 = vadd.f32 %v2475_v51, %v5577_v20  ;;  %v2566_v50 = vadd.f32 %v2565_v44, %v2524_v9  ;;  %v2531_v9 = vmul.f32 %v5584_v21, %v5584_v21 }
 0x275   : > { %v2477_v63 = vadd.f32 %v2476_v13, %v5588_v53  ;;  %v2567_v32 = vadd.f32 %v2566_v50, %v2525_v31  ;;  %v2532_v31 = vmul.f32 %v5591_v25, %v5591_v25 }
 0x277   : > { %v2478_v36 = vadd.f32 %v2477_v63, %v5595_v43  ;;  %v2568_v39 = vadd.f32 %v2567_v32, %v2526_v37  ;;  %v2533_v37 = vmul.f32 %v5601_v54, %v5601_v54 }
 0x279   : > { %v2479_v40 = vadd.f32 %v2478_v36, %v5584_v21  ;;  %v2569_v5 = vadd.f32 %v2568_v39, %v2527_v47  ;;  %v2534_v47 = vmul.f32 %v5607_v16, %v5607_v16 }
 0x27b   : > { %v2480_v55 = vadd.f32 %v2479_v40, %v5591_v25  ;;  %v2570_v38 = vadd.f32 %v2569_v5, %v2528_v28  ;;  %v2535_v28 = vmul.f32 %v5597_v46, %v5597_v46 }
 0x27d   : > { %v2481_v23 = vadd.f32 %v2480_v55, %v5601_v54  ;;  %v2571_v30 = vadd.f32 %v2570_v38, %v2529_v4  ;;  %v2536_v4 = vmul.f32 %v5603_v12, %v5603_v12 }
 0x27f   : > { %v2482_v51 = vadd.f32 %v2481_v23, %v5607_v16  ;;  %v2572_v44 = vadd.f32 %v2571_v30, %v2530_v48  ;;  %v2537_v48 = vmul.f32 %v5612_v61, %v5612_v61 }
 0x281   : > { %v2483_v13 = vadd.f32 %v2482_v51, %v5597_v46  ;;  %v2573_v50 = vadd.f32 %v2572_v44, %v2531_v9  ;;  %v2538_v9 = vmul.f32 %v5617_v10, %v5617_v10 }
 0x283   : > { %v2484_v63 = vadd.f32 %v2483_v13, %v5603_v12  ;;  %v2574_v32 = vadd.f32 %v2573_v50, %v2532_v31  ;;  %v2539_v31 = vmul.f32 %v5609_v19, %v5609_v19 }
 0x285   : > { %v2485_v36 = vadd.f32 %v2484_v63, %v5612_v61  ;;  %v2575_v39 = vadd.f32 %v2574_v32, %v2533_v37  ;;  %v2540_v37 = vmul.f32 %v5614_v58, %v5614_v58 }
 0x287   : > { %v2486_v40 = vadd.f32 %v2485_v36, %v5617_v10  ;;  %v2576_v5 = vadd.f32 %v2575_v39, %v2534_v47  ;;  %v2541_v47 = vmul.f32 %v5622_v41, %v5622_v41 }
 0x289   : > { %v2487_v55 = vadd.f32 %v2486_v40, %v5609_v19  ;;  %v2577_v38 = vadd.f32 %v2576_v5, %v2535_v28  ;;  %v2542_v28 = vmul.f32 %v5627_v45, %v5627_v45 }
 0x28b   : > { %v2488_v23 = vadd.f32 %v2487_v55, %v5614_v58  ;;  %v2578_v30 = vadd.f32 %v2577_v38, %v2536_v4  ;;  %v2543_v4 = vmul.f32 %v5619_v24, %v5619_v24 }
 0x28d   : > { %v2489_v51 = vadd.f32 %v2488_v23, %v5622_v41  ;;  %v2579_v44 = vadd.f32 %v2578_v30, %v2537_v48  ;;  %v2544_v48 = vmul.f32 %v5624_v2, %v5624_v2 }
 0x28f   : > { %v2490_v13 = vadd.f32 %v2489_v51, %v5627_v45  ;;  %v2580_v50 = vadd.f32 %v2579_v44, %v2538_v9  ;;  %v2545_v9 = vmul.f32 %v5632_v0, %v5632_v0 }
 0x291   : > { %v2491_v63 = vadd.f32 %v2490_v13, %v5619_v24  ;;  %v2581_v32 = vadd.f32 %v2580_v50, %v2539_v31  ;;  %v2546_v31 = vmul.f32 %v5637_v8, %v5637_v8 }
 0x293   : > { %v2492_v36 = vadd.f32 %v2491_v63, %v5624_v2  ;;  %v2582_v39 = vadd.f32 %v2581_v32, %v2540_v37  ;;  %v2547_v37 = vmul.f32 %v5629_v6, %v5629_v6 }
 0x295   : > { %v2493_v40 = vadd.f32 %v2492_v36, %v5632_v0  ;;  %v2583_v5 = vadd.f32 %v2582_v39, %v2541_v47  ;;  %v2548_v47 = vmul.f32 %v5634_v22, %v5634_v22 }
 0x297   : > { %v2494_v55 = vadd.f32 %v2493_v40, %v5637_v8  ;;  %v2584_v38 = vadd.f32 %v2583_v5, %v2542_v28  ;;  %v2549_v28 = vmul.f32 %v5640_v14, %v5640_v14 }
 0x299   : > { %v2495_v23 = vadd.f32 %v2494_v55, %v5629_v6  ;;  %v2585_v30 = vadd.f32 %v2584_v38, %v2543_v4  ;;  %v2550_v4 = vmul.f32 %v5645_v18, %v5645_v18 }
 0x29b   : > { %v2496_v51 = vadd.f32 %v2495_v23, %v5634_v22  ;;  %v2586_v44 = vadd.f32 %v2585_v30, %v2544_v48  ;;  %v2551_v48 = vmul.f32 %v5642_v3, %v5642_v3 }
 0x29d   : > { %v2497_v13 = vadd.f32 %v2496_v51, %v5640_v14  ;;  %v2587_v50 = vadd.f32 %v2586_v44, %v2545_v9  ;;  %v2552_v9 = vmul.f32 %v5647_v35, %v5647_v35 }
 0x29f   : > { %v2498_v63 = vadd.f32 %v2497_v13, %v5645_v18  ;;  %v2588_v32 = vadd.f32 %v2587_v50, %v2546_v31  ;;  %v2553_v31 = vmul.f32 %v5651_v27, %v5651_v27 }
 0x2a1   : > { %v2499_v36 = vadd.f32 %v2498_v63, %v5642_v3  ;;  %v2589_v39 = vadd.f32 %v2588_v32, %v2547_v37  ;;  %v2554_v37 = vmul.f32 %v5653_v57, %v5653_v57 }
 0x2a3   : > { %v2500_v40 = vadd.f32 %v2499_v36, %v5647_v35  ;;  %v2590_v5 = vadd.f32 %v2589_v39, %v2548_v47  ;;  %v2555_v47 = vmul.f32 %v5656_v29, %v5656_v29  ;;  %v2461_v39 = vld [vmem:[#allocation2] sm:$0x1] }
 0x2a5   : > { %v2501_v55 = vadd.f32 %v2500_v40, %v5651_v27  ;;  %v2591_v38 = vadd.f32 %v2590_v5, %v2549_v28  ;;  %v2512_v27 = vld [vmem:[#allocation3] sm:$0x1] }
 0x2a7   : > { %v2502_v23 = vadd.f32 %v2501_v55, %v5653_v57  ;;  %v2592_v30 = vadd.f32 %v2591_v38, %v2550_v4 }
 0x2a9   : > { %v2503_v51 = vadd.f32 %v2502_v23, %v5656_v29  ;;  %v2593_v44 = vadd.f32 %v2592_v30, %v2551_v48 }
 0x2ab   : > { %v2504_v13 = vrot.slane %v2503_v51, 4  ;;  %v2594_v50 = vadd.f32 %v2593_v44, %v2552_v9 }
 0x2ad   : > { %v2505_v63 = vadd.f32 %v2504_v13, %v2503_v51  ;;  %v2595_v32 = vadd.f32 %v2594_v50, %v2553_v31 }
 0x2af   : > { %v2506_v36 = vrot.slane %v2505_v63, 2  ;;  %v2596_v28 = vadd.f32 %v2595_v32, %v2554_v37 }
 0x2b1   : > { %v2507_v40 = vadd.f32 %v2506_v36, %v2505_v63  ;;  %v2597_v4 = vadd.f32 %v2596_v28, %v2555_v47 }
 0x2b3   : > { %v2508_v55 = vrot.slane %v2507_v40, 1  ;;  %v2598_v51 = vrot.slane %v2597_v4, 4 }
 0x2b5   : > { %v2509_v23 = vadd.f32 %v2508_v55, %v2507_v40  ;;  %v2599_v38 = vadd.f32 %v2598_v51, %v2597_v4 }
 0x2b7   : > { %v2510_v5 = vadd.f32 %v2509_v23, %v2461_v39  ;;  %v2600_v48 = vrot.slane %v2599_v38, 2 }
 0x2b9   : > { %2511 = vst [vmem:[#allocation2] sm:$0x1] %v2510_v5  ;;  %v2601_v13 = vadd.f32 %v2600_v48, %v2599_v38 }
 0x2bb   : > { %v2602_v30 = vrot.slane %v2601_v13, 1 }
 0x2bd   : > { %v2603_v57 = vadd.f32 %v2602_v30, %v2601_v13 }
 0x2bf   : > { %v2604_v9 = vadd.f32 %v2603_v57, %v2512_v27 }
 0x2c1   : > { %2605 = vst [vmem:[#allocation3] sm:$0x1] %v2604_v9 }
 0x2c2 PF: > { %p3616_p6 = scmp.ne.s32.totalorder %s4566_s15, 1 }
 0x2c3   : > { %v2826_v63 = vld [vmem:[#allocation2] sm:$0x1] (!%p3616_p6)  ;;  %v2834_v44 = vlaneseq (!%p3616_p6) }
 0x2c4   : > { %2825 = sbr.rel (%p3616_p6) target bundleno = 799 (0x31f), region = 48  ;;  %v2827_v36 = vmul.f32 (!%p3616_p6), 0.00295858, %v2826_v63 }
 0x2c5   : > { %v2835_v50 = vshrl.u32 (!%p3616_p6), %v2834_v44, 7 }
 0x2c6   : > { %v2830_v40 = vmul.f32 (!%p3616_p6), %v2827_v36, %v2827_v36 }
 0x2c7   : > { %v2836_v32 = vsub.s32 (!%p3616_p6), 0, %v2835_v50 }
 0x2c8   : > { %v2828_v31 = vld [vmem:[#allocation3] sm:$0x1] (!%p3616_p6) }
 0x2c9   : > { %v2829_v37 = vmul.f32 (!%p3616_p6), 0.00295858, %v2828_v31  ;;  %v5901_v28 = vrot.slane (!%p3616_p6), %v2827_v36, %v2836_v32 }
 0x2cb   : > { %v2831_v47 = vsub.f32 %v2829_v37, %v2830_v40  ;;  %v2839_v27 = vsub.f32 %v5530_v52, %v5901_v28  ;;  %v2840_v57 = vsub.f32 %v5539_v56, %v5901_v28  ;;  %v2841_v23 = vsub.f32 %v5524_v1, %v5901_v28 }
 0x2cc   : > { %v2842_v4 = vsub.f32 %v5533_v33, %v5901_v28  ;;  %v2843_v5 = vsub.f32 %v5546_v62, %v5901_v28  ;;  %v2844_v51 = vsub.f32 %v5553_v26, %v5901_v28  ;;  %v2845_v38 = vsub.f32 %v5542_v60, %v5901_v28 }
 0x2cd   : > { %v2832_v55 = vmax.f32 %v2831_v47, 0.0  ;;  %v2846_v52 = vsub.f32 %v5549_v7, %v5901_v28  ;;  %v2847_v56 = vsub.f32 %v5560_v34, %v5901_v28  ;;  %v2848_v1 = vsub.f32 %v5567_v59, %v5901_v28  ;;  %v5986_v47 = vld [vmem:[%s6312_s2] ss:$0 sm:$0xff] }
 0x2cf   : > { %v2882_v39 = vadd.f32 1e-05, %v2832_v55  ;;  %v6003_v55 = vld [vmem:[%s6313_s3] ss:$0 sm:$0xff] }
 0x2d1   : > { %4550 = vrsqrt.f32 %v2882_v39  ;;  %v6322_v39 = vld [vmem:[#allocation5_spill] sm:$0xff] }
 0x2db   : > { %v4551_v44 = vpop.eup %4550 }
 0x2dc   : > { %v5975_v36 = vrot.slane %v4551_v44, %v2836_v32  ;;  %v6321_v32 = vld [vmem:[#allocation4_spill] sm:$0xff] }
 0x2de   : > { %v2890_v31 = vmul.f32 %v5975_v36, %v2839_v27  ;;  %v2891_v40 = vmul.f32 %v5975_v36, %v2840_v57  ;;  %v2892_v63 = vmul.f32 %v5975_v36, %v2841_v23  ;;  %v2893_v9 = vmul.f32 %v5975_v36, %v2842_v4 }
 0x2df   : > { %v2894_v44 = vmul.f32 %v5975_v36, %v2843_v5  ;;  %v2895_v37 = vmul.f32 %v5975_v36, %v2844_v51  ;;  %v2896_v30 = vmul.f32 %v5975_v36, %v2845_v38  ;;  %v2897_v50 = vmul.f32 %v5975_v36, %v2846_v52 }
 0x2e0   : > { %v2940_v27 = vmul.f32 %v5986_v47, %v2890_v31  ;;  %v2941_v57 = vmul.f32 %v5986_v47, %v2891_v40  ;;  %v2942_v23 = vmul.f32 %v5986_v47, %v2892_v63  ;;  %v2943_v4 = vmul.f32 %v5986_v47, %v2893_v9 }
 0x2e1   : > { %v2944_v13 = vmul.f32 %v5986_v47, %v2894_v44  ;;  %v2945_v48 = vmul.f32 %v5986_v47, %v2895_v37  ;;  %v2946_v5 = vmul.f32 %v5986_v47, %v2896_v30  ;;  %v2947_v51 = vmul.f32 %v5986_v47, %v2897_v50 }
 0x2e2   : > { %v2990_v38 = vadd.f32 %v6003_v55, %v2940_v27  ;;  %v2991_v52 = vadd.f32 %v6003_v55, %v2941_v57  ;;  %v2992_v31 = vadd.f32 %v6003_v55, %v2942_v23  ;;  %v2993_v40 = vadd.f32 %v6003_v55, %v2943_v4 }
 0x2e3   : > { %v2994_v63 = vadd.f32 %v6003_v55, %v2944_v13  ;;  %v2995_v9 = vadd.f32 %v6003_v55, %v2945_v48  ;;  %v2996_v44 = vadd.f32 %v6003_v55, %v2946_v5  ;;  %v2997_v37 = vadd.f32 %v6003_v55, %v2947_v51 }
 0x2e4   : > { %v3033_v7 = vmax.f32 %v2990_v38, 0.0  ;;  %v3034_v30 = vmax.f32 %v2991_v52, 0.0  ;;  %v3035_v60 = vmax.f32 %v2992_v31, 0.0  ;;  %v3036_v50 = vmax.f32 %v2993_v40, 0.0 }
 0x2e5   : > { %v3037_v26 = vmax.f32 %v2994_v63, 0.0  ;;  %v3038_v27 = vmax.f32 %v2995_v9, 0.0  ;;  %v3039_v62 = vmax.f32 %v2996_v44, 0.0  ;;  %v3040_v57 = vmax.f32 %v2997_v37, 0.0 }
 0x2e6   : > { %v3861_v33 = vpack.c.bf16 %v3034_v30, %v3033_v7  ;;  %v3866_v23 = vpack.c.bf16 %v3036_v50, %v3035_v60  ;;  %v2898_v13 = vmul.f32 %v5975_v36, %v2847_v56  ;;  %v2899_v48 = vmul.f32 %v5975_v36, %v2848_v1 }
 0x2e7   : > { %v3871_v4 = vpack.c.bf16 %v3038_v27, %v3037_v26  ;;  %v3876_v5 = vpack.c.bf16 %v3040_v57, %v3039_v62  ;;  %v6323_v51 = vsub.f32 %v5556_v11, %v5901_v28  ;;  %v6324_v60 = vsub.f32 %v5563_v15, %v5901_v28 }
 0x2e8   : > { %3862 = vst [vmem:[%s6314_s4] sm:$0xff] %v3861_v33   ;;  %3983 = vst [vmem:[%s6314_s4 + $0x8] sm:$0xff] %v3866_v23   ;;  %v2948_v34 = vmul.f32 %v5986_v47, %v2898_v13  ;;  %v2949_v59 = vmul.f32 %v5986_v47, %v2899_v48  ;;  %v6325_v11 = vsub.f32 %v5574_v42, %v5901_v28 }
 0x2e9   : > { %v2900_v38 = vmul.f32 %v5975_v36, %v6323_v51  ;;  %v2901_v7 = vmul.f32 %v5975_v36, %v6324_v60  ;;  %v6326_v15 = vsub.f32 %v5581_v49, %v5901_v28  ;;  %3984 = vst [vmem:[%s6314_s4 + $0x10] sm:$0xff] %v3871_v4   ;;  %3985 = vst [vmem:[%s6314_s4 + $0x18] sm:$0xff] %v3876_v5  }
 0x2ea   : > { %v2902_v56 = vmul.f32 %v5975_v36, %v6325_v11  ;;  %v6327_v42 = vsub.f32 %v5570_v17, %v5901_v28  ;;  %v6328_v49 = vsub.f32 %v5577_v20, %v5901_v28  ;;  %v2998_v31 = vadd.f32 %v6003_v55, %v2948_v34 }
 0x2eb   : > { %v2903_v1 = vmul.f32 %v5975_v36, %v6326_v15  ;;  %v2950_v33 = vmul.f32 %v5986_v47, %v2900_v38  ;;  %v2951_v62 = vmul.f32 %v5986_v47, %v2901_v7  ;;  %v2999_v40 = vadd.f32 %v6003_v55, %v2949_v59 }
 0x2ec   : > { %v2904_v26 = vmul.f32 %v5975_v36, %v6327_v42  ;;  %v2905_v52 = vmul.f32 %v5975_v36, %v6328_v49  ;;  %v2952_v63 = vmul.f32 %v5986_v47, %v2902_v56  ;;  %v3041_v50 = vmax.f32 %v2998_v31, 0.0 }
 0x2ed   : > { %v2953_v9 = vmul.f32 %v5986_v47, %v2903_v1  ;;  %v3000_v44 = vadd.f32 %v6003_v55, %v2950_v33  ;;  %v3001_v37 = vadd.f32 %v6003_v55, %v2951_v62  ;;  %v3042_v20 = vmax.f32 %v2999_v40, 0.0 }
 0x2ee   : > { %v2954_v17 = vmul.f32 %v5986_v47, %v2904_v26  ;;  %v2955_v30 = vmul.f32 %v5986_v47, %v2905_v52  ;;  %v3002_v27 = vadd.f32 %v6003_v55, %v2952_v63  ;;  %v6329_v60 = vsub.f32 %v5588_v53, %v5901_v28 }
 0x2ef   : > { %v3003_v57 = vadd.f32 %v6003_v55, %v2953_v9  ;;  %v3043_v23 = vmax.f32 %v3000_v44, 0.0  ;;  %v3044_v13 = vmax.f32 %v3001_v37, 0.0  ;;  %v3881_v5 = vpack.c.bf16 %v3042_v20, %v3041_v50 }
 0x2f0   : > { %v3004_v48 = vadd.f32 %v6003_v55, %v2954_v17  ;;  %v3005_v4 = vadd.f32 %v6003_v55, %v2955_v30  ;;  %v3045_v51 = vmax.f32 %v3002_v27, 0.0  ;;  %v2906_v7 = vmul.f32 %v5975_v36, %v6329_v60 }
 0x2f1   : > { %v3046_v38 = vmax.f32 %v3003_v57, 0.0  ;;  %v3886_v34 = vpack.c.bf16 %v3044_v13, %v3043_v23  ;;  %v6330_v56 = vsub.f32 %v5595_v43, %v5901_v28  ;;  %3986 = vst [vmem:[%s6314_s4 + $0x20] sm:$0xff] %v3881_v5   ;;  %v6331_v53 = vsub.f32 %v5584_v21, %v5901_v28 }
 0x2f2   : > { %v3047_v59 = vmax.f32 %v3004_v48, 0.0  ;;  %v3048_v11 = vmax.f32 %v3005_v4, 0.0  ;;  %v2956_v33 = vmul.f32 %v5986_v47, %v2906_v7  ;;  %v6332_v42 = vsub.f32 %v5591_v25, %v5901_v28 }
 0x2f3   : > { %v2907_v15 = vmul.f32 %v5975_v36, %v6330_v56  ;;  %v3891_v1 = vpack.c.bf16 %v3046_v38, %v3045_v51  ;;  %v2908_v62 = vmul.f32 %v5975_v36, %v6331_v53  ;;  %3987 = vst [vmem:[%s6314_s4 + $0x28] sm:$0xff] %v3886_v34   ;;  %v6333_v52 = vsub.f32 %v5601_v54, %v5901_v28 }
 0x2f4   : > { %v2909_v26 = vmul.f32 %v5975_v36, %v6332_v42  ;;  %v3896_v43 = vpack.c.bf16 %v3048_v11, %v3047_v59  ;;  %v6334_v21 = vsub.f32 %v5607_v16, %v5901_v28  ;;  %v3006_v25 = vadd.f32 %v6003_v55, %v2956_v33 }
 0x2f5   : > { %v2957_v49 = vmul.f32 %v5986_v47, %v2907_v15  ;;  %v2910_v31 = vmul.f32 %v5975_v36, %v6333_v52  ;;  %3988 = vst [vmem:[%s6314_s4 + $0x30] sm:$0xff] %v3891_v1   ;;  %v2958_v63 = vmul.f32 %v5986_v47, %v2908_v62  ;;  %v6335_v54 = vsub.f32 %v5597_v46, %v5901_v28 }
 0x2f6   : > { %v2911_v40 = vmul.f32 %v5975_v36, %v6334_v21  ;;  %v2959_v9 = vmul.f32 %v5986_v47, %v2909_v26  ;;  %3989 = vst [vmem:[%s6314_s4 + $0x38] sm:$0xff] %v3896_v43   ;;  %v6336_v30 = vsub.f32 %v5603_v12, %v5901_v28  ;;  %v3049_v20 = vmax.f32 %v3006_v25, 0.0 }
 0x2f7   : > { %v2912_v44 = vmul.f32 %v5975_v36, %v6335_v54  ;;  %v3007_v16 = vadd.f32 %v6003_v55, %v2957_v49  ;;  %v2960_v37 = vmul.f32 %v5986_v47, %v2910_v31  ;;  %v3008_v46 = vadd.f32 %v6003_v55, %v2958_v63 }
 0x2f8   : > { %v2961_v17 = vmul.f32 %v5986_v47, %v2911_v40  ;;  %v2913_v50 = vmul.f32 %v5975_v36, %v6336_v30  ;;  %v3009_v27 = vadd.f32 %v6003_v55, %v2959_v9  ;;  %v6337_v38 = vsub.f32 %v5612_v61, %v5901_v28 }
 0x2f9   : > { %v2962_v57 = vmul.f32 %v5986_v47, %v2912_v44  ;;  %v3050_v23 = vmax.f32 %v3007_v16, 0.0  ;;  %v3010_v13 = vadd.f32 %v6003_v55, %v2960_v37  ;;  %v3051_v5 = vmax.f32 %v3008_v46, 0.0 }
 0x2fa   : > { %v3011_v48 = vadd.f32 %v6003_v55, %v2961_v17  ;;  %v2963_v4 = vmul.f32 %v5986_v47, %v2913_v50  ;;  %v3052_v51 = vmax.f32 %v3009_v27, 0.0  ;;  %v2914_v60 = vmul.f32 %v5975_v36, %v6337_v38 }
 0x2fb   : > { %v3012_v12 = vadd.f32 %v6003_v55, %v2962_v57  ;;  %v3901_v7 = vpack.c.bf16 %v3050_v23, %v3049_v20  ;;  %v3053_v34 = vmax.f32 %v3010_v13, 0.0  ;;  %v6338_v1 = vsub.f32 %v5617_v10, %v5901_v28 }
 0x2fc   : > { %v3054_v59 = vmax.f32 %v3011_v48, 0.0  ;;  %v3013_v11 = vadd.f32 %v6003_v55, %v2963_v4  ;;  %v3906_v56 = vpack.c.bf16 %v3052_v51, %v3051_v5  ;;  %v2964_v53 = vmul.f32 %v5986_v47, %v2914_v60 }
 0x2fd   : > { %v3055_v15 = vmax.f32 %v3012_v12, 0.0  ;;  %v2915_v33 = vmul.f32 %v5975_v36, %v6338_v1  ;;  %3990 = vst [vmem:[%s6314_s4 + $0x40] sm:$0xff] %v3901_v7   ;;  %v6339_v42 = vsub.f32 %v5609_v19, %v5901_v28  ;;  %v6340_v43 = vsub.f32 %v5614_v58, %v5901_v28 }
 0x2fe   : > { %v3911_v61 = vpack.c.bf16 %v3054_v59, %v3053_v34  ;;  %v3056_v62 = vmax.f32 %v3013_v11, 0.0  ;;  %3991 = vst [vmem:[%s6314_s4 + $0x48] sm:$0xff] %v3906_v56   ;;  %v3014_v52 = vadd.f32 %v6003_v55, %v2964_v53  ;;  %v6341_v31 = vsub.f32 %v5622_v41, %v5901_v28 }
 0x2ff   : > { %v2916_v26 = vmul.f32 %v5975_v36, %v6339_v42  ;;  %v2917_v10 = vmul.f32 %v5975_v36, %v6340_v43  ;;  %v2965_v49 = vmul.f32 %v5986_v47, %v2915_v33  ;;  %v6342_v21 = vsub.f32 %v5627_v45, %v5901_v28 }
 0x300   : > { %v2918_v19 = vmul.f32 %v5975_v36, %v6341_v31  ;;  %3992 = vst [vmem:[%s6314_s4 + $0x50] sm:$0xff] %v3911_v61   ;;  %v3916_v40 = vpack.c.bf16 %v3056_v62, %v3055_v15  ;;  %v6343_v9 = vsub.f32 %v5619_v24, %v5901_v28  ;;  %v3057_v44 = vmax.f32 %v3014_v52, 0.0 }
 0x301   : > { %v2919_v58 = vmul.f32 %v5975_v36, %v6342_v21  ;;  %v2966_v25 = vmul.f32 %v5986_v47, %v2916_v26  ;;  %v2967_v63 = vmul.f32 %v5986_v47, %v2917_v10  ;;  %v3015_v54 = vadd.f32 %v6003_v55, %v2965_v49 }
 0x302   : > { %v2920_v41 = vmul.f32 %v5975_v36, %v6343_v9  ;;  %v2968_v45 = vmul.f32 %v5986_v47, %v2918_v19  ;;  %3993 = vst [vmem:[%s6314_s4 + $0x58] sm:$0xff] %v3916_v40   ;;  %v6344_v24 = vsub.f32 %v5624_v2, %v5901_v28  ;;  %v6345_v57 = vsub.f32 %v5632_v0, %v5901_v28 }
 0x303   : > { %v2969_v16 = vmul.f32 %v5986_v47, %v2919_v58  ;;  %v3016_v37 = vadd.f32 %v6003_v55, %v2966_v25  ;;  %v3017_v17 = vadd.f32 %v6003_v55, %v2967_v63  ;;  %v3058_v20 = vmax.f32 %v3015_v54, 0.0 }
 0x304   : > { %v2921_v30 = vmul.f32 %v5975_v36, %v6344_v24  ;;  %v2970_v50 = vmul.f32 %v5986_v47, %v2920_v41  ;;  %v3018_v46 = vadd.f32 %v6003_v55, %v2968_v45  ;;  %v2922_v23 = vmul.f32 %v5975_v36, %v6345_v57 }
 0x305   : > { %v3019_v27 = vadd.f32 %v6003_v55, %v2969_v16  ;;  %v3059_v13 = vmax.f32 %v3016_v37, 0.0  ;;  %v3060_v48 = vmax.f32 %v3017_v17, 0.0  ;;  %v3921_v5 = vpack.c.bf16 %v3058_v20, %v3057_v44 }
 0x306   : > { %v2971_v4 = vmul.f32 %v5986_v47, %v2921_v30  ;;  %v3020_v2 = vadd.f32 %v6003_v55, %v2970_v50  ;;  %v3061_v51 = vmax.f32 %v3018_v46, 0.0  ;;  %v6346_v38 = vsub.f32 %v5637_v8, %v5901_v28 }
 0x307   : > { %v3062_v12 = vmax.f32 %v3019_v27, 0.0  ;;  %v3926_v7 = vpack.c.bf16 %v3060_v48, %v3059_v13  ;;  %v2972_v59 = vmul.f32 %v5986_v47, %v2922_v23  ;;  %3994 = vst [vmem:[%s6314_s4 + $0x60] sm:$0xff] %v3921_v5   ;;  %v6347_v15 = vsub.f32 %v5629_v6, %v5901_v28 }
 0x308   : > { %v2923_v60 = vmul.f32 %v5975_v36, %v6346_v38  ;;  %v3021_v34 = vadd.f32 %v6003_v55, %v2971_v4  ;;  %v3063_v0 = vmax.f32 %v3020_v2, 0.0  ;;  %v6348_v1 = vsub.f32 %v5634_v22, %v5901_v28 }
 0x309   : > { %v3931_v11 = vpack.c.bf16 %v3062_v12, %v3061_v51  ;;  %v2924_v8 = vmul.f32 %v5975_v36, %v6347_v15  ;;  %3995 = vst [vmem:[%s6314_s4 + $0x68] sm:$0xff] %v3926_v7   ;;  %v3022_v61 = vadd.f32 %v6003_v55, %v2972_v59  ;;  %v6349_v62 = vsub.f32 %v5640_v14, %v5901_v28 }
 0x30a   : > { %v2973_v56 = vmul.f32 %v5986_v47, %v2923_v60  ;;  %v2925_v33 = vmul.f32 %v5975_v36, %v6348_v1  ;;  %v3064_v53 = vmax.f32 %v3021_v34, 0.0  ;;  %v6350_v6 = vsub.f32 %v5645_v18, %v5901_v28 }
 0x30b   : > { %v2926_v42 = vmul.f32 %v5975_v36, %v6349_v62  ;;  %3996 = vst [vmem:[%s6314_s4 + $0x70] sm:$0xff] %v3931_v11   ;;  %v2974_v43 = vmul.f32 %v5986_v47, %v2924_v8  ;;  %v6351_v14 = vsub.f32 %v5642_v3, %v5901_v28  ;;  %v3065_v31 = vmax.f32 %v3022_v61, 0.0 }
 0x30c   : > { %v2927_v26 = vmul.f32 %v5975_v36, %v6350_v6  ;;  %v3023_v22 = vadd.f32 %v6003_v55, %v2973_v56  ;;  %v2975_v10 = vmul.f32 %v5986_v47, %v2925_v33  ;;  %v3936_v52 = vpack.c.bf16 %v3064_v53, %v3063_v0 }
 0x30d   : > { %v2928_v49 = vmul.f32 %v5975_v36, %v6351_v14  ;;  %v2976_v18 = vmul.f32 %v5986_v47, %v2926_v42  ;;  %v3024_v58 = vadd.f32 %v6003_v55, %v2974_v43  ;;  %v6352_v25 = vsub.f32 %v5647_v35, %v5901_v28 }
 0x30e   : > { %v2977_v19 = vmul.f32 %v5986_v47, %v2927_v26  ;;  %v3066_v21 = vmax.f32 %v3023_v22, 0.0  ;;  %v3025_v40 = vadd.f32 %v6003_v55, %v2975_v10  ;;  %3997 = vst [vmem:[%s6314_s4 + $0x78] sm:$0xff] %v3936_v52   ;;  %v6353_v54 = vsub.f32 %v6321_v32, %v5901_v28 }
 0x30f   : > { %v2929_v63 = vmul.f32 %v5975_v36, %v6352_v25  ;;  %v3026_v3 = vadd.f32 %v6003_v55, %v2976_v18  ;;  %v2978_v41 = vmul.f32 %v5986_v47, %v2928_v49  ;;  %v3067_v16 = vmax.f32 %v3024_v58, 0.0 }
 0x310   : > { %v3027_v9 = vadd.f32 %v6003_v55, %v2977_v19  ;;  %v2930_v44 = vmul.f32 %v5975_v36, %v6353_v54  ;;  %v3941_v45 = vpack.c.bf16 %v3066_v21, %v3065_v31  ;;  %v3068_v35 = vmax.f32 %v3025_v40, 0.0 }
 0x311   : > { %v2979_v37 = vmul.f32 %v5986_v47, %v2929_v63  ;;  %v3069_v17 = vmax.f32 %v3026_v3, 0.0  ;;  %v3028_v30 = vadd.f32 %v6003_v55, %v2978_v41  ;;  %v6354_v50 = vsub.f32 %v6322_v39, %v5901_v28 }
 0x312   : > { %v3070_v24 = vmax.f32 %v3027_v9, 0.0  ;;  %3998 = vst [vmem:[%s6314_s4 + $0x80] sm:$0xff] %v3941_v45   ;;  %v3946_v32 = vpack.c.bf16 %v3068_v35, %v3067_v16  ;;  %v2980_v27 = vmul.f32 %v5986_v47, %v2930_v44  ;;  %v6355_v57 = vsub.f32 %v5656_v29, %v5901_v28 }
 0x313   : > { %v2931_v20 = vmul.f32 %v5975_v36, %v6354_v50  ;;  %v3029_v46 = vadd.f32 %v6003_v55, %v2979_v37  ;;  %v3071_v48 = vmax.f32 %v3028_v30, 0.0 }
 0x314   : > { %v2932_v23 = vmul.f32 %v5975_v36, %v6355_v57  ;;  %v3951_v13 = vpack.c.bf16 %v3070_v24, %v3069_v17  ;;  %3999 = vst [vmem:[%s6314_s4 + $0x88] sm:$0xff] %v3946_v32   ;;  %v3030_v2 = vadd.f32 %v6003_v55, %v2980_v27 }
 0x315   : > { %v2981_v39 = vmul.f32 %v5986_v47, %v2931_v20  ;;  %v3072_v4 = vmax.f32 %v3029_v46, 0.0 }
 0x316   : > { %v2982_v5 = vmul.f32 %v5986_v47, %v2932_v23  ;;  %4000 = vst [vmem:[%s6314_s4 + $0x90] sm:$0xff] %v3951_v13   ;;  %v3073_v36 = vmax.f32 %v3030_v2, 0.0 }
 0x317   : > { %v3031_v29 = vadd.f32 %v6003_v55, %v2981_v39  ;;  %v3956_v28 = vpack.c.bf16 %v3072_v4, %v3071_v48 }
 0x318   : > { %v3032_v51 = vadd.f32 %v6003_v55, %v2982_v5 }
 0x319   : > { %v3074_v12 = vmax.f32 %v3031_v29, 0.0  ;;  %4001 = vst [vmem:[%s6314_s4 + $0x98] sm:$0xff] %v3956_v28  }
 0x31a   : > { %v3075_v38 = vmax.f32 %v3032_v51, 0.0 }
 0x31b   : > { %v3961_v60 = vpack.c.bf16 %v3074_v12, %v3073_v36 }
 0x31c   : > { %v3752_v7 = vpack.c.bf16 %v3075_v38, %v3075_v38 }
 0x31d   : > { %4002 = vst [vmem:[%s6314_s4 + $0xa0] sm:$0xff] %v3961_v60  }
 0x31e   : > { %3291 = vst [vmem:[%s6314_s4 + $0xa8] sm:$0xf] %v3752_v7 }
 0x31f PF: > { %s14_s17 = sadd.s32 1, %s4574_s17   ;;  %s6356_s15 = smov %s4570_s16 }
 0x320   : > { %p11_p7 = scmp.ge.s32.totalorder %s14_s17, 4   ;;  %s6357_s16 = smov %s6359_s18 }
 0x322   :  { %13 = sbr.rel (!%p11_p7) target bundleno = 2 (0x2), region = 78 }

// kernel: squeeze.0
= control target key start
LH: loop header
LB: loop body
LE: loop exit
PB: predicated region body
PF: predicated region fallthrough
CT: control target
= control target key end

     0   :  { %s236_s6 = smov 3  ;;  %s239_s7 = smov 3  ;;  %vm241_vm0 = vcmask 850944   ;;  %vm280_vm1 = vcmask 916480   ;;  %vm261_vm2 = vcmask 883712   ;;  %vm298_vm3 = vcmask 949248   ;;  %s1052_s0 = inlined_call_operand.vmem [shape: f32[1568], index: 0, kind: input, shape index: {}]   ;;  %s1053_s1 = inlined_call_operand.hbm [shape: f32[2,1,28,28], index: 1, kind: output, shape index: {}]  }
   0x1   :  { %v769_v0 = vld [vmem:[%s1052_s0 + $0x4] ss:$7 sm:%s236_s6]   ;;  %v770_v1 = vld [vmem:[%s1052_s0 + $0x5] ss:$7 sm:%s239_s7]   ;;  %s275_s12 = smov 3  ;;  %s278_s15 = smov 3 }
   0x2   :  { %v242_v2 = vsel %vm241_vm0, %v770_v1, %v769_v0  ;;  %v276_v3 = vld [vmem:[%s1052_s0] ss:$7 sm:%s275_s12]   ;;  %v774_v4 = vld [vmem:[%s1052_s0 + $0x5] sm:$0x1]   ;;  %s836_s18 = smov 24   ;;  %s256_s21 = smov 3 }
   0x3   :  { %243 = vrot.lane.b32.xlu0 %v242_v2, %s836_s18  ;;  %v773_v5 = vld [vmem:[%s1052_s0 + $0x1] ss:$7 sm:%s278_s15]   ;;  %s259_s22 = smov 3  ;;  %v775_v6 = vld [vmem:[%s1052_s0 + $0x6] sm:$0x1]   ;;  %s837_s29 = smov 16  }
   0x4   :  { %v281_v7 = vsel %vm280_vm1, %v773_v5, %v276_v3  ;;  %v771_v8 = vld [vmem:[%s1052_s0 + $0x2] ss:$7 sm:%s256_s21]   ;;  %v772_v9 = vld [vmem:[%s1052_s0 + $0x3] ss:$7 sm:%s259_s22]   ;;  %s309_s30 = smov 3  ;;  %s312_s2 = smov 3  ;;  %v299_v11 = vsel %vm298_vm3, %v775_v6, %v774_v4 }
   0x5   :  { %282 = vrot.lane.b32.xlu1 %v281_v7, %s837_s29  ;;  %v262_v10 = vsel %vm261_vm2, %v772_v9, %v771_v8  ;;  %vm314_vm4 = vcmask 982016   ;;  %v776_v12 = vld [vmem:[%s1052_s0 + $0x3] ss:$7 sm:%s309_s30]   ;;  %s329_s7 = smov 3  ;;  %s838_s8 = smov 20   ;;  %vm334_vm5 = vcmask 1014784  }
   0x6   :  { %v777_v13 = vld [vmem:[%s1052_s0 + $0x4] ss:$7 sm:%s312_s2]   ;;  %s332_s11 = smov 3  ;;  %s839_s14 = smov 12   ;;  %v750_v21 = vld [vmem:[%s1052_s0 + $0x6] sm:$0x1]  }
   0x7   :  { %263 = vrot.lane.b32.xlu0 %v262_v10, %s838_s8  ;;  %v778_v14 = vld [vmem:[%s1052_s0 + $0x1] ss:$7 sm:%s329_s7]   ;;  %v315_v15 = vsel %vm314_vm4, %v777_v13, %v776_v12  ;;  %s10_s15 = smov 3  ;;  %s840_s16 = smov 8  }
   0x8   :  { %v779_v16 = vld [vmem:[%s1052_s0 + $0x2] ss:$7 sm:%s332_s11]   ;;  %s20_s17 = smov 3  ;;  %s841_s20 = smov 4  }
   0x9   :  { %300 = vrot.lane.b32.xlu1 %v299_v11, %s839_s14  ;;  %v335_v17 = vsel %vm334_vm5, %v779_v16, %v778_v14  ;;  %v747_v18 = vld [vmem:[%s1052_s0 + $0x5] ss:$7 sm:%s10_s15]   ;;  %s30_s21 = smov 3  ;;  %s842_s24 = smov 124  }
   0xa   :  { %v748_v19 = vld [vmem:[%s1052_s0 + $0x3] ss:$7 sm:%s20_s17]   ;;  %v749_v20 = vld [vmem:[%s1052_s0 + $0x1] ss:$7 sm:%s30_s21]   ;;  %s843_s27 = smov 120   ;;  %s47_s28 = smov 3 }
   0xb   :  { %316 = vrot.lane.b32.xlu0 %v315_v15, %s840_s16  ;;  %s844_s2 = smov 116   ;;  %s57_s3 = smov 3 }
   0xd   :  { %336 = vrot.lane.b32.xlu1 %v335_v17, %s841_s20 }
   0xf   :  { %12 = vrot.lane.b32.xlu0 %v747_v18, %s842_s24 }
  0x11   :  { %22 = vrot.lane.b32.xlu1 %v748_v19, %s843_s27 }
  0x13   :  { %32 = vrot.lane.b32.xlu0 %v749_v20, %s844_s2 }
  0x14   :  { %2 = vsyncpa [#allocation1], 0  ;;  %v751_v22 = vld [vmem:[%s1052_s0 + $0x4] ss:$7 sm:%s47_s28]   ;;  %s845_s6 = smov 112   ;;  %s66_s7 = smov 3 }
  0x15   :  { %41 = vrot.lane.b32.xlu1 %v750_v21, %s845_s6  ;;  %v752_v23 = vld [vmem:[%s1052_s0 + $0x2] ss:$7 sm:%s57_s3]   ;;  %s846_s10 = smov 108   ;;  %s847_s13 = smov 104   ;;  %v756_v28 = vld [vmem:[%s1052_s0 + $0x6] sm:$0x1]  }
  0x16   :  { %v67_v24 = vld [vmem:[%s1052_s0] ss:$7 sm:%s66_s7]   ;;  %s83_s14 = smov 3  ;;  %v753_v25 = vld [vmem:[%s1052_s0 + $0x5] sm:$0x1]   ;;  %s848_s17 = smov 100  }
  0x17   :  { %49 = vrot.lane.b32.xlu0 %v751_v22, %s846_s10  ;;  %s93_s18 = smov 3  ;;  %v754_v26 = vld [vmem:[%s1052_s0 + $0x3] ss:$7 sm:%s83_s14]   ;;  %s849_s21 = smov 96   ;;  %v759_v32 = vld [vmem:[%s1052_s0 + $0x5] sm:$0x1]  }
  0x18   :  { %v755_v27 = vld [vmem:[%s1052_s0 + $0x1] ss:$7 sm:%s93_s18]   ;;  %s850_s24 = smov 92   ;;  %s110_s25 = smov 3  ;;  %v762_v35 = vld [vmem:[%s1052_s0 + $0x6] sm:$0x1]  }
  0x19   :  { %59 = vrot.lane.b32.xlu1 %v752_v23, %s847_s13  ;;  %s851_s28 = smov 88   ;;  %s120_s29 = smov 3  ;;  %v757_v29 = vld [vmem:[%s1052_s0 + $0x4] ss:$7 sm:%s110_s25]   ;;  %vm5_vm6 = vcmask 228352   ;;  %vm245_vm7 = vcmask 195584  }
  0x1a   :  { %s852_s3 = smov 84   ;;  %s129_s4 = smov 3  ;;  %v758_v30 = vld [vmem:[%s1052_s0 + $0x2] ss:$7 sm:%s120_s29]   ;;  %v768_v45 = vld [vmem:[%s1052_s0 + $0x6] sm:$0x1]  }
  0x1b   :  { %68 = vrot.lane.b32.xlu0 %v67_v24, %s848_s17  ;;  %s853_s7 = smov 80   ;;  %v130_v31 = vld [vmem:[%s1052_s0] ss:$7 sm:%s129_s4]   ;;  %s854_s10 = smov 76   ;;  %v765_v40 = vld [vmem:[%s1052_s0 + $0x5] sm:$0x1]  }
  0x1c   :  { %s146_s11 = smov 3  ;;  %s855_s14 = smov 72   ;;  %vm250_vm8 = vcmask 228544   ;;  %vm284_vm9 = vcmask 130048   ;;  %vm289_vm10 = vcmask 228480   ;;  %vm265_vm11 = vcmask 162816  }
  0x1d   :  { %77 = vrot.lane.b32.xlu1 %v753_v25, %s849_s21  ;;  %s156_s15 = smov 3  ;;  %v760_v33 = vld [vmem:[%s1052_s0 + $0x3] ss:$7 sm:%s146_s11]   ;;  %s856_s18 = smov 68   ;;  %vm270_vm12 = vcmask 228512   ;;  %vm302_vm13 = vcmask 97280  }
  0x1e   :  { %v761_v34 = vld [vmem:[%s1052_s0 + $0x1] ss:$7 sm:%s156_s15]   ;;  %s857_s21 = smov 64   ;;  %s173_s22 = smov 3  ;;  %vm305_vm14 = vcmask 228448   ;;  %vm318_vm15 = vcmask 64512  }
  0x1f   :  { %85 = vrot.lane.b32.xlu0 %v754_v26, %s850_s24  ;;  %s858_s25 = smov 60   ;;  %s183_s26 = smov 3  ;;  %v763_v36 = vld [vmem:[%s1052_s0 + $0x4] ss:$7 sm:%s173_s22]   ;;  %vm323_vm0 = vcmask 228416   ;;  %vm338_vm1 = vcmask 31744  }
  0x20   :  { %s3_s29 = smov 3  ;;  %s859_s30 = smov 56   ;;  %v764_v38 = vld [vmem:[%s1052_s0 + $0x2] ss:$7 sm:%s183_s26]   ;;  %vm343_vm2 = vcmask 228384  }
  0x21   :  { %95 = vrot.lane.b32.xlu1 %v755_v27, %s851_s28  ;;  %s192_s2 = smov 3  ;;  %v4_v37 = vld [vmem:[%s1052_s0] ss:$7 sm:%s3_s29]   ;;  %s209_s11 = smov 3 }
  0x22   :  { %6 = vst.msk [vmem:[#allocation2] sm:$0x1] %vm5_vm6, %v4_v37   ;;  %8 = vst.msk [vmem:[#allocation2 + $0xff] sm:$0x2] %vm5_vm6, %v4_v37   ;;  %v193_v39 = vld [vmem:[%s1052_s0] ss:$7 sm:%s192_s2]  }
  0x23   :  { %104 = vrot.lane.b32.xlu0 %v756_v28, %s852_s3  ;;  %s219_s15 = smov 3  ;;  %v766_v41 = vld [vmem:[%s1052_s0 + $0x3] ss:$7 sm:%s209_s11]   ;;  %s866_s24 = smov 28  }
  0x24   :  { %v767_v44 = vld [vmem:[%s1052_s0 + $0x1] ss:$7 sm:%s219_s15]   ;;  %s865_s0 = smov 32  }
  0x25   :  { %112 = vrot.lane.b32.xlu1 %v757_v29, %s853_s7  ;;  %s860_s7 = smov 52  }
  0x27   :  { %122 = vrot.lane.b32.xlu0 %v758_v30, %s854_s10  ;;  %s861_s10 = smov 48  }
  0x29   :  { %131 = vrot.lane.b32.xlu1 %v130_v31, %s855_s14  ;;  %s862_s14 = smov 44   ;;  %v351_v42 = vld [vmem:[#allocation2] sm:$0x1] }
  0x2a   :  { %v540_v43 = vld [vmem:[#allocation2 + $0x100] sm:$0x1]  ;;  %353 = vst [vmem:[#allocation0] sm:$0x1] %v351_v42 }
  0x2b   :  { %140 = vrot.lane.b32.xlu0 %v759_v32, %s856_s18  ;;  %s863_s18 = smov 40   ;;  %544 = vst [vmem:[#allocation0 + $0x20] sm:$0x1] %v540_v43 }
  0x2d   :  { %148 = vrot.lane.b32.xlu1 %v760_v33, %s857_s21  ;;  %s864_s21 = smov 36  }
  0x2f   :  { %158 = vrot.lane.b32.xlu0 %v761_v34, %s858_s25  ;;  %s867_s25 = smov [#allocation0]  }
  0x30   :  { %s687_s26 = sshll.u32 %s867_s25, 4  ;;  %s688_s26 = int_to_ptr.vmem [resolvable:$true] %s687_s26 }
  0x31   :  { %167 = vrot.lane.b32.xlu1 %v762_v35, %s859_s30  ;;  %s812_s27 = scalar_lea.vmem %s688_s26, 896  ;;  %p817_p1 = scmp.lt.s32.totalorder %s688_s26, %s688_s26 }
  0x32   :  { %p813_p0 = scmp.ne.s32.totalorder %s688_s26, %s812_s27  ;;  %p818_p2 = scmp.lt.s32.totalorder %s812_s27, %s812_s27 }
  0x33   :  { %175 = vrot.lane.b32.xlu0 %v763_v36, %s860_s7 }
  0x34   :  { %p819_p3 = por %p818_p2, %p817_p1 }
  0x35   :  { %185 = vrot.lane.b32.xlu1 %v764_v38, %s861_s10 }
  0x36   :  { %p820_p4 = pnand %p819_p3, %p813_p0 }
  0x37   :  { %194 = vrot.lane.b32.xlu0 %v193_v39, %s862_s14 }
  0x39   :  { %203 = vrot.lane.b32.xlu1 %v765_v40, %s863_s18 }
  0x3b   :  { %211 = vrot.lane.b32.xlu0 %v766_v41, %s864_s21 }
  0x3d   :  { %221 = vrot.lane.b32.xlu1 %v767_v44, %s865_s0 }
  0x3f   :  { %230 = vrot.lane.b32.xlu0 %v768_v45, %s866_s24 }
  0x75   :  { %v244_v46 = vpop.permute.xlu0 %243  }
  0x76   :  { %247 = vst.msk [vmem:[#allocation2 + $0xb0] sm:$0x1] %vm245_vm7, %v244_v46   ;;  %249 = vst.msk [vmem:[#allocation2 + $0x1af] sm:$0x2] %vm245_vm7, %v244_v46  }
  0x77   :  { %252 = vst.msk [vmem:[#allocation2 + $0xb0] sm:$0x1] %vm250_vm8, %v244_v46   ;;  %254 = vst.msk [vmem:[#allocation2 + $0x1af] sm:$0x2] %vm250_vm8, %v244_v46   ;;  %v283_v47 = vpop.permute.xlu1 %282  }
  0x78   :  { %286 = vst.msk [vmem:[#allocation2 + $0x20] sm:$0x1] %vm284_vm9, %v283_v47   ;;  %288 = vst.msk [vmem:[#allocation2 + $0x11f] sm:$0x2] %vm284_vm9, %v283_v47  }
  0x79   :  { %291 = vst.msk [vmem:[#allocation2 + $0x20] sm:$0x1] %vm289_vm10, %v283_v47   ;;  %293 = vst.msk [vmem:[#allocation2 + $0x11f] sm:$0x2] %vm289_vm10, %v283_v47   ;;  %v264_v48 = vpop.permute.xlu0 %263  }
  0x7a   :  { %267 = vst.msk [vmem:[#allocation2 + $0x68] sm:$0x1] %vm265_vm11, %v264_v48   ;;  %269 = vst.msk [vmem:[#allocation2 + $0x167] sm:$0x2] %vm265_vm11, %v264_v48  }
  0x7b   :  { %272 = vst.msk [vmem:[#allocation2 + $0x68] sm:$0x1] %vm270_vm12, %v264_v48   ;;  %274 = vst.msk [vmem:[#allocation2 + $0x167] sm:$0x2] %vm270_vm12, %v264_v48   ;;  %v301_v49 = vpop.permute.xlu1 %300  }
  0x7c   :  { %304 = vst.msk [vmem:[#allocation2 + $0xd8] sm:$0x1] %vm302_vm13, %v301_v49  }
  0x7d   :  { %307 = vst.msk [vmem:[#allocation2 + $0xd8] sm:$0x1] %vm305_vm14, %v301_v49   ;;  %v317_v50 = vpop.permute.xlu0 %316  }
  0x7e   :  { %v480_v51 = vld [vmem:[#allocation2 + $0xb0] sm:$0x1]  ;;  %320 = vst.msk [vmem:[#allocation2 + $0x90] sm:$0x1] %vm318_vm15, %v317_v50   ;;  %322 = vst.msk [vmem:[#allocation2 + $0x18f] sm:$0x2] %vm318_vm15, %v317_v50  }
  0x7f   :  { %v672_v52 = vld [vmem:[#allocation2 + $0x1b0] sm:$0x1]  ;;  %484 = vst [vmem:[#allocation0 + $0x16] sm:$0x1] %v480_v51  ;;  %325 = vst.msk [vmem:[#allocation2 + $0x90] sm:$0x1] %vm323_vm0, %v317_v50   ;;  %v337_v53 = vpop.permute.xlu1 %336  }
  0x80   :  { %676 = vst [vmem:[#allocation0 + $0x36] sm:$0x1] %v672_v52  ;;  %327 = vst.msk [vmem:[#allocation2 + $0x18f] sm:$0x2] %vm323_vm0, %v317_v50   ;;  %v372_v54 = vld [vmem:[#allocation2 + $0x20] sm:$0x1] }
  0x81   :  { %v564_v55 = vld [vmem:[#allocation2 + $0x120] sm:$0x1]  ;;  %340 = vst.msk [vmem:[#allocation2 + $0x48] sm:$0x1] %vm338_vm1, %v337_v53   ;;  %342 = vst.msk [vmem:[#allocation2 + $0x147] sm:$0x2] %vm338_vm1, %v337_v53   ;;  %v13_v56 = vpop.permute.xlu0 %12  }
  0x82   :  { %376 = vst [vmem:[#allocation0 + $0x4] sm:$0x1] %v372_v54  ;;  %568 = vst [vmem:[#allocation0 + $0x24] sm:$0x1] %v564_v55  ;;  %v426_v57 = vld [vmem:[#allocation2 + $0x68] sm:$0x1] }
  0x83   :  { %345 = vst.msk [vmem:[#allocation2 + $0x48] sm:$0x1] %vm343_vm2, %v337_v53   ;;  %347 = vst.msk [vmem:[#allocation2 + $0x147] sm:$0x2] %vm343_vm2, %v337_v53   ;;  %v618_v58 = vld [vmem:[#allocation2 + $0x168] sm:$0x1]  ;;  %v23_v59 = vpop.permute.xlu1 %22  }
  0x84   :  { %16 = vst.msk [vmem:[#allocation2 + $0xb8] sm:$0x1] %vm5_vm6, %v13_v56   ;;  %18 = vst.msk [vmem:[#allocation2 + $0x1b7] sm:$0x2] %vm5_vm6, %v13_v56   ;;  %v510_v60 = vld [vmem:[#allocation2 + $0xd8] sm:$0x1] }
  0x85   :  { %430 = vst [vmem:[#allocation0 + $0xd] sm:$0x1] %v426_v57  ;;  %622 = vst [vmem:[#allocation0 + $0x2d] sm:$0x1] %v618_v58  ;;  %v33_v61 = vpop.permute.xlu0 %32  }
  0x86   :  { %26 = vst.msk [vmem:[#allocation2 + $0x70] sm:$0x1] %vm5_vm6, %v23_v59   ;;  %28 = vst.msk [vmem:[#allocation2 + $0x16f] sm:$0x2] %vm5_vm6, %v23_v59   ;;  %v456_v62 = vld [vmem:[#allocation2 + $0x90] sm:$0x1] }
  0x87   :  { %514 = vst [vmem:[#allocation0 + $0x1b] sm:$0x1] %v510_v60  ;;  %v648_v63 = vld [vmem:[#allocation2 + $0x190] sm:$0x1]  ;;  %36 = vst.msk [vmem:[#allocation2 + $0x28] sm:$0x1] %vm5_vm6, %v33_v61   ;;  %v42_v0 = vpop.permute.xlu1 %41  }
  0x88   :  { %38 = vst.msk [vmem:[#allocation2 + $0x127] sm:$0x2] %vm5_vm6, %v33_v61   ;;  %460 = vst [vmem:[#allocation0 + $0x12] sm:$0x1] %v456_v62 }
  0x89   :  { %652 = vst [vmem:[#allocation0 + $0x32] sm:$0x1] %v648_v63  ;;  %45 = vst.msk [vmem:[#allocation2 + $0xe0] sm:$0x1] %vm5_vm6, %v42_v0   ;;  %v50_v5 = vpop.permute.xlu0 %49  }
  0x8a   :  { %v402_v1 = vld [vmem:[#allocation2 + $0x48] sm:$0x1]  ;;  %53 = vst.msk [vmem:[#allocation2 + $0x98] sm:$0x1] %vm5_vm6, %v50_v5   ;;  %55 = vst.msk [vmem:[#allocation2 + $0x197] sm:$0x2] %vm5_vm6, %v50_v5  }
  0x8b   :  { %v594_v2 = vld [vmem:[#allocation2 + $0x148] sm:$0x1]  ;;  %406 = vst [vmem:[#allocation0 + $0x9] sm:$0x1] %v402_v1  ;;  %v486_v3 = vld [vmem:[#allocation2 + $0xb8] sm:$0x1]  ;;  %v60_v8 = vpop.permute.xlu1 %59  }
  0x8c   :  { %598 = vst [vmem:[#allocation0 + $0x29] sm:$0x1] %v594_v2  ;;  %v678_v4 = vld [vmem:[#allocation2 + $0x1b8] sm:$0x1]  ;;  %490 = vst [vmem:[#allocation0 + $0x17] sm:$0x1] %v486_v3 }
  0x8d   :  { %682 = vst [vmem:[#allocation0 + $0x37] sm:$0x1] %v678_v4  ;;  %v432_v6 = vld [vmem:[#allocation2 + $0x70] sm:$0x1]  ;;  %63 = vst.msk [vmem:[#allocation2 + $0x50] sm:$0x1] %vm5_vm6, %v60_v8   ;;  %v69_v11 = vpop.permute.xlu0 %68  }
  0x8e   :  { %v624_v7 = vld [vmem:[#allocation2 + $0x170] sm:$0x1]  ;;  %436 = vst [vmem:[#allocation0 + $0xe] sm:$0x1] %v432_v6  ;;  %65 = vst.msk [vmem:[#allocation2 + $0x14f] sm:$0x2] %vm5_vm6, %v60_v8  }
  0x8f   :  { %628 = vst [vmem:[#allocation0 + $0x2e] sm:$0x1] %v624_v7  ;;  %v378_v9 = vld [vmem:[#allocation2 + $0x28] sm:$0x1]  ;;  %72 = vst.msk [vmem:[#allocation2 + $0x8] sm:$0x1] %vm5_vm6, %v69_v11   ;;  %v78_v13 = vpop.permute.xlu1 %77  }
  0x90   :  { %v570_v10 = vld [vmem:[#allocation2 + $0x128] sm:$0x1]  ;;  %382 = vst [vmem:[#allocation0 + $0x5] sm:$0x1] %v378_v9  ;;  %74 = vst.msk [vmem:[#allocation2 + $0x107] sm:$0x2] %vm5_vm6, %v69_v11  }
  0x91   :  { %574 = vst [vmem:[#allocation0 + $0x25] sm:$0x1] %v570_v10  ;;  %v516_v12 = vld [vmem:[#allocation2 + $0xe0] sm:$0x1]  ;;  %81 = vst.msk [vmem:[#allocation2 + $0xc0] sm:$0x1] %vm5_vm6, %v78_v13   ;;  %v86_v16 = vpop.permute.xlu0 %85  }
  0x92   :  { %520 = vst [vmem:[#allocation0 + $0x1c] sm:$0x1] %v516_v12  ;;  %v462_v14 = vld [vmem:[#allocation2 + $0x98] sm:$0x1]  ;;  %89 = vst.msk [vmem:[#allocation2 + $0x78] sm:$0x1] %vm5_vm6, %v86_v16  }
  0x93   :  { %v654_v15 = vld [vmem:[#allocation2 + $0x198] sm:$0x1]  ;;  %466 = vst [vmem:[#allocation0 + $0x13] sm:$0x1] %v462_v14  ;;  %91 = vst.msk [vmem:[#allocation2 + $0x177] sm:$0x2] %vm5_vm6, %v86_v16   ;;  %v96_v19 = vpop.permute.xlu1 %95  }
  0x94   :  { %658 = vst [vmem:[#allocation0 + $0x33] sm:$0x1] %v654_v15  ;;  %v408_v17 = vld [vmem:[#allocation2 + $0x50] sm:$0x1]  ;;  %99 = vst.msk [vmem:[#allocation2 + $0x30] sm:$0x1] %vm5_vm6, %v96_v19  }
  0x95   :  { %v600_v18 = vld [vmem:[#allocation2 + $0x150] sm:$0x1]  ;;  %412 = vst [vmem:[#allocation0 + $0xa] sm:$0x1] %v408_v17  ;;  %101 = vst.msk [vmem:[#allocation2 + $0x12f] sm:$0x2] %vm5_vm6, %v96_v19   ;;  %v105_v22 = vpop.permute.xlu0 %104  }
  0x96   :  { %604 = vst [vmem:[#allocation0 + $0x2a] sm:$0x1] %v600_v18  ;;  %v355_v20 = vld [vmem:[#allocation2 + $0x8] sm:$0x1]  ;;  %108 = vst.msk [vmem:[#allocation2 + $0xe8] sm:$0x1] %vm5_vm6, %v105_v22  }
  0x97   :  { %v546_v21 = vld [vmem:[#allocation2 + $0x108] sm:$0x1]  ;;  %358 = vst [vmem:[#allocation0 + $0x1] sm:$0x1] %v355_v20  ;;  %v113_v24 = vpop.permute.xlu1 %112  }
  0x98   :  { %550 = vst [vmem:[#allocation0 + $0x21] sm:$0x1] %v546_v21  ;;  %v492_v23 = vld [vmem:[#allocation2 + $0xc0] sm:$0x1]  ;;  %116 = vst.msk [vmem:[#allocation2 + $0xa0] sm:$0x1] %vm5_vm6, %v113_v24  }
  0x99   :  { %496 = vst [vmem:[#allocation0 + $0x18] sm:$0x1] %v492_v23  ;;  %118 = vst.msk [vmem:[#allocation2 + $0x19f] sm:$0x2] %vm5_vm6, %v113_v24   ;;  %v438_v25 = vld [vmem:[#allocation2 + $0x78] sm:$0x1]  ;;  %v123_v27 = vpop.permute.xlu0 %122  }
  0x9a   :  { %v630_v26 = vld [vmem:[#allocation2 + $0x178] sm:$0x1]  ;;  %442 = vst [vmem:[#allocation0 + $0xf] sm:$0x1] %v438_v25  ;;  %126 = vst.msk [vmem:[#allocation2 + $0x58] sm:$0x1] %vm5_vm6, %v123_v27  }
  0x9b   :  { %634 = vst [vmem:[#allocation0 + $0x2f] sm:$0x1] %v630_v26  ;;  %128 = vst.msk [vmem:[#allocation2 + $0x157] sm:$0x2] %vm5_vm6, %v123_v27   ;;  %v384_v28 = vld [vmem:[#allocation2 + $0x30] sm:$0x1]  ;;  %v132_v30 = vpop.permute.xlu1 %131  }
  0x9c   :  { %v576_v29 = vld [vmem:[#allocation2 + $0x130] sm:$0x1]  ;;  %388 = vst [vmem:[#allocation0 + $0x6] sm:$0x1] %v384_v28  ;;  %135 = vst.msk [vmem:[#allocation2 + $0x10] sm:$0x1] %vm5_vm6, %v132_v30  }
  0x9d   :  { %580 = vst [vmem:[#allocation0 + $0x26] sm:$0x1] %v576_v29  ;;  %137 = vst.msk [vmem:[#allocation2 + $0x10f] sm:$0x2] %vm5_vm6, %v132_v30   ;;  %v522_v31 = vld [vmem:[#allocation2 + $0xe8] sm:$0x1]  ;;  %v141_v32 = vpop.permute.xlu0 %140  }
  0x9e   :  { %526 = vst [vmem:[#allocation0 + $0x1d] sm:$0x1] %v522_v31  ;;  %144 = vst.msk [vmem:[#allocation2 + $0xc8] sm:$0x1] %vm5_vm6, %v141_v32  }
  0x9f   :  { %v468_v33 = vld [vmem:[#allocation2 + $0xa0] sm:$0x1]  ;;  %v149_v35 = vpop.permute.xlu1 %148  }
  0xa0   :  { %v660_v34 = vld [vmem:[#allocation2 + $0x1a0] sm:$0x1]  ;;  %472 = vst [vmem:[#allocation0 + $0x14] sm:$0x1] %v468_v33  ;;  %152 = vst.msk [vmem:[#allocation2 + $0x80] sm:$0x1] %vm5_vm6, %v149_v35  }
  0xa1   :  { %664 = vst [vmem:[#allocation0 + $0x34] sm:$0x1] %v660_v34  ;;  %154 = vst.msk [vmem:[#allocation2 + $0x17f] sm:$0x2] %vm5_vm6, %v149_v35   ;;  %v414_v36 = vld [vmem:[#allocation2 + $0x58] sm:$0x1]  ;;  %v159_v38 = vpop.permute.xlu0 %158  }
  0xa2   :  { %v606_v37 = vld [vmem:[#allocation2 + $0x158] sm:$0x1]  ;;  %418 = vst [vmem:[#allocation0 + $0xb] sm:$0x1] %v414_v36  ;;  %162 = vst.msk [vmem:[#allocation2 + $0x38] sm:$0x1] %vm5_vm6, %v159_v38  }
  0xa3   :  { %610 = vst [vmem:[#allocation0 + $0x2b] sm:$0x1] %v606_v37  ;;  %164 = vst.msk [vmem:[#allocation2 + $0x137] sm:$0x2] %vm5_vm6, %v159_v38   ;;  %v360_v39 = vld [vmem:[#allocation2 + $0x10] sm:$0x1]  ;;  %v168_v41 = vpop.permute.xlu1 %167  }
  0xa4   :  { %v552_v40 = vld [vmem:[#allocation2 + $0x110] sm:$0x1]  ;;  %364 = vst [vmem:[#allocation0 + $0x2] sm:$0x1] %v360_v39  ;;  %171 = vst.msk [vmem:[#allocation2 + $0xf0] sm:$0x1] %vm5_vm6, %v168_v41  }
  0xa5   :  { %556 = vst [vmem:[#allocation0 + $0x22] sm:$0x1] %v552_v40  ;;  %v498_v42 = vld [vmem:[#allocation2 + $0xc8] sm:$0x1]  ;;  %v176_v43 = vpop.permute.xlu0 %175  }
  0xa6   :  { %502 = vst [vmem:[#allocation0 + $0x19] sm:$0x1] %v498_v42  ;;  %179 = vst.msk [vmem:[#allocation2 + $0xa8] sm:$0x1] %vm5_vm6, %v176_v43  }
  0xa7   :  { %181 = vst.msk [vmem:[#allocation2 + $0x1a7] sm:$0x2] %vm5_vm6, %v176_v43   ;;  %v444_v44 = vld [vmem:[#allocation2 + $0x80] sm:$0x1]  ;;  %v186_v46 = vpop.permute.xlu1 %185  }
  0xa8   :  { %v636_v45 = vld [vmem:[#allocation2 + $0x180] sm:$0x1]  ;;  %448 = vst [vmem:[#allocation0 + $0x10] sm:$0x1] %v444_v44  ;;  %189 = vst.msk [vmem:[#allocation2 + $0x60] sm:$0x1] %vm5_vm6, %v186_v46  }
  0xa9   :  { %640 = vst [vmem:[#allocation0 + $0x30] sm:$0x1] %v636_v45  ;;  %191 = vst.msk [vmem:[#allocation2 + $0x15f] sm:$0x2] %vm5_vm6, %v186_v46   ;;  %v390_v47 = vld [vmem:[#allocation2 + $0x38] sm:$0x1]  ;;  %v195_v49 = vpop.permute.xlu0 %194  }
  0xaa   :  { %v582_v48 = vld [vmem:[#allocation2 + $0x138] sm:$0x1]  ;;  %394 = vst [vmem:[#allocation0 + $0x7] sm:$0x1] %v390_v47  ;;  %198 = vst.msk [vmem:[#allocation2 + $0x18] sm:$0x1] %vm5_vm6, %v195_v49  }
  0xab   :  { %586 = vst [vmem:[#allocation0 + $0x27] sm:$0x1] %v582_v48  ;;  %200 = vst.msk [vmem:[#allocation2 + $0x117] sm:$0x2] %vm5_vm6, %v195_v49   ;;  %v528_v50 = vld [vmem:[#allocation2 + $0xf0] sm:$0x1]  ;;  %v204_v51 = vpop.permute.xlu1 %203  }
  0xac   :  { %532 = vst [vmem:[#allocation0 + $0x1e] sm:$0x1] %v528_v50  ;;  %207 = vst.msk [vmem:[#allocation2 + $0xd0] sm:$0x1] %vm5_vm6, %v204_v51  }
  0xad   :  { %v474_v52 = vld [vmem:[#allocation2 + $0xa8] sm:$0x1]  ;;  %v212_v54 = vpop.permute.xlu0 %211  }
  0xae   :  { %v666_v53 = vld [vmem:[#allocation2 + $0x1a8] sm:$0x1]  ;;  %478 = vst [vmem:[#allocation0 + $0x15] sm:$0x1] %v474_v52  ;;  %215 = vst.msk [vmem:[#allocation2 + $0x88] sm:$0x1] %vm5_vm6, %v212_v54  }
  0xaf   :  { %670 = vst [vmem:[#allocation0 + $0x35] sm:$0x1] %v666_v53  ;;  %217 = vst.msk [vmem:[#allocation2 + $0x187] sm:$0x2] %vm5_vm6, %v212_v54   ;;  %v420_v55 = vld [vmem:[#allocation2 + $0x60] sm:$0x1]  ;;  %v222_v57 = vpop.permute.xlu1 %221  }
  0xb0   :  { %v612_v56 = vld [vmem:[#allocation2 + $0x160] sm:$0x1]  ;;  %424 = vst [vmem:[#allocation0 + $0xc] sm:$0x1] %v420_v55  ;;  %225 = vst.msk [vmem:[#allocation2 + $0x40] sm:$0x1] %vm5_vm6, %v222_v57  }
  0xb1   :  { %616 = vst [vmem:[#allocation0 + $0x2c] sm:$0x1] %v612_v56  ;;  %227 = vst.msk [vmem:[#allocation2 + $0x13f] sm:$0x2] %vm5_vm6, %v222_v57   ;;  %v366_v58 = vld [vmem:[#allocation2 + $0x18] sm:$0x1]  ;;  %v231_v60 = vpop.permute.xlu0 %230  }
  0xb2   :  { %v558_v59 = vld [vmem:[#allocation2 + $0x118] sm:$0x1]  ;;  %370 = vst [vmem:[#allocation0 + $0x3] sm:$0x1] %v366_v58  ;;  %234 = vst.msk [vmem:[#allocation2 + $0xf8] sm:$0x1] %vm5_vm6, %v231_v60  }
  0xb3   :  { %562 = vst [vmem:[#allocation0 + $0x23] sm:$0x1] %v558_v59  ;;  %v504_v61 = vld [vmem:[#allocation2 + $0xd0] sm:$0x1] }
  0xb4   :  { %508 = vst [vmem:[#allocation0 + $0x1a] sm:$0x1] %v504_v61 }
  0xb5   :  { %v450_v62 = vld [vmem:[#allocation2 + $0x88] sm:$0x1] }
  0xb6   :  { %v642_v63 = vld [vmem:[#allocation2 + $0x188] sm:$0x1]  ;;  %454 = vst [vmem:[#allocation0 + $0x11] sm:$0x1] %v450_v62 }
  0xb7   :  { %646 = vst [vmem:[#allocation0 + $0x31] sm:$0x1] %v642_v63  ;;  %v396_v0 = vld [vmem:[#allocation2 + $0x40] sm:$0x1] }
  0xb8   :  { %v588_v1 = vld [vmem:[#allocation2 + $0x140] sm:$0x1]  ;;  %400 = vst [vmem:[#allocation0 + $0x8] sm:$0x1] %v396_v0 }
  0xb9   :  { %592 = vst [vmem:[#allocation0 + $0x28] sm:$0x1] %v588_v1  ;;  %v534_v2 = vld [vmem:[#allocation2 + $0xf8] sm:$0x1] }
  0xba   :  { %538 = vst [vmem:[#allocation0 + $0x1f] sm:$0x1] %v534_v2 }
  0xbb   :  { %823 = shalt.err (!%p820_p4)
}
  0xbc   :  { %s824_s30 = scalar_lea.hbm %s1053_s1, 896 }
  0xbd   :  { %p825_p5 = scmp.ne.s32.totalorder %s1053_s1, %s824_s30  ;;  %p828_p6 = scmp.lt.u32.totalorder %s824_s30, %s1053_s1 }
  0xbf   :  { %p830_p7 = pnand %p828_p6, %p825_p5 }
  0xc1   :  { %833 = shalt.err (!%p830_p7)
}
  0xc2   :  { %690 = dma.vmem_to_hbm [thread:$0]  %s688_s26, 896, %s1053_s1, [#allocation1]  }
  0xc3   :  { %834 = dma.done.wait [#allocation1], 896  }
  0xc4   :  { %835 = vsyncadd [#allocation1], 4294966400 }
  0xc5   :  { %692 = vsyncpa [#allocation1], 1 }

// kernel: generator_forward.7
= control target key start
LH: loop header
LB: loop body
LE: loop exit
PB: predicated region body
PF: predicated region fallthrough
CT: control target
= control target key end

     0   :  { %s3833_s9 = smov 0   ;;  %s3835_s10 = smov 0   ;;  %s4915_s0 = inlined_call_operand.vmem [shape: bf16[1,640], index: 0, kind: input, shape index: {}]   ;;  %s4916_s1 = inlined_call_operand.vmem [shape: bf16[640,2048], index: 1, kind: input, shape index: {}]   ;;  %s4917_s2 = inlined_call_operand.vmem [shape: f32[1,2048], index: 2, kind: output, shape index: {}]  }
   0x1   :  { %s3837_s11 = smov 0  }
   0x2 LB: > { %s3384_s12 = sadd.s32 4294967295, %s3814_s11   ;;  %s3850_s13 = sadd.s32 1, %s3814_s11   ;;  %s3814_s11 = sphi %s3837_s11, %s4920_s11   ;;  %s3810_s10 = sphi %s3835_s10, %s4919_s10   ;;  %s3806_s9 = sphi %s3833_s9, %s4918_s9  }
   0x3   : > { %s37_s14 = ssub.s32 %s3814_s11, %s3850_s13  ;;  %s40_s15 = sadd.s32 1, %s3810_s10 }
   0x4   : > { %p38_p0 = scmp.eq.s32.totalorder %s37_s14, 0  ;;  %p47_p1 = scmp.ne.s32.totalorder %s3810_s10, %s3806_s9 }
   0x5   : > { %p48_p2 = scmp.eq.s32.totalorder %s3814_s11, 0  ;;  %p3387_p4 = scmp.ge.s32.totalorder %s3814_s11, 2 }
   0x6   : > { %s3859_s16 = scalar_select %p38_p0, %s3810_s10, %s40_s15  }
   0x7   : > { %p49_p3 = por %p48_p2, %p47_p1  ;;  %102 = sbr.rel (%p3387_p4) target bundleno = 179 (0xb3), region = 20 }
   0xe   : > { %105 = sbr.rel (!%p49_p3) target bundleno = 179 (0xb3), region = 24  ;;  %s107_s17 = sand.u32 (%p49_p3), 1, %s3810_s10  }
   0xf   : > { %s3714_s18 = sshll.u32 (%p49_p3), %s3814_s11, 5  ;;  %s3747_s19 = smul.u32 (%p49_p3), 2560, %s107_s17 }
  0x10   : > { %s3867_s22 = scalar_lea.vmem (%p49_p3), %s4916_s1, %s3714_s18 }
  0x11   : > { %v125_v0 = vld [vmem:[%s3867_s22] sm:$0xff] (%p49_p3)  ;;  %v127_v1 = vld [vmem:[%s3867_s22 + $0x8] sm:$0xff] (%p49_p3)  ;;  %v129_v2 = vld [vmem:[%s3867_s22 + $0x10] sm:$0xff] (%p49_p3)  ;;  %s3875_s23 = scalar_lea.vmem (%p49_p3), [#allocation2], %s3747_s19 }
  0x12   : > { %v131_v3 = vld [vmem:[%s3867_s22 + $0x18] sm:$0xff] (%p49_p3)  ;;  %v133_v4 = vld [vmem:[%s3867_s22 + $0x40] sm:$0xff] (%p49_p3)  ;;  %v135_v5 = vld [vmem:[%s3867_s22 + $0x48] sm:$0xff] (%p49_p3)  ;;  %126 = vst [vmem:[%s3875_s23] sm:$0xff] (%p49_p3), %v125_v0 }
  0x13   : > { %128 = vst [vmem:[%s3875_s23 + $0x8] sm:$0xff] (%p49_p3), %v127_v1  ;;  %130 = vst [vmem:[%s3875_s23 + $0x10] sm:$0xff] (%p49_p3), %v129_v2  ;;  %v137_v6 = vld [vmem:[%s3867_s22 + $0x50] sm:$0xff] (%p49_p3)  ;;  %v139_v7 = vld [vmem:[%s3867_s22 + $0x58] sm:$0xff] (%p49_p3) }
  0x14   : > { %132 = vst [vmem:[%s3875_s23 + $0x18] sm:$0xff] (%p49_p3), %v131_v3  ;;  %134 = vst [vmem:[%s3875_s23 + $0x20] sm:$0xff] (%p49_p3), %v133_v4  ;;  %v141_v8 = vld [vmem:[%s3867_s22 + $0x80] sm:$0xff] (%p49_p3)  ;;  %v143_v9 = vld [vmem:[%s3867_s22 + $0x88] sm:$0xff] (%p49_p3) }
  0x15   : > { %136 = vst [vmem:[%s3875_s23 + $0x28] sm:$0xff] %v135_v5  ;;  %138 = vst [vmem:[%s3875_s23 + $0x30] sm:$0xff] %v137_v6  ;;  %v145_v10 = vld [vmem:[%s3867_s22 + $0x90] sm:$0xff]  ;;  %v147_v11 = vld [vmem:[%s3867_s22 + $0x98] sm:$0xff] }
  0x16   : > { %140 = vst [vmem:[%s3875_s23 + $0x38] sm:$0xff] %v139_v7  ;;  %142 = vst [vmem:[%s3875_s23 + $0x40] sm:$0xff] %v141_v8  ;;  %v149_v12 = vld [vmem:[%s3867_s22 + $0xc0] sm:$0xff]  ;;  %v151_v13 = vld [vmem:[%s3867_s22 + $0xc8] sm:$0xff] }
  0x17   : > { %144 = vst [vmem:[%s3875_s23 + $0x48] sm:$0xff] %v143_v9  ;;  %146 = vst [vmem:[%s3875_s23 + $0x50] sm:$0xff] %v145_v10  ;;  %v153_v14 = vld [vmem:[%s3867_s22 + $0xd0] sm:$0xff]  ;;  %v155_v15 = vld [vmem:[%s3867_s22 + $0xd8] sm:$0xff] }
  0x18   : > { %148 = vst [vmem:[%s3875_s23 + $0x58] sm:$0xff] %v147_v11  ;;  %150 = vst [vmem:[%s3875_s23 + $0x60] sm:$0xff] %v149_v12  ;;  %v157_v16 = vld [vmem:[%s3867_s22 + $0x100] sm:$0xff]  ;;  %v159_v17 = vld [vmem:[%s3867_s22 + $0x108] sm:$0xff] }
  0x19   : > { %152 = vst [vmem:[%s3875_s23 + $0x68] sm:$0xff] %v151_v13  ;;  %154 = vst [vmem:[%s3875_s23 + $0x70] sm:$0xff] %v153_v14  ;;  %v161_v18 = vld [vmem:[%s3867_s22 + $0x110] sm:$0xff]  ;;  %v163_v19 = vld [vmem:[%s3867_s22 + $0x118] sm:$0xff] }
  0x1a   : > { %156 = vst [vmem:[%s3875_s23 + $0x78] sm:$0xff] %v155_v15  ;;  %158 = vst [vmem:[%s3875_s23 + $0x80] sm:$0xff] %v157_v16  ;;  %v165_v20 = vld [vmem:[%s3867_s22 + $0x140] sm:$0xff]  ;;  %v167_v21 = vld [vmem:[%s3867_s22 + $0x148] sm:$0xff] }
  0x1b   : > { %160 = vst [vmem:[%s3875_s23 + $0x88] sm:$0xff] %v159_v17  ;;  %162 = vst [vmem:[%s3875_s23 + $0x90] sm:$0xff] %v161_v18  ;;  %v169_v22 = vld [vmem:[%s3867_s22 + $0x150] sm:$0xff]  ;;  %v171_v23 = vld [vmem:[%s3867_s22 + $0x158] sm:$0xff] }
  0x1c   : > { %164 = vst [vmem:[%s3875_s23 + $0x98] sm:$0xff] %v163_v19  ;;  %166 = vst [vmem:[%s3875_s23 + $0xa0] sm:$0xff] %v165_v20  ;;  %v173_v24 = vld [vmem:[%s3867_s22 + $0x180] sm:$0xff]  ;;  %v175_v25 = vld [vmem:[%s3867_s22 + $0x188] sm:$0xff] }
  0x1d   : > { %168 = vst [vmem:[%s3875_s23 + $0xa8] sm:$0xff] %v167_v21  ;;  %170 = vst [vmem:[%s3875_s23 + $0xb0] sm:$0xff] %v169_v22  ;;  %v177_v26 = vld [vmem:[%s3867_s22 + $0x190] sm:$0xff]  ;;  %v179_v27 = vld [vmem:[%s3867_s22 + $0x198] sm:$0xff] }
  0x1e   : > { %172 = vst [vmem:[%s3875_s23 + $0xb8] sm:$0xff] %v171_v23  ;;  %174 = vst [vmem:[%s3875_s23 + $0xc0] sm:$0xff] %v173_v24  ;;  %v181_v28 = vld [vmem:[%s3867_s22 + $0x1c0] sm:$0xff]  ;;  %v183_v29 = vld [vmem:[%s3867_s22 + $0x1c8] sm:$0xff] }
  0x1f   : > { %176 = vst [vmem:[%s3875_s23 + $0xc8] sm:$0xff] %v175_v25  ;;  %178 = vst [vmem:[%s3875_s23 + $0xd0] sm:$0xff] %v177_v26  ;;  %v185_v30 = vld [vmem:[%s3867_s22 + $0x1d0] sm:$0xff]  ;;  %v187_v31 = vld [vmem:[%s3867_s22 + $0x1d8] sm:$0xff] }
  0x20   : > { %180 = vst [vmem:[%s3875_s23 + $0xd8] sm:$0xff] %v179_v27  ;;  %182 = vst [vmem:[%s3875_s23 + $0xe0] sm:$0xff] %v181_v28  ;;  %v189_v32 = vld [vmem:[%s3867_s22 + $0x200] sm:$0xff]  ;;  %v191_v33 = vld [vmem:[%s3867_s22 + $0x208] sm:$0xff] }
  0x21   : > { %184 = vst [vmem:[%s3875_s23 + $0xe8] sm:$0xff] %v183_v29  ;;  %186 = vst [vmem:[%s3875_s23 + $0xf0] sm:$0xff] %v185_v30  ;;  %v193_v34 = vld [vmem:[%s3867_s22 + $0x210] sm:$0xff]  ;;  %v195_v35 = vld [vmem:[%s3867_s22 + $0x218] sm:$0xff] }
  0x22   : > { %188 = vst [vmem:[%s3875_s23 + $0xf8] sm:$0xff] %v187_v31  ;;  %190 = vst [vmem:[%s3875_s23 + $0x100] sm:$0xff] %v189_v32  ;;  %v197_v36 = vld [vmem:[%s3867_s22 + $0x240] sm:$0xff]  ;;  %v199_v37 = vld [vmem:[%s3867_s22 + $0x248] sm:$0xff] }
  0x23   : > { %192 = vst [vmem:[%s3875_s23 + $0x108] sm:$0xff] %v191_v33  ;;  %194 = vst [vmem:[%s3875_s23 + $0x110] sm:$0xff] %v193_v34  ;;  %v201_v38 = vld [vmem:[%s3867_s22 + $0x250] sm:$0xff]  ;;  %v203_v39 = vld [vmem:[%s3867_s22 + $0x258] sm:$0xff] }
  0x24   : > { %196 = vst [vmem:[%s3875_s23 + $0x118] sm:$0xff] %v195_v35  ;;  %198 = vst [vmem:[%s3875_s23 + $0x120] sm:$0xff] %v197_v36  ;;  %v205_v40 = vld [vmem:[%s3867_s22 + $0x280] sm:$0xff]  ;;  %v207_v41 = vld [vmem:[%s3867_s22 + $0x288] sm:$0xff] }
  0x25   : > { %200 = vst [vmem:[%s3875_s23 + $0x128] sm:$0xff] %v199_v37  ;;  %202 = vst [vmem:[%s3875_s23 + $0x130] sm:$0xff] %v201_v38  ;;  %v209_v42 = vld [vmem:[%s3867_s22 + $0x290] sm:$0xff]  ;;  %v211_v43 = vld [vmem:[%s3867_s22 + $0x298] sm:$0xff] }
  0x26   : > { %204 = vst [vmem:[%s3875_s23 + $0x138] sm:$0xff] %v203_v39  ;;  %206 = vst [vmem:[%s3875_s23 + $0x140] sm:$0xff] %v205_v40  ;;  %v213_v44 = vld [vmem:[%s3867_s22 + $0x2c0] sm:$0xff]  ;;  %v215_v45 = vld [vmem:[%s3867_s22 + $0x2c8] sm:$0xff] }
  0x27   : > { %208 = vst [vmem:[%s3875_s23 + $0x148] sm:$0xff] %v207_v41  ;;  %210 = vst [vmem:[%s3875_s23 + $0x150] sm:$0xff] %v209_v42  ;;  %v217_v46 = vld [vmem:[%s3867_s22 + $0x2d0] sm:$0xff]  ;;  %v219_v47 = vld [vmem:[%s3867_s22 + $0x2d8] sm:$0xff] }
  0x28   : > { %212 = vst [vmem:[%s3875_s23 + $0x158] sm:$0xff] %v211_v43  ;;  %214 = vst [vmem:[%s3875_s23 + $0x160] sm:$0xff] %v213_v44  ;;  %v221_v48 = vld [vmem:[%s3867_s22 + $0x300] sm:$0xff]  ;;  %v223_v49 = vld [vmem:[%s3867_s22 + $0x308] sm:$0xff] }
  0x29   : > { %216 = vst [vmem:[%s3875_s23 + $0x168] sm:$0xff] %v215_v45  ;;  %218 = vst [vmem:[%s3875_s23 + $0x170] sm:$0xff] %v217_v46  ;;  %v225_v50 = vld [vmem:[%s3867_s22 + $0x310] sm:$0xff]  ;;  %v227_v51 = vld [vmem:[%s3867_s22 + $0x318] sm:$0xff] }
  0x2a   : > { %220 = vst [vmem:[%s3875_s23 + $0x178] sm:$0xff] %v219_v47  ;;  %222 = vst [vmem:[%s3875_s23 + $0x180] sm:$0xff] %v221_v48  ;;  %v229_v52 = vld [vmem:[%s3867_s22 + $0x340] sm:$0xff]  ;;  %v231_v53 = vld [vmem:[%s3867_s22 + $0x348] sm:$0xff] }
  0x2b   : > { %224 = vst [vmem:[%s3875_s23 + $0x188] sm:$0xff] %v223_v49  ;;  %226 = vst [vmem:[%s3875_s23 + $0x190] sm:$0xff] %v225_v50  ;;  %v233_v54 = vld [vmem:[%s3867_s22 + $0x350] sm:$0xff]  ;;  %v235_v55 = vld [vmem:[%s3867_s22 + $0x358] sm:$0xff] }
  0x2c   : > { %228 = vst [vmem:[%s3875_s23 + $0x198] sm:$0xff] %v227_v51  ;;  %230 = vst [vmem:[%s3875_s23 + $0x1a0] sm:$0xff] %v229_v52  ;;  %v237_v56 = vld [vmem:[%s3867_s22 + $0x380] sm:$0xff]  ;;  %v239_v57 = vld [vmem:[%s3867_s22 + $0x388] sm:$0xff] }
  0x2d   : > { %232 = vst [vmem:[%s3875_s23 + $0x1a8] sm:$0xff] %v231_v53  ;;  %234 = vst [vmem:[%s3875_s23 + $0x1b0] sm:$0xff] %v233_v54  ;;  %v241_v58 = vld [vmem:[%s3867_s22 + $0x390] sm:$0xff]  ;;  %v243_v59 = vld [vmem:[%s3867_s22 + $0x398] sm:$0xff] }
  0x2e   : > { %236 = vst [vmem:[%s3875_s23 + $0x1b8] sm:$0xff] %v235_v55  ;;  %238 = vst [vmem:[%s3875_s23 + $0x1c0] sm:$0xff] %v237_v56  ;;  %v245_v60 = vld [vmem:[%s3867_s22 + $0x3c0] sm:$0xff]  ;;  %v247_v61 = vld [vmem:[%s3867_s22 + $0x3c8] sm:$0xff] }
  0x2f   : > { %240 = vst [vmem:[%s3875_s23 + $0x1c8] sm:$0xff] %v239_v57  ;;  %242 = vst [vmem:[%s3875_s23 + $0x1d0] sm:$0xff] %v241_v58  ;;  %v249_v62 = vld [vmem:[%s3867_s22 + $0x3d0] sm:$0xff]  ;;  %v251_v63 = vld [vmem:[%s3867_s22 + $0x3d8] sm:$0xff] }
  0x30   : > { %244 = vst [vmem:[%s3875_s23 + $0x1d8] sm:$0xff] %v243_v59  ;;  %246 = vst [vmem:[%s3875_s23 + $0x1e0] sm:$0xff] %v245_v60  ;;  %v253_v0 = vld [vmem:[%s3867_s22 + $0x400] sm:$0xff]  ;;  %v255_v1 = vld [vmem:[%s3867_s22 + $0x408] sm:$0xff] }
  0x31   : > { %248 = vst [vmem:[%s3875_s23 + $0x1e8] sm:$0xff] %v247_v61  ;;  %250 = vst [vmem:[%s3875_s23 + $0x1f0] sm:$0xff] %v249_v62  ;;  %v257_v2 = vld [vmem:[%s3867_s22 + $0x410] sm:$0xff]  ;;  %v259_v3 = vld [vmem:[%s3867_s22 + $0x418] sm:$0xff] }
  0x32   : > { %252 = vst [vmem:[%s3875_s23 + $0x1f8] sm:$0xff] %v251_v63  ;;  %254 = vst [vmem:[%s3875_s23 + $0x200] sm:$0xff] %v253_v0  ;;  %v261_v4 = vld [vmem:[%s3867_s22 + $0x440] sm:$0xff]  ;;  %v263_v5 = vld [vmem:[%s3867_s22 + $0x448] sm:$0xff] }
  0x33   : > { %256 = vst [vmem:[%s3875_s23 + $0x208] sm:$0xff] %v255_v1  ;;  %258 = vst [vmem:[%s3875_s23 + $0x210] sm:$0xff] %v257_v2  ;;  %v265_v6 = vld [vmem:[%s3867_s22 + $0x450] sm:$0xff]  ;;  %v267_v7 = vld [vmem:[%s3867_s22 + $0x458] sm:$0xff] }
  0x34   : > { %260 = vst [vmem:[%s3875_s23 + $0x218] sm:$0xff] %v259_v3  ;;  %262 = vst [vmem:[%s3875_s23 + $0x220] sm:$0xff] %v261_v4  ;;  %v269_v8 = vld [vmem:[%s3867_s22 + $0x480] sm:$0xff]  ;;  %v271_v9 = vld [vmem:[%s3867_s22 + $0x488] sm:$0xff] }
  0x35   : > { %264 = vst [vmem:[%s3875_s23 + $0x228] sm:$0xff] %v263_v5  ;;  %266 = vst [vmem:[%s3875_s23 + $0x230] sm:$0xff] %v265_v6  ;;  %v273_v10 = vld [vmem:[%s3867_s22 + $0x490] sm:$0xff]  ;;  %v275_v11 = vld [vmem:[%s3867_s22 + $0x498] sm:$0xff] }
  0x36   : > { %268 = vst [vmem:[%s3875_s23 + $0x238] sm:$0xff] %v267_v7  ;;  %270 = vst [vmem:[%s3875_s23 + $0x240] sm:$0xff] %v269_v8  ;;  %v277_v12 = vld [vmem:[%s3867_s22 + $0x4c0] sm:$0xff]  ;;  %v279_v13 = vld [vmem:[%s3867_s22 + $0x4c8] sm:$0xff] }
  0x37   : > { %272 = vst [vmem:[%s3875_s23 + $0x248] sm:$0xff] %v271_v9  ;;  %274 = vst [vmem:[%s3875_s23 + $0x250] sm:$0xff] %v273_v10  ;;  %v281_v14 = vld [vmem:[%s3867_s22 + $0x4d0] sm:$0xff]  ;;  %v283_v15 = vld [vmem:[%s3867_s22 + $0x4d8] sm:$0xff] }
  0x38   : > { %276 = vst [vmem:[%s3875_s23 + $0x258] sm:$0xff] %v275_v11  ;;  %278 = vst [vmem:[%s3875_s23 + $0x260] sm:$0xff] %v277_v12  ;;  %v285_v16 = vld [vmem:[%s3867_s22 + $0x500] sm:$0xff]  ;;  %v287_v17 = vld [vmem:[%s3867_s22 + $0x508] sm:$0xff] }
  0x39   : > { %280 = vst [vmem:[%s3875_s23 + $0x268] sm:$0xff] %v279_v13  ;;  %282 = vst [vmem:[%s3875_s23 + $0x270] sm:$0xff] %v281_v14  ;;  %v289_v18 = vld [vmem:[%s3867_s22 + $0x510] sm:$0xff]  ;;  %v291_v19 = vld [vmem:[%s3867_s22 + $0x518] sm:$0xff] }
  0x3a   : > { %284 = vst [vmem:[%s3875_s23 + $0x278] sm:$0xff] %v283_v15  ;;  %286 = vst [vmem:[%s3875_s23 + $0x280] sm:$0xff] %v285_v16  ;;  %v293_v20 = vld [vmem:[%s3867_s22 + $0x540] sm:$0xff]  ;;  %v295_v21 = vld [vmem:[%s3867_s22 + $0x548] sm:$0xff] }
  0x3b   : > { %288 = vst [vmem:[%s3875_s23 + $0x288] sm:$0xff] %v287_v17  ;;  %290 = vst [vmem:[%s3875_s23 + $0x290] sm:$0xff] %v289_v18  ;;  %v297_v22 = vld [vmem:[%s3867_s22 + $0x550] sm:$0xff]  ;;  %v299_v23 = vld [vmem:[%s3867_s22 + $0x558] sm:$0xff] }
  0x3c   : > { %292 = vst [vmem:[%s3875_s23 + $0x298] sm:$0xff] %v291_v19  ;;  %294 = vst [vmem:[%s3875_s23 + $0x2a0] sm:$0xff] %v293_v20  ;;  %v301_v24 = vld [vmem:[%s3867_s22 + $0x580] sm:$0xff]  ;;  %v303_v25 = vld [vmem:[%s3867_s22 + $0x588] sm:$0xff] }
  0x3d   : > { %296 = vst [vmem:[%s3875_s23 + $0x2a8] sm:$0xff] %v295_v21  ;;  %298 = vst [vmem:[%s3875_s23 + $0x2b0] sm:$0xff] %v297_v22  ;;  %v305_v26 = vld [vmem:[%s3867_s22 + $0x590] sm:$0xff]  ;;  %v307_v27 = vld [vmem:[%s3867_s22 + $0x598] sm:$0xff] }
  0x3e   : > { %300 = vst [vmem:[%s3875_s23 + $0x2b8] sm:$0xff] %v299_v23  ;;  %302 = vst [vmem:[%s3875_s23 + $0x2c0] sm:$0xff] %v301_v24  ;;  %v309_v28 = vld [vmem:[%s3867_s22 + $0x5c0] sm:$0xff]  ;;  %v311_v29 = vld [vmem:[%s3867_s22 + $0x5c8] sm:$0xff] }
  0x3f   : > { %304 = vst [vmem:[%s3875_s23 + $0x2c8] sm:$0xff] %v303_v25  ;;  %306 = vst [vmem:[%s3875_s23 + $0x2d0] sm:$0xff] %v305_v26  ;;  %v313_v30 = vld [vmem:[%s3867_s22 + $0x5d0] sm:$0xff]  ;;  %v315_v31 = vld [vmem:[%s3867_s22 + $0x5d8] sm:$0xff] }
  0x40   : > { %308 = vst [vmem:[%s3875_s23 + $0x2d8] sm:$0xff] %v307_v27  ;;  %310 = vst [vmem:[%s3875_s23 + $0x2e0] sm:$0xff] %v309_v28  ;;  %v317_v32 = vld [vmem:[%s3867_s22 + $0x600] sm:$0xff]  ;;  %v319_v33 = vld [vmem:[%s3867_s22 + $0x608] sm:$0xff] }
  0x41   : > { %312 = vst [vmem:[%s3875_s23 + $0x2e8] sm:$0xff] %v311_v29  ;;  %314 = vst [vmem:[%s3875_s23 + $0x2f0] sm:$0xff] %v313_v30  ;;  %v321_v34 = vld [vmem:[%s3867_s22 + $0x610] sm:$0xff]  ;;  %v323_v35 = vld [vmem:[%s3867_s22 + $0x618] sm:$0xff] }
  0x42   : > { %316 = vst [vmem:[%s3875_s23 + $0x2f8] sm:$0xff] %v315_v31  ;;  %318 = vst [vmem:[%s3875_s23 + $0x300] sm:$0xff] %v317_v32  ;;  %v325_v36 = vld [vmem:[%s3867_s22 + $0x640] sm:$0xff]  ;;  %v327_v37 = vld [vmem:[%s3867_s22 + $0x648] sm:$0xff] }
  0x43   : > { %320 = vst [vmem:[%s3875_s23 + $0x308] sm:$0xff] %v319_v33  ;;  %322 = vst [vmem:[%s3875_s23 + $0x310] sm:$0xff] %v321_v34  ;;  %v329_v38 = vld [vmem:[%s3867_s22 + $0x650] sm:$0xff]  ;;  %v331_v39 = vld [vmem:[%s3867_s22 + $0x658] sm:$0xff] }
  0x44   : > { %324 = vst [vmem:[%s3875_s23 + $0x318] sm:$0xff] %v323_v35  ;;  %326 = vst [vmem:[%s3875_s23 + $0x320] sm:$0xff] %v325_v36  ;;  %v333_v40 = vld [vmem:[%s3867_s22 + $0x680] sm:$0xff]  ;;  %v335_v41 = vld [vmem:[%s3867_s22 + $0x688] sm:$0xff] }
  0x45   : > { %328 = vst [vmem:[%s3875_s23 + $0x328] sm:$0xff] %v327_v37  ;;  %330 = vst [vmem:[%s3875_s23 + $0x330] sm:$0xff] %v329_v38  ;;  %v337_v42 = vld [vmem:[%s3867_s22 + $0x690] sm:$0xff]  ;;  %v339_v43 = vld [vmem:[%s3867_s22 + $0x698] sm:$0xff] }
  0x46   : > { %332 = vst [vmem:[%s3875_s23 + $0x338] sm:$0xff] %v331_v39  ;;  %334 = vst [vmem:[%s3875_s23 + $0x340] sm:$0xff] %v333_v40  ;;  %v341_v44 = vld [vmem:[%s3867_s22 + $0x6c0] sm:$0xff]  ;;  %v343_v45 = vld [vmem:[%s3867_s22 + $0x6c8] sm:$0xff] }
  0x47   : > { %336 = vst [vmem:[%s3875_s23 + $0x348] sm:$0xff] %v335_v41  ;;  %338 = vst [vmem:[%s3875_s23 + $0x350] sm:$0xff] %v337_v42  ;;  %v345_v46 = vld [vmem:[%s3867_s22 + $0x6d0] sm:$0xff]  ;;  %v347_v47 = vld [vmem:[%s3867_s22 + $0x6d8] sm:$0xff] }
  0x48   : > { %340 = vst [vmem:[%s3875_s23 + $0x358] sm:$0xff] %v339_v43  ;;  %342 = vst [vmem:[%s3875_s23 + $0x360] sm:$0xff] %v341_v44  ;;  %v349_v48 = vld [vmem:[%s3867_s22 + $0x700] sm:$0xff]  ;;  %v351_v49 = vld [vmem:[%s3867_s22 + $0x708] sm:$0xff] }
  0x49   : > { %344 = vst [vmem:[%s3875_s23 + $0x368] sm:$0xff] %v343_v45  ;;  %346 = vst [vmem:[%s3875_s23 + $0x370] sm:$0xff] %v345_v46  ;;  %v353_v50 = vld [vmem:[%s3867_s22 + $0x710] sm:$0xff]  ;;  %v355_v51 = vld [vmem:[%s3867_s22 + $0x718] sm:$0xff] }
  0x4a   : > { %348 = vst [vmem:[%s3875_s23 + $0x378] sm:$0xff] %v347_v47  ;;  %350 = vst [vmem:[%s3875_s23 + $0x380] sm:$0xff] %v349_v48  ;;  %v357_v52 = vld [vmem:[%s3867_s22 + $0x740] sm:$0xff]  ;;  %v359_v53 = vld [vmem:[%s3867_s22 + $0x748] sm:$0xff] }
  0x4b   : > { %352 = vst [vmem:[%s3875_s23 + $0x388] sm:$0xff] %v351_v49  ;;  %354 = vst [vmem:[%s3875_s23 + $0x390] sm:$0xff] %v353_v50  ;;  %v361_v54 = vld [vmem:[%s3867_s22 + $0x750] sm:$0xff]  ;;  %v363_v55 = vld [vmem:[%s3867_s22 + $0x758] sm:$0xff] }
  0x4c   : > { %356 = vst [vmem:[%s3875_s23 + $0x398] sm:$0xff] %v355_v51  ;;  %358 = vst [vmem:[%s3875_s23 + $0x3a0] sm:$0xff] %v357_v52  ;;  %v365_v56 = vld [vmem:[%s3867_s22 + $0x780] sm:$0xff]  ;;  %v367_v57 = vld [vmem:[%s3867_s22 + $0x788] sm:$0xff] }
  0x4d   : > { %360 = vst [vmem:[%s3875_s23 + $0x3a8] sm:$0xff] %v359_v53  ;;  %362 = vst [vmem:[%s3875_s23 + $0x3b0] sm:$0xff] %v361_v54  ;;  %v369_v58 = vld [vmem:[%s3867_s22 + $0x790] sm:$0xff]  ;;  %v371_v59 = vld [vmem:[%s3867_s22 + $0x798] sm:$0xff] }
  0x4e   : > { %364 = vst [vmem:[%s3875_s23 + $0x3b8] sm:$0xff] %v363_v55  ;;  %366 = vst [vmem:[%s3875_s23 + $0x3c0] sm:$0xff] %v365_v56  ;;  %v373_v60 = vld [vmem:[%s3867_s22 + $0x7c0] sm:$0xff]  ;;  %v375_v61 = vld [vmem:[%s3867_s22 + $0x7c8] sm:$0xff] }
  0x4f   : > { %368 = vst [vmem:[%s3875_s23 + $0x3c8] sm:$0xff] %v367_v57  ;;  %370 = vst [vmem:[%s3875_s23 + $0x3d0] sm:$0xff] %v369_v58  ;;  %v377_v62 = vld [vmem:[%s3867_s22 + $0x7d0] sm:$0xff]  ;;  %v379_v63 = vld [vmem:[%s3867_s22 + $0x7d8] sm:$0xff] }
  0x50   : > { %372 = vst [vmem:[%s3875_s23 + $0x3d8] sm:$0xff] %v371_v59  ;;  %374 = vst [vmem:[%s3875_s23 + $0x3e0] sm:$0xff] %v373_v60  ;;  %v381_v0 = vld [vmem:[%s3867_s22 + $0x800] sm:$0xff]  ;;  %v383_v1 = vld [vmem:[%s3867_s22 + $0x808] sm:$0xff] }
  0x51   : > { %376 = vst [vmem:[%s3875_s23 + $0x3e8] sm:$0xff] %v375_v61  ;;  %378 = vst [vmem:[%s3875_s23 + $0x3f0] sm:$0xff] %v377_v62  ;;  %v385_v2 = vld [vmem:[%s3867_s22 + $0x810] sm:$0xff]  ;;  %v387_v3 = vld [vmem:[%s3867_s22 + $0x818] sm:$0xff] }
  0x52   : > { %380 = vst [vmem:[%s3875_s23 + $0x3f8] sm:$0xff] %v379_v63  ;;  %382 = vst [vmem:[%s3875_s23 + $0x400] sm:$0xff] %v381_v0  ;;  %v389_v4 = vld [vmem:[%s3867_s22 + $0x840] sm:$0xff]  ;;  %v391_v5 = vld [vmem:[%s3867_s22 + $0x848] sm:$0xff] }
  0x53   : > { %384 = vst [vmem:[%s3875_s23 + $0x408] sm:$0xff] %v383_v1  ;;  %386 = vst [vmem:[%s3875_s23 + $0x410] sm:$0xff] %v385_v2  ;;  %v393_v6 = vld [vmem:[%s3867_s22 + $0x850] sm:$0xff]  ;;  %v395_v7 = vld [vmem:[%s3867_s22 + $0x858] sm:$0xff] }
  0x54   : > { %388 = vst [vmem:[%s3875_s23 + $0x418] sm:$0xff] %v387_v3  ;;  %390 = vst [vmem:[%s3875_s23 + $0x420] sm:$0xff] %v389_v4  ;;  %v397_v8 = vld [vmem:[%s3867_s22 + $0x880] sm:$0xff]  ;;  %v399_v9 = vld [vmem:[%s3867_s22 + $0x888] sm:$0xff] }
  0x55   : > { %392 = vst [vmem:[%s3875_s23 + $0x428] sm:$0xff] %v391_v5  ;;  %394 = vst [vmem:[%s3875_s23 + $0x430] sm:$0xff] %v393_v6  ;;  %v401_v10 = vld [vmem:[%s3867_s22 + $0x890] sm:$0xff]  ;;  %v403_v11 = vld [vmem:[%s3867_s22 + $0x898] sm:$0xff] }
  0x56   : > { %396 = vst [vmem:[%s3875_s23 + $0x438] sm:$0xff] %v395_v7  ;;  %398 = vst [vmem:[%s3875_s23 + $0x440] sm:$0xff] %v397_v8  ;;  %v405_v12 = vld [vmem:[%s3867_s22 + $0x8c0] sm:$0xff]  ;;  %v407_v13 = vld [vmem:[%s3867_s22 + $0x8c8] sm:$0xff] }
  0x57   : > { %400 = vst [vmem:[%s3875_s23 + $0x448] sm:$0xff] %v399_v9  ;;  %402 = vst [vmem:[%s3875_s23 + $0x450] sm:$0xff] %v401_v10  ;;  %v409_v14 = vld [vmem:[%s3867_s22 + $0x8d0] sm:$0xff]  ;;  %v411_v15 = vld [vmem:[%s3867_s22 + $0x8d8] sm:$0xff] }
  0x58   : > { %404 = vst [vmem:[%s3875_s23 + $0x458] sm:$0xff] %v403_v11  ;;  %406 = vst [vmem:[%s3875_s23 + $0x460] sm:$0xff] %v405_v12  ;;  %v413_v16 = vld [vmem:[%s3867_s22 + $0x900] sm:$0xff]  ;;  %v415_v17 = vld [vmem:[%s3867_s22 + $0x908] sm:$0xff] }
  0x59   : > { %408 = vst [vmem:[%s3875_s23 + $0x468] sm:$0xff] %v407_v13  ;;  %410 = vst [vmem:[%s3875_s23 + $0x470] sm:$0xff] %v409_v14  ;;  %v417_v18 = vld [vmem:[%s3867_s22 + $0x910] sm:$0xff]  ;;  %v419_v19 = vld [vmem:[%s3867_s22 + $0x918] sm:$0xff] }
  0x5a   : > { %412 = vst [vmem:[%s3875_s23 + $0x478] sm:$0xff] %v411_v15  ;;  %414 = vst [vmem:[%s3875_s23 + $0x480] sm:$0xff] %v413_v16  ;;  %v421_v20 = vld [vmem:[%s3867_s22 + $0x940] sm:$0xff]  ;;  %v423_v21 = vld [vmem:[%s3867_s22 + $0x948] sm:$0xff] }
  0x5b   : > { %416 = vst [vmem:[%s3875_s23 + $0x488] sm:$0xff] %v415_v17  ;;  %418 = vst [vmem:[%s3875_s23 + $0x490] sm:$0xff] %v417_v18  ;;  %v425_v22 = vld [vmem:[%s3867_s22 + $0x950] sm:$0xff]  ;;  %v427_v23 = vld [vmem:[%s3867_s22 + $0x958] sm:$0xff] }
  0x5c   : > { %420 = vst [vmem:[%s3875_s23 + $0x498] sm:$0xff] %v419_v19  ;;  %422 = vst [vmem:[%s3875_s23 + $0x4a0] sm:$0xff] %v421_v20  ;;  %v429_v24 = vld [vmem:[%s3867_s22 + $0x980] sm:$0xff]  ;;  %v431_v25 = vld [vmem:[%s3867_s22 + $0x988] sm:$0xff] }
  0x5d   : > { %424 = vst [vmem:[%s3875_s23 + $0x4a8] sm:$0xff] %v423_v21  ;;  %426 = vst [vmem:[%s3875_s23 + $0x4b0] sm:$0xff] %v425_v22  ;;  %v433_v26 = vld [vmem:[%s3867_s22 + $0x990] sm:$0xff]  ;;  %v435_v27 = vld [vmem:[%s3867_s22 + $0x998] sm:$0xff] }
  0x5e   : > { %428 = vst [vmem:[%s3875_s23 + $0x4b8] sm:$0xff] %v427_v23  ;;  %430 = vst [vmem:[%s3875_s23 + $0x4c0] sm:$0xff] %v429_v24  ;;  %v437_v28 = vld [vmem:[%s3867_s22 + $0x9c0] sm:$0xff]  ;;  %v439_v29 = vld [vmem:[%s3867_s22 + $0x9c8] sm:$0xff] }
  0x5f   : > { %432 = vst [vmem:[%s3875_s23 + $0x4c8] sm:$0xff] %v431_v25  ;;  %434 = vst [vmem:[%s3875_s23 + $0x4d0] sm:$0xff] %v433_v26  ;;  %v441_v30 = vld [vmem:[%s3867_s22 + $0x9d0] sm:$0xff]  ;;  %v443_v31 = vld [vmem:[%s3867_s22 + $0x9d8] sm:$0xff] }
  0x60   : > { %436 = vst [vmem:[%s3875_s23 + $0x4d8] sm:$0xff] %v435_v27  ;;  %438 = vst [vmem:[%s3875_s23 + $0x4e0] sm:$0xff] %v437_v28  ;;  %v445_v32 = vld [vmem:[%s3867_s22 + $0xa00] sm:$0xff]  ;;  %v447_v33 = vld [vmem:[%s3867_s22 + $0xa08] sm:$0xff] }
  0x61   : > { %440 = vst [vmem:[%s3875_s23 + $0x4e8] sm:$0xff] %v439_v29  ;;  %442 = vst [vmem:[%s3875_s23 + $0x4f0] sm:$0xff] %v441_v30  ;;  %v449_v34 = vld [vmem:[%s3867_s22 + $0xa10] sm:$0xff]  ;;  %v451_v35 = vld [vmem:[%s3867_s22 + $0xa18] sm:$0xff] }
  0x62   : > { %444 = vst [vmem:[%s3875_s23 + $0x4f8] sm:$0xff] %v443_v31  ;;  %446 = vst [vmem:[%s3875_s23 + $0x500] sm:$0xff] %v445_v32  ;;  %v453_v36 = vld [vmem:[%s3867_s22 + $0xa40] sm:$0xff]  ;;  %v455_v37 = vld [vmem:[%s3867_s22 + $0xa48] sm:$0xff] }
  0x63   : > { %448 = vst [vmem:[%s3875_s23 + $0x508] sm:$0xff] %v447_v33  ;;  %450 = vst [vmem:[%s3875_s23 + $0x510] sm:$0xff] %v449_v34  ;;  %v457_v38 = vld [vmem:[%s3867_s22 + $0xa50] sm:$0xff]  ;;  %v459_v39 = vld [vmem:[%s3867_s22 + $0xa58] sm:$0xff] }
  0x64   : > { %452 = vst [vmem:[%s3875_s23 + $0x518] sm:$0xff] %v451_v35  ;;  %454 = vst [vmem:[%s3875_s23 + $0x520] sm:$0xff] %v453_v36  ;;  %v461_v40 = vld [vmem:[%s3867_s22 + $0xa80] sm:$0xff]  ;;  %v463_v41 = vld [vmem:[%s3867_s22 + $0xa88] sm:$0xff] }
  0x65   : > { %456 = vst [vmem:[%s3875_s23 + $0x528] sm:$0xff] %v455_v37  ;;  %458 = vst [vmem:[%s3875_s23 + $0x530] sm:$0xff] %v457_v38  ;;  %v465_v42 = vld [vmem:[%s3867_s22 + $0xa90] sm:$0xff]  ;;  %v467_v43 = vld [vmem:[%s3867_s22 + $0xa98] sm:$0xff] }
  0x66   : > { %460 = vst [vmem:[%s3875_s23 + $0x538] sm:$0xff] %v459_v39  ;;  %462 = vst [vmem:[%s3875_s23 + $0x540] sm:$0xff] %v461_v40  ;;  %v469_v44 = vld [vmem:[%s3867_s22 + $0xac0] sm:$0xff]  ;;  %v471_v45 = vld [vmem:[%s3867_s22 + $0xac8] sm:$0xff] }
  0x67   : > { %464 = vst [vmem:[%s3875_s23 + $0x548] sm:$0xff] %v463_v41  ;;  %466 = vst [vmem:[%s3875_s23 + $0x550] sm:$0xff] %v465_v42  ;;  %v473_v46 = vld [vmem:[%s3867_s22 + $0xad0] sm:$0xff]  ;;  %v475_v47 = vld [vmem:[%s3867_s22 + $0xad8] sm:$0xff] }
  0x68   : > { %468 = vst [vmem:[%s3875_s23 + $0x558] sm:$0xff] %v467_v43  ;;  %470 = vst [vmem:[%s3875_s23 + $0x560] sm:$0xff] %v469_v44  ;;  %v477_v48 = vld [vmem:[%s3867_s22 + $0xb00] sm:$0xff]  ;;  %v479_v49 = vld [vmem:[%s3867_s22 + $0xb08] sm:$0xff] }
  0x69   : > { %472 = vst [vmem:[%s3875_s23 + $0x568] sm:$0xff] %v471_v45  ;;  %474 = vst [vmem:[%s3875_s23 + $0x570] sm:$0xff] %v473_v46  ;;  %v481_v50 = vld [vmem:[%s3867_s22 + $0xb10] sm:$0xff]  ;;  %v483_v51 = vld [vmem:[%s3867_s22 + $0xb18] sm:$0xff] }
  0x6a   : > { %476 = vst [vmem:[%s3875_s23 + $0x578] sm:$0xff] %v475_v47  ;;  %478 = vst [vmem:[%s3875_s23 + $0x580] sm:$0xff] %v477_v48  ;;  %v485_v52 = vld [vmem:[%s3867_s22 + $0xb40] sm:$0xff]  ;;  %v487_v53 = vld [vmem:[%s3867_s22 + $0xb48] sm:$0xff] }
  0x6b   : > { %480 = vst [vmem:[%s3875_s23 + $0x588] sm:$0xff] %v479_v49  ;;  %482 = vst [vmem:[%s3875_s23 + $0x590] sm:$0xff] %v481_v50  ;;  %v489_v54 = vld [vmem:[%s3867_s22 + $0xb50] sm:$0xff]  ;;  %v491_v55 = vld [vmem:[%s3867_s22 + $0xb58] sm:$0xff] }
  0x6c   : > { %484 = vst [vmem:[%s3875_s23 + $0x598] sm:$0xff] %v483_v51  ;;  %486 = vst [vmem:[%s3875_s23 + $0x5a0] sm:$0xff] %v485_v52  ;;  %v493_v56 = vld [vmem:[%s3867_s22 + $0xb80] sm:$0xff]  ;;  %v495_v57 = vld [vmem:[%s3867_s22 + $0xb88] sm:$0xff] }
  0x6d   : > { %488 = vst [vmem:[%s3875_s23 + $0x5a8] sm:$0xff] %v487_v53  ;;  %490 = vst [vmem:[%s3875_s23 + $0x5b0] sm:$0xff] %v489_v54  ;;  %v497_v58 = vld [vmem:[%s3867_s22 + $0xb90] sm:$0xff]  ;;  %v499_v59 = vld [vmem:[%s3867_s22 + $0xb98] sm:$0xff] }
  0x6e   : > { %492 = vst [vmem:[%s3875_s23 + $0x5b8] sm:$0xff] %v491_v55  ;;  %494 = vst [vmem:[%s3875_s23 + $0x5c0] sm:$0xff] %v493_v56  ;;  %v501_v60 = vld [vmem:[%s3867_s22 + $0xbc0] sm:$0xff]  ;;  %v503_v61 = vld [vmem:[%s3867_s22 + $0xbc8] sm:$0xff] }
  0x6f   : > { %496 = vst [vmem:[%s3875_s23 + $0x5c8] sm:$0xff] %v495_v57  ;;  %498 = vst [vmem:[%s3875_s23 + $0x5d0] sm:$0xff] %v497_v58  ;;  %v505_v62 = vld [vmem:[%s3867_s22 + $0xbd0] sm:$0xff]  ;;  %v507_v63 = vld [vmem:[%s3867_s22 + $0xbd8] sm:$0xff] }
  0x70   : > { %500 = vst [vmem:[%s3875_s23 + $0x5d8] sm:$0xff] %v499_v59  ;;  %502 = vst [vmem:[%s3875_s23 + $0x5e0] sm:$0xff] %v501_v60  ;;  %v509_v0 = vld [vmem:[%s3867_s22 + $0xc00] sm:$0xff]  ;;  %v511_v1 = vld [vmem:[%s3867_s22 + $0xc08] sm:$0xff] }
  0x71   : > { %504 = vst [vmem:[%s3875_s23 + $0x5e8] sm:$0xff] %v503_v61  ;;  %506 = vst [vmem:[%s3875_s23 + $0x5f0] sm:$0xff] %v505_v62  ;;  %v513_v2 = vld [vmem:[%s3867_s22 + $0xc10] sm:$0xff]  ;;  %v515_v3 = vld [vmem:[%s3867_s22 + $0xc18] sm:$0xff] }
  0x72   : > { %508 = vst [vmem:[%s3875_s23 + $0x5f8] sm:$0xff] %v507_v63  ;;  %510 = vst [vmem:[%s3875_s23 + $0x600] sm:$0xff] %v509_v0  ;;  %v517_v4 = vld [vmem:[%s3867_s22 + $0xc40] sm:$0xff]  ;;  %v519_v5 = vld [vmem:[%s3867_s22 + $0xc48] sm:$0xff] }
  0x73   : > { %512 = vst [vmem:[%s3875_s23 + $0x608] sm:$0xff] %v511_v1  ;;  %514 = vst [vmem:[%s3875_s23 + $0x610] sm:$0xff] %v513_v2  ;;  %v521_v6 = vld [vmem:[%s3867_s22 + $0xc50] sm:$0xff]  ;;  %v523_v7 = vld [vmem:[%s3867_s22 + $0xc58] sm:$0xff] }
  0x74   : > { %516 = vst [vmem:[%s3875_s23 + $0x618] sm:$0xff] %v515_v3  ;;  %518 = vst [vmem:[%s3875_s23 + $0x620] sm:$0xff] %v517_v4  ;;  %v525_v8 = vld [vmem:[%s3867_s22 + $0xc80] sm:$0xff]  ;;  %v527_v9 = vld [vmem:[%s3867_s22 + $0xc88] sm:$0xff] }
  0x75   : > { %520 = vst [vmem:[%s3875_s23 + $0x628] sm:$0xff] %v519_v5  ;;  %522 = vst [vmem:[%s3875_s23 + $0x630] sm:$0xff] %v521_v6  ;;  %v529_v10 = vld [vmem:[%s3867_s22 + $0xc90] sm:$0xff]  ;;  %v531_v11 = vld [vmem:[%s3867_s22 + $0xc98] sm:$0xff] }
  0x76   : > { %524 = vst [vmem:[%s3875_s23 + $0x638] sm:$0xff] %v523_v7  ;;  %526 = vst [vmem:[%s3875_s23 + $0x640] sm:$0xff] %v525_v8  ;;  %v533_v12 = vld [vmem:[%s3867_s22 + $0xcc0] sm:$0xff]  ;;  %v535_v13 = vld [vmem:[%s3867_s22 + $0xcc8] sm:$0xff] }
  0x77   : > { %528 = vst [vmem:[%s3875_s23 + $0x648] sm:$0xff] %v527_v9  ;;  %530 = vst [vmem:[%s3875_s23 + $0x650] sm:$0xff] %v529_v10  ;;  %v537_v14 = vld [vmem:[%s3867_s22 + $0xcd0] sm:$0xff]  ;;  %v539_v15 = vld [vmem:[%s3867_s22 + $0xcd8] sm:$0xff] }
  0x78   : > { %532 = vst [vmem:[%s3875_s23 + $0x658] sm:$0xff] %v531_v11  ;;  %534 = vst [vmem:[%s3875_s23 + $0x660] sm:$0xff] %v533_v12  ;;  %v541_v16 = vld [vmem:[%s3867_s22 + $0xd00] sm:$0xff]  ;;  %v543_v17 = vld [vmem:[%s3867_s22 + $0xd08] sm:$0xff] }
  0x79   : > { %536 = vst [vmem:[%s3875_s23 + $0x668] sm:$0xff] %v535_v13  ;;  %538 = vst [vmem:[%s3875_s23 + $0x670] sm:$0xff] %v537_v14  ;;  %v545_v18 = vld [vmem:[%s3867_s22 + $0xd10] sm:$0xff]  ;;  %v547_v19 = vld [vmem:[%s3867_s22 + $0xd18] sm:$0xff] }
  0x7a   : > { %540 = vst [vmem:[%s3875_s23 + $0x678] sm:$0xff] %v539_v15  ;;  %542 = vst [vmem:[%s3875_s23 + $0x680] sm:$0xff] %v541_v16  ;;  %v549_v20 = vld [vmem:[%s3867_s22 + $0xd40] sm:$0xff]  ;;  %v551_v21 = vld [vmem:[%s3867_s22 + $0xd48] sm:$0xff] }
  0x7b   : > { %544 = vst [vmem:[%s3875_s23 + $0x688] sm:$0xff] %v543_v17  ;;  %546 = vst [vmem:[%s3875_s23 + $0x690] sm:$0xff] %v545_v18  ;;  %v553_v22 = vld [vmem:[%s3867_s22 + $0xd50] sm:$0xff]  ;;  %v555_v23 = vld [vmem:[%s3867_s22 + $0xd58] sm:$0xff] }
  0x7c   : > { %548 = vst [vmem:[%s3875_s23 + $0x698] sm:$0xff] %v547_v19  ;;  %550 = vst [vmem:[%s3875_s23 + $0x6a0] sm:$0xff] %v549_v20  ;;  %v557_v24 = vld [vmem:[%s3867_s22 + $0xd80] sm:$0xff]  ;;  %v559_v25 = vld [vmem:[%s3867_s22 + $0xd88] sm:$0xff] }
  0x7d   : > { %552 = vst [vmem:[%s3875_s23 + $0x6a8] sm:$0xff] %v551_v21  ;;  %554 = vst [vmem:[%s3875_s23 + $0x6b0] sm:$0xff] %v553_v22  ;;  %v561_v26 = vld [vmem:[%s3867_s22 + $0xd90] sm:$0xff]  ;;  %v563_v27 = vld [vmem:[%s3867_s22 + $0xd98] sm:$0xff] }
  0x7e   : > { %556 = vst [vmem:[%s3875_s23 + $0x6b8] sm:$0xff] %v555_v23  ;;  %558 = vst [vmem:[%s3875_s23 + $0x6c0] sm:$0xff] %v557_v24  ;;  %v565_v28 = vld [vmem:[%s3867_s22 + $0xdc0] sm:$0xff]  ;;  %v567_v29 = vld [vmem:[%s3867_s22 + $0xdc8] sm:$0xff] }
  0x7f   : > { %560 = vst [vmem:[%s3875_s23 + $0x6c8] sm:$0xff] %v559_v25  ;;  %562 = vst [vmem:[%s3875_s23 + $0x6d0] sm:$0xff] %v561_v26  ;;  %v569_v30 = vld [vmem:[%s3867_s22 + $0xdd0] sm:$0xff]  ;;  %v571_v31 = vld [vmem:[%s3867_s22 + $0xdd8] sm:$0xff] }
  0x80   : > { %564 = vst [vmem:[%s3875_s23 + $0x6d8] sm:$0xff] %v563_v27  ;;  %566 = vst [vmem:[%s3875_s23 + $0x6e0] sm:$0xff] %v565_v28  ;;  %v573_v32 = vld [vmem:[%s3867_s22 + $0xe00] sm:$0xff]  ;;  %v575_v33 = vld [vmem:[%s3867_s22 + $0xe08] sm:$0xff] }
  0x81   : > { %568 = vst [vmem:[%s3875_s23 + $0x6e8] sm:$0xff] %v567_v29  ;;  %570 = vst [vmem:[%s3875_s23 + $0x6f0] sm:$0xff] %v569_v30  ;;  %v577_v34 = vld [vmem:[%s3867_s22 + $0xe10] sm:$0xff]  ;;  %v579_v35 = vld [vmem:[%s3867_s22 + $0xe18] sm:$0xff] }
  0x82   : > { %572 = vst [vmem:[%s3875_s23 + $0x6f8] sm:$0xff] %v571_v31  ;;  %574 = vst [vmem:[%s3875_s23 + $0x700] sm:$0xff] %v573_v32  ;;  %v581_v36 = vld [vmem:[%s3867_s22 + $0xe40] sm:$0xff]  ;;  %v583_v37 = vld [vmem:[%s3867_s22 + $0xe48] sm:$0xff] }
  0x83   : > { %576 = vst [vmem:[%s3875_s23 + $0x708] sm:$0xff] %v575_v33  ;;  %578 = vst [vmem:[%s3875_s23 + $0x710] sm:$0xff] %v577_v34  ;;  %v585_v38 = vld [vmem:[%s3867_s22 + $0xe50] sm:$0xff]  ;;  %v587_v39 = vld [vmem:[%s3867_s22 + $0xe58] sm:$0xff] }
  0x84   : > { %580 = vst [vmem:[%s3875_s23 + $0x718] sm:$0xff] %v579_v35  ;;  %582 = vst [vmem:[%s3875_s23 + $0x720] sm:$0xff] %v581_v36  ;;  %v589_v40 = vld [vmem:[%s3867_s22 + $0xe80] sm:$0xff]  ;;  %v591_v41 = vld [vmem:[%s3867_s22 + $0xe88] sm:$0xff] }
  0x85   : > { %584 = vst [vmem:[%s3875_s23 + $0x728] sm:$0xff] %v583_v37  ;;  %586 = vst [vmem:[%s3875_s23 + $0x730] sm:$0xff] %v585_v38  ;;  %v593_v42 = vld [vmem:[%s3867_s22 + $0xe90] sm:$0xff]  ;;  %v595_v43 = vld [vmem:[%s3867_s22 + $0xe98] sm:$0xff] }
  0x86   : > { %588 = vst [vmem:[%s3875_s23 + $0x738] sm:$0xff] %v587_v39  ;;  %590 = vst [vmem:[%s3875_s23 + $0x740] sm:$0xff] %v589_v40  ;;  %v597_v44 = vld [vmem:[%s3867_s22 + $0xec0] sm:$0xff]  ;;  %v599_v45 = vld [vmem:[%s3867_s22 + $0xec8] sm:$0xff] }
  0x87   : > { %592 = vst [vmem:[%s3875_s23 + $0x748] sm:$0xff] %v591_v41  ;;  %594 = vst [vmem:[%s3875_s23 + $0x750] sm:$0xff] %v593_v42  ;;  %v601_v46 = vld [vmem:[%s3867_s22 + $0xed0] sm:$0xff]  ;;  %v603_v47 = vld [vmem:[%s3867_s22 + $0xed8] sm:$0xff] }
  0x88   : > { %596 = vst [vmem:[%s3875_s23 + $0x758] sm:$0xff] %v595_v43  ;;  %598 = vst [vmem:[%s3875_s23 + $0x760] sm:$0xff] %v597_v44  ;;  %v605_v48 = vld [vmem:[%s3867_s22 + $0xf00] sm:$0xff]  ;;  %v607_v49 = vld [vmem:[%s3867_s22 + $0xf08] sm:$0xff] }
  0x89   : > { %600 = vst [vmem:[%s3875_s23 + $0x768] sm:$0xff] %v599_v45  ;;  %602 = vst [vmem:[%s3875_s23 + $0x770] sm:$0xff] %v601_v46  ;;  %v609_v50 = vld [vmem:[%s3867_s22 + $0xf10] sm:$0xff]  ;;  %v611_v51 = vld [vmem:[%s3867_s22 + $0xf18] sm:$0xff] }
  0x8a   : > { %604 = vst [vmem:[%s3875_s23 + $0x778] sm:$0xff] %v603_v47  ;;  %606 = vst [vmem:[%s3875_s23 + $0x780] sm:$0xff] %v605_v48  ;;  %v613_v52 = vld [vmem:[%s3867_s22 + $0xf40] sm:$0xff]  ;;  %v615_v53 = vld [vmem:[%s3867_s22 + $0xf48] sm:$0xff] }
  0x8b   : > { %608 = vst [vmem:[%s3875_s23 + $0x788] sm:$0xff] %v607_v49  ;;  %610 = vst [vmem:[%s3875_s23 + $0x790] sm:$0xff] %v609_v50  ;;  %v617_v54 = vld [vmem:[%s3867_s22 + $0xf50] sm:$0xff]  ;;  %v619_v55 = vld [vmem:[%s3867_s22 + $0xf58] sm:$0xff] }
  0x8c   : > { %612 = vst [vmem:[%s3875_s23 + $0x798] sm:$0xff] %v611_v51  ;;  %614 = vst [vmem:[%s3875_s23 + $0x7a0] sm:$0xff] %v613_v52  ;;  %v621_v56 = vld [vmem:[%s3867_s22 + $0xf80] sm:$0xff]  ;;  %v623_v57 = vld [vmem:[%s3867_s22 + $0xf88] sm:$0xff] }
  0x8d   : > { %616 = vst [vmem:[%s3875_s23 + $0x7a8] sm:$0xff] %v615_v53  ;;  %618 = vst [vmem:[%s3875_s23 + $0x7b0] sm:$0xff] %v617_v54  ;;  %v625_v58 = vld [vmem:[%s3867_s22 + $0xf90] sm:$0xff]  ;;  %v627_v59 = vld [vmem:[%s3867_s22 + $0xf98] sm:$0xff] }
  0x8e   : > { %620 = vst [vmem:[%s3875_s23 + $0x7b8] sm:$0xff] %v619_v55  ;;  %622 = vst [vmem:[%s3875_s23 + $0x7c0] sm:$0xff] %v621_v56  ;;  %v629_v60 = vld [vmem:[%s3867_s22 + $0xfc0] sm:$0xff]  ;;  %v631_v61 = vld [vmem:[%s3867_s22 + $0xfc8] sm:$0xff] }
  0x8f   : > { %624 = vst [vmem:[%s3875_s23 + $0x7c8] sm:$0xff] %v623_v57  ;;  %626 = vst [vmem:[%s3875_s23 + $0x7d0] sm:$0xff] %v625_v58  ;;  %v633_v62 = vld [vmem:[%s3867_s22 + $0xfd0] sm:$0xff]  ;;  %v635_v63 = vld [vmem:[%s3867_s22 + $0xfd8] sm:$0xff] }
  0x90   : > { %628 = vst [vmem:[%s3875_s23 + $0x7d8] sm:$0xff] %v627_v59  ;;  %630 = vst [vmem:[%s3875_s23 + $0x7e0] sm:$0xff] %v629_v60  ;;  %v637_v0 = vld [vmem:[%s3867_s22 + $0x1000] sm:$0xff]  ;;  %v639_v1 = vld [vmem:[%s3867_s22 + $0x1008] sm:$0xff] }
  0x91   : > { %632 = vst [vmem:[%s3875_s23 + $0x7e8] sm:$0xff] %v631_v61  ;;  %634 = vst [vmem:[%s3875_s23 + $0x7f0] sm:$0xff] %v633_v62  ;;  %v641_v2 = vld [vmem:[%s3867_s22 + $0x1010] sm:$0xff]  ;;  %v643_v3 = vld [vmem:[%s3867_s22 + $0x1018] sm:$0xff] }
  0x92   : > { %636 = vst [vmem:[%s3875_s23 + $0x7f8] sm:$0xff] %v635_v63  ;;  %638 = vst [vmem:[%s3875_s23 + $0x800] sm:$0xff] %v637_v0  ;;  %v645_v4 = vld [vmem:[%s3867_s22 + $0x1040] sm:$0xff]  ;;  %v647_v5 = vld [vmem:[%s3867_s22 + $0x1048] sm:$0xff] }
  0x93   : > { %640 = vst [vmem:[%s3875_s23 + $0x808] sm:$0xff] %v639_v1  ;;  %642 = vst [vmem:[%s3875_s23 + $0x810] sm:$0xff] %v641_v2  ;;  %v649_v6 = vld [vmem:[%s3867_s22 + $0x1050] sm:$0xff]  ;;  %v651_v7 = vld [vmem:[%s3867_s22 + $0x1058] sm:$0xff] }
  0x94   : > { %644 = vst [vmem:[%s3875_s23 + $0x818] sm:$0xff] %v643_v3  ;;  %646 = vst [vmem:[%s3875_s23 + $0x820] sm:$0xff] %v645_v4  ;;  %v653_v8 = vld [vmem:[%s3867_s22 + $0x1080] sm:$0xff]  ;;  %v655_v9 = vld [vmem:[%s3867_s22 + $0x1088] sm:$0xff] }
  0x95   : > { %648 = vst [vmem:[%s3875_s23 + $0x828] sm:$0xff] %v647_v5  ;;  %650 = vst [vmem:[%s3875_s23 + $0x830] sm:$0xff] %v649_v6  ;;  %v657_v10 = vld [vmem:[%s3867_s22 + $0x1090] sm:$0xff]  ;;  %v659_v11 = vld [vmem:[%s3867_s22 + $0x1098] sm:$0xff] }
  0x96   : > { %652 = vst [vmem:[%s3875_s23 + $0x838] sm:$0xff] %v651_v7  ;;  %654 = vst [vmem:[%s3875_s23 + $0x840] sm:$0xff] %v653_v8  ;;  %v661_v12 = vld [vmem:[%s3867_s22 + $0x10c0] sm:$0xff]  ;;  %v663_v13 = vld [vmem:[%s3867_s22 + $0x10c8] sm:$0xff] }
  0x97   : > { %656 = vst [vmem:[%s3875_s23 + $0x848] sm:$0xff] %v655_v9  ;;  %658 = vst [vmem:[%s3875_s23 + $0x850] sm:$0xff] %v657_v10  ;;  %v665_v14 = vld [vmem:[%s3867_s22 + $0x10d0] sm:$0xff]  ;;  %v667_v15 = vld [vmem:[%s3867_s22 + $0x10d8] sm:$0xff] }
  0x98   : > { %660 = vst [vmem:[%s3875_s23 + $0x858] sm:$0xff] %v659_v11  ;;  %662 = vst [vmem:[%s3875_s23 + $0x860] sm:$0xff] %v661_v12  ;;  %v669_v16 = vld [vmem:[%s3867_s22 + $0x1100] sm:$0xff]  ;;  %v671_v17 = vld [vmem:[%s3867_s22 + $0x1108] sm:$0xff] }
  0x99   : > { %664 = vst [vmem:[%s3875_s23 + $0x868] sm:$0xff] %v663_v13  ;;  %666 = vst [vmem:[%s3875_s23 + $0x870] sm:$0xff] %v665_v14  ;;  %v673_v18 = vld [vmem:[%s3867_s22 + $0x1110] sm:$0xff]  ;;  %v675_v19 = vld [vmem:[%s3867_s22 + $0x1118] sm:$0xff] }
  0x9a   : > { %668 = vst [vmem:[%s3875_s23 + $0x878] sm:$0xff] %v667_v15  ;;  %670 = vst [vmem:[%s3875_s23 + $0x880] sm:$0xff] %v669_v16  ;;  %v677_v20 = vld [vmem:[%s3867_s22 + $0x1140] sm:$0xff]  ;;  %v679_v21 = vld [vmem:[%s3867_s22 + $0x1148] sm:$0xff] }
  0x9b   : > { %672 = vst [vmem:[%s3875_s23 + $0x888] sm:$0xff] %v671_v17  ;;  %674 = vst [vmem:[%s3875_s23 + $0x890] sm:$0xff] %v673_v18  ;;  %v681_v22 = vld [vmem:[%s3867_s22 + $0x1150] sm:$0xff]  ;;  %v683_v23 = vld [vmem:[%s3867_s22 + $0x1158] sm:$0xff] }
  0x9c   : > { %676 = vst [vmem:[%s3875_s23 + $0x898] sm:$0xff] %v675_v19  ;;  %678 = vst [vmem:[%s3875_s23 + $0x8a0] sm:$0xff] %v677_v20  ;;  %v685_v24 = vld [vmem:[%s3867_s22 + $0x1180] sm:$0xff]  ;;  %v687_v25 = vld [vmem:[%s3867_s22 + $0x1188] sm:$0xff] }
  0x9d   : > { %680 = vst [vmem:[%s3875_s23 + $0x8a8] sm:$0xff] %v679_v21  ;;  %682 = vst [vmem:[%s3875_s23 + $0x8b0] sm:$0xff] %v681_v22  ;;  %v689_v26 = vld [vmem:[%s3867_s22 + $0x1190] sm:$0xff]  ;;  %v691_v27 = vld [vmem:[%s3867_s22 + $0x1198] sm:$0xff] }
  0x9e   : > { %684 = vst [vmem:[%s3875_s23 + $0x8b8] sm:$0xff] %v683_v23  ;;  %686 = vst [vmem:[%s3875_s23 + $0x8c0] sm:$0xff] %v685_v24  ;;  %v693_v28 = vld [vmem:[%s3867_s22 + $0x11c0] sm:$0xff]  ;;  %v695_v29 = vld [vmem:[%s3867_s22 + $0x11c8] sm:$0xff] }
  0x9f   : > { %688 = vst [vmem:[%s3875_s23 + $0x8c8] sm:$0xff] %v687_v25  ;;  %690 = vst [vmem:[%s3875_s23 + $0x8d0] sm:$0xff] %v689_v26  ;;  %v697_v30 = vld [vmem:[%s3867_s22 + $0x11d0] sm:$0xff]  ;;  %v699_v31 = vld [vmem:[%s3867_s22 + $0x11d8] sm:$0xff] }
  0xa0   : > { %692 = vst [vmem:[%s3875_s23 + $0x8d8] sm:$0xff] %v691_v27  ;;  %694 = vst [vmem:[%s3875_s23 + $0x8e0] sm:$0xff] %v693_v28  ;;  %v701_v32 = vld [vmem:[%s3867_s22 + $0x1200] sm:$0xff]  ;;  %v703_v33 = vld [vmem:[%s3867_s22 + $0x1208] sm:$0xff] }
  0xa1   : > { %696 = vst [vmem:[%s3875_s23 + $0x8e8] sm:$0xff] %v695_v29  ;;  %698 = vst [vmem:[%s3875_s23 + $0x8f0] sm:$0xff] %v697_v30  ;;  %v705_v34 = vld [vmem:[%s3867_s22 + $0x1210] sm:$0xff]  ;;  %v707_v35 = vld [vmem:[%s3867_s22 + $0x1218] sm:$0xff] }
  0xa2   : > { %700 = vst [vmem:[%s3875_s23 + $0x8f8] sm:$0xff] %v699_v31  ;;  %702 = vst [vmem:[%s3875_s23 + $0x900] sm:$0xff] %v701_v32  ;;  %v709_v36 = vld [vmem:[%s3867_s22 + $0x1240] sm:$0xff]  ;;  %v711_v37 = vld [vmem:[%s3867_s22 + $0x1248] sm:$0xff] }
  0xa3   : > { %704 = vst [vmem:[%s3875_s23 + $0x908] sm:$0xff] %v703_v33  ;;  %706 = vst [vmem:[%s3875_s23 + $0x910] sm:$0xff] %v705_v34  ;;  %v713_v38 = vld [vmem:[%s3867_s22 + $0x1250] sm:$0xff]  ;;  %v715_v39 = vld [vmem:[%s3867_s22 + $0x1258] sm:$0xff] }
  0xa4   : > { %708 = vst [vmem:[%s3875_s23 + $0x918] sm:$0xff] %v707_v35  ;;  %710 = vst [vmem:[%s3875_s23 + $0x920] sm:$0xff] %v709_v36  ;;  %v717_v40 = vld [vmem:[%s3867_s22 + $0x1280] sm:$0xff]  ;;  %v719_v41 = vld [vmem:[%s3867_s22 + $0x1288] sm:$0xff] }
  0xa5   : > { %712 = vst [vmem:[%s3875_s23 + $0x928] sm:$0xff] %v711_v37  ;;  %714 = vst [vmem:[%s3875_s23 + $0x930] sm:$0xff] %v713_v38  ;;  %v721_v42 = vld [vmem:[%s3867_s22 + $0x1290] sm:$0xff]  ;;  %v723_v43 = vld [vmem:[%s3867_s22 + $0x1298] sm:$0xff] }
  0xa6   : > { %716 = vst [vmem:[%s3875_s23 + $0x938] sm:$0xff] %v715_v39  ;;  %718 = vst [vmem:[%s3875_s23 + $0x940] sm:$0xff] %v717_v40  ;;  %v725_v44 = vld [vmem:[%s3867_s22 + $0x12c0] sm:$0xff]  ;;  %v727_v45 = vld [vmem:[%s3867_s22 + $0x12c8] sm:$0xff] }
  0xa7   : > { %720 = vst [vmem:[%s3875_s23 + $0x948] sm:$0xff] %v719_v41  ;;  %722 = vst [vmem:[%s3875_s23 + $0x950] sm:$0xff] %v721_v42  ;;  %v729_v46 = vld [vmem:[%s3867_s22 + $0x12d0] sm:$0xff]  ;;  %v731_v47 = vld [vmem:[%s3867_s22 + $0x12d8] sm:$0xff] }
  0xa8   : > { %724 = vst [vmem:[%s3875_s23 + $0x958] sm:$0xff] %v723_v43  ;;  %726 = vst [vmem:[%s3875_s23 + $0x960] sm:$0xff] %v725_v44  ;;  %v733_v48 = vld [vmem:[%s3867_s22 + $0x1300] sm:$0xff]  ;;  %v735_v49 = vld [vmem:[%s3867_s22 + $0x1308] sm:$0xff] }
  0xa9   : > { %728 = vst [vmem:[%s3875_s23 + $0x968] sm:$0xff] %v727_v45  ;;  %730 = vst [vmem:[%s3875_s23 + $0x970] sm:$0xff] %v729_v46  ;;  %v737_v50 = vld [vmem:[%s3867_s22 + $0x1310] sm:$0xff]  ;;  %v739_v51 = vld [vmem:[%s3867_s22 + $0x1318] sm:$0xff] }
  0xaa   : > { %732 = vst [vmem:[%s3875_s23 + $0x978] sm:$0xff] %v731_v47  ;;  %734 = vst [vmem:[%s3875_s23 + $0x980] sm:$0xff] %v733_v48  ;;  %v741_v52 = vld [vmem:[%s3867_s22 + $0x1340] sm:$0xff]  ;;  %v743_v53 = vld [vmem:[%s3867_s22 + $0x1348] sm:$0xff] }
  0xab   : > { %736 = vst [vmem:[%s3875_s23 + $0x988] sm:$0xff] %v735_v49  ;;  %738 = vst [vmem:[%s3875_s23 + $0x990] sm:$0xff] %v737_v50  ;;  %v745_v54 = vld [vmem:[%s3867_s22 + $0x1350] sm:$0xff]  ;;  %v747_v55 = vld [vmem:[%s3867_s22 + $0x1358] sm:$0xff] }
  0xac   : > { %740 = vst [vmem:[%s3875_s23 + $0x998] sm:$0xff] %v739_v51  ;;  %742 = vst [vmem:[%s3875_s23 + $0x9a0] sm:$0xff] %v741_v52  ;;  %v749_v56 = vld [vmem:[%s3867_s22 + $0x1380] sm:$0xff]  ;;  %v751_v57 = vld [vmem:[%s3867_s22 + $0x1388] sm:$0xff] }
  0xad   : > { %744 = vst [vmem:[%s3875_s23 + $0x9a8] sm:$0xff] %v743_v53  ;;  %746 = vst [vmem:[%s3875_s23 + $0x9b0] sm:$0xff] %v745_v54  ;;  %v753_v58 = vld [vmem:[%s3867_s22 + $0x1390] sm:$0xff]  ;;  %v755_v59 = vld [vmem:[%s3867_s22 + $0x1398] sm:$0xff] }
  0xae   : > { %748 = vst [vmem:[%s3875_s23 + $0x9b8] sm:$0xff] %v747_v55  ;;  %750 = vst [vmem:[%s3875_s23 + $0x9c0] sm:$0xff] %v749_v56  ;;  %v757_v60 = vld [vmem:[%s3867_s22 + $0x13c0] sm:$0xff]  ;;  %v759_v61 = vld [vmem:[%s3867_s22 + $0x13c8] sm:$0xff] }
  0xaf   : > { %752 = vst [vmem:[%s3875_s23 + $0x9c8] sm:$0xff] %v751_v57  ;;  %754 = vst [vmem:[%s3875_s23 + $0x9d0] sm:$0xff] %v753_v58  ;;  %v761_v62 = vld [vmem:[%s3867_s22 + $0x13d0] sm:$0xff]  ;;  %v763_v63 = vld [vmem:[%s3867_s22 + $0x13d8] sm:$0xff] }
  0xb0   : > { %756 = vst [vmem:[%s3875_s23 + $0x9d8] sm:$0xff] %v755_v59  ;;  %758 = vst [vmem:[%s3875_s23 + $0x9e0] sm:$0xff] %v757_v60 }
  0xb1   : > { %760 = vst [vmem:[%s3875_s23 + $0x9e8] sm:$0xff] %v759_v61  ;;  %762 = vst [vmem:[%s3875_s23 + $0x9f0] sm:$0xff] %v761_v62 }
  0xb2   : > { %764 = vst [vmem:[%s3875_s23 + $0x9f8] sm:$0xff] %v763_v63 }
  0xb3 PF: > { %p3390_p5 = scmp.ge.s32.totalorder %s3814_s11, 1  ;;  %p769_p6 = scmp.lt.s32.totalorder %s3814_s11, 3 }
  0xb5   : > { %p770_p7 = pnand %p3390_p5, %p769_p6 }
  0xb6   : > { %s776_s24 = sand.u32 (!%p770_p7), 1, %s3806_s9   ;;  %v1129_v0 = vlaneseq (!%p770_p7)  ;;  %v3816_v1 = vmov (!%p770_p7), 1966171168   ;;  %v4517_v4 = vld [vmem:[%s4915_s0] sm:$0x1f] (!%p770_p7)  ;;  %s3391_s29 = sshll.u32 (!%p770_p7), %s3384_s12, 3 }
  0xb7   : > { %773 = sbr.rel (%p770_p7) target bundleno = 748 (0x2ec), region = 47  ;;  %v1127_v2 = vunpack.c.l.s4 (!%p770_p7), %v3816_v1  ;;  %p798_p8 = scmp.lt.s32.totalorder (!%p770_p7), %s3391_s29, 15 }
  0xb8   : > { %s3748_s25 = smul.u32 (!%p770_p7), 2560, %s776_s24  ;;  %v1130_v3 = vshrl.u32 (!%p770_p7), %v1129_v0, 7 }
  0xb9   : > { %v1128_v5 = vunpack.c.0.s8 (!%p770_p7), %v1127_v2 }
  0xba   : > { %s4519_s28 = scalar_lea.vmem (!%p770_p7), [#allocation2], %s3748_s25 }
  0xbb   : > { %v804_v6 = vld [vmem:[%s4519_s28] sm:$0xff] (!%p770_p7)  ;;  %v805_v8 = vld [vmem:[%s4519_s28 + $0x8] sm:$0xff] (!%p770_p7)  ;;  %v4527_v14 = vsub.s32 (!%p770_p7), %v1128_v5, %v1130_v3 }
  0xbc   : > { %v808_v7 = vld [vmem:[%s4519_s28 + $0x20] sm:$0xff] (!%p770_p7)  ;;  %v809_v10 = vld [vmem:[%s4519_s28 + $0x28] sm:$0xff] (!%p770_p7) }
  0xbd   : > { %v3393_v9 = vcombine.high (!%p770_p7), %v804_v6, %v808_v7  ;;  %v3392_v11 = vcombine.low (!%p770_p7), %v804_v6, %v808_v7  ;;  %v812_v12 = vld [vmem:[%s4519_s28 + $0x40] sm:$0xff] (!%p770_p7)  ;;  %v3395_v15 = vcombine.high (!%p770_p7), %v805_v8, %v809_v10  ;;  %v3394_v16 = vcombine.low (!%p770_p7), %v805_v8, %v809_v10  ;;  %v813_v18 = vld [vmem:[%s4519_s28 + $0x48] sm:$0xff] (!%p770_p7) }
  0xbe   : > { %v816_v13 = vld [vmem:[%s4519_s28 + $0x60] sm:$0xff]  ;;  %v817_v19 = vld [vmem:[%s4519_s28 + $0x68] sm:$0xff]  ;;  %v4537_v25 = vrot.slane %v4517_v4, %v4527_v14  ;;  %s4922_s29 = smov (!%p798_p8, %s3391_s29), 15 }
  0xbf   : > { %v3401_v17 = vcombine.high %v812_v12, %v816_v13  ;;  %v820_v20 = vld [vmem:[%s4519_s28 + $0x80] sm:$0xff]  ;;  %2769 = vmatprep.subr.bf16.mxu0 %v3393_v9  ;;  %v3403_v21 = vcombine.high %v813_v18, %v817_v19  ;;  %v821_v23 = vld [vmem:[%s4519_s28 + $0x88] sm:$0xff]  ;;  %2892 = vmatprep.subr.bf16.mxu1 %v3395_v15  ;;  %v3400_v26 = vcombine.low %v812_v12, %v816_v13  ;;  %s800_s4 = scalar_lea.vmem %s4917_s2, %s4922_s29 }
  0xc0   : > { %v824_v22 = vld [vmem:[%s4519_s28 + $0xa0] sm:$0xff]  ;;  %v825_v24 = vld [vmem:[%s4519_s28 + $0xa8] sm:$0xff]  ;;  %2770 = vmatpush1.bf16.msra.mxu0 %v3392_v11  ;;  %2893 = vmatpush1.bf16.msra.mxu1 %v3394_v16  ;;  %v3402_v27 = vcombine.low %v813_v18, %v817_v19  ;;  %v1140_v34 = vcombine.high %v4537_v25, %v4537_v25 }
  0xc1   : > { %2771 = vmatprep.subr.bf16.mxu0 %v3401_v17  ;;  %v3409_v28 = vcombine.high %v820_v20, %v824_v22  ;;  %2894 = vmatprep.subr.bf16.mxu1 %v3403_v21  ;;  %v3411_v29 = vcombine.high %v821_v23, %v825_v24  ;;  %v828_v30 = vld [vmem:[%s4519_s28 + $0xc0] sm:$0xff]  ;;  %v829_v32 = vld [vmem:[%s4519_s28 + $0xc8] sm:$0xff]  ;;  %v3408_v35 = vcombine.low %v820_v20, %v824_v22 }
  0xc2   : > { %v832_v31 = vld [vmem:[%s4519_s28 + $0xe0] sm:$0xff]  ;;  %v833_v33 = vld [vmem:[%s4519_s28 + $0xe8] sm:$0xff]  ;;  %v3410_v36 = vcombine.low %v821_v23, %v825_v24  ;;  %v4546_v38 = vrot.slane %v1140_v34, %v4527_v14 }
  0xc3   : > { %v3417_v37 = vcombine.high %v828_v30, %v832_v31  ;;  %v3419_v39 = vcombine.high %v829_v32, %v833_v33  ;;  %v836_v40 = vld [vmem:[%s4519_s28 + $0x100] sm:$0xff]  ;;  %v837_v42 = vld [vmem:[%s4519_s28 + $0x108] sm:$0xff]  ;;  %v3416_v44 = vcombine.low %v828_v30, %v832_v31  ;;  %v3418_v45 = vcombine.low %v829_v32, %v833_v33 }
  0xc4   : > { %2772 = vmatpush1.bf16.msra.mxu0 %v3400_v26  ;;  %2895 = vmatpush1.bf16.msra.mxu1 %v3402_v27  ;;  %v840_v41 = vld [vmem:[%s4519_s28 + $0x120] sm:$0xff]  ;;  %v841_v43 = vld [vmem:[%s4519_s28 + $0x128] sm:$0xff] }
  0xc5   : > { %2773 = vmatprep.subr.bf16.mxu0 %v3409_v28  ;;  %2896 = vmatprep.subr.bf16.mxu1 %v3411_v29  ;;  %v3425_v46 = vcombine.high %v836_v40, %v840_v41  ;;  %v3427_v47 = vcombine.high %v837_v42, %v841_v43  ;;  %v844_v48 = vld [vmem:[%s4519_s28 + $0x140] sm:$0xff]  ;;  %v845_v50 = vld [vmem:[%s4519_s28 + $0x148] sm:$0xff]  ;;  %v3424_v52 = vcombine.low %v836_v40, %v840_v41 }
  0xc6   : > { %2801 = vmatprep.mubr.bf16.mxu0 %v4546_v38  ;;  %2924 = vmatprep.mubr.bf16.mxu1 %v4546_v38  ;;  %v848_v49 = vld [vmem:[%s4519_s28 + $0x160] sm:$0xff]  ;;  %v849_v51 = vld [vmem:[%s4519_s28 + $0x168] sm:$0xff]  ;;  %v3426_v53 = vcombine.low %v837_v42, %v841_v43 }
  0xc7   : > { %v3433_v54 = vcombine.high %v844_v48, %v848_v49  ;;  %v3435_v55 = vcombine.high %v845_v50, %v849_v51  ;;  %v852_v56 = vld [vmem:[%s4519_s28 + $0x180] sm:$0xff]  ;;  %v853_v58 = vld [vmem:[%s4519_s28 + $0x188] sm:$0xff]  ;;  %v3432_v60 = vcombine.low %v844_v48, %v848_v49  ;;  %v3434_v61 = vcombine.low %v845_v50, %v849_v51 }
  0xc8   : > { %2774 = vmatpush1.bf16.msra.mxu0 %v3408_v35  ;;  %2897 = vmatpush1.bf16.msra.mxu1 %v3410_v36  ;;  %v856_v57 = vld [vmem:[%s4519_s28 + $0x1a0] sm:$0xff]  ;;  %v857_v59 = vld [vmem:[%s4519_s28 + $0x1a8] sm:$0xff] }
  0xc9   : > { %2775 = vmatprep.subr.bf16.mxu0 %v3417_v37  ;;  %2898 = vmatprep.subr.bf16.mxu1 %v3419_v39  ;;  %v3441_v62 = vcombine.high %v852_v56, %v856_v57  ;;  %v3443_v63 = vcombine.high %v853_v58, %v857_v59  ;;  %v860_v0 = vld [vmem:[%s4519_s28 + $0x1c0] sm:$0xff]  ;;  %v861_v2 = vld [vmem:[%s4519_s28 + $0x1c8] sm:$0xff]  ;;  %v3440_v5 = vcombine.low %v852_v56, %v856_v57 }
  0xca   : > { %v864_v1 = vld [vmem:[%s4519_s28 + $0x1e0] sm:$0xff]  ;;  %v865_v3 = vld [vmem:[%s4519_s28 + $0x1e8] sm:$0xff]  ;;  %v3442_v6 = vcombine.low %v853_v58, %v857_v59 }
  0xcb   : > { %v3449_v7 = vcombine.high %v860_v0, %v864_v1  ;;  %v3451_v8 = vcombine.high %v861_v2, %v865_v3  ;;  %v868_v9 = vld [vmem:[%s4519_s28 + $0x200] sm:$0xff]  ;;  %v869_v11 = vld [vmem:[%s4519_s28 + $0x208] sm:$0xff]  ;;  %v3448_v13 = vcombine.low %v860_v0, %v864_v1  ;;  %v3450_v15 = vcombine.low %v861_v2, %v865_v3 }
  0xcc   : > { %2776 = vmatpush1.bf16.msra.mxu0 %v3416_v44  ;;  %2899 = vmatpush1.bf16.msra.mxu1 %v3418_v45  ;;  %v872_v10 = vld [vmem:[%s4519_s28 + $0x220] sm:$0xff]  ;;  %v873_v12 = vld [vmem:[%s4519_s28 + $0x228] sm:$0xff] }
  0xcd   : > { %2777 = vmatprep.subr.bf16.mxu0 %v3425_v46  ;;  %2900 = vmatprep.subr.bf16.mxu1 %v3427_v47  ;;  %v3457_v16 = vcombine.high %v868_v9, %v872_v10  ;;  %v3459_v17 = vcombine.high %v869_v11, %v873_v12  ;;  %v876_v18 = vld [vmem:[%s4519_s28 + $0x240] sm:$0xff]  ;;  %v877_v20 = vld [vmem:[%s4519_s28 + $0x248] sm:$0xff]  ;;  %v3456_v22 = vcombine.low %v868_v9, %v872_v10 }
  0xce   : > { %v880_v19 = vld [vmem:[%s4519_s28 + $0x260] sm:$0xff]  ;;  %v881_v21 = vld [vmem:[%s4519_s28 + $0x268] sm:$0xff]  ;;  %v3458_v23 = vcombine.low %v869_v11, %v873_v12 }
  0xcf   : > { %v3465_v24 = vcombine.high %v876_v18, %v880_v19  ;;  %v3467_v26 = vcombine.high %v877_v20, %v881_v21  ;;  %v884_v27 = vld [vmem:[%s4519_s28 + $0x280] sm:$0xff]  ;;  %v885_v29 = vld [vmem:[%s4519_s28 + $0x288] sm:$0xff]  ;;  %v3464_v31 = vcombine.low %v876_v18, %v880_v19  ;;  %v3466_v32 = vcombine.low %v877_v20, %v881_v21 }
  0xd0   : > { %2778 = vmatpush1.bf16.msra.mxu0 %v3424_v52  ;;  %2901 = vmatpush1.bf16.msra.mxu1 %v3426_v53  ;;  %v888_v28 = vld [vmem:[%s4519_s28 + $0x2a0] sm:$0xff]  ;;  %v889_v30 = vld [vmem:[%s4519_s28 + $0x2a8] sm:$0xff] }
  0xd1   : > { %2779 = vmatprep.subr.bf16.mxu0 %v3433_v54  ;;  %2902 = vmatprep.subr.bf16.mxu1 %v3435_v55  ;;  %v3473_v33 = vcombine.high %v884_v27, %v888_v28  ;;  %v3475_v34 = vcombine.high %v885_v29, %v889_v30  ;;  %v892_v35 = vld [vmem:[%s4519_s28 + $0x2c0] sm:$0xff]  ;;  %v893_v37 = vld [vmem:[%s4519_s28 + $0x2c8] sm:$0xff]  ;;  %v3472_v40 = vcombine.low %v884_v27, %v888_v28 }
  0xd2   : > { %v896_v36 = vld [vmem:[%s4519_s28 + $0x2e0] sm:$0xff]  ;;  %v897_v39 = vld [vmem:[%s4519_s28 + $0x2e8] sm:$0xff]  ;;  %v3474_v41 = vcombine.low %v885_v29, %v889_v30 }
  0xd3   : > { %v3481_v42 = vcombine.high %v892_v35, %v896_v36  ;;  %v3483_v43 = vcombine.high %v893_v37, %v897_v39  ;;  %v900_v44 = vld [vmem:[%s4519_s28 + $0x300] sm:$0xff]  ;;  %v901_v46 = vld [vmem:[%s4519_s28 + $0x308] sm:$0xff]  ;;  %v3480_v48 = vcombine.low %v892_v35, %v896_v36  ;;  %v3482_v49 = vcombine.low %v893_v37, %v897_v39 }
  0xd4   : > { %2780 = vmatpush1.bf16.msra.mxu0 %v3432_v60  ;;  %2903 = vmatpush1.bf16.msra.mxu1 %v3434_v61  ;;  %v904_v45 = vld [vmem:[%s4519_s28 + $0x320] sm:$0xff]  ;;  %v905_v47 = vld [vmem:[%s4519_s28 + $0x328] sm:$0xff] }
  0xd5   : > { %2781 = vmatprep.subr.bf16.mxu0 %v3441_v62  ;;  %2904 = vmatprep.subr.bf16.mxu1 %v3443_v63  ;;  %v3489_v50 = vcombine.high %v900_v44, %v904_v45  ;;  %v3491_v51 = vcombine.high %v901_v46, %v905_v47  ;;  %v908_v52 = vld [vmem:[%s4519_s28 + $0x340] sm:$0xff]  ;;  %v909_v54 = vld [vmem:[%s4519_s28 + $0x348] sm:$0xff]  ;;  %v3488_v56 = vcombine.low %v900_v44, %v904_v45 }
  0xd6   : > { %v912_v53 = vld [vmem:[%s4519_s28 + $0x360] sm:$0xff]  ;;  %v913_v55 = vld [vmem:[%s4519_s28 + $0x368] sm:$0xff]  ;;  %v3490_v57 = vcombine.low %v901_v46, %v905_v47 }
  0xd7   : > { %v3497_v58 = vcombine.high %v908_v52, %v912_v53  ;;  %v3499_v59 = vcombine.high %v909_v54, %v913_v55  ;;  %v916_v60 = vld [vmem:[%s4519_s28 + $0x380] sm:$0xff]  ;;  %v917_v62 = vld [vmem:[%s4519_s28 + $0x388] sm:$0xff]  ;;  %v3496_v0 = vcombine.low %v908_v52, %v912_v53  ;;  %v3498_v1 = vcombine.low %v909_v54, %v913_v55 }
  0xd8   : > { %2782 = vmatpush1.bf16.msra.mxu0 %v3440_v5  ;;  %2905 = vmatpush1.bf16.msra.mxu1 %v3442_v6  ;;  %v920_v61 = vld [vmem:[%s4519_s28 + $0x3a0] sm:$0xff]  ;;  %v921_v63 = vld [vmem:[%s4519_s28 + $0x3a8] sm:$0xff] }
  0xd9   : > { %2783 = vmatprep.subr.bf16.mxu0 %v3449_v7  ;;  %2906 = vmatprep.subr.bf16.mxu1 %v3451_v8  ;;  %v3505_v2 = vcombine.high %v916_v60, %v920_v61  ;;  %v3507_v3 = vcombine.high %v917_v62, %v921_v63  ;;  %v924_v5 = vld [vmem:[%s4519_s28 + $0x3c0] sm:$0xff]  ;;  %v925_v7 = vld [vmem:[%s4519_s28 + $0x3c8] sm:$0xff]  ;;  %v3504_v9 = vcombine.low %v916_v60, %v920_v61 }
  0xda   : > { %v928_v6 = vld [vmem:[%s4519_s28 + $0x3e0] sm:$0xff]  ;;  %v929_v8 = vld [vmem:[%s4519_s28 + $0x3e8] sm:$0xff]  ;;  %v3506_v10 = vcombine.low %v917_v62, %v921_v63 }
  0xdb   : > { %v3513_v11 = vcombine.high %v924_v5, %v928_v6  ;;  %v3515_v12 = vcombine.high %v925_v7, %v929_v8  ;;  %v3512_v18 = vcombine.low %v924_v5, %v928_v6  ;;  %v3514_v19 = vcombine.low %v925_v7, %v929_v8  ;;  %v945_v27 = vld [vmem:[%s4519_s28 + $0x468] sm:$0xff] }
  0xdc   : > { %2784 = vmatpush1.bf16.msra.mxu0 %v3448_v13  ;;  %2907 = vmatpush1.bf16.msra.mxu1 %v3450_v15  ;;  %v932_v13 = vld [vmem:[%s4519_s28 + $0x400] sm:$0xff]  ;;  %v953_v35 = vld [vmem:[%s4519_s28 + $0x4a8] sm:$0xff] }
  0xdd   : > { %2785 = vmatprep.subr.bf16.mxu0 %v3457_v16  ;;  %2908 = vmatprep.subr.bf16.mxu1 %v3459_v17  ;;  %v936_v15 = vld [vmem:[%s4519_s28 + $0x420] sm:$0xff]  ;;  %v933_v16 = vld [vmem:[%s4519_s28 + $0x408] sm:$0xff] }
  0xde   : > { %v937_v17 = vld [vmem:[%s4519_s28 + $0x428] sm:$0xff]  ;;  %v3521_v20 = vcombine.high %v932_v13, %v936_v15  ;;  %v3520_v28 = vcombine.low %v932_v13, %v936_v15 }
  0xdf   : > { %v3523_v21 = vcombine.high %v933_v16, %v937_v17  ;;  %v3522_v29 = vcombine.low %v933_v16, %v937_v17  ;;  %v961_v44 = vld [vmem:[%s4519_s28 + $0x4e8] sm:$0xff] }
  0xe0   : > { %2786 = vmatpush1.bf16.msra.mxu0 %v3456_v22  ;;  %2909 = vmatpush1.bf16.msra.mxu1 %v3458_v23  ;;  %v940_v22 = vld [vmem:[%s4519_s28 + $0x440] sm:$0xff]  ;;  %v969_v52 = vld [vmem:[%s4519_s28 + $0x528] sm:$0xff] }
  0xe1   : > { %2787 = vmatprep.subr.bf16.mxu0 %v3465_v24  ;;  %2910 = vmatprep.subr.bf16.mxu1 %v3467_v26  ;;  %v944_v23 = vld [vmem:[%s4519_s28 + $0x460] sm:$0xff]  ;;  %v4606_v24 = vrot.slane %v4537_v25, %v4527_v14  ;;  %v941_v26 = vld [vmem:[%s4519_s28 + $0x448] sm:$0xff] }
  0xe2   : > { %v3529_v30 = vcombine.high %v940_v22, %v944_v23  ;;  %v949_v25 = vld [vmem:[%s4519_s28 + $0x488] sm:$0xff]  ;;  %v3528_v36 = vcombine.low %v940_v22, %v944_v23  ;;  %v3530_v37 = vcombine.low %v941_v26, %v945_v27 }
  0xe3   : > { %v3538_v46 = vcombine.low %v949_v25, %v953_v35  ;;  %v977_v60 = vld [vmem:[%s4519_s28 + $0x568] sm:$0xff] }
  0xe4   : > { %2788 = vmatpush1.bf16.msra.mxu0 %v3464_v31  ;;  %2911 = vmatpush1.bf16.msra.mxu1 %v3466_v32  ;;  %v3531_v31 = vcombine.high %v941_v26, %v945_v27  ;;  %v948_v32 = vld [vmem:[%s4519_s28 + $0x480] sm:$0xff]  ;;  %v985_v5 = vld [vmem:[%s4519_s28 + $0x5a8] sm:$0xff] }
  0xe5   : > { %2789 = vmatprep.subr.bf16.mxu0 %v3473_v33  ;;  %2912 = vmatprep.subr.bf16.mxu1 %v3475_v34  ;;  %v952_v33 = vld [vmem:[%s4519_s28 + $0x4a0] sm:$0xff]  ;;  %v4614_v34 = vcombine.high %v4546_v38, %v4546_v38  ;;  %v993_v13 = vld [vmem:[%s4519_s28 + $0x5e8] sm:$0xff] }
  0xe6   : > { %v3537_v39 = vcombine.high %v948_v32, %v952_v33  ;;  %v3536_v45 = vcombine.low %v948_v32, %v952_v33  ;;  %v1001_v22 = vld [vmem:[%s4519_s28 + $0x628] sm:$0xff] }
  0xe7   : > { %v1009_v32 = vld [vmem:[%s4519_s28 + $0x668] sm:$0xff] }
  0xe8   : > { %2790 = vmatpush1.bf16.msra.mxu0 %v3472_v40  ;;  %2913 = vmatpush1.bf16.msra.mxu1 %v3474_v41  ;;  %v3539_v40 = vcombine.high %v949_v25, %v953_v35  ;;  %v956_v41 = vld [vmem:[%s4519_s28 + $0x4c0] sm:$0xff] }
  0xe9   : > { %2791 = vmatprep.subr.bf16.mxu0 %v3481_v42  ;;  %2914 = vmatprep.subr.bf16.mxu1 %v3483_v43  ;;  %v960_v42 = vld [vmem:[%s4519_s28 + $0x4e0] sm:$0xff]  ;;  %v957_v43 = vld [vmem:[%s4519_s28 + $0x4c8] sm:$0xff] }
  0xea   : > { %v3545_v47 = vcombine.high %v956_v41, %v960_v42  ;;  %v3544_v53 = vcombine.low %v956_v41, %v960_v42  ;;  %v3546_v54 = vcombine.low %v957_v43, %v961_v44  ;;  %v1017_v41 = vld [vmem:[%s4519_s28 + $0x6a8] sm:$0xff] }
  0xec   : > { %2792 = vmatpush1.bf16.msra.mxu0 %v3480_v48  ;;  %2915 = vmatpush1.bf16.msra.mxu1 %v3482_v49  ;;  %v3547_v48 = vcombine.high %v957_v43, %v961_v44  ;;  %v964_v49 = vld [vmem:[%s4519_s28 + $0x500] sm:$0xff] }
  0xed   : > { %2793 = vmatprep.subr.bf16.mxu0 %v3489_v50  ;;  %2916 = vmatprep.subr.bf16.mxu1 %v3491_v51  ;;  %v968_v50 = vld [vmem:[%s4519_s28 + $0x520] sm:$0xff]  ;;  %v965_v51 = vld [vmem:[%s4519_s28 + $0x508] sm:$0xff] }
  0xee   : > { %v3553_v55 = vcombine.high %v964_v49, %v968_v50  ;;  %v3552_v61 = vcombine.low %v964_v49, %v968_v50  ;;  %v3554_v62 = vcombine.low %v965_v51, %v969_v52  ;;  %v1025_v49 = vld [vmem:[%s4519_s28 + $0x6e8] sm:$0xff] }
  0xf0   : > { %2794 = vmatpush1.bf16.msra.mxu0 %v3488_v56  ;;  %2917 = vmatpush1.bf16.msra.mxu1 %v3490_v57  ;;  %v3555_v56 = vcombine.high %v965_v51, %v969_v52  ;;  %v972_v57 = vld [vmem:[%s4519_s28 + $0x540] sm:$0xff] }
  0xf1   : > { %2795 = vmatprep.subr.bf16.mxu0 %v3497_v58  ;;  %2918 = vmatprep.subr.bf16.mxu1 %v3499_v59  ;;  %v976_v58 = vld [vmem:[%s4519_s28 + $0x560] sm:$0xff]  ;;  %v973_v59 = vld [vmem:[%s4519_s28 + $0x548] sm:$0xff] }
  0xf2   : > { %v3561_v63 = vcombine.high %v972_v57, %v976_v58  ;;  %v3560_v6 = vcombine.low %v972_v57, %v976_v58  ;;  %v3562_v7 = vcombine.low %v973_v59, %v977_v60  ;;  %v1033_v57 = vld [vmem:[%s4519_s28 + $0x728] sm:$0xff] }
  0xf4   : > { %2796 = vmatpush1.bf16.msra.mxu0 %v3496_v0  ;;  %2919 = vmatpush1.bf16.msra.mxu1 %v3498_v1  ;;  %v3563_v0 = vcombine.high %v973_v59, %v977_v60  ;;  %v980_v1 = vld [vmem:[%s4519_s28 + $0x580] sm:$0xff] }
  0xf5   : > { %2797 = vmatprep.subr.bf16.mxu0 %v3505_v2  ;;  %2920 = vmatprep.subr.bf16.mxu1 %v3507_v3  ;;  %v984_v2 = vld [vmem:[%s4519_s28 + $0x5a0] sm:$0xff]  ;;  %v981_v3 = vld [vmem:[%s4519_s28 + $0x588] sm:$0xff] }
  0xf6   : > { %v3569_v8 = vcombine.high %v980_v1, %v984_v2  ;;  %v3568_v15 = vcombine.low %v980_v1, %v984_v2  ;;  %v3570_v16 = vcombine.low %v981_v3, %v985_v5  ;;  %v1041_v1 = vld [vmem:[%s4519_s28 + $0x768] sm:$0xff] }
  0xf8   : > { %2798 = vmatpush1.bf16.msra.mxu0 %v3504_v9  ;;  %2921 = vmatpush1.bf16.msra.mxu1 %v3506_v10  ;;  %v3571_v9 = vcombine.high %v981_v3, %v985_v5  ;;  %v988_v10 = vld [vmem:[%s4519_s28 + $0x5c0] sm:$0xff] }
  0xf9   : > { %2799 = vmatprep.subr.bf16.mxu0 %v3513_v11  ;;  %2922 = vmatprep.subr.bf16.mxu1 %v3515_v12  ;;  %v992_v11 = vld [vmem:[%s4519_s28 + $0x5e0] sm:$0xff]  ;;  %v989_v12 = vld [vmem:[%s4519_s28 + $0x5c8] sm:$0xff] }
  0xfa   : > { %v3577_v17 = vcombine.high %v988_v10, %v992_v11  ;;  %v3576_v23 = vcombine.low %v988_v10, %v992_v11  ;;  %v3578_v26 = vcombine.low %v989_v12, %v993_v13  ;;  %v1049_v10 = vld [vmem:[%s4519_s28 + $0x7a8] sm:$0xff] }
  0xfc   : > { %2800 = vmatpush1.bf16.msra.mxu0 %v3512_v18  ;;  %2923 = vmatpush1.bf16.msra.mxu1 %v3514_v19  ;;  %v3579_v18 = vcombine.high %v989_v12, %v993_v13  ;;  %v996_v19 = vld [vmem:[%s4519_s28 + $0x600] sm:$0xff] }
  0xfd   : > { %2810 = vmatprep.subr.bf16.mxu0 %v3521_v20  ;;  %2933 = vmatprep.subr.bf16.mxu1 %v3523_v21  ;;  %v1000_v20 = vld [vmem:[%s4519_s28 + $0x620] sm:$0xff]  ;;  %v997_v21 = vld [vmem:[%s4519_s28 + $0x608] sm:$0xff] }
  0xfe   : > { %v3585_v27 = vcombine.high %v996_v19, %v1000_v20  ;;  %v3584_v33 = vcombine.low %v996_v19, %v1000_v20  ;;  %v3586_v25 = vcombine.low %v997_v21, %v1001_v22  ;;  %v1057_v19 = vld [vmem:[%s4519_s28 + $0x7e8] sm:$0xff] }
  0xff   : > { %2802 = vmatmul.mubr.bf16.vlgmr.msra.gmra.mrb[0].mxu0 %v4606_v24  ;;  %2925 = vmatmul.mubr.bf16.vlgmr.msra.gmra.mrb[0].mxu1 %v4606_v24 }
 0x100   : > { %2811 = vmatpush1.bf16.msra.mxu0 %v3520_v28  ;;  %2934 = vmatpush1.bf16.msra.mxu1 %v3522_v29  ;;  %v3587_v28 = vcombine.high %v997_v21, %v1001_v22  ;;  %v1004_v29 = vld [vmem:[%s4519_s28 + $0x640] sm:$0xff] }
 0x101   : > { %2812 = vmatprep.subr.bf16.mxu0 %v3529_v30  ;;  %2935 = vmatprep.subr.bf16.mxu1 %v3531_v31  ;;  %v1008_v30 = vld [vmem:[%s4519_s28 + $0x660] sm:$0xff]  ;;  %v1005_v31 = vld [vmem:[%s4519_s28 + $0x648] sm:$0xff] }
 0x102   : > { %2842 = vmatprep.mubr.bf16.mxu0 %v4614_v34  ;;  %2965 = vmatprep.mubr.bf16.mxu1 %v4614_v34  ;;  %v3593_v35 = vcombine.high %v1004_v29, %v1008_v30  ;;  %v3592_v42 = vcombine.low %v1004_v29, %v1008_v30  ;;  %v3594_v43 = vcombine.low %v1005_v31, %v1009_v32  ;;  %v1065_v29 = vld [vmem:[%s4519_s28 + $0x828] sm:$0xff] }
 0x104   : > { %2813 = vmatpush1.bf16.msra.mxu0 %v3528_v36  ;;  %2936 = vmatpush1.bf16.msra.mxu1 %v3530_v37  ;;  %v3595_v36 = vcombine.high %v1005_v31, %v1009_v32  ;;  %v1012_v37 = vld [vmem:[%s4519_s28 + $0x680] sm:$0xff] }
 0x105   : > { %2814 = vmatprep.subr.bf16.mxu0 %v3537_v39  ;;  %2937 = vmatprep.subr.bf16.mxu1 %v3539_v40  ;;  %v1016_v39 = vld [vmem:[%s4519_s28 + $0x6a0] sm:$0xff]  ;;  %v1013_v40 = vld [vmem:[%s4519_s28 + $0x688] sm:$0xff] }
 0x106   : > { %v3601_v44 = vcombine.high %v1012_v37, %v1016_v39  ;;  %v3600_v50 = vcombine.low %v1012_v37, %v1016_v39  ;;  %v3602_v51 = vcombine.low %v1013_v40, %v1017_v41  ;;  %v1069_v37 = vld [vmem:[%s4519_s28 + $0x848] sm:$0xff] }
 0x107   : > { %v1073_v39 = vld [vmem:[%s4519_s28 + $0x868] sm:$0xff] }
 0x108   : > { %2815 = vmatpush1.bf16.msra.mxu0 %v3536_v45  ;;  %2938 = vmatpush1.bf16.msra.mxu1 %v3538_v46  ;;  %v3603_v45 = vcombine.high %v1013_v40, %v1017_v41  ;;  %v1020_v46 = vld [vmem:[%s4519_s28 + $0x6c0] sm:$0xff] }
 0x109   : > { %2816 = vmatprep.subr.bf16.mxu0 %v3545_v47  ;;  %2939 = vmatprep.subr.bf16.mxu1 %v3547_v48  ;;  %v1024_v47 = vld [vmem:[%s4519_s28 + $0x6e0] sm:$0xff]  ;;  %v1021_v48 = vld [vmem:[%s4519_s28 + $0x6c8] sm:$0xff] }
 0x10a   : > { %v3609_v52 = vcombine.high %v1020_v46, %v1024_v47  ;;  %v3608_v58 = vcombine.low %v1020_v46, %v1024_v47  ;;  %v3610_v59 = vcombine.low %v1021_v48, %v1025_v49  ;;  %v1077_v46 = vld [vmem:[%s4519_s28 + $0x888] sm:$0xff] }
 0x10b   : > { %v1081_v47 = vld [vmem:[%s4519_s28 + $0x8a8] sm:$0xff] }
 0x10c   : > { %2817 = vmatpush1.bf16.msra.mxu0 %v3544_v53  ;;  %2940 = vmatpush1.bf16.msra.mxu1 %v3546_v54  ;;  %v3611_v53 = vcombine.high %v1021_v48, %v1025_v49  ;;  %v1028_v54 = vld [vmem:[%s4519_s28 + $0x700] sm:$0xff]  ;;  %v3658_v49 = vcombine.low %v1069_v37, %v1073_v39 }
 0x10d   : > { %2818 = vmatprep.subr.bf16.mxu0 %v3553_v55  ;;  %2941 = vmatprep.subr.bf16.mxu1 %v3555_v56  ;;  %v1032_v55 = vld [vmem:[%s4519_s28 + $0x720] sm:$0xff]  ;;  %v1029_v56 = vld [vmem:[%s4519_s28 + $0x708] sm:$0xff] }
 0x10e   : > { %v3617_v60 = vcombine.high %v1028_v54, %v1032_v55  ;;  %v3616_v2 = vcombine.low %v1028_v54, %v1032_v55  ;;  %v3618_v3 = vcombine.low %v1029_v56, %v1033_v57  ;;  %v3817_v54 = vmov 0   ;;  %v1085_v55 = vld [vmem:[%s4519_s28 + $0x8c8] sm:$0xff] }
 0x110   : > { %2819 = vmatpush1.bf16.msra.mxu0 %v3552_v61  ;;  %2942 = vmatpush1.bf16.msra.mxu1 %v3554_v62  ;;  %v3619_v61 = vcombine.high %v1029_v56, %v1033_v57  ;;  %v1036_v62 = vld [vmem:[%s4519_s28 + $0x740] sm:$0xff]  ;;  %v1089_v56 = vld [vmem:[%s4519_s28 + $0x8e8] sm:$0xff] }
 0x111   : > { %2820 = vmatprep.subr.bf16.mxu0 %v3561_v63  ;;  %2943 = vmatprep.subr.bf16.mxu1 %v3563_v0  ;;  %v1040_v63 = vld [vmem:[%s4519_s28 + $0x760] sm:$0xff]  ;;  %v1037_v0 = vld [vmem:[%s4519_s28 + $0x748] sm:$0xff] }
 0x112   : > { %v3625_v5 = vcombine.high %v1036_v62, %v1040_v63  ;;  %v3624_v11 = vcombine.low %v1036_v62, %v1040_v63  ;;  %v3626_v12 = vcombine.low %v1037_v0, %v1041_v1  ;;  %v1096_v62 = vld [vmem:[%s4519_s28 + $0x920] sm:$0xff]  ;;  %v1093_v63 = vld [vmem:[%s4519_s28 + $0x908] sm:$0xff] }
 0x114   : > { %2821 = vmatpush1.bf16.msra.mxu0 %v3560_v6  ;;  %2944 = vmatpush1.bf16.msra.mxu1 %v3562_v7  ;;  %v3627_v6 = vcombine.high %v1037_v0, %v1041_v1  ;;  %v1044_v7 = vld [vmem:[%s4519_s28 + $0x780] sm:$0xff]  ;;  %v1097_v0 = vld [vmem:[%s4519_s28 + $0x928] sm:$0xff] }
 0x115   : > { %2822 = vmatprep.subr.bf16.mxu0 %v3569_v8  ;;  %2945 = vmatprep.subr.bf16.mxu1 %v3571_v9  ;;  %v1048_v8 = vld [vmem:[%s4519_s28 + $0x7a0] sm:$0xff]  ;;  %v1045_v9 = vld [vmem:[%s4519_s28 + $0x788] sm:$0xff] }
 0x116   : > { %v3633_v13 = vcombine.high %v1044_v7, %v1048_v8  ;;  %v3632_v20 = vcombine.low %v1044_v7, %v1048_v8  ;;  %v3634_v21 = vcombine.low %v1045_v9, %v1049_v10  ;;  %v1104_v7 = vld [vmem:[%s4519_s28 + $0x960] sm:$0xff]  ;;  %v1101_v8 = vld [vmem:[%s4519_s28 + $0x948] sm:$0xff] }
 0x118   : > { %2823 = vmatpush1.bf16.msra.mxu0 %v3568_v15  ;;  %2946 = vmatpush1.bf16.msra.mxu1 %v3570_v16  ;;  %v3635_v15 = vcombine.high %v1045_v9, %v1049_v10  ;;  %v1052_v16 = vld [vmem:[%s4519_s28 + $0x7c0] sm:$0xff]  ;;  %v1105_v9 = vld [vmem:[%s4519_s28 + $0x968] sm:$0xff] }
 0x119   : > { %2824 = vmatprep.subr.bf16.mxu0 %v3577_v17  ;;  %2947 = vmatprep.subr.bf16.mxu1 %v3579_v18  ;;  %v1056_v17 = vld [vmem:[%s4519_s28 + $0x7e0] sm:$0xff]  ;;  %v1053_v18 = vld [vmem:[%s4519_s28 + $0x7c8] sm:$0xff] }
 0x11a   : > { %v3641_v22 = vcombine.high %v1052_v16, %v1056_v17  ;;  %v3640_v30 = vcombine.low %v1052_v16, %v1056_v17  ;;  %v3642_v31 = vcombine.low %v1053_v18, %v1057_v19  ;;  %v1112_v16 = vld [vmem:[%s4519_s28 + $0x9a0] sm:$0xff]  ;;  %v1109_v17 = vld [vmem:[%s4519_s28 + $0x988] sm:$0xff] }
 0x11c   : > { %2825 = vmatpush1.bf16.msra.mxu0 %v3576_v23  ;;  %2948 = vmatpush1.bf16.msra.mxu1 %v3578_v26  ;;  %v3643_v23 = vcombine.high %v1053_v18, %v1057_v19  ;;  %v1060_v26 = vld [vmem:[%s4519_s28 + $0x800] sm:$0xff]  ;;  %v1113_v18 = vld [vmem:[%s4519_s28 + $0x9a8] sm:$0xff] }
 0x11d   : > { %2826 = vmatprep.subr.bf16.mxu0 %v3585_v27  ;;  %2949 = vmatprep.subr.bf16.mxu1 %v3587_v28  ;;  %v1064_v27 = vld [vmem:[%s4519_s28 + $0x820] sm:$0xff]  ;;  %v1061_v28 = vld [vmem:[%s4519_s28 + $0x808] sm:$0xff] }
 0x11e   : > { %v3649_v32 = vcombine.high %v1060_v26, %v1064_v27  ;;  %v3648_v40 = vcombine.low %v1060_v26, %v1064_v27  ;;  %v3650_v41 = vcombine.low %v1061_v28, %v1065_v29  ;;  %v1120_v26 = vld [vmem:[%s4519_s28 + $0x9e0] sm:$0xff]  ;;  %v1117_v27 = vld [vmem:[%s4519_s28 + $0x9c8] sm:$0xff] }
 0x120   : > { %2827 = vmatpush1.bf16.msra.mxu0 %v3584_v33  ;;  %2950 = vmatpush1.bf16.msra.mxu1 %v3586_v25  ;;  %v3651_v33 = vcombine.high %v1061_v28, %v1065_v29  ;;  %v1068_v25 = vld [vmem:[%s4519_s28 + $0x840] sm:$0xff]  ;;  %v1121_v28 = vld [vmem:[%s4519_s28 + $0x9e8] sm:$0xff]  ;;  %v1125_v29 = vcombine.high %v4517_v4, %v4517_v4 }
 0x121   : > { %2828 = vmatprep.subr.bf16.mxu0 %v3593_v35  ;;  %2951 = vmatprep.subr.bf16.mxu1 %v3595_v36  ;;  %v1072_v35 = vld [vmem:[%s4519_s28 + $0x860] sm:$0xff]  ;;  %v4682_v36 = vcombine.high %v4606_v24, %v4606_v24 }
 0x122   : > { %v3656_v48 = vcombine.low %v1068_v25, %v1072_v35 }
 0x124   : > { %2829 = vmatpush1.bf16.msra.mxu0 %v3592_v42  ;;  %2952 = vmatpush1.bf16.msra.mxu1 %v3594_v43  ;;  %v3657_v42 = vcombine.high %v1068_v25, %v1072_v35  ;;  %v3659_v43 = vcombine.high %v1069_v37, %v1073_v39  ;;  %v806_v25 = vld [vmem:[%s4519_s28 + $0x10] sm:$0xff]  ;;  %v1139_v37 = vrot.slane %v1125_v29, %v4527_v14  ;;  %v807_v39 = vld [vmem:[%s4519_s28 + $0x18] sm:$0xff] }
 0x125   : > { %2830 = vmatprep.subr.bf16.mxu0 %v3601_v44  ;;  %2953 = vmatprep.subr.bf16.mxu1 %v3603_v45  ;;  %v1076_v44 = vld [vmem:[%s4519_s28 + $0x880] sm:$0xff]  ;;  %v810_v35 = vld [vmem:[%s4519_s28 + $0x30] sm:$0xff] }
 0x126   : > { %v1080_v45 = vld [vmem:[%s4519_s28 + $0x8a0] sm:$0xff] }
 0x127   : > { %v3664_v57 = vcombine.low %v1076_v44, %v1080_v45 }
 0x128   : > { %2831 = vmatpush1.bf16.msra.mxu0 %v3600_v50  ;;  %2954 = vmatpush1.bf16.msra.mxu1 %v3602_v51  ;;  %v3665_v50 = vcombine.high %v1076_v44, %v1080_v45  ;;  %v3667_v51 = vcombine.high %v1077_v46, %v1081_v47  ;;  %v814_v44 = vld [vmem:[%s4519_s28 + $0x50] sm:$0xff] }
 0x129   : > { %2832 = vmatprep.subr.bf16.mxu0 %v3609_v52  ;;  %2955 = vmatprep.subr.bf16.mxu1 %v3611_v53  ;;  %v1084_v52 = vld [vmem:[%s4519_s28 + $0x8c0] sm:$0xff]  ;;  %v818_v45 = vld [vmem:[%s4519_s28 + $0x70] sm:$0xff] }
 0x12a   : > { %v1088_v53 = vld [vmem:[%s4519_s28 + $0x8e0] sm:$0xff] }
 0x12b   : > { %v3672_v1 = vcombine.low %v1084_v52, %v1088_v53 }
 0x12c   : > { %2833 = vmatpush1.bf16.msra.mxu0 %v3608_v58  ;;  %2956 = vmatpush1.bf16.msra.mxu1 %v3610_v59  ;;  %v3666_v58 = vcombine.low %v1077_v46, %v1081_v47  ;;  %v3673_v59 = vcombine.high %v1084_v52, %v1088_v53  ;;  %v4724_v46 = vrot.slane %v1139_v37, %v4527_v14  ;;  %v815_v47 = vld [vmem:[%s4519_s28 + $0x58] sm:$0xff]  ;;  %v822_v53 = vld [vmem:[%s4519_s28 + $0x90] sm:$0xff] }
 0x12d   : > { %2834 = vmatprep.subr.bf16.mxu0 %v3617_v60  ;;  %2957 = vmatprep.subr.bf16.mxu1 %v3619_v61  ;;  %v3675_v60 = vcombine.high %v1085_v55, %v1089_v56  ;;  %v1092_v61 = vld [vmem:[%s4519_s28 + $0x900] sm:$0xff]  ;;  %v867_v37 = vld [vmem:[%s4519_s28 + $0x1f8] sm:$0xff] }
 0x12e   : > { %v3680_v10 = vcombine.low %v1092_v61, %v1096_v62 }
 0x130   : > { %2835 = vmatpush1.bf16.msra.mxu0 %v3616_v2  ;;  %2958 = vmatpush1.bf16.msra.mxu1 %v3618_v3  ;;  %v3674_v2 = vcombine.low %v1085_v55, %v1089_v56  ;;  %v3681_v3 = vcombine.high %v1092_v61, %v1096_v62  ;;  %v826_v55 = vld [vmem:[%s4519_s28 + $0xb0] sm:$0xff]  ;;  %v823_v56 = vld [vmem:[%s4519_s28 + $0x98] sm:$0xff] }
 0x131   : > { %2836 = vmatprep.subr.bf16.mxu0 %v3625_v5  ;;  %2959 = vmatprep.subr.bf16.mxu1 %v3627_v6  ;;  %v3683_v5 = vcombine.high %v1093_v63, %v1097_v0  ;;  %v1100_v6 = vld [vmem:[%s4519_s28 + $0x940] sm:$0xff]  ;;  %v830_v62 = vld [vmem:[%s4519_s28 + $0xd0] sm:$0xff] }
 0x132   : > { %v3688_v19 = vcombine.low %v1100_v6, %v1104_v7 }
 0x134   : > { %2837 = vmatpush1.bf16.msra.mxu0 %v3624_v11  ;;  %2960 = vmatpush1.bf16.msra.mxu1 %v3626_v12  ;;  %v3682_v11 = vcombine.low %v1093_v63, %v1097_v0  ;;  %v3689_v12 = vcombine.high %v1100_v6, %v1104_v7  ;;  %v834_v63 = vld [vmem:[%s4519_s28 + $0xf0] sm:$0xff]  ;;  %v831_v0 = vld [vmem:[%s4519_s28 + $0xd8] sm:$0xff] }
 0x135   : > { %2838 = vmatprep.subr.bf16.mxu0 %v3633_v13  ;;  %2961 = vmatprep.subr.bf16.mxu1 %v3635_v15  ;;  %v3691_v13 = vcombine.high %v1101_v8, %v1105_v9  ;;  %v1108_v15 = vld [vmem:[%s4519_s28 + $0x980] sm:$0xff]  ;;  %v838_v7 = vld [vmem:[%s4519_s28 + $0x110] sm:$0xff] }
 0x138   : > { %2839 = vmatpush1.bf16.msra.mxu0 %v3632_v20  ;;  %2962 = vmatpush1.bf16.msra.mxu1 %v3634_v21  ;;  %v3690_v20 = vcombine.low %v1101_v8, %v1105_v9  ;;  %v3697_v21 = vcombine.high %v1108_v15, %v1112_v16  ;;  %v842_v8 = vld [vmem:[%s4519_s28 + $0x130] sm:$0xff]  ;;  %v839_v9 = vld [vmem:[%s4519_s28 + $0x118] sm:$0xff] }
 0x139   : > { %2840 = vmatprep.subr.bf16.mxu0 %v3641_v22  ;;  %2963 = vmatprep.subr.bf16.mxu1 %v3643_v23  ;;  %v3699_v22 = vcombine.high %v1109_v17, %v1113_v18  ;;  %v1116_v23 = vld [vmem:[%s4519_s28 + $0x9c0] sm:$0xff] }
 0x13a   : > { %v3704_v4 = vcombine.low %v1116_v23, %v1120_v26 }
 0x13c   : > { %2841 = vmatpush1.bf16.msra.mxu0 %v3640_v30  ;;  %2964 = vmatpush1.bf16.msra.mxu1 %v3642_v31  ;;  %v3696_v30 = vcombine.low %v1108_v15, %v1112_v16  ;;  %v3698_v31 = vcombine.low %v1109_v17, %v1113_v18  ;;  %v846_v15 = vld [vmem:[%s4519_s28 + $0x150] sm:$0xff]  ;;  %v847_v17 = vld [vmem:[%s4519_s28 + $0x158] sm:$0xff] }
 0x13d   : > { %2851 = vmatprep.subr.bf16.mxu0 %v3649_v32  ;;  %2974 = vmatprep.subr.bf16.mxu1 %v3651_v33  ;;  %v3705_v32 = vcombine.high %v1116_v23, %v1120_v26  ;;  %v3707_v33 = vcombine.high %v1117_v27, %v1121_v28  ;;  %v850_v16 = vld [vmem:[%s4519_s28 + $0x170] sm:$0xff]  ;;  %v851_v18 = vld [vmem:[%s4519_s28 + $0x178] sm:$0xff] }
 0x13e   : > { %v854_v23 = vld [vmem:[%s4519_s28 + $0x190] sm:$0xff]  ;;  %v3436_v29 = vcombine.low %v846_v15, %v850_v16 }
 0x13f   : > { %2843 = vmatmul.mubr.bf16.vlgmr.msra.gmra.mrb[0].mxu0 %v4682_v36  ;;  %2966 = vmatmul.mubr.bf16.vlgmr.msra.gmra.mrb[0].mxu1 %v4682_v36  ;;  %v858_v26 = vld [vmem:[%s4519_s28 + $0x1b0] sm:$0xff] }
 0x140   : > { %2852 = vmatpush1.bf16.msra.mxu0 %v3648_v40  ;;  %2975 = vmatpush1.bf16.msra.mxu1 %v3650_v41  ;;  %v811_v40 = vld [vmem:[%s4519_s28 + $0x38] sm:$0xff]  ;;  %v3706_v41 = vcombine.low %v1117_v27, %v1121_v28 }
 0x141   : > { %2853 = vmatprep.subr.bf16.mxu0 %v3657_v42  ;;  %2976 = vmatprep.subr.bf16.mxu1 %v3659_v43  ;;  %v3397_v42 = vcombine.high %v806_v25, %v810_v35  ;;  %v3399_v43 = vcombine.high %v807_v39, %v811_v40  ;;  %v855_v27 = vld [vmem:[%s4519_s28 + $0x198] sm:$0xff] }
 0x142   : > { %2883 = vmatprep.mubr.bf16.mxu0 %v3817_v54  ;;  %3006 = vmatprep.mubr.bf16.mxu1 %v3817_v54  ;;  %v859_v28 = vld [vmem:[%s4519_s28 + $0x1b8] sm:$0xff] }
 0x144   : > { %2854 = vmatpush1.bf16.msra.mxu0 %v3656_v48  ;;  %2977 = vmatpush1.bf16.msra.mxu1 %v3658_v49  ;;  %v819_v48 = vld [vmem:[%s4519_s28 + $0x78] sm:$0xff]  ;;  %v3396_v49 = vcombine.low %v806_v25, %v810_v35  ;;  %v866_v25 = vld [vmem:[%s4519_s28 + $0x1f0] sm:$0xff] }
 0x145   : > { %2855 = vmatprep.subr.bf16.mxu0 %v3665_v50  ;;  %2978 = vmatprep.subr.bf16.mxu1 %v3667_v51  ;;  %v3398_v50 = vcombine.low %v807_v39, %v811_v40  ;;  %v3405_v51 = vcombine.high %v814_v44, %v818_v45  ;;  %v3407_v52 = vcombine.high %v815_v47, %v819_v48  ;;  %v863_v35 = vld [vmem:[%s4519_s28 + $0x1d8] sm:$0xff] }
 0x146   : > { %v3444_v39 = vcombine.low %v854_v23, %v858_v26  ;;  %v3446_v40 = vcombine.low %v855_v27, %v859_v28 }
 0x148   : > { %2856 = vmatpush1.bf16.msra.mxu0 %v3664_v57  ;;  %2979 = vmatpush1.bf16.msra.mxu1 %v3666_v58  ;;  %v827_v57 = vld [vmem:[%s4519_s28 + $0xb8] sm:$0xff]  ;;  %v3404_v58 = vcombine.low %v814_v44, %v818_v45 }
 0x149   : > { %2857 = vmatprep.subr.bf16.mxu0 %v3673_v59  ;;  %2980 = vmatprep.subr.bf16.mxu1 %v3675_v60  ;;  %v3406_v59 = vcombine.low %v815_v47, %v819_v48  ;;  %v3413_v60 = vcombine.high %v822_v53, %v826_v55  ;;  %v3415_v61 = vcombine.high %v823_v56, %v827_v57  ;;  %v871_v44 = vld [vmem:[%s4519_s28 + $0x218] sm:$0xff] }
 0x14a   : > { %v875_v45 = vld [vmem:[%s4519_s28 + $0x238] sm:$0xff]  ;;  %v3454_v48 = vcombine.low %v863_v35, %v867_v37 }
 0x14c   : > { %2858 = vmatpush1.bf16.msra.mxu0 %v3672_v1  ;;  %2981 = vmatpush1.bf16.msra.mxu1 %v3674_v2  ;;  %v835_v1 = vld [vmem:[%s4519_s28 + $0xf8] sm:$0xff]  ;;  %v3412_v2 = vcombine.low %v822_v53, %v826_v55 }
 0x14d   : > { %2859 = vmatprep.subr.bf16.mxu0 %v3681_v3  ;;  %2982 = vmatprep.subr.bf16.mxu1 %v3683_v5  ;;  %v3414_v3 = vcombine.low %v823_v56, %v827_v57  ;;  %v3421_v5 = vcombine.high %v830_v62, %v834_v63  ;;  %v3423_v6 = vcombine.high %v831_v0, %v835_v1  ;;  %v879_v53 = vld [vmem:[%s4519_s28 + $0x258] sm:$0xff] }
 0x14e   : > { %v883_v55 = vld [vmem:[%s4519_s28 + $0x278] sm:$0xff]  ;;  %v3462_v57 = vcombine.low %v871_v44, %v875_v45 }
 0x150   : > { %2860 = vmatpush1.bf16.msra.mxu0 %v3680_v10  ;;  %2983 = vmatpush1.bf16.msra.mxu1 %v3682_v11  ;;  %v843_v10 = vld [vmem:[%s4519_s28 + $0x138] sm:$0xff]  ;;  %v3420_v11 = vcombine.low %v830_v62, %v834_v63 }
 0x151   : > { %2861 = vmatprep.subr.bf16.mxu0 %v3689_v12  ;;  %2984 = vmatprep.subr.bf16.mxu1 %v3691_v13  ;;  %v3429_v12 = vcombine.high %v838_v7, %v842_v8  ;;  %v3431_v13 = vcombine.high %v839_v9, %v843_v10  ;;  %v887_v62 = vld [vmem:[%s4519_s28 + $0x298] sm:$0xff] }
 0x152   : > { %v891_v63 = vld [vmem:[%s4519_s28 + $0x2b8] sm:$0xff] }
 0x154   : > { %2862 = vmatpush1.bf16.msra.mxu0 %v3688_v19  ;;  %2985 = vmatpush1.bf16.msra.mxu1 %v3690_v20  ;;  %v3428_v19 = vcombine.low %v838_v7, %v842_v8  ;;  %v3430_v20 = vcombine.low %v839_v9, %v843_v10  ;;  %v895_v7 = vld [vmem:[%s4519_s28 + $0x2d8] sm:$0xff]  ;;  %v3478_v10 = vcombine.low %v887_v62, %v891_v63 }
 0x155   : > { %2863 = vmatprep.subr.bf16.mxu0 %v3697_v21  ;;  %2986 = vmatprep.subr.bf16.mxu1 %v3699_v22  ;;  %v3437_v21 = vcombine.high %v846_v15, %v850_v16  ;;  %v3439_v22 = vcombine.high %v847_v17, %v851_v18  ;;  %v899_v8 = vld [vmem:[%s4519_s28 + $0x2f8] sm:$0xff] }
 0x156   : > { %v903_v15 = vld [vmem:[%s4519_s28 + $0x318] sm:$0xff] }
 0x157   : > { %v907_v16 = vld [vmem:[%s4519_s28 + $0x338] sm:$0xff] }
 0x158   : > { %2864 = vmatpush1.bf16.msra.mxu0 %v3696_v30  ;;  %2987 = vmatpush1.bf16.msra.mxu1 %v3698_v31  ;;  %v3438_v30 = vcombine.low %v847_v17, %v851_v18  ;;  %v3445_v31 = vcombine.high %v854_v23, %v858_v26  ;;  %v3486_v18 = vcombine.low %v895_v7, %v899_v8  ;;  %v911_v23 = vld [vmem:[%s4519_s28 + $0x358] sm:$0xff] }
 0x159   : > { %2865 = vmatprep.subr.bf16.mxu0 %v3705_v32  ;;  %2988 = vmatprep.subr.bf16.mxu1 %v3707_v33  ;;  %v3447_v32 = vcombine.high %v855_v27, %v859_v28  ;;  %v862_v33 = vld [vmem:[%s4519_s28 + $0x1d0] sm:$0xff]  ;;  %v915_v26 = vld [vmem:[%s4519_s28 + $0x378] sm:$0xff]  ;;  %v3494_v28 = vcombine.low %v903_v15, %v907_v16 }
 0x15a   : > { %v3452_v47 = vcombine.low %v862_v33, %v866_v25 }
 0x15c   : > { %2866 = vmatpush1.bf16.msra.mxu0 %v3704_v4  ;;  %2989 = vmatpush1.bf16.msra.mxu1 %v3706_v41  ;;  %v3453_v4 = vcombine.high %v862_v33, %v866_v25  ;;  %v3455_v41 = vcombine.high %v863_v35, %v867_v37  ;;  %v919_v33 = vld [vmem:[%s4519_s28 + $0x398] sm:$0xff]  ;;  %v3502_v37 = vcombine.low %v911_v23, %v915_v26 }
 0x15d   : > { %3015 = vmatprep.subr.bf16.mxu0 %v3397_v42  ;;  %3138 = vmatprep.subr.bf16.mxu1 %v3399_v43  ;;  %v870_v42 = vld [vmem:[%s4519_s28 + $0x210] sm:$0xff]  ;;  %v923_v25 = vld [vmem:[%s4519_s28 + $0x3b8] sm:$0xff] }
 0x15e   : > { %v874_v43 = vld [vmem:[%s4519_s28 + $0x230] sm:$0xff] }
 0x15f   : > { %2884 = vmatmul.mubr.bf16.vlgmr.msra.gmra.mrb[0].mxu0 %v4724_v46  ;;  %3007 = vmatmul.mubr.bf16.vlgmr.msra.gmra.mrb[0].mxu1 %v4724_v46  ;;  %v3460_v56 = vcombine.low %v870_v42, %v874_v43 }
 0x160   : > { %3016 = vmatpush1.bf16.msra.mxu0 %v3396_v49  ;;  %3139 = vmatpush1.bf16.msra.mxu1 %v3398_v50  ;;  %v3461_v49 = vcombine.high %v870_v42, %v874_v43  ;;  %v3463_v50 = vcombine.high %v871_v44, %v875_v45  ;;  %v927_v42 = vld [vmem:[%s4519_s28 + $0x3d8] sm:$0xff]  ;;  %v3510_v45 = vcombine.low %v919_v33, %v923_v25 }
 0x161   : > { %3017 = vmatprep.subr.bf16.mxu0 %v3405_v51  ;;  %3140 = vmatprep.subr.bf16.mxu1 %v3407_v52  ;;  %v878_v51 = vld [vmem:[%s4519_s28 + $0x250] sm:$0xff]  ;;  %v931_v43 = vld [vmem:[%s4519_s28 + $0x3f8] sm:$0xff] }
 0x162   : > { %3047 = vmatprep.mubr.bf16.mxu0 %v4546_v38  ;;  %3170 = vmatprep.mubr.bf16.mxu1 %v4546_v38  ;;  %v3422_v38 = vcombine.low %v831_v0, %v835_v1  ;;  %v882_v52 = vld [vmem:[%s4519_s28 + $0x270] sm:$0xff]  ;;  %v3470_v1 = vcombine.low %v879_v53, %v883_v55 }
 0x163   : > { %v3468_v0 = vcombine.low %v878_v51, %v882_v52 }
 0x164   : > { %3018 = vmatpush1.bf16.msra.mxu0 %v3404_v58  ;;  %3141 = vmatpush1.bf16.msra.mxu1 %v3406_v59  ;;  %v3469_v58 = vcombine.high %v878_v51, %v882_v52  ;;  %v3471_v59 = vcombine.high %v879_v53, %v883_v55  ;;  %v935_v51 = vld [vmem:[%s4519_s28 + $0x418] sm:$0xff]  ;;  %v3518_v55 = vcombine.low %v927_v42, %v931_v43 }
 0x165   : > { %3019 = vmatprep.subr.bf16.mxu0 %v3413_v60  ;;  %3142 = vmatprep.subr.bf16.mxu1 %v3415_v61  ;;  %v886_v60 = vld [vmem:[%s4519_s28 + $0x290] sm:$0xff]  ;;  %v939_v52 = vld [vmem:[%s4519_s28 + $0x438] sm:$0xff] }
 0x166   : > { %v890_v61 = vld [vmem:[%s4519_s28 + $0x2b0] sm:$0xff] }
 0x167   : > { %v3476_v9 = vcombine.low %v886_v60, %v890_v61 }
 0x168   : > { %3020 = vmatpush1.bf16.msra.mxu0 %v3412_v2  ;;  %3143 = vmatpush1.bf16.msra.mxu1 %v3414_v3  ;;  %v3477_v2 = vcombine.high %v886_v60, %v890_v61  ;;  %v3479_v3 = vcombine.high %v887_v62, %v891_v63  ;;  %v943_v60 = vld [vmem:[%s4519_s28 + $0x458] sm:$0xff]  ;;  %v3526_v63 = vcombine.low %v935_v51, %v939_v52 }
 0x169   : > { %3021 = vmatprep.subr.bf16.mxu0 %v3421_v5  ;;  %3144 = vmatprep.subr.bf16.mxu1 %v3423_v6  ;;  %v894_v5 = vld [vmem:[%s4519_s28 + $0x2d0] sm:$0xff]  ;;  %v947_v61 = vld [vmem:[%s4519_s28 + $0x478] sm:$0xff] }
 0x16a   : > { %v898_v6 = vld [vmem:[%s4519_s28 + $0x2f0] sm:$0xff] }
 0x16b   : > { %v3484_v17 = vcombine.low %v894_v5, %v898_v6 }
 0x16c   : > { %3022 = vmatpush1.bf16.msra.mxu0 %v3420_v11  ;;  %3145 = vmatpush1.bf16.msra.mxu1 %v3422_v38  ;;  %v3485_v11 = vcombine.high %v894_v5, %v898_v6  ;;  %v3487_v38 = vcombine.high %v895_v7, %v899_v8  ;;  %v951_v5 = vld [vmem:[%s4519_s28 + $0x498] sm:$0xff]  ;;  %v3534_v8 = vcombine.low %v943_v60, %v947_v61 }
 0x16d   : > { %3023 = vmatprep.subr.bf16.mxu0 %v3429_v12  ;;  %3146 = vmatprep.subr.bf16.mxu1 %v3431_v13  ;;  %v902_v12 = vld [vmem:[%s4519_s28 + $0x310] sm:$0xff]  ;;  %v955_v6 = vld [vmem:[%s4519_s28 + $0x4b8] sm:$0xff] }
 0x16e   : > { %v906_v13 = vld [vmem:[%s4519_s28 + $0x330] sm:$0xff] }
 0x16f   : > { %v3492_v27 = vcombine.low %v902_v12, %v906_v13 }
 0x170   : > { %3024 = vmatpush1.bf16.msra.mxu0 %v3428_v19  ;;  %3147 = vmatpush1.bf16.msra.mxu1 %v3430_v20  ;;  %v3493_v19 = vcombine.high %v902_v12, %v906_v13  ;;  %v3495_v20 = vcombine.high %v903_v15, %v907_v16  ;;  %v959_v12 = vld [vmem:[%s4519_s28 + $0x4d8] sm:$0xff]  ;;  %v3542_v15 = vcombine.low %v951_v5, %v955_v6 }
 0x171   : > { %3025 = vmatprep.subr.bf16.mxu0 %v3437_v21  ;;  %3148 = vmatprep.subr.bf16.mxu1 %v3439_v22  ;;  %v910_v21 = vld [vmem:[%s4519_s28 + $0x350] sm:$0xff]  ;;  %v963_v13 = vld [vmem:[%s4519_s28 + $0x4f8] sm:$0xff] }
 0x172   : > { %v914_v22 = vld [vmem:[%s4519_s28 + $0x370] sm:$0xff] }
 0x173   : > { %v3500_v35 = vcombine.low %v910_v21, %v914_v22 }
 0x174   : > { %3026 = vmatpush1.bf16.msra.mxu0 %v3436_v29  ;;  %3149 = vmatpush1.bf16.msra.mxu1 %v3438_v30  ;;  %v3501_v29 = vcombine.high %v910_v21, %v914_v22  ;;  %v3503_v30 = vcombine.high %v911_v23, %v915_v26  ;;  %v971_v21 = vld [vmem:[%s4519_s28 + $0x538] sm:$0xff] }
 0x175   : > { %3027 = vmatprep.subr.bf16.mxu0 %v3445_v31  ;;  %3150 = vmatprep.subr.bf16.mxu1 %v3447_v32  ;;  %v918_v31 = vld [vmem:[%s4519_s28 + $0x390] sm:$0xff] }
 0x176   : > { %v922_v32 = vld [vmem:[%s4519_s28 + $0x3b0] sm:$0xff] }
 0x177   : > { %v3508_v44 = vcombine.low %v918_v31, %v922_v32 }
 0x178   : > { %3028 = vmatpush1.bf16.msra.mxu0 %v3444_v39  ;;  %3151 = vmatpush1.bf16.msra.mxu1 %v3446_v40  ;;  %v3509_v39 = vcombine.high %v918_v31, %v922_v32  ;;  %v3511_v40 = vcombine.high %v919_v33, %v923_v25 }
 0x179   : > { %3029 = vmatprep.subr.bf16.mxu0 %v3453_v4  ;;  %3152 = vmatprep.subr.bf16.mxu1 %v3455_v41  ;;  %v926_v4 = vld [vmem:[%s4519_s28 + $0x3d0] sm:$0xff] }
 0x17a   : > { %v930_v41 = vld [vmem:[%s4519_s28 + $0x3f0] sm:$0xff] }
 0x17b   : > { %v3516_v53 = vcombine.low %v926_v4, %v930_v41 }
 0x17c   : > { %3030 = vmatpush1.bf16.msra.mxu0 %v3452_v47  ;;  %3153 = vmatpush1.bf16.msra.mxu1 %v3454_v48  ;;  %v3517_v47 = vcombine.high %v926_v4, %v930_v41  ;;  %v3519_v48 = vcombine.high %v927_v42, %v931_v43 }
 0x17d   : > { %3031 = vmatprep.subr.bf16.mxu0 %v3461_v49  ;;  %3154 = vmatprep.subr.bf16.mxu1 %v3463_v50  ;;  %v934_v49 = vld [vmem:[%s4519_s28 + $0x410] sm:$0xff] }
 0x17e   : > { %v938_v50 = vld [vmem:[%s4519_s28 + $0x430] sm:$0xff] }
 0x17f   : > { %v3524_v62 = vcombine.low %v934_v49, %v938_v50 }
 0x180   : > { %3032 = vmatpush1.bf16.msra.mxu0 %v3460_v56  ;;  %3155 = vmatpush1.bf16.msra.mxu1 %v3462_v57  ;;  %v3525_v56 = vcombine.high %v934_v49, %v938_v50  ;;  %v3527_v57 = vcombine.high %v935_v51, %v939_v52 }
 0x181   : > { %3033 = vmatprep.subr.bf16.mxu0 %v3469_v58  ;;  %3156 = vmatprep.subr.bf16.mxu1 %v3471_v59  ;;  %v942_v58 = vld [vmem:[%s4519_s28 + $0x450] sm:$0xff] }
 0x182   : > { %v946_v59 = vld [vmem:[%s4519_s28 + $0x470] sm:$0xff] }
 0x183   : > { %v3532_v7 = vcombine.low %v942_v58, %v946_v59 }
 0x184   : > { %3034 = vmatpush1.bf16.msra.mxu0 %v3468_v0  ;;  %3157 = vmatpush1.bf16.msra.mxu1 %v3470_v1  ;;  %v3533_v0 = vcombine.high %v942_v58, %v946_v59  ;;  %v3535_v1 = vcombine.high %v943_v60, %v947_v61 }
 0x185   : > { %3035 = vmatprep.subr.bf16.mxu0 %v3477_v2  ;;  %3158 = vmatprep.subr.bf16.mxu1 %v3479_v3  ;;  %v950_v2 = vld [vmem:[%s4519_s28 + $0x490] sm:$0xff] }
 0x186   : > { %v954_v3 = vld [vmem:[%s4519_s28 + $0x4b0] sm:$0xff] }
 0x188   : > { %3036 = vmatpush1.bf16.msra.mxu0 %v3476_v9  ;;  %3159 = vmatpush1.bf16.msra.mxu1 %v3478_v10  ;;  %v3541_v9 = vcombine.high %v950_v2, %v954_v3  ;;  %v3543_v10 = vcombine.high %v951_v5, %v955_v6 }
 0x189   : > { %3037 = vmatprep.subr.bf16.mxu0 %v3485_v11  ;;  %3160 = vmatprep.subr.bf16.mxu1 %v3487_v38  ;;  %v958_v11 = vld [vmem:[%s4519_s28 + $0x4d0] sm:$0xff] }
 0x18a   : > { %v962_v38 = vld [vmem:[%s4519_s28 + $0x4f0] sm:$0xff] }
 0x18b   : > { %v3549_v16 = vcombine.high %v958_v11, %v962_v38  ;;  %v3548_v22 = vcombine.low %v958_v11, %v962_v38 }
 0x18c   : > { %3038 = vmatpush1.bf16.msra.mxu0 %v3484_v17  ;;  %3161 = vmatpush1.bf16.msra.mxu1 %v3486_v18  ;;  %v3551_v17 = vcombine.high %v959_v12, %v963_v13  ;;  %v966_v18 = vld [vmem:[%s4519_s28 + $0x510] sm:$0xff] }
 0x18d   : > { %3039 = vmatprep.subr.bf16.mxu0 %v3493_v19  ;;  %3162 = vmatprep.subr.bf16.mxu1 %v3495_v20  ;;  %v970_v19 = vld [vmem:[%s4519_s28 + $0x530] sm:$0xff]  ;;  %v967_v20 = vld [vmem:[%s4519_s28 + $0x518] sm:$0xff] }
 0x18e   : > { %v3557_v23 = vcombine.high %v966_v18, %v970_v19  ;;  %v3559_v26 = vcombine.high %v967_v20, %v971_v21  ;;  %v3556_v31 = vcombine.low %v966_v18, %v970_v19  ;;  %v3558_v32 = vcombine.low %v967_v20, %v971_v21 }
 0x190   : > { %3040 = vmatpush1.bf16.msra.mxu0 %v3492_v27  ;;  %3163 = vmatpush1.bf16.msra.mxu1 %v3494_v28  ;;  %v974_v27 = vld [vmem:[%s4519_s28 + $0x550] sm:$0xff] }
 0x191   : > { %3041 = vmatprep.subr.bf16.mxu0 %v3501_v29  ;;  %3164 = vmatprep.subr.bf16.mxu1 %v3503_v30  ;;  %v978_v28 = vld [vmem:[%s4519_s28 + $0x570] sm:$0xff]  ;;  %v975_v29 = vld [vmem:[%s4519_s28 + $0x558] sm:$0xff] }
 0x192   : > { %v979_v30 = vld [vmem:[%s4519_s28 + $0x578] sm:$0xff]  ;;  %v3565_v33 = vcombine.high %v974_v27, %v978_v28  ;;  %v3564_v4 = vcombine.low %v974_v27, %v978_v28 }
 0x193   : > { %v3567_v25 = vcombine.high %v975_v29, %v979_v30  ;;  %v3566_v41 = vcombine.low %v975_v29, %v979_v30 }
 0x194   : > { %3042 = vmatpush1.bf16.msra.mxu0 %v3500_v35  ;;  %3165 = vmatpush1.bf16.msra.mxu1 %v3502_v37  ;;  %v982_v35 = vld [vmem:[%s4519_s28 + $0x590] sm:$0xff] }
 0x195   : > { %3043 = vmatprep.subr.bf16.mxu0 %v3509_v39  ;;  %3166 = vmatprep.subr.bf16.mxu1 %v3511_v40  ;;  %v986_v37 = vld [vmem:[%s4519_s28 + $0x5b0] sm:$0xff]  ;;  %v983_v39 = vld [vmem:[%s4519_s28 + $0x598] sm:$0xff] }
 0x196   : > { %v987_v40 = vld [vmem:[%s4519_s28 + $0x5b8] sm:$0xff]  ;;  %v3573_v42 = vcombine.high %v982_v35, %v986_v37  ;;  %v3572_v49 = vcombine.low %v982_v35, %v986_v37 }
 0x197   : > { %v3575_v43 = vcombine.high %v983_v39, %v987_v40  ;;  %v3574_v50 = vcombine.low %v983_v39, %v987_v40 }
 0x198   : > { %3044 = vmatpush1.bf16.msra.mxu0 %v3508_v44  ;;  %3167 = vmatpush1.bf16.msra.mxu1 %v3510_v45  ;;  %v990_v44 = vld [vmem:[%s4519_s28 + $0x5d0] sm:$0xff] }
 0x199   : > { %3045 = vmatprep.subr.bf16.mxu0 %v3517_v47  ;;  %3168 = vmatprep.subr.bf16.mxu1 %v3519_v48  ;;  %v994_v45 = vld [vmem:[%s4519_s28 + $0x5f0] sm:$0xff]  ;;  %v991_v47 = vld [vmem:[%s4519_s28 + $0x5d8] sm:$0xff] }
 0x19a   : > { %v995_v48 = vld [vmem:[%s4519_s28 + $0x5f8] sm:$0xff]  ;;  %v3581_v51 = vcombine.high %v990_v44, %v994_v45  ;;  %v3580_v58 = vcombine.low %v990_v44, %v994_v45 }
 0x19b   : > { %v3583_v52 = vcombine.high %v991_v47, %v995_v48  ;;  %v3582_v59 = vcombine.low %v991_v47, %v995_v48 }
 0x19c   : > { %3046 = vmatpush1.bf16.msra.mxu0 %v3516_v53  ;;  %3169 = vmatpush1.bf16.msra.mxu1 %v3518_v55  ;;  %v998_v53 = vld [vmem:[%s4519_s28 + $0x610] sm:$0xff] }
 0x19d   : > { %3056 = vmatprep.subr.bf16.mxu0 %v3525_v56  ;;  %3179 = vmatprep.subr.bf16.mxu1 %v3527_v57  ;;  %v1002_v55 = vld [vmem:[%s4519_s28 + $0x630] sm:$0xff]  ;;  %v999_v56 = vld [vmem:[%s4519_s28 + $0x618] sm:$0xff] }
 0x19e   : > { %v1003_v57 = vld [vmem:[%s4519_s28 + $0x638] sm:$0xff]  ;;  %v3589_v60 = vcombine.high %v998_v53, %v1002_v55 }
 0x19f   : > { %3048 = vmatmul.mubr.bf16.vlgmr.msra.gmra.mrb[4].mxu0 %v4606_v24  ;;  %3171 = vmatmul.mubr.bf16.vlgmr.msra.gmra.mrb[4].mxu1 %v4606_v24  ;;  %v3540_v24 = vcombine.low %v950_v2, %v954_v3  ;;  %v3591_v61 = vcombine.high %v999_v56, %v1003_v57  ;;  %v3588_v2 = vcombine.low %v998_v53, %v1002_v55 }
 0x1a0   : > { %3057 = vmatpush1.bf16.msra.mxu0 %v3524_v62  ;;  %3180 = vmatpush1.bf16.msra.mxu1 %v3526_v63  ;;  %v1006_v62 = vld [vmem:[%s4519_s28 + $0x650] sm:$0xff]  ;;  %v3590_v3 = vcombine.low %v999_v56, %v1003_v57 }
 0x1a1   : > { %3058 = vmatprep.subr.bf16.mxu0 %v3533_v0  ;;  %3181 = vmatprep.subr.bf16.mxu1 %v3535_v1  ;;  %v1010_v63 = vld [vmem:[%s4519_s28 + $0x670] sm:$0xff]  ;;  %v1007_v0 = vld [vmem:[%s4519_s28 + $0x658] sm:$0xff] }
 0x1a2   : > { %3088 = vmatprep.mubr.bf16.mxu0 %v4614_v34  ;;  %3211 = vmatprep.mubr.bf16.mxu1 %v4614_v34  ;;  %v3550_v34 = vcombine.low %v959_v12, %v963_v13  ;;  %v1011_v1 = vld [vmem:[%s4519_s28 + $0x678] sm:$0xff]  ;;  %v3597_v5 = vcombine.high %v1006_v62, %v1010_v63  ;;  %v3596_v11 = vcombine.low %v1006_v62, %v1010_v63 }
 0x1a3   : > { %v3599_v6 = vcombine.high %v1007_v0, %v1011_v1  ;;  %v3598_v38 = vcombine.low %v1007_v0, %v1011_v1 }
 0x1a4   : > { %3059 = vmatpush1.bf16.msra.mxu0 %v3532_v7  ;;  %3182 = vmatpush1.bf16.msra.mxu1 %v3534_v8  ;;  %v1014_v7 = vld [vmem:[%s4519_s28 + $0x690] sm:$0xff] }
 0x1a5   : > { %3060 = vmatprep.subr.bf16.mxu0 %v3541_v9  ;;  %3183 = vmatprep.subr.bf16.mxu1 %v3543_v10  ;;  %v1018_v8 = vld [vmem:[%s4519_s28 + $0x6b0] sm:$0xff]  ;;  %v1015_v9 = vld [vmem:[%s4519_s28 + $0x698] sm:$0xff] }
 0x1a6   : > { %v1019_v10 = vld [vmem:[%s4519_s28 + $0x6b8] sm:$0xff]  ;;  %v3605_v12 = vcombine.high %v1014_v7, %v1018_v8  ;;  %v3604_v18 = vcombine.low %v1014_v7, %v1018_v8 }
 0x1a7   : > { %v3607_v13 = vcombine.high %v1015_v9, %v1019_v10  ;;  %v3606_v19 = vcombine.low %v1015_v9, %v1019_v10 }
 0x1a8   : > { %3061 = vmatpush1.bf16.msra.mxu0 %v3540_v24  ;;  %3184 = vmatpush1.bf16.msra.mxu1 %v3542_v15  ;;  %v1022_v24 = vld [vmem:[%s4519_s28 + $0x6d0] sm:$0xff] }
 0x1a9   : > { %3062 = vmatprep.subr.bf16.mxu0 %v3549_v16  ;;  %3185 = vmatprep.subr.bf16.mxu1 %v3551_v17  ;;  %v1026_v15 = vld [vmem:[%s4519_s28 + $0x6f0] sm:$0xff]  ;;  %v1023_v16 = vld [vmem:[%s4519_s28 + $0x6d8] sm:$0xff] }
 0x1aa   : > { %v1027_v17 = vld [vmem:[%s4519_s28 + $0x6f8] sm:$0xff]  ;;  %v3613_v20 = vcombine.high %v1022_v24, %v1026_v15  ;;  %v3612_v27 = vcombine.low %v1022_v24, %v1026_v15 }
 0x1ab   : > { %v3615_v21 = vcombine.high %v1023_v16, %v1027_v17  ;;  %v3614_v28 = vcombine.low %v1023_v16, %v1027_v17 }
 0x1ac   : > { %3063 = vmatpush1.bf16.msra.mxu0 %v3548_v22  ;;  %3186 = vmatpush1.bf16.msra.mxu1 %v3550_v34  ;;  %v1030_v22 = vld [vmem:[%s4519_s28 + $0x710] sm:$0xff] }
 0x1ad   : > { %3064 = vmatprep.subr.bf16.mxu0 %v3557_v23  ;;  %3187 = vmatprep.subr.bf16.mxu1 %v3559_v26  ;;  %v1034_v34 = vld [vmem:[%s4519_s28 + $0x730] sm:$0xff]  ;;  %v1031_v23 = vld [vmem:[%s4519_s28 + $0x718] sm:$0xff] }
 0x1ae   : > { %v1035_v26 = vld [vmem:[%s4519_s28 + $0x738] sm:$0xff]  ;;  %v3621_v29 = vcombine.high %v1030_v22, %v1034_v34  ;;  %v3620_v35 = vcombine.low %v1030_v22, %v1034_v34 }
 0x1af   : > { %v3623_v30 = vcombine.high %v1031_v23, %v1035_v26  ;;  %v3622_v37 = vcombine.low %v1031_v23, %v1035_v26  ;;  %v1094_v26 = vld [vmem:[%s4519_s28 + $0x910] sm:$0xff] }
 0x1b0   : > { %3065 = vmatpush1.bf16.msra.mxu0 %v3556_v31  ;;  %3188 = vmatpush1.bf16.msra.mxu1 %v3558_v32  ;;  %v1038_v31 = vld [vmem:[%s4519_s28 + $0x750] sm:$0xff] }
 0x1b1   : > { %3066 = vmatprep.subr.bf16.mxu0 %v3565_v33  ;;  %3189 = vmatprep.subr.bf16.mxu1 %v3567_v25  ;;  %v1042_v32 = vld [vmem:[%s4519_s28 + $0x770] sm:$0xff]  ;;  %v1039_v33 = vld [vmem:[%s4519_s28 + $0x758] sm:$0xff] }
 0x1b2   : > { %v1043_v25 = vld [vmem:[%s4519_s28 + $0x778] sm:$0xff]  ;;  %v3629_v39 = vcombine.high %v1038_v31, %v1042_v32  ;;  %v3628_v44 = vcombine.low %v1038_v31, %v1042_v32 }
 0x1b3   : > { %v3631_v40 = vcombine.high %v1039_v33, %v1043_v25  ;;  %v3630_v45 = vcombine.low %v1039_v33, %v1043_v25  ;;  %v1102_v33 = vld [vmem:[%s4519_s28 + $0x950] sm:$0xff] }
 0x1b4   : > { %3067 = vmatpush1.bf16.msra.mxu0 %v3564_v4  ;;  %3190 = vmatpush1.bf16.msra.mxu1 %v3566_v41  ;;  %v1046_v4 = vld [vmem:[%s4519_s28 + $0x790] sm:$0xff] }
 0x1b5   : > { %3068 = vmatprep.subr.bf16.mxu0 %v3573_v42  ;;  %3191 = vmatprep.subr.bf16.mxu1 %v3575_v43  ;;  %v1050_v41 = vld [vmem:[%s4519_s28 + $0x7b0] sm:$0xff]  ;;  %v1047_v42 = vld [vmem:[%s4519_s28 + $0x798] sm:$0xff] }
 0x1b6   : > { %v1051_v43 = vld [vmem:[%s4519_s28 + $0x7b8] sm:$0xff]  ;;  %v3637_v47 = vcombine.high %v1046_v4, %v1050_v41  ;;  %v3636_v53 = vcombine.low %v1046_v4, %v1050_v41  ;;  %v1106_v25 = vld [vmem:[%s4519_s28 + $0x970] sm:$0xff] }
 0x1b7   : > { %v3639_v48 = vcombine.high %v1047_v42, %v1051_v43  ;;  %v3638_v55 = vcombine.low %v1047_v42, %v1051_v43  ;;  %v3693_v4 = vcombine.high %v1102_v33, %v1106_v25  ;;  %v1110_v42 = vld [vmem:[%s4519_s28 + $0x990] sm:$0xff] }
 0x1b8   : > { %3069 = vmatpush1.bf16.msra.mxu0 %v3572_v49  ;;  %3192 = vmatpush1.bf16.msra.mxu1 %v3574_v50  ;;  %v1054_v49 = vld [vmem:[%s4519_s28 + $0x7d0] sm:$0xff] }
 0x1b9   : > { %3070 = vmatprep.subr.bf16.mxu0 %v3581_v51  ;;  %3193 = vmatprep.subr.bf16.mxu1 %v3583_v52  ;;  %v1058_v50 = vld [vmem:[%s4519_s28 + $0x7f0] sm:$0xff]  ;;  %v1055_v51 = vld [vmem:[%s4519_s28 + $0x7d8] sm:$0xff] }
 0x1ba   : > { %v1059_v52 = vld [vmem:[%s4519_s28 + $0x7f8] sm:$0xff]  ;;  %v3645_v56 = vcombine.high %v1054_v49, %v1058_v50  ;;  %v3644_v62 = vcombine.low %v1054_v49, %v1058_v50  ;;  %v1114_v43 = vld [vmem:[%s4519_s28 + $0x9b0] sm:$0xff] }
 0x1bb   : > { %v3647_v57 = vcombine.high %v1055_v51, %v1059_v52  ;;  %v3646_v63 = vcombine.low %v1055_v51, %v1059_v52  ;;  %v3701_v49 = vcombine.high %v1110_v42, %v1114_v43  ;;  %v1118_v51 = vld [vmem:[%s4519_s28 + $0x9d0] sm:$0xff] }
 0x1bc   : > { %3071 = vmatpush1.bf16.msra.mxu0 %v3580_v58  ;;  %3194 = vmatpush1.bf16.msra.mxu1 %v3582_v59  ;;  %v1062_v58 = vld [vmem:[%s4519_s28 + $0x810] sm:$0xff] }
 0x1bd   : > { %3072 = vmatprep.subr.bf16.mxu0 %v3589_v60  ;;  %3195 = vmatprep.subr.bf16.mxu1 %v3591_v61  ;;  %v1066_v59 = vld [vmem:[%s4519_s28 + $0x830] sm:$0xff]  ;;  %v1063_v60 = vld [vmem:[%s4519_s28 + $0x818] sm:$0xff] }
 0x1be   : > { %v1067_v61 = vld [vmem:[%s4519_s28 + $0x838] sm:$0xff]  ;;  %v3653_v0 = vcombine.high %v1062_v58, %v1066_v59  ;;  %v3652_v7 = vcombine.low %v1062_v58, %v1066_v59  ;;  %v1122_v52 = vld [vmem:[%s4519_s28 + $0x9f0] sm:$0xff] }
 0x1bf   : > { %v3655_v1 = vcombine.high %v1063_v60, %v1067_v61  ;;  %v3654_v8 = vcombine.low %v1063_v60, %v1067_v61  ;;  %v3709_v58 = vcombine.high %v1118_v51, %v1122_v52  ;;  %v3708_v60 = vcombine.low %v1118_v51, %v1122_v52 }
 0x1c0   : > { %3073 = vmatpush1.bf16.msra.mxu0 %v3588_v2  ;;  %3196 = vmatpush1.bf16.msra.mxu1 %v3590_v3  ;;  %v1070_v2 = vld [vmem:[%s4519_s28 + $0x850] sm:$0xff] }
 0x1c1   : > { %3074 = vmatprep.subr.bf16.mxu0 %v3597_v5  ;;  %3197 = vmatprep.subr.bf16.mxu1 %v3599_v6  ;;  %v1074_v3 = vld [vmem:[%s4519_s28 + $0x870] sm:$0xff]  ;;  %v1071_v5 = vld [vmem:[%s4519_s28 + $0x858] sm:$0xff] }
 0x1c2   : > { %v1075_v6 = vld [vmem:[%s4519_s28 + $0x878] sm:$0xff]  ;;  %v3661_v9 = vcombine.high %v1070_v2, %v1074_v3  ;;  %v3660_v24 = vcombine.low %v1070_v2, %v1074_v3 }
 0x1c3   : > { %v3663_v10 = vcombine.high %v1071_v5, %v1075_v6  ;;  %v3662_v15 = vcombine.low %v1071_v5, %v1075_v6 }
 0x1c4   : > { %3075 = vmatpush1.bf16.msra.mxu0 %v3596_v11  ;;  %3198 = vmatpush1.bf16.msra.mxu1 %v3598_v38  ;;  %v1078_v11 = vld [vmem:[%s4519_s28 + $0x890] sm:$0xff] }
 0x1c5   : > { %3076 = vmatprep.subr.bf16.mxu0 %v3605_v12  ;;  %3199 = vmatprep.subr.bf16.mxu1 %v3607_v13  ;;  %v1082_v38 = vld [vmem:[%s4519_s28 + $0x8b0] sm:$0xff]  ;;  %v1079_v12 = vld [vmem:[%s4519_s28 + $0x898] sm:$0xff] }
 0x1c6   : > { %v1083_v13 = vld [vmem:[%s4519_s28 + $0x8b8] sm:$0xff]  ;;  %v3669_v16 = vcombine.high %v1078_v11, %v1082_v38 }
 0x1c7   : > { %v3671_v17 = vcombine.high %v1079_v12, %v1083_v13  ;;  %v3670_v22 = vcombine.low %v1079_v12, %v1083_v13 }
 0x1c8   : > { %3077 = vmatpush1.bf16.msra.mxu0 %v3604_v18  ;;  %3200 = vmatpush1.bf16.msra.mxu1 %v3606_v19  ;;  %v1086_v18 = vld [vmem:[%s4519_s28 + $0x8d0] sm:$0xff] }
 0x1c9   : > { %3078 = vmatprep.subr.bf16.mxu0 %v3613_v20  ;;  %3201 = vmatprep.subr.bf16.mxu1 %v3615_v21  ;;  %v1090_v19 = vld [vmem:[%s4519_s28 + $0x8f0] sm:$0xff]  ;;  %v1087_v20 = vld [vmem:[%s4519_s28 + $0x8d8] sm:$0xff] }
 0x1ca   : > { %v1091_v21 = vld [vmem:[%s4519_s28 + $0x8f8] sm:$0xff]  ;;  %v3677_v34 = vcombine.high %v1086_v18, %v1090_v19 }
 0x1cb   : > { %v3679_v23 = vcombine.high %v1087_v20, %v1091_v21 }
 0x1cc   : > { %3079 = vmatpush1.bf16.msra.mxu0 %v3612_v27  ;;  %3202 = vmatpush1.bf16.msra.mxu1 %v3614_v28  ;;  %v1098_v27 = vld [vmem:[%s4519_s28 + $0x930] sm:$0xff]  ;;  %v1095_v28 = vld [vmem:[%s4519_s28 + $0x918] sm:$0xff] }
 0x1cd   : > { %3080 = vmatprep.subr.bf16.mxu0 %v3621_v29  ;;  %3203 = vmatprep.subr.bf16.mxu1 %v3623_v30  ;;  %v1099_v29 = vld [vmem:[%s4519_s28 + $0x938] sm:$0xff]  ;;  %v3676_v30 = vcombine.low %v1086_v18, %v1090_v19  ;;  %v3685_v31 = vcombine.high %v1094_v26, %v1098_v27 }
 0x1ce   : > { %v3687_v32 = vcombine.high %v1095_v28, %v1099_v29 }
 0x1d0   : > { %3081 = vmatpush1.bf16.msra.mxu0 %v3620_v35  ;;  %3204 = vmatpush1.bf16.msra.mxu1 %v3622_v37  ;;  %v1103_v35 = vld [vmem:[%s4519_s28 + $0x958] sm:$0xff] }
 0x1d1   : > { %3082 = vmatprep.subr.bf16.mxu0 %v3629_v39  ;;  %3205 = vmatprep.subr.bf16.mxu1 %v3631_v40  ;;  %v1107_v37 = vld [vmem:[%s4519_s28 + $0x978] sm:$0xff]  ;;  %v3684_v39 = vcombine.low %v1094_v26, %v1098_v27  ;;  %v3686_v40 = vcombine.low %v1095_v28, %v1099_v29 }
 0x1d2   : > { %v3695_v41 = vcombine.high %v1103_v35, %v1107_v37 }
 0x1d4   : > { %3083 = vmatpush1.bf16.msra.mxu0 %v3628_v44  ;;  %3206 = vmatpush1.bf16.msra.mxu1 %v3630_v45  ;;  %v1111_v44 = vld [vmem:[%s4519_s28 + $0x998] sm:$0xff] }
 0x1d5   : > { %3084 = vmatprep.subr.bf16.mxu0 %v3637_v47  ;;  %3207 = vmatprep.subr.bf16.mxu1 %v3639_v48  ;;  %v1115_v45 = vld [vmem:[%s4519_s28 + $0x9b8] sm:$0xff]  ;;  %v3692_v47 = vcombine.low %v1102_v33, %v1106_v25  ;;  %v3694_v48 = vcombine.low %v1103_v35, %v1107_v37 }
 0x1d6   : > { %v3703_v50 = vcombine.high %v1111_v44, %v1115_v45 }
 0x1d8   : > { %3085 = vmatpush1.bf16.msra.mxu0 %v3636_v53  ;;  %3208 = vmatpush1.bf16.msra.mxu1 %v3638_v55  ;;  %v1119_v53 = vld [vmem:[%s4519_s28 + $0x9d8] sm:$0xff] }
 0x1d9   : > { %3086 = vmatprep.subr.bf16.mxu0 %v3645_v56  ;;  %3209 = vmatprep.subr.bf16.mxu1 %v3647_v57  ;;  %v1123_v55 = vld [vmem:[%s4519_s28 + $0x9f8] sm:$0xff]  ;;  %v3700_v56 = vcombine.low %v1110_v42, %v1114_v43  ;;  %v3702_v57 = vcombine.low %v1111_v44, %v1115_v45 }
 0x1da   : > { %v3711_v59 = vcombine.high %v1119_v53, %v1123_v55  ;;  %v3710_v61 = vcombine.low %v1119_v53, %v1123_v55 }
 0x1dc   : > { %3087 = vmatpush1.bf16.msra.mxu0 %v3644_v62  ;;  %3210 = vmatpush1.bf16.msra.mxu1 %v3646_v63 }
 0x1dd   : > { %3097 = vmatprep.subr.bf16.mxu0 %v3653_v0  ;;  %3220 = vmatprep.subr.bf16.mxu1 %v3655_v1 }
 0x1df   : > { %3089 = vmatmul.mubr.bf16.vlgmr.msra.gmra.mrb[4].mxu0 %v4682_v36  ;;  %3212 = vmatmul.mubr.bf16.vlgmr.msra.gmra.mrb[4].mxu1 %v4682_v36  ;;  %v3668_v36 = vcombine.low %v1078_v11, %v1082_v38 }
 0x1e0   : > { %3098 = vmatpush1.bf16.msra.mxu0 %v3652_v7  ;;  %3221 = vmatpush1.bf16.msra.mxu1 %v3654_v8 }
 0x1e1   : > { %3099 = vmatprep.subr.bf16.mxu0 %v3661_v9  ;;  %3222 = vmatprep.subr.bf16.mxu1 %v3663_v10 }
 0x1e2   : > { %3129 = vmatprep.mubr.bf16.mxu0 %v3817_v54  ;;  %3252 = vmatprep.mubr.bf16.mxu1 %v3817_v54  ;;  %v3678_v54 = vcombine.low %v1087_v20, %v1091_v21 }
 0x1e4   : > { %3100 = vmatpush1.bf16.msra.mxu0 %v3660_v24  ;;  %3223 = vmatpush1.bf16.msra.mxu1 %v3662_v15 }
 0x1e5   : > { %3101 = vmatprep.subr.bf16.mxu0 %v3669_v16  ;;  %3224 = vmatprep.subr.bf16.mxu1 %v3671_v17 }
 0x1e8   : > { %3102 = vmatpush1.bf16.msra.mxu0 %v3668_v36  ;;  %3225 = vmatpush1.bf16.msra.mxu1 %v3670_v22 }
 0x1e9   : > { %3103 = vmatprep.subr.bf16.mxu0 %v3677_v34  ;;  %3226 = vmatprep.subr.bf16.mxu1 %v3679_v23 }
 0x1ec   : > { %3104 = vmatpush1.bf16.msra.mxu0 %v3676_v30  ;;  %3227 = vmatpush1.bf16.msra.mxu1 %v3678_v54 }
 0x1ed   : > { %3105 = vmatprep.subr.bf16.mxu0 %v3685_v31  ;;  %3228 = vmatprep.subr.bf16.mxu1 %v3687_v32 }
 0x1f0   : > { %3106 = vmatpush1.bf16.msra.mxu0 %v3684_v39  ;;  %3229 = vmatpush1.bf16.msra.mxu1 %v3686_v40 }
 0x1f1   : > { %3107 = vmatprep.subr.bf16.mxu0 %v3693_v4  ;;  %3230 = vmatprep.subr.bf16.mxu1 %v3695_v41 }
 0x1f4   : > { %3108 = vmatpush1.bf16.msra.mxu0 %v3692_v47  ;;  %3231 = vmatpush1.bf16.msra.mxu1 %v3694_v48 }
 0x1f5   : > { %3109 = vmatprep.subr.bf16.mxu0 %v3701_v49  ;;  %3232 = vmatprep.subr.bf16.mxu1 %v3703_v50 }
 0x1f8   : > { %3110 = vmatpush1.bf16.msra.mxu0 %v3700_v56  ;;  %3233 = vmatpush1.bf16.msra.mxu1 %v3702_v57 }
 0x1f9   : > { %3111 = vmatprep.subr.bf16.mxu0 %v3709_v58  ;;  %3234 = vmatprep.subr.bf16.mxu1 %v3711_v59 }
 0x1fc   : > { %3112 = vmatpush1.bf16.msra.mxu0 %v3708_v60  ;;  %3235 = vmatpush1.bf16.msra.mxu1 %v3710_v61 }
 0x1ff   : > { %3130 = vmatmul.mubr.bf16.vlgmr.msra.gmra.mrb[4].mxu0 %v4724_v46  ;;  %3253 = vmatmul.mubr.bf16.vlgmr.msra.gmra.mrb[4].mxu1 %v4724_v46 }
 0x232   : > { %v2885_v62 = vpop.f32.mrb[0].mxu0  ;;  %v3008_v63 = vpop.f32.mrb[0].mxu1 }
 0x233   : > { %3776 = vtanh.f32 %v2885_v62  ;;  %v2887_v0 = vpop.f32.mrb[1].mxu0  ;;  %v3010_v1 = vpop.f32.mrb[1].mxu1 }
 0x234   : > { %3778 = vtanh.f32 %v3008_v63  ;;  %v2889_v2 = vpop.f32.mrb[2].mxu0  ;;  %v3012_v3 = vpop.f32.mrb[2].mxu1 }
 0x235   : > { %3780 = vtanh.f32 %v2887_v0  ;;  %v2890_v5 = vpop.f32.mrb[3].mxu0  ;;  %v3013_v6 = vpop.f32.mrb[3].mxu1 }
 0x236   : > { %3782 = vtanh.f32 %v3010_v1 }
 0x23d   : > { %v3777_v7 = vpop.eup %3776 }
 0x23e   : > { %v3779_v8 = vpop.eup %3778 }
 0x23f   : > { %v3781_v9 = vpop.eup %3780 }
 0x240   : > { %v3783_v10 = vpop.eup %3782  ;;  %v3277_v11 = vcombine.low %v3777_v7, %v3781_v9 }
 0x241   : > { %v3278_v38 = vcombine.low %v3779_v8, %v3783_v10 }
 0x242   : > { %v3287_v46 = vrot.slane %v3277_v11, %v4527_v14 }
 0x243   : > { %v3294_v12 = vrot.slane %v3278_v38, %v4527_v14 }
 0x245   : > { %v3309_v13 = vcombine.low %v3287_v46, %v3294_v12 }
 0x247   : > { %v3317_v54 = vrot.slane %v3309_v13, %v4527_v14 }
 0x2d2   : > { %v3131_v24 = vpop.f32.mrb[4].mxu0  ;;  %v3254_v15 = vpop.f32.mrb[4].mxu1 }
 0x2d3   : > { %3784 = vtanh.f32 %v3131_v24  ;;  %v3133_v16 = vpop.f32.mrb[5].mxu0  ;;  %v3256_v17 = vpop.f32.mrb[5].mxu1 }
 0x2d4   : > { %3786 = vtanh.f32 %v3254_v15  ;;  %v3135_v18 = vpop.f32.mrb[6].mxu0  ;;  %v3258_v19 = vpop.f32.mrb[6].mxu1 }
 0x2d5   : > { %3788 = vtanh.f32 %v3133_v16  ;;  %v3136_v20 = vpop.f32.mrb[7].mxu0  ;;  %v3259_v21 = vpop.f32.mrb[7].mxu1 }
 0x2d6   : > { %3790 = vtanh.f32 %v3256_v17 }
 0x2dd   : > { %v3785_v36 = vpop.eup %3784 }
 0x2de   : > { %v3787_v22 = vpop.eup %3786 }
 0x2df   : > { %v3789_v34 = vpop.eup %3788 }
 0x2e0   : > { %v3791_v23 = vpop.eup %3790  ;;  %v3279_v26 = vcombine.low %v3785_v36, %v3789_v34 }
 0x2e1   : > { %v3280_v27 = vcombine.low %v3787_v22, %v3791_v23 }
 0x2e2   : > { %v3301_v28 = vrot.slane %v3279_v26, %v4527_v14 }
 0x2e3   : > { %v3308_v29 = vrot.slane %v3280_v27, %v4527_v14 }
 0x2e5   : > { %v3310_v30 = vcombine.low %v3301_v28, %v3308_v29 }
 0x2e7   : > { %v3324_v31 = vrot.slane %v3310_v30, %v4527_v14 }
 0x2e9   : > { %v3325_v32 = vcombine.low %v3317_v54, %v3324_v31 }
 0x2eb   : > { %3327 = vst [vmem:[%s800_s4] sm:$0xff] %v3325_v32 }
 0x2ec PF: > { %p9_p9 = scmp.ge.s32.totalorder %s3850_s13, 4   ;;  %s4918_s9 = smov %s3810_s10 }
 0x2ed   : > { %s4919_s10 = smov %s3859_s16  ;;  %s4920_s11 = smov %s3850_s13 }
 0x2ee   :  { %11 = sbr.rel (!%p9_p9) target bundleno = 2 (0x2), region = 86 }

</bundles_post_ra>
